<compile_context>
chip_gen: v7x
topology: tpu7x:2x2x1
jax: 0.10.0
libtpu: 0.0.40
codegen_flags: <defaults>
</compile_context>

<pallas_src>
import numpy as np
import jax
import jax.numpy as jnp
from jax.experimental import pallas as pl
from jax.experimental.pallas import tpu as pltpu

# ---------------- model hyper-parameters (small, forward-consistent) --------
B = 2                  # batch
C = 4                  # in_chans
H = W = 16             # img_size
P = 4                  # patch_size
GH, GW = H // P, W // P
L = GH * GW            # num_patches (16)
BL = B * L             # batch folded into rows (32)
PATCH_DIM = C * P * P  # 64
EMBED = 32             # embed_dim
DEPTH = 2              # encoder depth
HEADS = 4              # num_heads
MLP_RATIO = 4.0
DEC_EMBED = 32         # decoder_embed_dim
DEC_DEPTH = 1          # decoder_depth
DEC_HEADS = 4          # decoder_num_heads
MLP_RATIO_DEC = 4.0
TIME_STEPS = 100
EPS = 1e-6             # LayerNorm eps (partial(nn.LayerNorm, eps=1e-6))
LANES = 128

_BLOCK_CFGS = ([(f"e{i}_", EMBED, HEADS, MLP_RATIO) for i in range(DEPTH)]
               + [(f"d{i}_", DEC_EMBED, DEC_HEADS, MLP_RATIO_DEC)
                  for i in range(DEC_DEPTH)])
_ENC_PREFIXES = [f"e{i}_" for i in range(DEPTH)]
_DEC_PREFIXES = [f"d{i}_" for i in range(DEC_DEPTH)]


# ----------------------------- slab layouts ----------------------------------
def _block_mat_entries(g, dim, heads, mlp_ratio):
    dh = dim // heads
    hid = int(dim * mlp_ratio)
    return [(g + "wq", heads * dim, dh), (g + "wk", heads * dim, dh),
            (g + "wv", heads * dim, dh), (g + "wo", dim, dim),
            (g + "w1", dim, hid), (g + "w2", hid, dim)]


def _block_vec_entries(g, dim, heads, mlp_ratio):
    dh = dim // heads
    hid = int(dim * mlp_ratio)
    return [(g + "n1g", 1, dim), (g + "n1b", 1, dim),
            (g + "bq", heads, dh), (g + "bk", heads, dh), (g + "bv", heads, dh),
            (g + "bo", 1, dim),
            (g + "n2g", 1, dim), (g + "n2b", 1, dim),
            (g + "b1", 1, hid), (g + "b2", 1, dim)]


def _mat_entries():
    e = [("patch_w", PATCH_DIM, EMBED), ("time_w", EMBED, EMBED)]
    for g, dim, heads, mr in _BLOCK_CFGS:
        e += _block_mat_entries(g, dim, heads, mr)
    e += [("dec_embed_w", EMBED, DEC_EMBED), ("dec_pred_w", DEC_EMBED, PATCH_DIM)]
    return e


def _vec_entries():
    e = [("pos_embed", BL, EMBED), ("time_b", 1, EMBED),
         ("norm_g", 1, EMBED), ("norm_b", 1, EMBED),
         ("dec_pos", BL, DEC_EMBED),
         ("dec_norm_g", 1, DEC_EMBED), ("dec_norm_b", 1, DEC_EMBED),
         ("dec_pred_b", 1, PATCH_DIM)]
    for g, dim, heads, mr in _BLOCK_CFGS:
        e += _block_vec_entries(g, dim, heads, mr)
    return e


def _layout(entries, row_align):
    idx, off = {}, 0
    for name, r, c in entries:
        assert c <= LANES
        idx[name] = (off, r, c)
        off += ((r + row_align - 1) // row_align) * row_align
    total = ((off + row_align - 1) // row_align) * row_align
    return idx, total


_MAT_IDX, _MAT_ROWS = _layout(_mat_entries(), 16)   # bf16 slab: 16-row tiles
_VEC_IDX, _VEC_ROWS = _layout(_vec_entries(), 8)    # f32  slab:  8-row tiles


# ------------------------- in-kernel building blocks -------------------------
def _layernorm(x, g, b):
    mu = jnp.mean(x, axis=-1, keepdims=True)
    var = jnp.mean((x - mu) ** 2, axis=-1, keepdims=True)
    return (x - mu) * jax.lax.rsqrt(var + EPS) * g + b


def _gelu_tanh(y):
    # TODO(synk): nn.GELU default is exact (erf); tanh approximation used here
    # for guaranteed Mosaic lowering (max abs deviation ~1e-3).
    return 0.5 * y * (1.0 + jnp.tanh(0.7978845608028654 *
                                     (y + 0.044715 * y * y * y)))


# ------------------------------ fused kernel ---------------------------------
def _fused_forward_kernel(xp_ref, temb_ref, wmat_ref, wvec_ref, out_ref):
    f32, bf16 = jnp.float32, jnp.bfloat16

    def M(name, r0=0, nrows=None):          # bf16 matmul weight (static slice)
        off, r, c = _MAT_IDX[name]
        n = r if nrows is None else nrows
        return wmat_ref[off + r0: off + r0 + n, :c]

    def V(name):                             # f32 bias / LN / pos-embed
        off, r, c = _VEC_IDX[name]
        return wvec_ref[off: off + r, :c]

    # ---- patch embed (Conv2d k=s=P as matmul); pos_embed (+patch bias) ----
    x = jnp.dot(xp_ref[...].astype(bf16), M("patch_w"),
                preferred_element_type=f32) + V("pos_embed")          # (BL, D)

    # ---- temporal embedding: Linear + SiLU, broadcast per sample ----
    te = jnp.dot(temb_ref[...].astype(bf16), M("time_w"),
                 preferred_element_type=f32) + V("time_b")            # (B, D)
    te = te * jax.nn.sigmoid(te)                                      # SiLU
    x = x + jnp.concatenate(
        [jnp.broadcast_to(te[b:b + 1, :], (L, EMBED)) for b in range(B)], axis=0)

    # ---- timm pre-norm transformer block (no layer-scale, eval) ----
    def block(x, g, dim, heads):
        # attention
        xn = _layernorm(x, V(g + "n1g"), V(g + "n1b")).astype(bf16)
        bq, bk, bv = V(g + "bq"), V(g + "bk"), V(g + "bv")            # (H, dh)
        qs, ks, vs = [], [], []
        for h in range(heads):                   # per-head weights start at lane 0
            r0 = h * dim
            qs.append((jnp.dot(xn, M(g + "wq", r0, dim), preferred_element_type=f32)
                       + bq[h:h + 1, :]).astype(bf16))                # scale pre-folded
            ks.append((jnp.dot(xn, M(g + "wk", r0, dim), preferred_element_type=f32)
                       + bk[h:h + 1, :]).astype(bf16))
            vs.append((jnp.dot(xn, M(g + "wv", r0, dim), preferred_element_type=f32)
                       + bv[h:h + 1, :]).astype(bf16))
        samples = []
        for b in range(B):                       # static per-sample loop
            rows = slice(b * L, (b + 1) * L)
            heads_out = []
            for h in range(heads):
                s = jax.lax.dot_general(qs[h][rows], ks[h][rows],
                                        (((1,), (1,)), ((), ())),
                                        preferred_element_type=f32)   # (L, L)
                s = s - jnp.max(s, axis=-1, keepdims=True)
                e = jnp.exp(s)
                p = (e / jnp.sum(e, axis=-1, keepdims=True)).astype(bf16)
                heads_out.append(jnp.dot(p, vs[h][rows],
                                         preferred_element_type=f32).astype(bf16))
            samples.append(jnp.concatenate(heads_out, axis=1))        # (L, dim)
        attn = jnp.concatenate(samples, axis=0)                       # (BL, dim)
        x = x + jnp.dot(attn, M(g + "wo"), preferred_element_type=f32) + V(g + "bo")

        # mlp
        xn = _layernorm(x, V(g + "n2g"), V(g + "n2b")).astype(bf16)
        h1 = _gelu_tanh(jnp.dot(xn, M(g + "w1"), preferred_element_type=f32)
                        + V(g + "b1")).astype(bf16)
        return x + jnp.dot(h1, M(g + "w2"), preferred_element_type=f32) + V(g + "b2")

    # ---- encoder ----
    for g in _ENC_PREFIXES:
        x = block(x, g, EMBED, HEADS)
    x = _layernorm(x, V("norm_g"), V("norm_b"))

    # ---- decoder head (pool with 0 prefix tokens is identity) ----
    y = jnp.dot(x.astype(bf16), M("dec_embed_w"),
                preferred_element_type=f32) + V("dec_pos")   # dec-embed bias folded
    for g in _DEC_PREFIXES:
        y = block(y, g, DEC_EMBED, DEC_HEADS)
    y = _layernorm(y, V("dec_norm_g"), V("dec_norm_b"))
    out_ref[...] = jnp.dot(y.astype(bf16), M("dec_pred_w"),
                           preferred_element_type=f32) + V("dec_pred_b")


# ------------------------- deterministic parameters --------------------------
def _sincos_1d(embed_dim, pos):
    omega = np.arange(embed_dim // 2, dtype=np.float64)
    omega /= embed_dim / 2.0
    omega = 1.0 / 10000 ** omega
    out = np.einsum("m,d->md", pos.reshape(-1).astype(np.float64), omega)
    return np.concatenate([np.sin(out), np.cos(out)], axis=1)


def _sincos_2d(embed_dim, gh, gw):
    gw_m, gh_m = np.meshgrid(np.arange(gw, dtype=np.float64),
                             np.arange(gh, dtype=np.float64))
    emb_h = _sincos_1d(embed_dim // 2, gh_m)
    emb_w = _sincos_1d(embed_dim // 2, gw_m)
    return np.concatenate([emb_h, emb_w], axis=1).astype(np.float32)  # (gh*gw, D)


def _sinusoidal_time_table(time_steps, dim):
    # TODO(synk): SinusoidalEmbeddings source not provided; standard diffusion
    # sinusoidal timestep table assumed.
    pos = np.arange(time_steps, dtype=np.float64)[:, None]
    div = np.exp(np.arange(0, dim, 2, dtype=np.float64) * -(np.log(10000.0) / dim))
    tab = np.zeros((time_steps, dim), dtype=np.float64)
    tab[:, 0::2] = np.sin(pos * div)
    tab[:, 1::2] = np.cos(pos * div)
    return tab.astype(np.float32)


def make_slabs(key):
    """Build the two packed weight slabs (+ time table) from random params."""
    f32 = np.float32
    kit = iter(jax.random.split(key, 64))

    def nrm(shape):
        return np.asarray(0.02 * jax.random.normal(next(kit), shape), dtype=f32)

    mats, vecs = {}, {}

    # top-level: patch embed, pos embeds (biases folded), time MLP, norms, heads
    mats["patch_w"] = nrm((PATCH_DIM, EMBED))
    patch_b = np.zeros((1, EMBED), f32)                       # timm init -> zeros
    vecs["pos_embed"] = np.tile(_sincos_2d(EMBED, GH, GW), (B, 1)) + patch_b
    # TODO(synk): EmbeddingDenseLayer source not provided; assumed
    # Linear(embed,embed) + SiLU (+ Dropout(0.5), inactive at eval).
    mats["time_w"] = nrm((EMBED, EMBED))
    vecs["time_b"] = np.zeros((1, EMBED), f32)
    vecs["norm_g"] = np.ones((1, EMBED), f32)
    vecs["norm_b"] = np.zeros((1, EMBED), f32)
    mats["dec_embed_w"] = nrm((EMBED, DEC_EMBED))
    vecs["dec_pos"] = (np.tile(_sincos_2d(DEC_EMBED, GH, GW), (B, 1))
                       + np.zeros((1, DEC_EMBED), f32))       # dec-embed bias folded
    vecs["dec_norm_g"] = np.ones((1, DEC_EMBED), f32)
    vecs["dec_norm_b"] = np.zeros((1, DEC_EMBED), f32)
    mats["dec_pred_w"] = nrm((DEC_EMBED, PATCH_DIM))
    vecs["dec_pred_b"] = np.zeros((1, PATCH_DIM), f32)

    # transformer blocks (encoder + decoder share the structure)
    for g, dim, heads, mr in _BLOCK_CFGS:
        dh = dim // heads
        hid = int(dim * mr)
        scale = dh ** -0.5
        wq, wk, wv = nrm((dim, dim)) * scale, nrm((dim, dim)), nrm((dim, dim))
        qb = np.zeros((dim,), f32) * scale                    # scale folded into q
        kb = np.zeros((dim,), f32)
        vb = np.zeros((dim,), f32)
        # per-head sublane-stacked weights: head h occupies rows [h*dim:(h+1)*dim]
        mats[g + "wq"] = np.concatenate([wq[:, h * dh:(h + 1) * dh] for h in range(heads)], 0)
        mats[g + "wk"] = np.concatenate([wk[:, h * dh:(h + 1) * dh] for h in range(heads)], 0)
        mats[g + "wv"] = np.concatenate([wv[:, h * dh:(h + 1) * dh] for h in range(heads)], 0)
        vecs[g + "bq"] = qb.reshape(heads, dh)
        vecs[g + "bk"] = kb.reshape(heads, dh)
        vecs[g + "bv"] = vb.reshape(heads, dh)
        mats[g + "wo"] = nrm((dim, dim))
        vecs[g + "bo"] = np.zeros((1, dim), f32)
        vecs[g + "n1g"] = np.ones((1, dim), f32)
        vecs[g + "n1b"] = np.zeros((1, dim), f32)
        vecs[g + "n2g"] = np.ones((1, dim), f32)
        vecs[g + "n2b"] = np.zeros((1, dim), f32)
        mats[g + "w1"] = nrm((dim, hid))
        vecs[g + "b1"] = np.zeros((1, hid), f32)
        mats[g + "w2"] = nrm((hid, dim))
        vecs[g + "b2"] = np.zeros((1, dim), f32)

    wmat = np.zeros((_MAT_ROWS, LANES), f32)
    for name, (off, r, c) in _MAT_IDX.items():
        a = mats[name]
        assert a.shape == (r, c), (name, a.shape, (r, c))
        wmat[off:off + r, :c] = a
    wvec = np.zeros((_VEC_ROWS, LANES), f32)
    for name, (off, r, c) in _VEC_IDX.items():
        a = vecs[name]
        assert a.shape == (r, c), (name, a.shape, (r, c))
        wvec[off:off + r, :c] = a

    return (jnp.asarray(wmat).astype(jnp.bfloat16),   # bf16 matmul-weight slab
            jnp.asarray(wvec),                        # f32 bias / pos-embed slab
            jnp.asarray(_sinusoidal_time_table(TIME_STEPS, EMBED)))


# -------------------------------- forward ------------------------------------
def forward(wmat, wvec, time_table, x_img, t):
    """x_img: (B, C, H, W) float32, t: (B,) int32 -> (B, L, PATCH_DIM) float32."""
    # Patch extraction ((c, ph, pw) flattening, matching Conv2d weight layout)
    # and timestep-table gather are tiny XLA glue ops feeding the fused kernel.
    xp = x_img.reshape(B, C, GH, P, GW, P)
    xp = xp.transpose(0, 2, 4, 1, 3, 5).reshape(BL, PATCH_DIM)
    temb = time_table[t]                                   # (B, EMBED)

    vmem = pl.BlockSpec(memory_space=pltpu.MemorySpace.VMEM)
    out = pl.pallas_call(
        _fused_forward_kernel,
        out_shape=jax.ShapeDtypeStruct((BL, PATCH_DIM), jnp.float32),
        in_specs=[vmem, vmem, vmem, vmem],
        out_specs=vmem,
    )(xp, temb, wmat, wvec)
    return out.reshape(B, L, PATCH_DIM)


# --------------------------------- main ---------------------------------------
if __name__ == "__main__":
    root = jax.random.PRNGKey(0)
    k_params, k_x = jax.random.split(root)
    wmat, wvec, time_table = make_slabs(k_params)

    x = jax.random.normal(k_x, (B, C, H, W), dtype=jnp.float32)
    t = jnp.array([3, 17], dtype=jnp.int32)

    out = jax.jit(forward)(wmat, wvec, time_table, x, t)
    out = jax.block_until_ready(out)

    assert out.shape == (B, L, PATCH_DIM), out.shape
    assert out.dtype == jnp.float32
    assert bool(jnp.all(jnp.isfinite(out)))
    print("KERNEL_OK")
</pallas_src>

<mosaic_0001>
module attributes {stable_mosaic.version = 11 : i64} {
  func.func @_fused_forward_kernel(%arg0: memref<32x64xf32, #tpu.memory_space<vmem>>, %arg1: memref<2x32xf32, #tpu.memory_space<vmem>>, %arg2: memref<1888x128xbf16, #tpu.memory_space<vmem>>, %arg3: memref<352x128xf32, #tpu.memory_space<vmem>>, %arg4: memref<32x64xf32, #tpu.memory_space<vmem>>) attributes {dimension_semantics = [], scalar_prefetch = 0 : i64, scratch_operands = 0 : i64, tpu.core_type = #tpu.core_type<tc>} {
    %c0 = arith.constant 0 : index
    %c0_0 = arith.constant 0 : index
    %0 = vector.load %arg0[%c0, %c0_0] : memref<32x64xf32, #tpu.memory_space<vmem>>, vector<32x64xf32>
    %1 = arith.truncf %0 : vector<32x64xf32> to vector<32x64xbf16>
    %c0_1 = arith.constant 0 : index
    %c0_2 = arith.constant 0 : index
    %2 = vector.load %arg2[%c0_1, %c0_2] : memref<1888x128xbf16, #tpu.memory_space<vmem>>, vector<64x32xbf16>
    %cst = arith.constant dense<0.000000e+00> : vector<32x32xf32>
    %3 = tpu.matmul %1, %2, %cst {dimension_numbers = #tpu.dot_dimension_numbers<[1], [0], [0], [1], [0, 0, 1, 1], [], []>} : vector<32x64xbf16>, vector<64x32xbf16>, vector<32x32xf32> -> vector<32x32xf32>
    %c0_3 = arith.constant 0 : index
    %c0_4 = arith.constant 0 : index
    %4 = vector.load %arg3[%c0_3, %c0_4] : memref<352x128xf32, #tpu.memory_space<vmem>>, vector<32x32xf32>
    %5 = arith.addf %3, %4 : vector<32x32xf32>
    %c0_5 = arith.constant 0 : index
    %c0_6 = arith.constant 0 : index
    %6 = vector.load %arg1[%c0_5, %c0_6] : memref<2x32xf32, #tpu.memory_space<vmem>>, vector<2x32xf32>
    %7 = arith.truncf %6 : vector<2x32xf32> to vector<2x32xbf16>
    %c64 = arith.constant 64 : index
    %c0_7 = arith.constant 0 : index
    %8 = vector.load %arg2[%c64, %c0_7] : memref<1888x128xbf16, #tpu.memory_space<vmem>>, vector<32x32xbf16>
    %cst_8 = arith.constant dense<0.000000e+00> : vector<2x32xf32>
    %9 = tpu.matmul %7, %8, %cst_8 {dimension_numbers = #tpu.dot_dimension_numbers<[1], [0], [0], [1], [0, 0, 1, 1], [], []>} : vector<2x32xbf16>, vector<32x32xbf16>, vector<2x32xf32> -> vector<2x32xf32>
    %c32 = arith.constant 32 : index
    %c0_9 = arith.constant 0 : index
    %10 = vector.load %arg3[%c32, %c0_9] : memref<352x128xf32, #tpu.memory_space<vmem>>, vector<1x32xf32>
    %11 = vector.broadcast %10 : vector<1x32xf32> to vector<2x32xf32>
    %12 = arith.addf %9, %11 : vector<2x32xf32>
    %13 = arith.negf %12 : vector<2x32xf32>
    %14 = math.exp %13 : vector<2x32xf32>
    %cst_10 = arith.constant 1.000000e+00 : f32
    %15 = vector.broadcast %cst_10 : f32 to vector<2x32xf32>
    %16 = arith.addf %15, %14 : vector<2x32xf32>
    %17 = arith.divf %15, %16 : vector<2x32xf32>
    %18 = arith.mulf %12, %17 : vector<2x32xf32>
    %19 = vector.extract_strided_slice %18 {offsets = [0, 0], sizes = [1, 32], strides = [1, 1]} : vector<2x32xf32> to vector<1x32xf32>
    %20 = vector.shape_cast %19 : vector<1x32xf32> to vector<1x32xf32>
    %21 = vector.broadcast %20 : vector<1x32xf32> to vector<16x32xf32>
    %22 = vector.extract_strided_slice %18 {offsets = [1, 0], sizes = [1, 32], strides = [1, 1]} : vector<2x32xf32> to vector<1x32xf32>
    %23 = vector.shape_cast %22 : vector<1x32xf32> to vector<1x32xf32>
    %24 = vector.broadcast %23 : vector<1x32xf32> to vector<16x32xf32>
    %25 = tpu.concatenate %21, %24 in 0 : vector<16x32xf32>, vector<16x32xf32> -> vector<32x32xf32>
    %26 = arith.addf %5, %25 : vector<32x32xf32>
    %c112 = arith.constant 112 : index
    %c0_11 = arith.constant 0 : index
    %27 = vector.load %arg3[%c112, %c0_11] : memref<352x128xf32, #tpu.memory_space<vmem>>, vector<1x32xf32>
    %c120 = arith.constant 120 : index
    %c0_12 = arith.constant 0 : index
    %28 = vector.load %arg3[%c120, %c0_12] : memref<352x128xf32, #tpu.memory_space<vmem>>, vector<1x32xf32>
    %cst_13 = arith.constant dense<0.000000e+00> : vector<32xf32>
    %29 = vector.multi_reduction <add>, %26, %cst_13 [1] : vector<32x32xf32> to vector<32xf32>
    %30 = vector.shape_cast %29 : vector<32xf32> to vector<32x1xf32>
    %cst_14 = arith.constant 3.200000e+01 : f32
    %31 = vector.broadcast %cst_14 : f32 to vector<32x1xf32>
    %32 = arith.divf %30, %31 : vector<32x1xf32>
    %33 = vector.broadcast %32 : vector<32x1xf32> to vector<32x32xf32>
    %34 = arith.subf %26, %33 : vector<32x32xf32>
    %35 = arith.mulf %34, %34 : vector<32x32xf32>
    %cst_15 = arith.constant dense<0.000000e+00> : vector<32xf32>
    %36 = vector.multi_reduction <add>, %35, %cst_15 [1] : vector<32x32xf32> to vector<32xf32>
    %37 = vector.shape_cast %36 : vector<32xf32> to vector<32x1xf32>
    %cst_16 = arith.constant 3.200000e+01 : f32
    %38 = vector.broadcast %cst_16 : f32 to vector<32x1xf32>
    %39 = arith.divf %37, %38 : vector<32x1xf32>
    %40 = vector.broadcast %32 : vector<32x1xf32> to vector<32x32xf32>
    %41 = arith.subf %26, %40 : vector<32x32xf32>
    %cst_17 = arith.constant 9.99999997E-7 : f32
    %42 = vector.broadcast %cst_17 : f32 to vector<32x1xf32>
    %43 = arith.addf %39, %42 : vector<32x1xf32>
    %44 = math.rsqrt %43 : vector<32x1xf32>
    %45 = vector.broadcast %44 : vector<32x1xf32> to vector<32x32xf32>
    %46 = arith.mulf %41, %45 : vector<32x32xf32>
    %47 = vector.broadcast %27 : vector<1x32xf32> to vector<32x32xf32>
    %48 = arith.mulf %46, %47 : vector<32x32xf32>
    %49 = vector.broadcast %28 : vector<1x32xf32> to vector<32x32xf32>
    %50 = arith.addf %48, %49 : vector<32x32xf32>
    %51 = arith.truncf %50 : vector<32x32xf32> to vector<32x32xbf16>
    %c128 = arith.constant 128 : index
    %c0_18 = arith.constant 0 : index
    %52 = vector.load %arg3[%c128, %c0_18] : memref<352x128xf32, #tpu.memory_space<vmem>>, vector<4x8xf32>
    %c136 = arith.constant 136 : index
    %c0_19 = arith.constant 0 : index
    %53 = vector.load %arg3[%c136, %c0_19] : memref<352x128xf32, #tpu.memory_space<vmem>>, vector<4x8xf32>
    %c144 = arith.constant 144 : index
    %c0_20 = arith.constant 0 : index
    %54 = vector.load %arg3[%c144, %c0_20] : memref<352x128xf32, #tpu.memory_space<vmem>>, vector<4x8xf32>
    %c96 = arith.constant 96 : index
    %c0_21 = arith.constant 0 : index
    %55 = vector.load %arg2[%c96, %c0_21] : memref<1888x128xbf16, #tpu.memory_space<vmem>>, vector<32x8xbf16>
    %cst_22 = arith.constant dense<0.000000e+00> : vector<32x8xf32>
    %56 = tpu.matmul %51, %55, %cst_22 {dimension_numbers = #tpu.dot_dimension_numbers<[1], [0], [0], [1], [0, 0, 1, 1], [], []>} : vector<32x32xbf16>, vector<32x8xbf16>, vector<32x8xf32> -> vector<32x8xf32>
    %57 = vector.extract_strided_slice %52 {offsets = [0, 0], sizes = [1, 8], strides = [1, 1]} : vector<4x8xf32> to vector<1x8xf32>
    %58 = vector.broadcast %57 : vector<1x8xf32> to vector<32x8xf32>
    %59 = arith.addf %56, %58 : vector<32x8xf32>
    %60 = arith.truncf %59 : vector<32x8xf32> to vector<32x8xbf16>
    %c224 = arith.constant 224 : index
    %c0_23 = arith.constant 0 : index
    %61 = vector.load %arg2[%c224, %c0_23] : memref<1888x128xbf16, #tpu.memory_space<vmem>>, vector<32x8xbf16>
    %cst_24 = arith.constant dense<0.000000e+00> : vector<32x8xf32>
    %62 = tpu.matmul %51, %61, %cst_24 {dimension_numbers = #tpu.dot_dimension_numbers<[1], [0], [0], [1], [0, 0, 1, 1], [], []>} : vector<32x32xbf16>, vector<32x8xbf16>, vector<32x8xf32> -> vector<32x8xf32>
    %63 = vector.extract_strided_slice %53 {offsets = [0, 0], sizes = [1, 8], strides = [1, 1]} : vector<4x8xf32> to vector<1x8xf32>
    %64 = vector.broadcast %63 : vector<1x8xf32> to vector<32x8xf32>
    %65 = arith.addf %62, %64 : vector<32x8xf32>
    %66 = arith.truncf %65 : vector<32x8xf32> to vector<32x8xbf16>
    %c352 = arith.constant 352 : index
    %c0_25 = arith.constant 0 : index
    %67 = vector.load %arg2[%c352, %c0_25] : memref<1888x128xbf16, #tpu.memory_space<vmem>>, vector<32x8xbf16>
    %cst_26 = arith.constant dense<0.000000e+00> : vector<32x8xf32>
    %68 = tpu.matmul %51, %67, %cst_26 {dimension_numbers = #tpu.dot_dimension_numbers<[1], [0], [0], [1], [0, 0, 1, 1], [], []>} : vector<32x32xbf16>, vector<32x8xbf16>, vector<32x8xf32> -> vector<32x8xf32>
    %69 = vector.extract_strided_slice %54 {offsets = [0, 0], sizes = [1, 8], strides = [1, 1]} : vector<4x8xf32> to vector<1x8xf32>
    %70 = vector.broadcast %69 : vector<1x8xf32> to vector<32x8xf32>
    %71 = arith.addf %68, %70 : vector<32x8xf32>
    %72 = arith.truncf %71 : vector<32x8xf32> to vector<32x8xbf16>
    %c128_27 = arith.constant 128 : index
    %c0_28 = arith.constant 0 : index
    %73 = vector.load %arg2[%c128_27, %c0_28] : memref<1888x128xbf16, #tpu.memory_space<vmem>>, vector<32x8xbf16>
    %cst_29 = arith.constant dense<0.000000e+00> : vector<32x8xf32>
    %74 = tpu.matmul %51, %73, %cst_29 {dimension_numbers = #tpu.dot_dimension_numbers<[1], [0], [0], [1], [0, 0, 1, 1], [], []>} : vector<32x32xbf16>, vector<32x8xbf16>, vector<32x8xf32> -> vector<32x8xf32>
    %75 = vector.extract_strided_slice %52 {offsets = [1, 0], sizes = [1, 8], strides = [1, 1]} : vector<4x8xf32> to vector<1x8xf32>
    %76 = vector.broadcast %75 : vector<1x8xf32> to vector<32x8xf32>
    %77 = arith.addf %74, %76 : vector<32x8xf32>
    %78 = arith.truncf %77 : vector<32x8xf32> to vector<32x8xbf16>
    %c256 = arith.constant 256 : index
    %c0_30 = arith.constant 0 : index
    %79 = vector.load %arg2[%c256, %c0_30] : memref<1888x128xbf16, #tpu.memory_space<vmem>>, vector<32x8xbf16>
    %cst_31 = arith.constant dense<0.000000e+00> : vector<32x8xf32>
    %80 = tpu.matmul %51, %79, %cst_31 {dimension_numbers = #tpu.dot_dimension_numbers<[1], [0], [0], [1], [0, 0, 1, 1], [], []>} : vector<32x32xbf16>, vector<32x8xbf16>, vector<32x8xf32> -> vector<32x8xf32>
    %81 = vector.extract_strided_slice %53 {offsets = [1, 0], sizes = [1, 8], strides = [1, 1]} : vector<4x8xf32> to vector<1x8xf32>
    %82 = vector.broadcast %81 : vector<1x8xf32> to vector<32x8xf32>
    %83 = arith.addf %80, %82 : vector<32x8xf32>
    %84 = arith.truncf %83 : vector<32x8xf32> to vector<32x8xbf16>
    %c384 = arith.constant 384 : index
    %c0_32 = arith.constant 0 : index
    %85 = vector.load %arg2[%c384, %c0_32] : memref<1888x128xbf16, #tpu.memory_space<vmem>>, vector<32x8xbf16>
    %cst_33 = arith.constant dense<0.000000e+00> : vector<32x8xf32>
    %86 = tpu.matmul %51, %85, %cst_33 {dimension_numbers = #tpu.dot_dimension_numbers<[1], [0], [0], [1], [0, 0, 1, 1], [], []>} : vector<32x32xbf16>, vector<32x8xbf16>, vector<32x8xf32> -> vector<32x8xf32>
    %87 = vector.extract_strided_slice %54 {offsets = [1, 0], sizes = [1, 8], strides = [1, 1]} : vector<4x8xf32> to vector<1x8xf32>
    %88 = vector.broadcast %87 : vector<1x8xf32> to vector<32x8xf32>
    %89 = arith.addf %86, %88 : vector<32x8xf32>
    %90 = arith.truncf %89 : vector<32x8xf32> to vector<32x8xbf16>
    %c160 = arith.constant 160 : index
    %c0_34 = arith.constant 0 : index
    %91 = vector.load %arg2[%c160, %c0_34] : memref<1888x128xbf16, #tpu.memory_space<vmem>>, vector<32x8xbf16>
    %cst_35 = arith.constant dense<0.000000e+00> : vector<32x8xf32>
    %92 = tpu.matmul %51, %91, %cst_35 {dimension_numbers = #tpu.dot_dimension_numbers<[1], [0], [0], [1], [0, 0, 1, 1], [], []>} : vector<32x32xbf16>, vector<32x8xbf16>, vector<32x8xf32> -> vector<32x8xf32>
    %93 = vector.extract_strided_slice %52 {offsets = [2, 0], sizes = [1, 8], strides = [1, 1]} : vector<4x8xf32> to vector<1x8xf32>
    %94 = vector.broadcast %93 : vector<1x8xf32> to vector<32x8xf32>
    %95 = arith.addf %92, %94 : vector<32x8xf32>
    %96 = arith.truncf %95 : vector<32x8xf32> to vector<32x8xbf16>
    %c288 = arith.constant 288 : index
    %c0_36 = arith.constant 0 : index
    %97 = vector.load %arg2[%c288, %c0_36] : memref<1888x128xbf16, #tpu.memory_space<vmem>>, vector<32x8xbf16>
    %cst_37 = arith.constant dense<0.000000e+00> : vector<32x8xf32>
    %98 = tpu.matmul %51, %97, %cst_37 {dimension_numbers = #tpu.dot_dimension_numbers<[1], [0], [0], [1], [0, 0, 1, 1], [], []>} : vector<32x32xbf16>, vector<32x8xbf16>, vector<32x8xf32> -> vector<32x8xf32>
    %99 = vector.extract_strided_slice %53 {offsets = [2, 0], sizes = [1, 8], strides = [1, 1]} : vector<4x8xf32> to vector<1x8xf32>
    %100 = vector.broadcast %99 : vector<1x8xf32> to vector<32x8xf32>
    %101 = arith.addf %98, %100 : vector<32x8xf32>
    %102 = arith.truncf %101 : vector<32x8xf32> to vector<32x8xbf16>
    %c416 = arith.constant 416 : index
    %c0_38 = arith.constant 0 : index
    %103 = vector.load %arg2[%c416, %c0_38] : memref<1888x128xbf16, #tpu.memory_space<vmem>>, vector<32x8xbf16>
    %cst_39 = arith.constant dense<0.000000e+00> : vector<32x8xf32>
    %104 = tpu.matmul %51, %103, %cst_39 {dimension_numbers = #tpu.dot_dimension_numbers<[1], [0], [0], [1], [0, 0, 1, 1], [], []>} : vector<32x32xbf16>, vector<32x8xbf16>, vector<32x8xf32> -> vector<32x8xf32>
    %105 = vector.extract_strided_slice %54 {offsets = [2, 0], sizes = [1, 8], strides = [1, 1]} : vector<4x8xf32> to vector<1x8xf32>
    %106 = vector.broadcast %105 : vector<1x8xf32> to vector<32x8xf32>
    %107 = arith.addf %104, %106 : vector<32x8xf32>
    %108 = arith.truncf %107 : vector<32x8xf32> to vector<32x8xbf16>
    %c192 = arith.constant 192 : index
    %c0_40 = arith.constant 0 : index
    %109 = vector.load %arg2[%c192, %c0_40] : memref<1888x128xbf16, #tpu.memory_space<vmem>>, vector<32x8xbf16>
    %cst_41 = arith.constant dense<0.000000e+00> : vector<32x8xf32>
    %110 = tpu.matmul %51, %109, %cst_41 {dimension_numbers = #tpu.dot_dimension_numbers<[1], [0], [0], [1], [0, 0, 1, 1], [], []>} : vector<32x32xbf16>, vector<32x8xbf16>, vector<32x8xf32> -> vector<32x8xf32>
    %111 = vector.extract_strided_slice %52 {offsets = [3, 0], sizes = [1, 8], strides = [1, 1]} : vector<4x8xf32> to vector<1x8xf32>
    %112 = vector.broadcast %111 : vector<1x8xf32> to vector<32x8xf32>
    %113 = arith.addf %110, %112 : vector<32x8xf32>
    %114 = arith.truncf %113 : vector<32x8xf32> to vector<32x8xbf16>
    %c320 = arith.constant 320 : index
    %c0_42 = arith.constant 0 : index
    %115 = vector.load %arg2[%c320, %c0_42] : memref<1888x128xbf16, #tpu.memory_space<vmem>>, vector<32x8xbf16>
    %cst_43 = arith.constant dense<0.000000e+00> : vector<32x8xf32>
    %116 = tpu.matmul %51, %115, %cst_43 {dimension_numbers = #tpu.dot_dimension_numbers<[1], [0], [0], [1], [0, 0, 1, 1], [], []>} : vector<32x32xbf16>, vector<32x8xbf16>, vector<32x8xf32> -> vector<32x8xf32>
    %117 = vector.extract_strided_slice %53 {offsets = [3, 0], sizes = [1, 8], strides = [1, 1]} : vector<4x8xf32> to vector<1x8xf32>
    %118 = vector.broadcast %117 : vector<1x8xf32> to vector<32x8xf32>
    %119 = arith.addf %116, %118 : vector<32x8xf32>
    %120 = arith.truncf %119 : vector<32x8xf32> to vector<32x8xbf16>
    %c448 = arith.constant 448 : index
    %c0_44 = arith.constant 0 : index
    %121 = vector.load %arg2[%c448, %c0_44] : memref<1888x128xbf16, #tpu.memory_space<vmem>>, vector<32x8xbf16>
    %cst_45 = arith.constant dense<0.000000e+00> : vector<32x8xf32>
    %122 = tpu.matmul %51, %121, %cst_45 {dimension_numbers = #tpu.dot_dimension_numbers<[1], [0], [0], [1], [0, 0, 1, 1], [], []>} : vector<32x32xbf16>, vector<32x8xbf16>, vector<32x8xf32> -> vector<32x8xf32>
    %123 = vector.extract_strided_slice %54 {offsets = [3, 0], sizes = [1, 8], strides = [1, 1]} : vector<4x8xf32> to vector<1x8xf32>
    %124 = vector.broadcast %123 : vector<1x8xf32> to vector<32x8xf32>
    %125 = arith.addf %122, %124 : vector<32x8xf32>
    %126 = arith.truncf %125 : vector<32x8xf32> to vector<32x8xbf16>
    %127 = vector.extract_strided_slice %60 {offsets = [0, 0], sizes = [16, 8], strides = [1, 1]} : vector<32x8xbf16> to vector<16x8xbf16>
    %128 = vector.extract_strided_slice %66 {offsets = [0, 0], sizes = [16, 8], strides = [1, 1]} : vector<32x8xbf16> to vector<16x8xbf16>
    %cst_46 = arith.constant dense<0.000000e+00> : vector<16x16xf32>
    %129 = tpu.matmul %127, %128, %cst_46 {dimension_numbers = #tpu.dot_dimension_numbers<[1], [1], [0], [0], [0, 0, 1, 0], [], []>} : vector<16x8xbf16>, vector<16x8xbf16>, vector<16x16xf32> -> vector<16x16xf32>
    %cst_47 = arith.constant dense<0xFF800000> : vector<16xf32>
    %130 = vector.multi_reduction <maximumf>, %129, %cst_47 [1] : vector<16x16xf32> to vector<16xf32>
    %131 = vector.shape_cast %130 : vector<16xf32> to vector<16x1xf32>
    %132 = vector.broadcast %131 : vector<16x1xf32> to vector<16x16xf32>
    %133 = arith.subf %129, %132 : vector<16x16xf32>
    %134 = math.exp %133 : vector<16x16xf32>
    %cst_48 = arith.constant dense<0.000000e+00> : vector<16xf32>
    %135 = vector.multi_reduction <add>, %134, %cst_48 [1] : vector<16x16xf32> to vector<16xf32>
    %136 = vector.shape_cast %135 : vector<16xf32> to vector<16x1xf32>
    %137 = vector.broadcast %136 : vector<16x1xf32> to vector<16x16xf32>
    %138 = arith.divf %134, %137 : vector<16x16xf32>
    %139 = arith.truncf %138 : vector<16x16xf32> to vector<16x16xbf16>
    %140 = vector.extract_strided_slice %72 {offsets = [0, 0], sizes = [16, 8], strides = [1, 1]} : vector<32x8xbf16> to vector<16x8xbf16>
    %cst_49 = arith.constant dense<0.000000e+00> : vector<16x8xf32>
    %141 = tpu.matmul %139, %140, %cst_49 {dimension_numbers = #tpu.dot_dimension_numbers<[1], [0], [0], [1], [0, 0, 1, 1], [], []>} : vector<16x16xbf16>, vector<16x8xbf16>, vector<16x8xf32> -> vector<16x8xf32>
    %142 = arith.truncf %141 : vector<16x8xf32> to vector<16x8xbf16>
    %143 = vector.extract_strided_slice %78 {offsets = [0, 0], sizes = [16, 8], strides = [1, 1]} : vector<32x8xbf16> to vector<16x8xbf16>
    %144 = vector.extract_strided_slice %84 {offsets = [0, 0], sizes = [16, 8], strides = [1, 1]} : vector<32x8xbf16> to vector<16x8xbf16>
    %cst_50 = arith.constant dense<0.000000e+00> : vector<16x16xf32>
    %145 = tpu.matmul %143, %144, %cst_50 {dimension_numbers = #tpu.dot_dimension_numbers<[1], [1], [0], [0], [0, 0, 1, 0], [], []>} : vector<16x8xbf16>, vector<16x8xbf16>, vector<16x16xf32> -> vector<16x16xf32>
    %cst_51 = arith.constant dense<0xFF800000> : vector<16xf32>
    %146 = vector.multi_reduction <maximumf>, %145, %cst_51 [1] : vector<16x16xf32> to vector<16xf32>
    %147 = vector.shape_cast %146 : vector<16xf32> to vector<16x1xf32>
    %148 = vector.broadcast %147 : vector<16x1xf32> to vector<16x16xf32>
    %149 = arith.subf %145, %148 : vector<16x16xf32>
    %150 = math.exp %149 : vector<16x16xf32>
    %cst_52 = arith.constant dense<0.000000e+00> : vector<16xf32>
    %151 = vector.multi_reduction <add>, %150, %cst_52 [1] : vector<16x16xf32> to vector<16xf32>
    %152 = vector.shape_cast %151 : vector<16xf32> to vector<16x1xf32>
    %153 = vector.broadcast %152 : vector<16x1xf32> to vector<16x16xf32>
    %154 = arith.divf %150, %153 : vector<16x16xf32>
    %155 = arith.truncf %154 : vector<16x16xf32> to vector<16x16xbf16>
    %156 = vector.extract_strided_slice %90 {offsets = [0, 0], sizes = [16, 8], strides = [1, 1]} : vector<32x8xbf16> to vector<16x8xbf16>
    %cst_53 = arith.constant dense<0.000000e+00> : vector<16x8xf32>
    %157 = tpu.matmul %155, %156, %cst_53 {dimension_numbers = #tpu.dot_dimension_numbers<[1], [0], [0], [1], [0, 0, 1, 1], [], []>} : vector<16x16xbf16>, vector<16x8xbf16>, vector<16x8xf32> -> vector<16x8xf32>
    %158 = arith.truncf %157 : vector<16x8xf32> to vector<16x8xbf16>
    %159 = vector.extract_strided_slice %96 {offsets = [0, 0], sizes = [16, 8], strides = [1, 1]} : vector<32x8xbf16> to vector<16x8xbf16>
    %160 = vector.extract_strided_slice %102 {offsets = [0, 0], sizes = [16, 8], strides = [1, 1]} : vector<32x8xbf16> to vector<16x8xbf16>
    %cst_54 = arith.constant dense<0.000000e+00> : vector<16x16xf32>
    %161 = tpu.matmul %159, %160, %cst_54 {dimension_numbers = #tpu.dot_dimension_numbers<[1], [1], [0], [0], [0, 0, 1, 0], [], []>} : vector<16x8xbf16>, vector<16x8xbf16>, vector<16x16xf32> -> vector<16x16xf32>
    %cst_55 = arith.constant dense<0xFF800000> : vector<16xf32>
    %162 = vector.multi_reduction <maximumf>, %161, %cst_55 [1] : vector<16x16xf32> to vector<16xf32>
    %163 = vector.shape_cast %162 : vector<16xf32> to vector<16x1xf32>
    %164 = vector.broadcast %163 : vector<16x1xf32> to vector<16x16xf32>
    %165 = arith.subf %161, %164 : vector<16x16xf32>
    %166 = math.exp %165 : vector<16x16xf32>
    %cst_56 = arith.constant dense<0.000000e+00> : vector<16xf32>
    %167 = vector.multi_reduction <add>, %166, %cst_56 [1] : vector<16x16xf32> to vector<16xf32>
    %168 = vector.shape_cast %167 : vector<16xf32> to vector<16x1xf32>
    %169 = vector.broadcast %168 : vector<16x1xf32> to vector<16x16xf32>
    %170 = arith.divf %166, %169 : vector<16x16xf32>
    %171 = arith.truncf %170 : vector<16x16xf32> to vector<16x16xbf16>
    %172 = vector.extract_strided_slice %108 {offsets = [0, 0], sizes = [16, 8], strides = [1, 1]} : vector<32x8xbf16> to vector<16x8xbf16>
    %cst_57 = arith.constant dense<0.000000e+00> : vector<16x8xf32>
    %173 = tpu.matmul %171, %172, %cst_57 {dimension_numbers = #tpu.dot_dimension_numbers<[1], [0], [0], [1], [0, 0, 1, 1], [], []>} : vector<16x16xbf16>, vector<16x8xbf16>, vector<16x8xf32> -> vector<16x8xf32>
    %174 = arith.truncf %173 : vector<16x8xf32> to vector<16x8xbf16>
    %175 = vector.extract_strided_slice %114 {offsets = [0, 0], sizes = [16, 8], strides = [1, 1]} : vector<32x8xbf16> to vector<16x8xbf16>
    %176 = vector.extract_strided_slice %120 {offsets = [0, 0], sizes = [16, 8], strides = [1, 1]} : vector<32x8xbf16> to vector<16x8xbf16>
    %cst_58 = arith.constant dense<0.000000e+00> : vector<16x16xf32>
    %177 = tpu.matmul %175, %176, %cst_58 {dimension_numbers = #tpu.dot_dimension_numbers<[1], [1], [0], [0], [0, 0, 1, 0], [], []>} : vector<16x8xbf16>, vector<16x8xbf16>, vector<16x16xf32> -> vector<16x16xf32>
    %cst_59 = arith.constant dense<0xFF800000> : vector<16xf32>
    %178 = vector.multi_reduction <maximumf>, %177, %cst_59 [1] : vector<16x16xf32> to vector<16xf32>
    %179 = vector.shape_cast %178 : vector<16xf32> to vector<16x1xf32>
    %180 = vector.broadcast %179 : vector<16x1xf32> to vector<16x16xf32>
    %181 = arith.subf %177, %180 : vector<16x16xf32>
    %182 = math.exp %181 : vector<16x16xf32>
    %cst_60 = arith.constant dense<0.000000e+00> : vector<16xf32>
    %183 = vector.multi_reduction <add>, %182, %cst_60 [1] : vector<16x16xf32> to vector<16xf32>
    %184 = vector.shape_cast %183 : vector<16xf32> to vector<16x1xf32>
    %185 = vector.broadcast %184 : vector<16x1xf32> to vector<16x16xf32>
    %186 = arith.divf %182, %185 : vector<16x16xf32>
    %187 = arith.truncf %186 : vector<16x16xf32> to vector<16x16xbf16>
    %188 = vector.extract_strided_slice %126 {offsets = [0, 0], sizes = [16, 8], strides = [1, 1]} : vector<32x8xbf16> to vector<16x8xbf16>
    %cst_61 = arith.constant dense<0.000000e+00> : vector<16x8xf32>
    %189 = tpu.matmul %187, %188, %cst_61 {dimension_numbers = #tpu.dot_dimension_numbers<[1], [0], [0], [1], [0, 0, 1, 1], [], []>} : vector<16x16xbf16>, vector<16x8xbf16>, vector<16x8xf32> -> vector<16x8xf32>
    %190 = arith.truncf %189 : vector<16x8xf32> to vector<16x8xbf16>
    %191 = tpu.concatenate %142, %158, %174, %190 in 1 : vector<16x8xbf16>, vector<16x8xbf16>, vector<16x8xbf16>, vector<16x8xbf16> -> vector<16x32xbf16>
    %192 = vector.extract_strided_slice %60 {offsets = [16, 0], sizes = [16, 8], strides = [1, 1]} : vector<32x8xbf16> to vector<16x8xbf16>
    %193 = vector.extract_strided_slice %66 {offsets = [16, 0], sizes = [16, 8], strides = [1, 1]} : vector<32x8xbf16> to vector<16x8xbf16>
    %cst_62 = arith.constant dense<0.000000e+00> : vector<16x16xf32>
    %194 = tpu.matmul %192, %193, %cst_62 {dimension_numbers = #tpu.dot_dimension_numbers<[1], [1], [0], [0], [0, 0, 1, 0], [], []>} : vector<16x8xbf16>, vector<16x8xbf16>, vector<16x16xf32> -> vector<16x16xf32>
    %cst_63 = arith.constant dense<0xFF800000> : vector<16xf32>
    %195 = vector.multi_reduction <maximumf>, %194, %cst_63 [1] : vector<16x16xf32> to vector<16xf32>
    %196 = vector.shape_cast %195 : vector<16xf32> to vector<16x1xf32>
    %197 = vector.broadcast %196 : vector<16x1xf32> to vector<16x16xf32>
    %198 = arith.subf %194, %197 : vector<16x16xf32>
    %199 = math.exp %198 : vector<16x16xf32>
    %cst_64 = arith.constant dense<0.000000e+00> : vector<16xf32>
    %200 = vector.multi_reduction <add>, %199, %cst_64 [1] : vector<16x16xf32> to vector<16xf32>
    %201 = vector.shape_cast %200 : vector<16xf32> to vector<16x1xf32>
    %202 = vector.broadcast %201 : vector<16x1xf32> to vector<16x16xf32>
    %203 = arith.divf %199, %202 : vector<16x16xf32>
    %204 = arith.truncf %203 : vector<16x16xf32> to vector<16x16xbf16>
    %205 = vector.extract_strided_slice %72 {offsets = [16, 0], sizes = [16, 8], strides = [1, 1]} : vector<32x8xbf16> to vector<16x8xbf16>
    %cst_65 = arith.constant dense<0.000000e+00> : vector<16x8xf32>
    %206 = tpu.matmul %204, %205, %cst_65 {dimension_numbers = #tpu.dot_dimension_numbers<[1], [0], [0], [1], [0, 0, 1, 1], [], []>} : vector<16x16xbf16>, vector<16x8xbf16>, vector<16x8xf32> -> vector<16x8xf32>
    %207 = arith.truncf %206 : vector<16x8xf32> to vector<16x8xbf16>
    %208 = vector.extract_strided_slice %78 {offsets = [16, 0], sizes = [16, 8], strides = [1, 1]} : vector<32x8xbf16> to vector<16x8xbf16>
    %209 = vector.extract_strided_slice %84 {offsets = [16, 0], sizes = [16, 8], strides = [1, 1]} : vector<32x8xbf16> to vector<16x8xbf16>
    %cst_66 = arith.constant dense<0.000000e+00> : vector<16x16xf32>
    %210 = tpu.matmul %208, %209, %cst_66 {dimension_numbers = #tpu.dot_dimension_numbers<[1], [1], [0], [0], [0, 0, 1, 0], [], []>} : vector<16x8xbf16>, vector<16x8xbf16>, vector<16x16xf32> -> vector<16x16xf32>
    %cst_67 = arith.constant dense<0xFF800000> : vector<16xf32>
    %211 = vector.multi_reduction <maximumf>, %210, %cst_67 [1] : vector<16x16xf32> to vector<16xf32>
    %212 = vector.shape_cast %211 : vector<16xf32> to vector<16x1xf32>
    %213 = vector.broadcast %212 : vector<16x1xf32> to vector<16x16xf32>
    %214 = arith.subf %210, %213 : vector<16x16xf32>
    %215 = math.exp %214 : vector<16x16xf32>
    %cst_68 = arith.constant dense<0.000000e+00> : vector<16xf32>
    %216 = vector.multi_reduction <add>, %215, %cst_68 [1] : vector<16x16xf32> to vector<16xf32>
    %217 = vector.shape_cast %216 : vector<16xf32> to vector<16x1xf32>
    %218 = vector.broadcast %217 : vector<16x1xf32> to vector<16x16xf32>
    %219 = arith.divf %215, %218 : vector<16x16xf32>
    %220 = arith.truncf %219 : vector<16x16xf32> to vector<16x16xbf16>
    %221 = vector.extract_strided_slice %90 {offsets = [16, 0], sizes = [16, 8], strides = [1, 1]} : vector<32x8xbf16> to vector<16x8xbf16>
    %cst_69 = arith.constant dense<0.000000e+00> : vector<16x8xf32>
    %222 = tpu.matmul %220, %221, %cst_69 {dimension_numbers = #tpu.dot_dimension_numbers<[1], [0], [0], [1], [0, 0, 1, 1], [], []>} : vector<16x16xbf16>, vector<16x8xbf16>, vector<16x8xf32> -> vector<16x8xf32>
    %223 = arith.truncf %222 : vector<16x8xf32> to vector<16x8xbf16>
    %224 = vector.extract_strided_slice %96 {offsets = [16, 0], sizes = [16, 8], strides = [1, 1]} : vector<32x8xbf16> to vector<16x8xbf16>
    %225 = vector.extract_strided_slice %102 {offsets = [16, 0], sizes = [16, 8], strides = [1, 1]} : vector<32x8xbf16> to vector<16x8xbf16>
    %cst_70 = arith.constant dense<0.000000e+00> : vector<16x16xf32>
    %226 = tpu.matmul %224, %225, %cst_70 {dimension_numbers = #tpu.dot_dimension_numbers<[1], [1], [0], [0], [0, 0, 1, 0], [], []>} : vector<16x8xbf16>, vector<16x8xbf16>, vector<16x16xf32> -> vector<16x16xf32>
    %cst_71 = arith.constant dense<0xFF800000> : vector<16xf32>
    %227 = vector.multi_reduction <maximumf>, %226, %cst_71 [1] : vector<16x16xf32> to vector<16xf32>
    %228 = vector.shape_cast %227 : vector<16xf32> to vector<16x1xf32>
    %229 = vector.broadcast %228 : vector<16x1xf32> to vector<16x16xf32>
    %230 = arith.subf %226, %229 : vector<16x16xf32>
    %231 = math.exp %230 : vector<16x16xf32>
    %cst_72 = arith.constant dense<0.000000e+00> : vector<16xf32>
    %232 = vector.multi_reduction <add>, %231, %cst_72 [1] : vector<16x16xf32> to vector<16xf32>
    %233 = vector.shape_cast %232 : vector<16xf32> to vector<16x1xf32>
    %234 = vector.broadcast %233 : vector<16x1xf32> to vector<16x16xf32>
    %235 = arith.divf %231, %234 : vector<16x16xf32>
    %236 = arith.truncf %235 : vector<16x16xf32> to vector<16x16xbf16>
    %237 = vector.extract_strided_slice %108 {offsets = [16, 0], sizes = [16, 8], strides = [1, 1]} : vector<32x8xbf16> to vector<16x8xbf16>
    %cst_73 = arith.constant dense<0.000000e+00> : vector<16x8xf32>
    %238 = tpu.matmul %236, %237, %cst_73 {dimension_numbers = #tpu.dot_dimension_numbers<[1], [0], [0], [1], [0, 0, 1, 1], [], []>} : vector<16x16xbf16>, vector<16x8xbf16>, vector<16x8xf32> -> vector<16x8xf32>
    %239 = arith.truncf %238 : vector<16x8xf32> to vector<16x8xbf16>
    %240 = vector.extract_strided_slice %114 {offsets = [16, 0], sizes = [16, 8], strides = [1, 1]} : vector<32x8xbf16> to vector<16x8xbf16>
    %241 = vector.extract_strided_slice %120 {offsets = [16, 0], sizes = [16, 8], strides = [1, 1]} : vector<32x8xbf16> to vector<16x8xbf16>
    %cst_74 = arith.constant dense<0.000000e+00> : vector<16x16xf32>
    %242 = tpu.matmul %240, %241, %cst_74 {dimension_numbers = #tpu.dot_dimension_numbers<[1], [1], [0], [0], [0, 0, 1, 0], [], []>} : vector<16x8xbf16>, vector<16x8xbf16>, vector<16x16xf32> -> vector<16x16xf32>
    %cst_75 = arith.constant dense<0xFF800000> : vector<16xf32>
    %243 = vector.multi_reduction <maximumf>, %242, %cst_75 [1] : vector<16x16xf32> to vector<16xf32>
    %244 = vector.shape_cast %243 : vector<16xf32> to vector<16x1xf32>
    %245 = vector.broadcast %244 : vector<16x1xf32> to vector<16x16xf32>
    %246 = arith.subf %242, %245 : vector<16x16xf32>
    %247 = math.exp %246 : vector<16x16xf32>
    %cst_76 = arith.constant dense<0.000000e+00> : vector<16xf32>
    %248 = vector.multi_reduction <add>, %247, %cst_76 [1] : vector<16x16xf32> to vector<16xf32>
    %249 = vector.shape_cast %248 : vector<16xf32> to vector<16x1xf32>
    %250 = vector.broadcast %249 : vector<16x1xf32> to vector<16x16xf32>
    %251 = arith.divf %247, %250 : vector<16x16xf32>
    %252 = arith.truncf %251 : vector<16x16xf32> to vector<16x16xbf16>
    %253 = vector.extract_strided_slice %126 {offsets = [16, 0], sizes = [16, 8], strides = [1, 1]} : vector<32x8xbf16> to vector<16x8xbf16>
    %cst_77 = arith.constant dense<0.000000e+00> : vector<16x8xf32>
    %254 = tpu.matmul %252, %253, %cst_77 {dimension_numbers = #tpu.dot_dimension_numbers<[1], [0], [0], [1], [0, 0, 1, 1], [], []>} : vector<16x16xbf16>, vector<16x8xbf16>, vector<16x8xf32> -> vector<16x8xf32>
    %255 = arith.truncf %254 : vector<16x8xf32> to vector<16x8xbf16>
    %256 = tpu.concatenate %207, %223, %239, %255 in 1 : vector<16x8xbf16>, vector<16x8xbf16>, vector<16x8xbf16>, vector<16x8xbf16> -> vector<16x32xbf16>
    %257 = tpu.concatenate %191, %256 in 0 : vector<16x32xbf16>, vector<16x32xbf16> -> vector<32x32xbf16>
    %c480 = arith.constant 480 : index
    %c0_78 = arith.constant 0 : index
    %258 = vector.load %arg2[%c480, %c0_78] : memref<1888x128xbf16, #tpu.memory_space<vmem>>, vector<32x32xbf16>
    %cst_79 = arith.constant dense<0.000000e+00> : vector<32x32xf32>
    %259 = tpu.matmul %257, %258, %cst_79 {dimension_numbers = #tpu.dot_dimension_numbers<[1], [0], [0], [1], [0, 0, 1, 1], [], []>} : vector<32x32xbf16>, vector<32x32xbf16>, vector<32x32xf32> -> vector<32x32xf32>
    %260 = arith.addf %26, %259 : vector<32x32xf32>
    %c152 = arith.constant 152 : index
    %c0_80 = arith.constant 0 : index
    %261 = vector.load %arg3[%c152, %c0_80] : memref<352x128xf32, #tpu.memory_space<vmem>>, vector<1x32xf32>
    %262 = vector.broadcast %261 : vector<1x32xf32> to vector<32x32xf32>
    %263 = arith.addf %260, %262 : vector<32x32xf32>
    %c160_81 = arith.constant 160 : index
    %c0_82 = arith.constant 0 : index
    %264 = vector.load %arg3[%c160_81, %c0_82] : memref<352x128xf32, #tpu.memory_space<vmem>>, vector<1x32xf32>
    %c168 = arith.constant 168 : index
    %c0_83 = arith.constant 0 : index
    %265 = vector.load %arg3[%c168, %c0_83] : memref<352x128xf32, #tpu.memory_space<vmem>>, vector<1x32xf32>
    %cst_84 = arith.constant dense<0.000000e+00> : vector<32xf32>
    %266 = vector.multi_reduction <add>, %263, %cst_84 [1] : vector<32x32xf32> to vector<32xf32>
    %267 = vector.shape_cast %266 : vector<32xf32> to vector<32x1xf32>
    %cst_85 = arith.constant 3.200000e+01 : f32
    %268 = vector.broadcast %cst_85 : f32 to vector<32x1xf32>
    %269 = arith.divf %267, %268 : vector<32x1xf32>
    %270 = vector.broadcast %269 : vector<32x1xf32> to vector<32x32xf32>
    %271 = arith.subf %263, %270 : vector<32x32xf32>
    %272 = arith.mulf %271, %271 : vector<32x32xf32>
    %cst_86 = arith.constant dense<0.000000e+00> : vector<32xf32>
    %273 = vector.multi_reduction <add>, %272, %cst_86 [1] : vector<32x32xf32> to vector<32xf32>
    %274 = vector.shape_cast %273 : vector<32xf32> to vector<32x1xf32>
    %cst_87 = arith.constant 3.200000e+01 : f32
    %275 = vector.broadcast %cst_87 : f32 to vector<32x1xf32>
    %276 = arith.divf %274, %275 : vector<32x1xf32>
    %277 = vector.broadcast %269 : vector<32x1xf32> to vector<32x32xf32>
    %278 = arith.subf %263, %277 : vector<32x32xf32>
    %cst_88 = arith.constant 9.99999997E-7 : f32
    %279 = vector.broadcast %cst_88 : f32 to vector<32x1xf32>
    %280 = arith.addf %276, %279 : vector<32x1xf32>
    %281 = math.rsqrt %280 : vector<32x1xf32>
    %282 = vector.broadcast %281 : vector<32x1xf32> to vector<32x32xf32>
    %283 = arith.mulf %278, %282 : vector<32x32xf32>
    %284 = vector.broadcast %264 : vector<1x32xf32> to vector<32x32xf32>
    %285 = arith.mulf %283, %284 : vector<32x32xf32>
    %286 = vector.broadcast %265 : vector<1x32xf32> to vector<32x32xf32>
    %287 = arith.addf %285, %286 : vector<32x32xf32>
    %288 = arith.truncf %287 : vector<32x32xf32> to vector<32x32xbf16>
    %c512 = arith.constant 512 : index
    %c0_89 = arith.constant 0 : index
    %289 = vector.load %arg2[%c512, %c0_89] : memref<1888x128xbf16, #tpu.memory_space<vmem>>, vector<32x128xbf16>
    %cst_90 = arith.constant dense<0.000000e+00> : vector<32x128xf32>
    %290 = tpu.matmul %288, %289, %cst_90 {dimension_numbers = #tpu.dot_dimension_numbers<[1], [0], [0], [1], [0, 0, 1, 1], [], []>} : vector<32x32xbf16>, vector<32x128xbf16>, vector<32x128xf32> -> vector<32x128xf32>
    %c176 = arith.constant 176 : index
    %c0_91 = arith.constant 0 : index
    %291 = vector.load %arg3[%c176, %c0_91] : memref<352x128xf32, #tpu.memory_space<vmem>>, vector<1x128xf32>
    %292 = vector.broadcast %291 : vector<1x128xf32> to vector<32x128xf32>
    %293 = arith.addf %290, %292 : vector<32x128xf32>
    %cst_92 = arith.constant 5.000000e-01 : f32
    %294 = vector.broadcast %cst_92 : f32 to vector<32x128xf32>
    %295 = arith.mulf %294, %293 : vector<32x128xf32>
    %cst_93 = arith.constant 4.471500e-02 : f32
    %296 = vector.broadcast %cst_93 : f32 to vector<32x128xf32>
    %297 = arith.mulf %296, %293 : vector<32x128xf32>
    %298 = arith.mulf %297, %293 : vector<32x128xf32>
    %299 = arith.mulf %298, %293 : vector<32x128xf32>
    %300 = arith.addf %293, %299 : vector<32x128xf32>
    %cst_94 = arith.constant 0.797884583 : f32
    %301 = vector.broadcast %cst_94 : f32 to vector<32x128xf32>
    %302 = arith.mulf %301, %300 : vector<32x128xf32>
    %303 = math.tanh %302 : vector<32x128xf32>
    %cst_95 = arith.constant 1.000000e+00 : f32
    %304 = vector.broadcast %cst_95 : f32 to vector<32x128xf32>
    %305 = arith.addf %304, %303 : vector<32x128xf32>
    %306 = arith.mulf %295, %305 : vector<32x128xf32>
    %307 = arith.truncf %306 : vector<32x128xf32> to vector<32x128xbf16>
    %c544 = arith.constant 544 : index
    %c0_96 = arith.constant 0 : index
    %308 = vector.load %arg2[%c544, %c0_96] : memref<1888x128xbf16, #tpu.memory_space<vmem>>, vector<128x32xbf16>
    %cst_97 = arith.constant dense<0.000000e+00> : vector<32x32xf32>
    %309 = tpu.matmul %307, %308, %cst_97 {dimension_numbers = #tpu.dot_dimension_numbers<[1], [0], [0], [1], [0, 0, 1, 1], [], []>} : vector<32x128xbf16>, vector<128x32xbf16>, vector<32x32xf32> -> vector<32x32xf32>
    %310 = arith.addf %263, %309 : vector<32x32xf32>
    %c184 = arith.constant 184 : index
    %c0_98 = arith.constant 0 : index
    %311 = vector.load %arg3[%c184, %c0_98] : memref<352x128xf32, #tpu.memory_space<vmem>>, vector<1x32xf32>
    %312 = vector.broadcast %311 : vector<1x32xf32> to vector<32x32xf32>
    %313 = arith.addf %310, %312 : vector<32x32xf32>
    %c192_99 = arith.constant 192 : index
    %c0_100 = arith.constant 0 : index
    %314 = vector.load %arg3[%c192_99, %c0_100] : memref<352x128xf32, #tpu.memory_space<vmem>>, vector<1x32xf32>
    %c200 = arith.constant 200 : index
    %c0_101 = arith.constant 0 : index
    %315 = vector.load %arg3[%c200, %c0_101] : memref<352x128xf32, #tpu.memory_space<vmem>>, vector<1x32xf32>
    %cst_102 = arith.constant dense<0.000000e+00> : vector<32xf32>
    %316 = vector.multi_reduction <add>, %313, %cst_102 [1] : vector<32x32xf32> to vector<32xf32>
    %317 = vector.shape_cast %316 : vector<32xf32> to vector<32x1xf32>
    %cst_103 = arith.constant 3.200000e+01 : f32
    %318 = vector.broadcast %cst_103 : f32 to vector<32x1xf32>
    %319 = arith.divf %317, %318 : vector<32x1xf32>
    %320 = vector.broadcast %319 : vector<32x1xf32> to vector<32x32xf32>
    %321 = arith.subf %313, %320 : vector<32x32xf32>
    %322 = arith.mulf %321, %321 : vector<32x32xf32>
    %cst_104 = arith.constant dense<0.000000e+00> : vector<32xf32>
    %323 = vector.multi_reduction <add>, %322, %cst_104 [1] : vector<32x32xf32> to vector<32xf32>
    %324 = vector.shape_cast %323 : vector<32xf32> to vector<32x1xf32>
    %cst_105 = arith.constant 3.200000e+01 : f32
    %325 = vector.broadcast %cst_105 : f32 to vector<32x1xf32>
    %326 = arith.divf %324, %325 : vector<32x1xf32>
    %327 = vector.broadcast %319 : vector<32x1xf32> to vector<32x32xf32>
    %328 = arith.subf %313, %327 : vector<32x32xf32>
    %cst_106 = arith.constant 9.99999997E-7 : f32
    %329 = vector.broadcast %cst_106 : f32 to vector<32x1xf32>
    %330 = arith.addf %326, %329 : vector<32x1xf32>
    %331 = math.rsqrt %330 : vector<32x1xf32>
    %332 = vector.broadcast %331 : vector<32x1xf32> to vector<32x32xf32>
    %333 = arith.mulf %328, %332 : vector<32x32xf32>
    %334 = vector.broadcast %314 : vector<1x32xf32> to vector<32x32xf32>
    %335 = arith.mulf %333, %334 : vector<32x32xf32>
    %336 = vector.broadcast %315 : vector<1x32xf32> to vector<32x32xf32>
    %337 = arith.addf %335, %336 : vector<32x32xf32>
    %338 = arith.truncf %337 : vector<32x32xf32> to vector<32x32xbf16>
    %c208 = arith.constant 208 : index
    %c0_107 = arith.constant 0 : index
    %339 = vector.load %arg3[%c208, %c0_107] : memref<352x128xf32, #tpu.memory_space<vmem>>, vector<4x8xf32>
    %c216 = arith.constant 216 : index
    %c0_108 = arith.constant 0 : index
    %340 = vector.load %arg3[%c216, %c0_108] : memref<352x128xf32, #tpu.memory_space<vmem>>, vector<4x8xf32>
    %c224_109 = arith.constant 224 : index
    %c0_110 = arith.constant 0 : index
    %341 = vector.load %arg3[%c224_109, %c0_110] : memref<352x128xf32, #tpu.memory_space<vmem>>, vector<4x8xf32>
    %c672 = arith.constant 672 : index
    %c0_111 = arith.constant 0 : index
    %342 = vector.load %arg2[%c672, %c0_111] : memref<1888x128xbf16, #tpu.memory_space<vmem>>, vector<32x8xbf16>
    %cst_112 = arith.constant dense<0.000000e+00> : vector<32x8xf32>
    %343 = tpu.matmul %338, %342, %cst_112 {dimension_numbers = #tpu.dot_dimension_numbers<[1], [0], [0], [1], [0, 0, 1, 1], [], []>} : vector<32x32xbf16>, vector<32x8xbf16>, vector<32x8xf32> -> vector<32x8xf32>
    %344 = vector.extract_strided_slice %339 {offsets = [0, 0], sizes = [1, 8], strides = [1, 1]} : vector<4x8xf32> to vector<1x8xf32>
    %345 = vector.broadcast %344 : vector<1x8xf32> to vector<32x8xf32>
    %346 = arith.addf %343, %345 : vector<32x8xf32>
    %347 = arith.truncf %346 : vector<32x8xf32> to vector<32x8xbf16>
    %c800 = arith.constant 800 : index
    %c0_113 = arith.constant 0 : index
    %348 = vector.load %arg2[%c800, %c0_113] : memref<1888x128xbf16, #tpu.memory_space<vmem>>, vector<32x8xbf16>
    %cst_114 = arith.constant dense<0.000000e+00> : vector<32x8xf32>
    %349 = tpu.matmul %338, %348, %cst_114 {dimension_numbers = #tpu.dot_dimension_numbers<[1], [0], [0], [1], [0, 0, 1, 1], [], []>} : vector<32x32xbf16>, vector<32x8xbf16>, vector<32x8xf32> -> vector<32x8xf32>
    %350 = vector.extract_strided_slice %340 {offsets = [0, 0], sizes = [1, 8], strides = [1, 1]} : vector<4x8xf32> to vector<1x8xf32>
    %351 = vector.broadcast %350 : vector<1x8xf32> to vector<32x8xf32>
    %352 = arith.addf %349, %351 : vector<32x8xf32>
    %353 = arith.truncf %352 : vector<32x8xf32> to vector<32x8xbf16>
    %c928 = arith.constant 928 : index
    %c0_115 = arith.constant 0 : index
    %354 = vector.load %arg2[%c928, %c0_115] : memref<1888x128xbf16, #tpu.memory_space<vmem>>, vector<32x8xbf16>
    %cst_116 = arith.constant dense<0.000000e+00> : vector<32x8xf32>
    %355 = tpu.matmul %338, %354, %cst_116 {dimension_numbers = #tpu.dot_dimension_numbers<[1], [0], [0], [1], [0, 0, 1, 1], [], []>} : vector<32x32xbf16>, vector<32x8xbf16>, vector<32x8xf32> -> vector<32x8xf32>
    %356 = vector.extract_strided_slice %341 {offsets = [0, 0], sizes = [1, 8], strides = [1, 1]} : vector<4x8xf32> to vector<1x8xf32>
    %357 = vector.broadcast %356 : vector<1x8xf32> to vector<32x8xf32>
    %358 = arith.addf %355, %357 : vector<32x8xf32>
    %359 = arith.truncf %358 : vector<32x8xf32> to vector<32x8xbf16>
    %c704 = arith.constant 704 : index
    %c0_117 = arith.constant 0 : index
    %360 = vector.load %arg2[%c704, %c0_117] : memref<1888x128xbf16, #tpu.memory_space<vmem>>, vector<32x8xbf16>
    %cst_118 = arith.constant dense<0.000000e+00> : vector<32x8xf32>
    %361 = tpu.matmul %338, %360, %cst_118 {dimension_numbers = #tpu.dot_dimension_numbers<[1], [0], [0], [1], [0, 0, 1, 1], [], []>} : vector<32x32xbf16>, vector<32x8xbf16>, vector<32x8xf32> -> vector<32x8xf32>
    %362 = vector.extract_strided_slice %339 {offsets = [1, 0], sizes = [1, 8], strides = [1, 1]} : vector<4x8xf32> to vector<1x8xf32>
    %363 = vector.broadcast %362 : vector<1x8xf32> to vector<32x8xf32>
    %364 = arith.addf %361, %363 : vector<32x8xf32>
    %365 = arith.truncf %364 : vector<32x8xf32> to vector<32x8xbf16>
    %c832 = arith.constant 832 : index
    %c0_119 = arith.constant 0 : index
    %366 = vector.load %arg2[%c832, %c0_119] : memref<1888x128xbf16, #tpu.memory_space<vmem>>, vector<32x8xbf16>
    %cst_120 = arith.constant dense<0.000000e+00> : vector<32x8xf32>
    %367 = tpu.matmul %338, %366, %cst_120 {dimension_numbers = #tpu.dot_dimension_numbers<[1], [0], [0], [1], [0, 0, 1, 1], [], []>} : vector<32x32xbf16>, vector<32x8xbf16>, vector<32x8xf32> -> vector<32x8xf32>
    %368 = vector.extract_strided_slice %340 {offsets = [1, 0], sizes = [1, 8], strides = [1, 1]} : vector<4x8xf32> to vector<1x8xf32>
    %369 = vector.broadcast %368 : vector<1x8xf32> to vector<32x8xf32>
    %370 = arith.addf %367, %369 : vector<32x8xf32>
    %371 = arith.truncf %370 : vector<32x8xf32> to vector<32x8xbf16>
    %c960 = arith.constant 960 : index
    %c0_121 = arith.constant 0 : index
    %372 = vector.load %arg2[%c960, %c0_121] : memref<1888x128xbf16, #tpu.memory_space<vmem>>, vector<32x8xbf16>
    %cst_122 = arith.constant dense<0.000000e+00> : vector<32x8xf32>
    %373 = tpu.matmul %338, %372, %cst_122 {dimension_numbers = #tpu.dot_dimension_numbers<[1], [0], [0], [1], [0, 0, 1, 1], [], []>} : vector<32x32xbf16>, vector<32x8xbf16>, vector<32x8xf32> -> vector<32x8xf32>
    %374 = vector.extract_strided_slice %341 {offsets = [1, 0], sizes = [1, 8], strides = [1, 1]} : vector<4x8xf32> to vector<1x8xf32>
    %375 = vector.broadcast %374 : vector<1x8xf32> to vector<32x8xf32>
    %376 = arith.addf %373, %375 : vector<32x8xf32>
    %377 = arith.truncf %376 : vector<32x8xf32> to vector<32x8xbf16>
    %c736 = arith.constant 736 : index
    %c0_123 = arith.constant 0 : index
    %378 = vector.load %arg2[%c736, %c0_123] : memref<1888x128xbf16, #tpu.memory_space<vmem>>, vector<32x8xbf16>
    %cst_124 = arith.constant dense<0.000000e+00> : vector<32x8xf32>
    %379 = tpu.matmul %338, %378, %cst_124 {dimension_numbers = #tpu.dot_dimension_numbers<[1], [0], [0], [1], [0, 0, 1, 1], [], []>} : vector<32x32xbf16>, vector<32x8xbf16>, vector<32x8xf32> -> vector<32x8xf32>
    %380 = vector.extract_strided_slice %339 {offsets = [2, 0], sizes = [1, 8], strides = [1, 1]} : vector<4x8xf32> to vector<1x8xf32>
    %381 = vector.broadcast %380 : vector<1x8xf32> to vector<32x8xf32>
    %382 = arith.addf %379, %381 : vector<32x8xf32>
    %383 = arith.truncf %382 : vector<32x8xf32> to vector<32x8xbf16>
    %c864 = arith.constant 864 : index
    %c0_125 = arith.constant 0 : index
    %384 = vector.load %arg2[%c864, %c0_125] : memref<1888x128xbf16, #tpu.memory_space<vmem>>, vector<32x8xbf16>
    %cst_126 = arith.constant dense<0.000000e+00> : vector<32x8xf32>
    %385 = tpu.matmul %338, %384, %cst_126 {dimension_numbers = #tpu.dot_dimension_numbers<[1], [0], [0], [1], [0, 0, 1, 1], [], []>} : vector<32x32xbf16>, vector<32x8xbf16>, vector<32x8xf32> -> vector<32x8xf32>
    %386 = vector.extract_strided_slice %340 {offsets = [2, 0], sizes = [1, 8], strides = [1, 1]} : vector<4x8xf32> to vector<1x8xf32>
    %387 = vector.broadcast %386 : vector<1x8xf32> to vector<32x8xf32>
    %388 = arith.addf %385, %387 : vector<32x8xf32>
    %389 = arith.truncf %388 : vector<32x8xf32> to vector<32x8xbf16>
    %c992 = arith.constant 992 : index
    %c0_127 = arith.constant 0 : index
    %390 = vector.load %arg2[%c992, %c0_127] : memref<1888x128xbf16, #tpu.memory_space<vmem>>, vector<32x8xbf16>
    %cst_128 = arith.constant dense<0.000000e+00> : vector<32x8xf32>
    %391 = tpu.matmul %338, %390, %cst_128 {dimension_numbers = #tpu.dot_dimension_numbers<[1], [0], [0], [1], [0, 0, 1, 1], [], []>} : vector<32x32xbf16>, vector<32x8xbf16>, vector<32x8xf32> -> vector<32x8xf32>
    %392 = vector.extract_strided_slice %341 {offsets = [2, 0], sizes = [1, 8], strides = [1, 1]} : vector<4x8xf32> to vector<1x8xf32>
    %393 = vector.broadcast %392 : vector<1x8xf32> to vector<32x8xf32>
    %394 = arith.addf %391, %393 : vector<32x8xf32>
    %395 = arith.truncf %394 : vector<32x8xf32> to vector<32x8xbf16>
    %c768 = arith.constant 768 : index
    %c0_129 = arith.constant 0 : index
    %396 = vector.load %arg2[%c768, %c0_129] : memref<1888x128xbf16, #tpu.memory_space<vmem>>, vector<32x8xbf16>
    %cst_130 = arith.constant dense<0.000000e+00> : vector<32x8xf32>
    %397 = tpu.matmul %338, %396, %cst_130 {dimension_numbers = #tpu.dot_dimension_numbers<[1], [0], [0], [1], [0, 0, 1, 1], [], []>} : vector<32x32xbf16>, vector<32x8xbf16>, vector<32x8xf32> -> vector<32x8xf32>
    %398 = vector.extract_strided_slice %339 {offsets = [3, 0], sizes = [1, 8], strides = [1, 1]} : vector<4x8xf32> to vector<1x8xf32>
    %399 = vector.broadcast %398 : vector<1x8xf32> to vector<32x8xf32>
    %400 = arith.addf %397, %399 : vector<32x8xf32>
    %401 = arith.truncf %400 : vector<32x8xf32> to vector<32x8xbf16>
    %c896 = arith.constant 896 : index
    %c0_131 = arith.constant 0 : index
    %402 = vector.load %arg2[%c896, %c0_131] : memref<1888x128xbf16, #tpu.memory_space<vmem>>, vector<32x8xbf16>
    %cst_132 = arith.constant dense<0.000000e+00> : vector<32x8xf32>
    %403 = tpu.matmul %338, %402, %cst_132 {dimension_numbers = #tpu.dot_dimension_numbers<[1], [0], [0], [1], [0, 0, 1, 1], [], []>} : vector<32x32xbf16>, vector<32x8xbf16>, vector<32x8xf32> -> vector<32x8xf32>
    %404 = vector.extract_strided_slice %340 {offsets = [3, 0], sizes = [1, 8], strides = [1, 1]} : vector<4x8xf32> to vector<1x8xf32>
    %405 = vector.broadcast %404 : vector<1x8xf32> to vector<32x8xf32>
    %406 = arith.addf %403, %405 : vector<32x8xf32>
    %407 = arith.truncf %406 : vector<32x8xf32> to vector<32x8xbf16>
    %c1024 = arith.constant 1024 : index
    %c0_133 = arith.constant 0 : index
    %408 = vector.load %arg2[%c1024, %c0_133] : memref<1888x128xbf16, #tpu.memory_space<vmem>>, vector<32x8xbf16>
    %cst_134 = arith.constant dense<0.000000e+00> : vector<32x8xf32>
    %409 = tpu.matmul %338, %408, %cst_134 {dimension_numbers = #tpu.dot_dimension_numbers<[1], [0], [0], [1], [0, 0, 1, 1], [], []>} : vector<32x32xbf16>, vector<32x8xbf16>, vector<32x8xf32> -> vector<32x8xf32>
    %410 = vector.extract_strided_slice %341 {offsets = [3, 0], sizes = [1, 8], strides = [1, 1]} : vector<4x8xf32> to vector<1x8xf32>
    %411 = vector.broadcast %410 : vector<1x8xf32> to vector<32x8xf32>
    %412 = arith.addf %409, %411 : vector<32x8xf32>
    %413 = arith.truncf %412 : vector<32x8xf32> to vector<32x8xbf16>
    %414 = vector.extract_strided_slice %347 {offsets = [0, 0], sizes = [16, 8], strides = [1, 1]} : vector<32x8xbf16> to vector<16x8xbf16>
    %415 = vector.extract_strided_slice %353 {offsets = [0, 0], sizes = [16, 8], strides = [1, 1]} : vector<32x8xbf16> to vector<16x8xbf16>
    %cst_135 = arith.constant dense<0.000000e+00> : vector<16x16xf32>
    %416 = tpu.matmul %414, %415, %cst_135 {dimension_numbers = #tpu.dot_dimension_numbers<[1], [1], [0], [0], [0, 0, 1, 0], [], []>} : vector<16x8xbf16>, vector<16x8xbf16>, vector<16x16xf32> -> vector<16x16xf32>
    %cst_136 = arith.constant dense<0xFF800000> : vector<16xf32>
    %417 = vector.multi_reduction <maximumf>, %416, %cst_136 [1] : vector<16x16xf32> to vector<16xf32>
    %418 = vector.shape_cast %417 : vector<16xf32> to vector<16x1xf32>
    %419 = vector.broadcast %418 : vector<16x1xf32> to vector<16x16xf32>
    %420 = arith.subf %416, %419 : vector<16x16xf32>
    %421 = math.exp %420 : vector<16x16xf32>
    %cst_137 = arith.constant dense<0.000000e+00> : vector<16xf32>
    %422 = vector.multi_reduction <add>, %421, %cst_137 [1] : vector<16x16xf32> to vector<16xf32>
    %423 = vector.shape_cast %422 : vector<16xf32> to vector<16x1xf32>
    %424 = vector.broadcast %423 : vector<16x1xf32> to vector<16x16xf32>
    %425 = arith.divf %421, %424 : vector<16x16xf32>
    %426 = arith.truncf %425 : vector<16x16xf32> to vector<16x16xbf16>
    %427 = vector.extract_strided_slice %359 {offsets = [0, 0], sizes = [16, 8], strides = [1, 1]} : vector<32x8xbf16> to vector<16x8xbf16>
    %cst_138 = arith.constant dense<0.000000e+00> : vector<16x8xf32>
    %428 = tpu.matmul %426, %427, %cst_138 {dimension_numbers = #tpu.dot_dimension_numbers<[1], [0], [0], [1], [0, 0, 1, 1], [], []>} : vector<16x16xbf16>, vector<16x8xbf16>, vector<16x8xf32> -> vector<16x8xf32>
    %429 = arith.truncf %428 : vector<16x8xf32> to vector<16x8xbf16>
    %430 = vector.extract_strided_slice %365 {offsets = [0, 0], sizes = [16, 8], strides = [1, 1]} : vector<32x8xbf16> to vector<16x8xbf16>
    %431 = vector.extract_strided_slice %371 {offsets = [0, 0], sizes = [16, 8], strides = [1, 1]} : vector<32x8xbf16> to vector<16x8xbf16>
    %cst_139 = arith.constant dense<0.000000e+00> : vector<16x16xf32>
    %432 = tpu.matmul %430, %431, %cst_139 {dimension_numbers = #tpu.dot_dimension_numbers<[1], [1], [0], [0], [0, 0, 1, 0], [], []>} : vector<16x8xbf16>, vector<16x8xbf16>, vector<16x16xf32> -> vector<16x16xf32>
    %cst_140 = arith.constant dense<0xFF800000> : vector<16xf32>
    %433 = vector.multi_reduction <maximumf>, %432, %cst_140 [1] : vector<16x16xf32> to vector<16xf32>
    %434 = vector.shape_cast %433 : vector<16xf32> to vector<16x1xf32>
    %435 = vector.broadcast %434 : vector<16x1xf32> to vector<16x16xf32>
    %436 = arith.subf %432, %435 : vector<16x16xf32>
    %437 = math.exp %436 : vector<16x16xf32>
    %cst_141 = arith.constant dense<0.000000e+00> : vector<16xf32>
    %438 = vector.multi_reduction <add>, %437, %cst_141 [1] : vector<16x16xf32> to vector<16xf32>
    %439 = vector.shape_cast %438 : vector<16xf32> to vector<16x1xf32>
    %440 = vector.broadcast %439 : vector<16x1xf32> to vector<16x16xf32>
    %441 = arith.divf %437, %440 : vector<16x16xf32>
    %442 = arith.truncf %441 : vector<16x16xf32> to vector<16x16xbf16>
    %443 = vector.extract_strided_slice %377 {offsets = [0, 0], sizes = [16, 8], strides = [1, 1]} : vector<32x8xbf16> to vector<16x8xbf16>
    %cst_142 = arith.constant dense<0.000000e+00> : vector<16x8xf32>
    %444 = tpu.matmul %442, %443, %cst_142 {dimension_numbers = #tpu.dot_dimension_numbers<[1], [0], [0], [1], [0, 0, 1, 1], [], []>} : vector<16x16xbf16>, vector<16x8xbf16>, vector<16x8xf32> -> vector<16x8xf32>
    %445 = arith.truncf %444 : vector<16x8xf32> to vector<16x8xbf16>
    %446 = vector.extract_strided_slice %383 {offsets = [0, 0], sizes = [16, 8], strides = [1, 1]} : vector<32x8xbf16> to vector<16x8xbf16>
    %447 = vector.extract_strided_slice %389 {offsets = [0, 0], sizes = [16, 8], strides = [1, 1]} : vector<32x8xbf16> to vector<16x8xbf16>
    %cst_143 = arith.constant dense<0.000000e+00> : vector<16x16xf32>
    %448 = tpu.matmul %446, %447, %cst_143 {dimension_numbers = #tpu.dot_dimension_numbers<[1], [1], [0], [0], [0, 0, 1, 0], [], []>} : vector<16x8xbf16>, vector<16x8xbf16>, vector<16x16xf32> -> vector<16x16xf32>
    %cst_144 = arith.constant dense<0xFF800000> : vector<16xf32>
    %449 = vector.multi_reduction <maximumf>, %448, %cst_144 [1] : vector<16x16xf32> to vector<16xf32>
    %450 = vector.shape_cast %449 : vector<16xf32> to vector<16x1xf32>
    %451 = vector.broadcast %450 : vector<16x1xf32> to vector<16x16xf32>
    %452 = arith.subf %448, %451 : vector<16x16xf32>
    %453 = math.exp %452 : vector<16x16xf32>
    %cst_145 = arith.constant dense<0.000000e+00> : vector<16xf32>
    %454 = vector.multi_reduction <add>, %453, %cst_145 [1] : vector<16x16xf32> to vector<16xf32>
    %455 = vector.shape_cast %454 : vector<16xf32> to vector<16x1xf32>
    %456 = vector.broadcast %455 : vector<16x1xf32> to vector<16x16xf32>
    %457 = arith.divf %453, %456 : vector<16x16xf32>
    %458 = arith.truncf %457 : vector<16x16xf32> to vector<16x16xbf16>
    %459 = vector.extract_strided_slice %395 {offsets = [0, 0], sizes = [16, 8], strides = [1, 1]} : vector<32x8xbf16> to vector<16x8xbf16>
    %cst_146 = arith.constant dense<0.000000e+00> : vector<16x8xf32>
    %460 = tpu.matmul %458, %459, %cst_146 {dimension_numbers = #tpu.dot_dimension_numbers<[1], [0], [0], [1], [0, 0, 1, 1], [], []>} : vector<16x16xbf16>, vector<16x8xbf16>, vector<16x8xf32> -> vector<16x8xf32>
    %461 = arith.truncf %460 : vector<16x8xf32> to vector<16x8xbf16>
    %462 = vector.extract_strided_slice %401 {offsets = [0, 0], sizes = [16, 8], strides = [1, 1]} : vector<32x8xbf16> to vector<16x8xbf16>
    %463 = vector.extract_strided_slice %407 {offsets = [0, 0], sizes = [16, 8], strides = [1, 1]} : vector<32x8xbf16> to vector<16x8xbf16>
    %cst_147 = arith.constant dense<0.000000e+00> : vector<16x16xf32>
    %464 = tpu.matmul %462, %463, %cst_147 {dimension_numbers = #tpu.dot_dimension_numbers<[1], [1], [0], [0], [0, 0, 1, 0], [], []>} : vector<16x8xbf16>, vector<16x8xbf16>, vector<16x16xf32> -> vector<16x16xf32>
    %cst_148 = arith.constant dense<0xFF800000> : vector<16xf32>
    %465 = vector.multi_reduction <maximumf>, %464, %cst_148 [1] : vector<16x16xf32> to vector<16xf32>
    %466 = vector.shape_cast %465 : vector<16xf32> to vector<16x1xf32>
    %467 = vector.broadcast %466 : vector<16x1xf32> to vector<16x16xf32>
    %468 = arith.subf %464, %467 : vector<16x16xf32>
    %469 = math.exp %468 : vector<16x16xf32>
    %cst_149 = arith.constant dense<0.000000e+00> : vector<16xf32>
    %470 = vector.multi_reduction <add>, %469, %cst_149 [1] : vector<16x16xf32> to vector<16xf32>
    %471 = vector.shape_cast %470 : vector<16xf32> to vector<16x1xf32>
    %472 = vector.broadcast %471 : vector<16x1xf32> to vector<16x16xf32>
    %473 = arith.divf %469, %472 : vector<16x16xf32>
    %474 = arith.truncf %473 : vector<16x16xf32> to vector<16x16xbf16>
    %475 = vector.extract_strided_slice %413 {offsets = [0, 0], sizes = [16, 8], strides = [1, 1]} : vector<32x8xbf16> to vector<16x8xbf16>
    %cst_150 = arith.constant dense<0.000000e+00> : vector<16x8xf32>
    %476 = tpu.matmul %474, %475, %cst_150 {dimension_numbers = #tpu.dot_dimension_numbers<[1], [0], [0], [1], [0, 0, 1, 1], [], []>} : vector<16x16xbf16>, vector<16x8xbf16>, vector<16x8xf32> -> vector<16x8xf32>
    %477 = arith.truncf %476 : vector<16x8xf32> to vector<16x8xbf16>
    %478 = tpu.concatenate %429, %445, %461, %477 in 1 : vector<16x8xbf16>, vector<16x8xbf16>, vector<16x8xbf16>, vector<16x8xbf16> -> vector<16x32xbf16>
    %479 = vector.extract_strided_slice %347 {offsets = [16, 0], sizes = [16, 8], strides = [1, 1]} : vector<32x8xbf16> to vector<16x8xbf16>
    %480 = vector.extract_strided_slice %353 {offsets = [16, 0], sizes = [16, 8], strides = [1, 1]} : vector<32x8xbf16> to vector<16x8xbf16>
    %cst_151 = arith.constant dense<0.000000e+00> : vector<16x16xf32>
    %481 = tpu.matmul %479, %480, %cst_151 {dimension_numbers = #tpu.dot_dimension_numbers<[1], [1], [0], [0], [0, 0, 1, 0], [], []>} : vector<16x8xbf16>, vector<16x8xbf16>, vector<16x16xf32> -> vector<16x16xf32>
    %cst_152 = arith.constant dense<0xFF800000> : vector<16xf32>
    %482 = vector.multi_reduction <maximumf>, %481, %cst_152 [1] : vector<16x16xf32> to vector<16xf32>
    %483 = vector.shape_cast %482 : vector<16xf32> to vector<16x1xf32>
    %484 = vector.broadcast %483 : vector<16x1xf32> to vector<16x16xf32>
    %485 = arith.subf %481, %484 : vector<16x16xf32>
    %486 = math.exp %485 : vector<16x16xf32>
    %cst_153 = arith.constant dense<0.000000e+00> : vector<16xf32>
    %487 = vector.multi_reduction <add>, %486, %cst_153 [1] : vector<16x16xf32> to vector<16xf32>
    %488 = vector.shape_cast %487 : vector<16xf32> to vector<16x1xf32>
    %489 = vector.broadcast %488 : vector<16x1xf32> to vector<16x16xf32>
    %490 = arith.divf %486, %489 : vector<16x16xf32>
    %491 = arith.truncf %490 : vector<16x16xf32> to vector<16x16xbf16>
    %492 = vector.extract_strided_slice %359 {offsets = [16, 0], sizes = [16, 8], strides = [1, 1]} : vector<32x8xbf16> to vector<16x8xbf16>
    %cst_154 = arith.constant dense<0.000000e+00> : vector<16x8xf32>
    %493 = tpu.matmul %491, %492, %cst_154 {dimension_numbers = #tpu.dot_dimension_numbers<[1], [0], [0], [1], [0, 0, 1, 1], [], []>} : vector<16x16xbf16>, vector<16x8xbf16>, vector<16x8xf32> -> vector<16x8xf32>
    %494 = arith.truncf %493 : vector<16x8xf32> to vector<16x8xbf16>
    %495 = vector.extract_strided_slice %365 {offsets = [16, 0], sizes = [16, 8], strides = [1, 1]} : vector<32x8xbf16> to vector<16x8xbf16>
    %496 = vector.extract_strided_slice %371 {offsets = [16, 0], sizes = [16, 8], strides = [1, 1]} : vector<32x8xbf16> to vector<16x8xbf16>
    %cst_155 = arith.constant dense<0.000000e+00> : vector<16x16xf32>
    %497 = tpu.matmul %495, %496, %cst_155 {dimension_numbers = #tpu.dot_dimension_numbers<[1], [1], [0], [0], [0, 0, 1, 0], [], []>} : vector<16x8xbf16>, vector<16x8xbf16>, vector<16x16xf32> -> vector<16x16xf32>
    %cst_156 = arith.constant dense<0xFF800000> : vector<16xf32>
    %498 = vector.multi_reduction <maximumf>, %497, %cst_156 [1] : vector<16x16xf32> to vector<16xf32>
    %499 = vector.shape_cast %498 : vector<16xf32> to vector<16x1xf32>
    %500 = vector.broadcast %499 : vector<16x1xf32> to vector<16x16xf32>
    %501 = arith.subf %497, %500 : vector<16x16xf32>
    %502 = math.exp %501 : vector<16x16xf32>
    %cst_157 = arith.constant dense<0.000000e+00> : vector<16xf32>
    %503 = vector.multi_reduction <add>, %502, %cst_157 [1] : vector<16x16xf32> to vector<16xf32>
    %504 = vector.shape_cast %503 : vector<16xf32> to vector<16x1xf32>
    %505 = vector.broadcast %504 : vector<16x1xf32> to vector<16x16xf32>
    %506 = arith.divf %502, %505 : vector<16x16xf32>
    %507 = arith.truncf %506 : vector<16x16xf32> to vector<16x16xbf16>
    %508 = vector.extract_strided_slice %377 {offsets = [16, 0], sizes = [16, 8], strides = [1, 1]} : vector<32x8xbf16> to vector<16x8xbf16>
    %cst_158 = arith.constant dense<0.000000e+00> : vector<16x8xf32>
    %509 = tpu.matmul %507, %508, %cst_158 {dimension_numbers = #tpu.dot_dimension_numbers<[1], [0], [0], [1], [0, 0, 1, 1], [], []>} : vector<16x16xbf16>, vector<16x8xbf16>, vector<16x8xf32> -> vector<16x8xf32>
    %510 = arith.truncf %509 : vector<16x8xf32> to vector<16x8xbf16>
    %511 = vector.extract_strided_slice %383 {offsets = [16, 0], sizes = [16, 8], strides = [1, 1]} : vector<32x8xbf16> to vector<16x8xbf16>
    %512 = vector.extract_strided_slice %389 {offsets = [16, 0], sizes = [16, 8], strides = [1, 1]} : vector<32x8xbf16> to vector<16x8xbf16>
    %cst_159 = arith.constant dense<0.000000e+00> : vector<16x16xf32>
    %513 = tpu.matmul %511, %512, %cst_159 {dimension_numbers = #tpu.dot_dimension_numbers<[1], [1], [0], [0], [0, 0, 1, 0], [], []>} : vector<16x8xbf16>, vector<16x8xbf16>, vector<16x16xf32> -> vector<16x16xf32>
    %cst_160 = arith.constant dense<0xFF800000> : vector<16xf32>
    %514 = vector.multi_reduction <maximumf>, %513, %cst_160 [1] : vector<16x16xf32> to vector<16xf32>
    %515 = vector.shape_cast %514 : vector<16xf32> to vector<16x1xf32>
    %516 = vector.broadcast %515 : vector<16x1xf32> to vector<16x16xf32>
    %517 = arith.subf %513, %516 : vector<16x16xf32>
    %518 = math.exp %517 : vector<16x16xf32>
    %cst_161 = arith.constant dense<0.000000e+00> : vector<16xf32>
    %519 = vector.multi_reduction <add>, %518, %cst_161 [1] : vector<16x16xf32> to vector<16xf32>
    %520 = vector.shape_cast %519 : vector<16xf32> to vector<16x1xf32>
    %521 = vector.broadcast %520 : vector<16x1xf32> to vector<16x16xf32>
    %522 = arith.divf %518, %521 : vector<16x16xf32>
    %523 = arith.truncf %522 : vector<16x16xf32> to vector<16x16xbf16>
    %524 = vector.extract_strided_slice %395 {offsets = [16, 0], sizes = [16, 8], strides = [1, 1]} : vector<32x8xbf16> to vector<16x8xbf16>
    %cst_162 = arith.constant dense<0.000000e+00> : vector<16x8xf32>
    %525 = tpu.matmul %523, %524, %cst_162 {dimension_numbers = #tpu.dot_dimension_numbers<[1], [0], [0], [1], [0, 0, 1, 1], [], []>} : vector<16x16xbf16>, vector<16x8xbf16>, vector<16x8xf32> -> vector<16x8xf32>
    %526 = arith.truncf %525 : vector<16x8xf32> to vector<16x8xbf16>
    %527 = vector.extract_strided_slice %401 {offsets = [16, 0], sizes = [16, 8], strides = [1, 1]} : vector<32x8xbf16> to vector<16x8xbf16>
    %528 = vector.extract_strided_slice %407 {offsets = [16, 0], sizes = [16, 8], strides = [1, 1]} : vector<32x8xbf16> to vector<16x8xbf16>
    %cst_163 = arith.constant dense<0.000000e+00> : vector<16x16xf32>
    %529 = tpu.matmul %527, %528, %cst_163 {dimension_numbers = #tpu.dot_dimension_numbers<[1], [1], [0], [0], [0, 0, 1, 0], [], []>} : vector<16x8xbf16>, vector<16x8xbf16>, vector<16x16xf32> -> vector<16x16xf32>
    %cst_164 = arith.constant dense<0xFF800000> : vector<16xf32>
    %530 = vector.multi_reduction <maximumf>, %529, %cst_164 [1] : vector<16x16xf32> to vector<16xf32>
    %531 = vector.shape_cast %530 : vector<16xf32> to vector<16x1xf32>
    %532 = vector.broadcast %531 : vector<16x1xf32> to vector<16x16xf32>
    %533 = arith.subf %529, %532 : vector<16x16xf32>
    %534 = math.exp %533 : vector<16x16xf32>
    %cst_165 = arith.constant dense<0.000000e+00> : vector<16xf32>
    %535 = vector.multi_reduction <add>, %534, %cst_165 [1] : vector<16x16xf32> to vector<16xf32>
    %536 = vector.shape_cast %535 : vector<16xf32> to vector<16x1xf32>
    %537 = vector.broadcast %536 : vector<16x1xf32> to vector<16x16xf32>
    %538 = arith.divf %534, %537 : vector<16x16xf32>
    %539 = arith.truncf %538 : vector<16x16xf32> to vector<16x16xbf16>
    %540 = vector.extract_strided_slice %413 {offsets = [16, 0], sizes = [16, 8], strides = [1, 1]} : vector<32x8xbf16> to vector<16x8xbf16>
    %cst_166 = arith.constant dense<0.000000e+00> : vector<16x8xf32>
    %541 = tpu.matmul %539, %540, %cst_166 {dimension_numbers = #tpu.dot_dimension_numbers<[1], [0], [0], [1], [0, 0, 1, 1], [], []>} : vector<16x16xbf16>, vector<16x8xbf16>, vector<16x8xf32> -> vector<16x8xf32>
    %542 = arith.truncf %541 : vector<16x8xf32> to vector<16x8xbf16>
    %543 = tpu.concatenate %494, %510, %526, %542 in 1 : vector<16x8xbf16>, vector<16x8xbf16>, vector<16x8xbf16>, vector<16x8xbf16> -> vector<16x32xbf16>
    %544 = tpu.concatenate %478, %543 in 0 : vector<16x32xbf16>, vector<16x32xbf16> -> vector<32x32xbf16>
    %c1056 = arith.constant 1056 : index
    %c0_167 = arith.constant 0 : index
    %545 = vector.load %arg2[%c1056, %c0_167] : memref<1888x128xbf16, #tpu.memory_space<vmem>>, vector<32x32xbf16>
    %cst_168 = arith.constant dense<0.000000e+00> : vector<32x32xf32>
    %546 = tpu.matmul %544, %545, %cst_168 {dimension_numbers = #tpu.dot_dimension_numbers<[1], [0], [0], [1], [0, 0, 1, 1], [], []>} : vector<32x32xbf16>, vector<32x32xbf16>, vector<32x32xf32> -> vector<32x32xf32>
    %547 = arith.addf %313, %546 : vector<32x32xf32>
    %c232 = arith.constant 232 : index
    %c0_169 = arith.constant 0 : index
    %548 = vector.load %arg3[%c232, %c0_169] : memref<352x128xf32, #tpu.memory_space<vmem>>, vector<1x32xf32>
    %549 = vector.broadcast %548 : vector<1x32xf32> to vector<32x32xf32>
    %550 = arith.addf %547, %549 : vector<32x32xf32>
    %c240 = arith.constant 240 : index
    %c0_170 = arith.constant 0 : index
    %551 = vector.load %arg3[%c240, %c0_170] : memref<352x128xf32, #tpu.memory_space<vmem>>, vector<1x32xf32>
    %c248 = arith.constant 248 : index
    %c0_171 = arith.constant 0 : index
    %552 = vector.load %arg3[%c248, %c0_171] : memref<352x128xf32, #tpu.memory_space<vmem>>, vector<1x32xf32>
    %cst_172 = arith.constant dense<0.000000e+00> : vector<32xf32>
    %553 = vector.multi_reduction <add>, %550, %cst_172 [1] : vector<32x32xf32> to vector<32xf32>
    %554 = vector.shape_cast %553 : vector<32xf32> to vector<32x1xf32>
    %cst_173 = arith.constant 3.200000e+01 : f32
    %555 = vector.broadcast %cst_173 : f32 to vector<32x1xf32>
    %556 = arith.divf %554, %555 : vector<32x1xf32>
    %557 = vector.broadcast %556 : vector<32x1xf32> to vector<32x32xf32>
    %558 = arith.subf %550, %557 : vector<32x32xf32>
    %559 = arith.mulf %558, %558 : vector<32x32xf32>
    %cst_174 = arith.constant dense<0.000000e+00> : vector<32xf32>
    %560 = vector.multi_reduction <add>, %559, %cst_174 [1] : vector<32x32xf32> to vector<32xf32>
    %561 = vector.shape_cast %560 : vector<32xf32> to vector<32x1xf32>
    %cst_175 = arith.constant 3.200000e+01 : f32
    %562 = vector.broadcast %cst_175 : f32 to vector<32x1xf32>
    %563 = arith.divf %561, %562 : vector<32x1xf32>
    %564 = vector.broadcast %556 : vector<32x1xf32> to vector<32x32xf32>
    %565 = arith.subf %550, %564 : vector<32x32xf32>
    %cst_176 = arith.constant 9.99999997E-7 : f32
    %566 = vector.broadcast %cst_176 : f32 to vector<32x1xf32>
    %567 = arith.addf %563, %566 : vector<32x1xf32>
    %568 = math.rsqrt %567 : vector<32x1xf32>
    %569 = vector.broadcast %568 : vector<32x1xf32> to vector<32x32xf32>
    %570 = arith.mulf %565, %569 : vector<32x32xf32>
    %571 = vector.broadcast %551 : vector<1x32xf32> to vector<32x32xf32>
    %572 = arith.mulf %570, %571 : vector<32x32xf32>
    %573 = vector.broadcast %552 : vector<1x32xf32> to vector<32x32xf32>
    %574 = arith.addf %572, %573 : vector<32x32xf32>
    %575 = arith.truncf %574 : vector<32x32xf32> to vector<32x32xbf16>
    %c1088 = arith.constant 1088 : index
    %c0_177 = arith.constant 0 : index
    %576 = vector.load %arg2[%c1088, %c0_177] : memref<1888x128xbf16, #tpu.memory_space<vmem>>, vector<32x128xbf16>
    %cst_178 = arith.constant dense<0.000000e+00> : vector<32x128xf32>
    %577 = tpu.matmul %575, %576, %cst_178 {dimension_numbers = #tpu.dot_dimension_numbers<[1], [0], [0], [1], [0, 0, 1, 1], [], []>} : vector<32x32xbf16>, vector<32x128xbf16>, vector<32x128xf32> -> vector<32x128xf32>
    %c256_179 = arith.constant 256 : index
    %c0_180 = arith.constant 0 : index
    %578 = vector.load %arg3[%c256_179, %c0_180] : memref<352x128xf32, #tpu.memory_space<vmem>>, vector<1x128xf32>
    %579 = vector.broadcast %578 : vector<1x128xf32> to vector<32x128xf32>
    %580 = arith.addf %577, %579 : vector<32x128xf32>
    %cst_181 = arith.constant 5.000000e-01 : f32
    %581 = vector.broadcast %cst_181 : f32 to vector<32x128xf32>
    %582 = arith.mulf %581, %580 : vector<32x128xf32>
    %cst_182 = arith.constant 4.471500e-02 : f32
    %583 = vector.broadcast %cst_182 : f32 to vector<32x128xf32>
    %584 = arith.mulf %583, %580 : vector<32x128xf32>
    %585 = arith.mulf %584, %580 : vector<32x128xf32>
    %586 = arith.mulf %585, %580 : vector<32x128xf32>
    %587 = arith.addf %580, %586 : vector<32x128xf32>
    %cst_183 = arith.constant 0.797884583 : f32
    %588 = vector.broadcast %cst_183 : f32 to vector<32x128xf32>
    %589 = arith.mulf %588, %587 : vector<32x128xf32>
    %590 = math.tanh %589 : vector<32x128xf32>
    %cst_184 = arith.constant 1.000000e+00 : f32
    %591 = vector.broadcast %cst_184 : f32 to vector<32x128xf32>
    %592 = arith.addf %591, %590 : vector<32x128xf32>
    %593 = arith.mulf %582, %592 : vector<32x128xf32>
    %594 = arith.truncf %593 : vector<32x128xf32> to vector<32x128xbf16>
    %c1120 = arith.constant 1120 : index
    %c0_185 = arith.constant 0 : index
    %595 = vector.load %arg2[%c1120, %c0_185] : memref<1888x128xbf16, #tpu.memory_space<vmem>>, vector<128x32xbf16>
    %cst_186 = arith.constant dense<0.000000e+00> : vector<32x32xf32>
    %596 = tpu.matmul %594, %595, %cst_186 {dimension_numbers = #tpu.dot_dimension_numbers<[1], [0], [0], [1], [0, 0, 1, 1], [], []>} : vector<32x128xbf16>, vector<128x32xbf16>, vector<32x32xf32> -> vector<32x32xf32>
    %597 = arith.addf %550, %596 : vector<32x32xf32>
    %c264 = arith.constant 264 : index
    %c0_187 = arith.constant 0 : index
    %598 = vector.load %arg3[%c264, %c0_187] : memref<352x128xf32, #tpu.memory_space<vmem>>, vector<1x32xf32>
    %599 = vector.broadcast %598 : vector<1x32xf32> to vector<32x32xf32>
    %600 = arith.addf %597, %599 : vector<32x32xf32>
    %c40 = arith.constant 40 : index
    %c0_188 = arith.constant 0 : index
    %601 = vector.load %arg3[%c40, %c0_188] : memref<352x128xf32, #tpu.memory_space<vmem>>, vector<1x32xf32>
    %c48 = arith.constant 48 : index
    %c0_189 = arith.constant 0 : index
    %602 = vector.load %arg3[%c48, %c0_189] : memref<352x128xf32, #tpu.memory_space<vmem>>, vector<1x32xf32>
    %cst_190 = arith.constant dense<0.000000e+00> : vector<32xf32>
    %603 = vector.multi_reduction <add>, %600, %cst_190 [1] : vector<32x32xf32> to vector<32xf32>
    %604 = vector.shape_cast %603 : vector<32xf32> to vector<32x1xf32>
    %cst_191 = arith.constant 3.200000e+01 : f32
    %605 = vector.broadcast %cst_191 : f32 to vector<32x1xf32>
    %606 = arith.divf %604, %605 : vector<32x1xf32>
    %607 = vector.broadcast %606 : vector<32x1xf32> to vector<32x32xf32>
    %608 = arith.subf %600, %607 : vector<32x32xf32>
    %609 = arith.mulf %608, %608 : vector<32x32xf32>
    %cst_192 = arith.constant dense<0.000000e+00> : vector<32xf32>
    %610 = vector.multi_reduction <add>, %609, %cst_192 [1] : vector<32x32xf32> to vector<32xf32>
    %611 = vector.shape_cast %610 : vector<32xf32> to vector<32x1xf32>
    %cst_193 = arith.constant 3.200000e+01 : f32
    %612 = vector.broadcast %cst_193 : f32 to vector<32x1xf32>
    %613 = arith.divf %611, %612 : vector<32x1xf32>
    %614 = vector.broadcast %606 : vector<32x1xf32> to vector<32x32xf32>
    %615 = arith.subf %600, %614 : vector<32x32xf32>
    %cst_194 = arith.constant 9.99999997E-7 : f32
    %616 = vector.broadcast %cst_194 : f32 to vector<32x1xf32>
    %617 = arith.addf %613, %616 : vector<32x1xf32>
    %618 = math.rsqrt %617 : vector<32x1xf32>
    %619 = vector.broadcast %618 : vector<32x1xf32> to vector<32x32xf32>
    %620 = arith.mulf %615, %619 : vector<32x32xf32>
    %621 = vector.broadcast %601 : vector<1x32xf32> to vector<32x32xf32>
    %622 = arith.mulf %620, %621 : vector<32x32xf32>
    %623 = vector.broadcast %602 : vector<1x32xf32> to vector<32x32xf32>
    %624 = arith.addf %622, %623 : vector<32x32xf32>
    %625 = arith.truncf %624 : vector<32x32xf32> to vector<32x32xbf16>
    %c1824 = arith.constant 1824 : index
    %c0_195 = arith.constant 0 : index
    %626 = vector.load %arg2[%c1824, %c0_195] : memref<1888x128xbf16, #tpu.memory_space<vmem>>, vector<32x32xbf16>
    %cst_196 = arith.constant dense<0.000000e+00> : vector<32x32xf32>
    %627 = tpu.matmul %625, %626, %cst_196 {dimension_numbers = #tpu.dot_dimension_numbers<[1], [0], [0], [1], [0, 0, 1, 1], [], []>} : vector<32x32xbf16>, vector<32x32xbf16>, vector<32x32xf32> -> vector<32x32xf32>
    %c56 = arith.constant 56 : index
    %c0_197 = arith.constant 0 : index
    %628 = vector.load %arg3[%c56, %c0_197] : memref<352x128xf32, #tpu.memory_space<vmem>>, vector<32x32xf32>
    %629 = arith.addf %627, %628 : vector<32x32xf32>
    %c272 = arith.constant 272 : index
    %c0_198 = arith.constant 0 : index
    %630 = vector.load %arg3[%c272, %c0_198] : memref<352x128xf32, #tpu.memory_space<vmem>>, vector<1x32xf32>
    %c280 = arith.constant 280 : index
    %c0_199 = arith.constant 0 : index
    %631 = vector.load %arg3[%c280, %c0_199] : memref<352x128xf32, #tpu.memory_space<vmem>>, vector<1x32xf32>
    %cst_200 = arith.constant dense<0.000000e+00> : vector<32xf32>
    %632 = vector.multi_reduction <add>, %629, %cst_200 [1] : vector<32x32xf32> to vector<32xf32>
    %633 = vector.shape_cast %632 : vector<32xf32> to vector<32x1xf32>
    %cst_201 = arith.constant 3.200000e+01 : f32
    %634 = vector.broadcast %cst_201 : f32 to vector<32x1xf32>
    %635 = arith.divf %633, %634 : vector<32x1xf32>
    %636 = vector.broadcast %635 : vector<32x1xf32> to vector<32x32xf32>
    %637 = arith.subf %629, %636 : vector<32x32xf32>
    %638 = arith.mulf %637, %637 : vector<32x32xf32>
    %cst_202 = arith.constant dense<0.000000e+00> : vector<32xf32>
    %639 = vector.multi_reduction <add>, %638, %cst_202 [1] : vector<32x32xf32> to vector<32xf32>
    %640 = vector.shape_cast %639 : vector<32xf32> to vector<32x1xf32>
    %cst_203 = arith.constant 3.200000e+01 : f32
    %641 = vector.broadcast %cst_203 : f32 to vector<32x1xf32>
    %642 = arith.divf %640, %641 : vector<32x1xf32>
    %643 = vector.broadcast %635 : vector<32x1xf32> to vector<32x32xf32>
    %644 = arith.subf %629, %643 : vector<32x32xf32>
    %cst_204 = arith.constant 9.99999997E-7 : f32
    %645 = vector.broadcast %cst_204 : f32 to vector<32x1xf32>
    %646 = arith.addf %642, %645 : vector<32x1xf32>
    %647 = math.rsqrt %646 : vector<32x1xf32>
    %648 = vector.broadcast %647 : vector<32x1xf32> to vector<32x32xf32>
    %649 = arith.mulf %644, %648 : vector<32x32xf32>
    %650 = vector.broadcast %630 : vector<1x32xf32> to vector<32x32xf32>
    %651 = arith.mulf %649, %650 : vector<32x32xf32>
    %652 = vector.broadcast %631 : vector<1x32xf32> to vector<32x32xf32>
    %653 = arith.addf %651, %652 : vector<32x32xf32>
    %654 = arith.truncf %653 : vector<32x32xf32> to vector<32x32xbf16>
    %c288_205 = arith.constant 288 : index
    %c0_206 = arith.constant 0 : index
    %655 = vector.load %arg3[%c288_205, %c0_206] : memref<352x128xf32, #tpu.memory_space<vmem>>, vector<4x8xf32>
    %c296 = arith.constant 296 : index
    %c0_207 = arith.constant 0 : index
    %656 = vector.load %arg3[%c296, %c0_207] : memref<352x128xf32, #tpu.memory_space<vmem>>, vector<4x8xf32>
    %c304 = arith.constant 304 : index
    %c0_208 = arith.constant 0 : index
    %657 = vector.load %arg3[%c304, %c0_208] : memref<352x128xf32, #tpu.memory_space<vmem>>, vector<4x8xf32>
    %c1248 = arith.constant 1248 : index
    %c0_209 = arith.constant 0 : index
    %658 = vector.load %arg2[%c1248, %c0_209] : memref<1888x128xbf16, #tpu.memory_space<vmem>>, vector<32x8xbf16>
    %cst_210 = arith.constant dense<0.000000e+00> : vector<32x8xf32>
    %659 = tpu.matmul %654, %658, %cst_210 {dimension_numbers = #tpu.dot_dimension_numbers<[1], [0], [0], [1], [0, 0, 1, 1], [], []>} : vector<32x32xbf16>, vector<32x8xbf16>, vector<32x8xf32> -> vector<32x8xf32>
    %660 = vector.extract_strided_slice %655 {offsets = [0, 0], sizes = [1, 8], strides = [1, 1]} : vector<4x8xf32> to vector<1x8xf32>
    %661 = vector.broadcast %660 : vector<1x8xf32> to vector<32x8xf32>
    %662 = arith.addf %659, %661 : vector<32x8xf32>
    %663 = arith.truncf %662 : vector<32x8xf32> to vector<32x8xbf16>
    %c1376 = arith.constant 1376 : index
    %c0_211 = arith.constant 0 : index
    %664 = vector.load %arg2[%c1376, %c0_211] : memref<1888x128xbf16, #tpu.memory_space<vmem>>, vector<32x8xbf16>
    %cst_212 = arith.constant dense<0.000000e+00> : vector<32x8xf32>
    %665 = tpu.matmul %654, %664, %cst_212 {dimension_numbers = #tpu.dot_dimension_numbers<[1], [0], [0], [1], [0, 0, 1, 1], [], []>} : vector<32x32xbf16>, vector<32x8xbf16>, vector<32x8xf32> -> vector<32x8xf32>
    %666 = vector.extract_strided_slice %656 {offsets = [0, 0], sizes = [1, 8], strides = [1, 1]} : vector<4x8xf32> to vector<1x8xf32>
    %667 = vector.broadcast %666 : vector<1x8xf32> to vector<32x8xf32>
    %668 = arith.addf %665, %667 : vector<32x8xf32>
    %669 = arith.truncf %668 : vector<32x8xf32> to vector<32x8xbf16>
    %c1504 = arith.constant 1504 : index
    %c0_213 = arith.constant 0 : index
    %670 = vector.load %arg2[%c1504, %c0_213] : memref<1888x128xbf16, #tpu.memory_space<vmem>>, vector<32x8xbf16>
    %cst_214 = arith.constant dense<0.000000e+00> : vector<32x8xf32>
    %671 = tpu.matmul %654, %670, %cst_214 {dimension_numbers = #tpu.dot_dimension_numbers<[1], [0], [0], [1], [0, 0, 1, 1], [], []>} : vector<32x32xbf16>, vector<32x8xbf16>, vector<32x8xf32> -> vector<32x8xf32>
    %672 = vector.extract_strided_slice %657 {offsets = [0, 0], sizes = [1, 8], strides = [1, 1]} : vector<4x8xf32> to vector<1x8xf32>
    %673 = vector.broadcast %672 : vector<1x8xf32> to vector<32x8xf32>
    %674 = arith.addf %671, %673 : vector<32x8xf32>
    %675 = arith.truncf %674 : vector<32x8xf32> to vector<32x8xbf16>
    %c1280 = arith.constant 1280 : index
    %c0_215 = arith.constant 0 : index
    %676 = vector.load %arg2[%c1280, %c0_215] : memref<1888x128xbf16, #tpu.memory_space<vmem>>, vector<32x8xbf16>
    %cst_216 = arith.constant dense<0.000000e+00> : vector<32x8xf32>
    %677 = tpu.matmul %654, %676, %cst_216 {dimension_numbers = #tpu.dot_dimension_numbers<[1], [0], [0], [1], [0, 0, 1, 1], [], []>} : vector<32x32xbf16>, vector<32x8xbf16>, vector<32x8xf32> -> vector<32x8xf32>
    %678 = vector.extract_strided_slice %655 {offsets = [1, 0], sizes = [1, 8], strides = [1, 1]} : vector<4x8xf32> to vector<1x8xf32>
    %679 = vector.broadcast %678 : vector<1x8xf32> to vector<32x8xf32>
    %680 = arith.addf %677, %679 : vector<32x8xf32>
    %681 = arith.truncf %680 : vector<32x8xf32> to vector<32x8xbf16>
    %c1408 = arith.constant 1408 : index
    %c0_217 = arith.constant 0 : index
    %682 = vector.load %arg2[%c1408, %c0_217] : memref<1888x128xbf16, #tpu.memory_space<vmem>>, vector<32x8xbf16>
    %cst_218 = arith.constant dense<0.000000e+00> : vector<32x8xf32>
    %683 = tpu.matmul %654, %682, %cst_218 {dimension_numbers = #tpu.dot_dimension_numbers<[1], [0], [0], [1], [0, 0, 1, 1], [], []>} : vector<32x32xbf16>, vector<32x8xbf16>, vector<32x8xf32> -> vector<32x8xf32>
    %684 = vector.extract_strided_slice %656 {offsets = [1, 0], sizes = [1, 8], strides = [1, 1]} : vector<4x8xf32> to vector<1x8xf32>
    %685 = vector.broadcast %684 : vector<1x8xf32> to vector<32x8xf32>
    %686 = arith.addf %683, %685 : vector<32x8xf32>
    %687 = arith.truncf %686 : vector<32x8xf32> to vector<32x8xbf16>
    %c1536 = arith.constant 1536 : index
    %c0_219 = arith.constant 0 : index
    %688 = vector.load %arg2[%c1536, %c0_219] : memref<1888x128xbf16, #tpu.memory_space<vmem>>, vector<32x8xbf16>
    %cst_220 = arith.constant dense<0.000000e+00> : vector<32x8xf32>
    %689 = tpu.matmul %654, %688, %cst_220 {dimension_numbers = #tpu.dot_dimension_numbers<[1], [0], [0], [1], [0, 0, 1, 1], [], []>} : vector<32x32xbf16>, vector<32x8xbf16>, vector<32x8xf32> -> vector<32x8xf32>
    %690 = vector.extract_strided_slice %657 {offsets = [1, 0], sizes = [1, 8], strides = [1, 1]} : vector<4x8xf32> to vector<1x8xf32>
    %691 = vector.broadcast %690 : vector<1x8xf32> to vector<32x8xf32>
    %692 = arith.addf %689, %691 : vector<32x8xf32>
    %693 = arith.truncf %692 : vector<32x8xf32> to vector<32x8xbf16>
    %c1312 = arith.constant 1312 : index
    %c0_221 = arith.constant 0 : index
    %694 = vector.load %arg2[%c1312, %c0_221] : memref<1888x128xbf16, #tpu.memory_space<vmem>>, vector<32x8xbf16>
    %cst_222 = arith.constant dense<0.000000e+00> : vector<32x8xf32>
    %695 = tpu.matmul %654, %694, %cst_222 {dimension_numbers = #tpu.dot_dimension_numbers<[1], [0], [0], [1], [0, 0, 1, 1], [], []>} : vector<32x32xbf16>, vector<32x8xbf16>, vector<32x8xf32> -> vector<32x8xf32>
    %696 = vector.extract_strided_slice %655 {offsets = [2, 0], sizes = [1, 8], strides = [1, 1]} : vector<4x8xf32> to vector<1x8xf32>
    %697 = vector.broadcast %696 : vector<1x8xf32> to vector<32x8xf32>
    %698 = arith.addf %695, %697 : vector<32x8xf32>
    %699 = arith.truncf %698 : vector<32x8xf32> to vector<32x8xbf16>
    %c1440 = arith.constant 1440 : index
    %c0_223 = arith.constant 0 : index
    %700 = vector.load %arg2[%c1440, %c0_223] : memref<1888x128xbf16, #tpu.memory_space<vmem>>, vector<32x8xbf16>
    %cst_224 = arith.constant dense<0.000000e+00> : vector<32x8xf32>
    %701 = tpu.matmul %654, %700, %cst_224 {dimension_numbers = #tpu.dot_dimension_numbers<[1], [0], [0], [1], [0, 0, 1, 1], [], []>} : vector<32x32xbf16>, vector<32x8xbf16>, vector<32x8xf32> -> vector<32x8xf32>
    %702 = vector.extract_strided_slice %656 {offsets = [2, 0], sizes = [1, 8], strides = [1, 1]} : vector<4x8xf32> to vector<1x8xf32>
    %703 = vector.broadcast %702 : vector<1x8xf32> to vector<32x8xf32>
    %704 = arith.addf %701, %703 : vector<32x8xf32>
    %705 = arith.truncf %704 : vector<32x8xf32> to vector<32x8xbf16>
    %c1568 = arith.constant 1568 : index
    %c0_225 = arith.constant 0 : index
    %706 = vector.load %arg2[%c1568, %c0_225] : memref<1888x128xbf16, #tpu.memory_space<vmem>>, vector<32x8xbf16>
    %cst_226 = arith.constant dense<0.000000e+00> : vector<32x8xf32>
    %707 = tpu.matmul %654, %706, %cst_226 {dimension_numbers = #tpu.dot_dimension_numbers<[1], [0], [0], [1], [0, 0, 1, 1], [], []>} : vector<32x32xbf16>, vector<32x8xbf16>, vector<32x8xf32> -> vector<32x8xf32>
    %708 = vector.extract_strided_slice %657 {offsets = [2, 0], sizes = [1, 8], strides = [1, 1]} : vector<4x8xf32> to vector<1x8xf32>
    %709 = vector.broadcast %708 : vector<1x8xf32> to vector<32x8xf32>
    %710 = arith.addf %707, %709 : vector<32x8xf32>
    %711 = arith.truncf %710 : vector<32x8xf32> to vector<32x8xbf16>
    %c1344 = arith.constant 1344 : index
    %c0_227 = arith.constant 0 : index
    %712 = vector.load %arg2[%c1344, %c0_227] : memref<1888x128xbf16, #tpu.memory_space<vmem>>, vector<32x8xbf16>
    %cst_228 = arith.constant dense<0.000000e+00> : vector<32x8xf32>
    %713 = tpu.matmul %654, %712, %cst_228 {dimension_numbers = #tpu.dot_dimension_numbers<[1], [0], [0], [1], [0, 0, 1, 1], [], []>} : vector<32x32xbf16>, vector<32x8xbf16>, vector<32x8xf32> -> vector<32x8xf32>
    %714 = vector.extract_strided_slice %655 {offsets = [3, 0], sizes = [1, 8], strides = [1, 1]} : vector<4x8xf32> to vector<1x8xf32>
    %715 = vector.broadcast %714 : vector<1x8xf32> to vector<32x8xf32>
    %716 = arith.addf %713, %715 : vector<32x8xf32>
    %717 = arith.truncf %716 : vector<32x8xf32> to vector<32x8xbf16>
    %c1472 = arith.constant 1472 : index
    %c0_229 = arith.constant 0 : index
    %718 = vector.load %arg2[%c1472, %c0_229] : memref<1888x128xbf16, #tpu.memory_space<vmem>>, vector<32x8xbf16>
    %cst_230 = arith.constant dense<0.000000e+00> : vector<32x8xf32>
    %719 = tpu.matmul %654, %718, %cst_230 {dimension_numbers = #tpu.dot_dimension_numbers<[1], [0], [0], [1], [0, 0, 1, 1], [], []>} : vector<32x32xbf16>, vector<32x8xbf16>, vector<32x8xf32> -> vector<32x8xf32>
    %720 = vector.extract_strided_slice %656 {offsets = [3, 0], sizes = [1, 8], strides = [1, 1]} : vector<4x8xf32> to vector<1x8xf32>
    %721 = vector.broadcast %720 : vector<1x8xf32> to vector<32x8xf32>
    %722 = arith.addf %719, %721 : vector<32x8xf32>
    %723 = arith.truncf %722 : vector<32x8xf32> to vector<32x8xbf16>
    %c1600 = arith.constant 1600 : index
    %c0_231 = arith.constant 0 : index
    %724 = vector.load %arg2[%c1600, %c0_231] : memref<1888x128xbf16, #tpu.memory_space<vmem>>, vector<32x8xbf16>
    %cst_232 = arith.constant dense<0.000000e+00> : vector<32x8xf32>
    %725 = tpu.matmul %654, %724, %cst_232 {dimension_numbers = #tpu.dot_dimension_numbers<[1], [0], [0], [1], [0, 0, 1, 1], [], []>} : vector<32x32xbf16>, vector<32x8xbf16>, vector<32x8xf32> -> vector<32x8xf32>
    %726 = vector.extract_strided_slice %657 {offsets = [3, 0], sizes = [1, 8], strides = [1, 1]} : vector<4x8xf32> to vector<1x8xf32>
    %727 = vector.broadcast %726 : vector<1x8xf32> to vector<32x8xf32>
    %728 = arith.addf %725, %727 : vector<32x8xf32>
    %729 = arith.truncf %728 : vector<32x8xf32> to vector<32x8xbf16>
    %730 = vector.extract_strided_slice %663 {offsets = [0, 0], sizes = [16, 8], strides = [1, 1]} : vector<32x8xbf16> to vector<16x8xbf16>
    %731 = vector.extract_strided_slice %669 {offsets = [0, 0], sizes = [16, 8], strides = [1, 1]} : vector<32x8xbf16> to vector<16x8xbf16>
    %cst_233 = arith.constant dense<0.000000e+00> : vector<16x16xf32>
    %732 = tpu.matmul %730, %731, %cst_233 {dimension_numbers = #tpu.dot_dimension_numbers<[1], [1], [0], [0], [0, 0, 1, 0], [], []>} : vector<16x8xbf16>, vector<16x8xbf16>, vector<16x16xf32> -> vector<16x16xf32>
    %cst_234 = arith.constant dense<0xFF800000> : vector<16xf32>
    %733 = vector.multi_reduction <maximumf>, %732, %cst_234 [1] : vector<16x16xf32> to vector<16xf32>
    %734 = vector.shape_cast %733 : vector<16xf32> to vector<16x1xf32>
    %735 = vector.broadcast %734 : vector<16x1xf32> to vector<16x16xf32>
    %736 = arith.subf %732, %735 : vector<16x16xf32>
    %737 = math.exp %736 : vector<16x16xf32>
    %cst_235 = arith.constant dense<0.000000e+00> : vector<16xf32>
    %738 = vector.multi_reduction <add>, %737, %cst_235 [1] : vector<16x16xf32> to vector<16xf32>
    %739 = vector.shape_cast %738 : vector<16xf32> to vector<16x1xf32>
    %740 = vector.broadcast %739 : vector<16x1xf32> to vector<16x16xf32>
    %741 = arith.divf %737, %740 : vector<16x16xf32>
    %742 = arith.truncf %741 : vector<16x16xf32> to vector<16x16xbf16>
    %743 = vector.extract_strided_slice %675 {offsets = [0, 0], sizes = [16, 8], strides = [1, 1]} : vector<32x8xbf16> to vector<16x8xbf16>
    %cst_236 = arith.constant dense<0.000000e+00> : vector<16x8xf32>
    %744 = tpu.matmul %742, %743, %cst_236 {dimension_numbers = #tpu.dot_dimension_numbers<[1], [0], [0], [1], [0, 0, 1, 1], [], []>} : vector<16x16xbf16>, vector<16x8xbf16>, vector<16x8xf32> -> vector<16x8xf32>
    %745 = arith.truncf %744 : vector<16x8xf32> to vector<16x8xbf16>
    %746 = vector.extract_strided_slice %681 {offsets = [0, 0], sizes = [16, 8], strides = [1, 1]} : vector<32x8xbf16> to vector<16x8xbf16>
    %747 = vector.extract_strided_slice %687 {offsets = [0, 0], sizes = [16, 8], strides = [1, 1]} : vector<32x8xbf16> to vector<16x8xbf16>
    %cst_237 = arith.constant dense<0.000000e+00> : vector<16x16xf32>
    %748 = tpu.matmul %746, %747, %cst_237 {dimension_numbers = #tpu.dot_dimension_numbers<[1], [1], [0], [0], [0, 0, 1, 0], [], []>} : vector<16x8xbf16>, vector<16x8xbf16>, vector<16x16xf32> -> vector<16x16xf32>
    %cst_238 = arith.constant dense<0xFF800000> : vector<16xf32>
    %749 = vector.multi_reduction <maximumf>, %748, %cst_238 [1] : vector<16x16xf32> to vector<16xf32>
    %750 = vector.shape_cast %749 : vector<16xf32> to vector<16x1xf32>
    %751 = vector.broadcast %750 : vector<16x1xf32> to vector<16x16xf32>
    %752 = arith.subf %748, %751 : vector<16x16xf32>
    %753 = math.exp %752 : vector<16x16xf32>
    %cst_239 = arith.constant dense<0.000000e+00> : vector<16xf32>
    %754 = vector.multi_reduction <add>, %753, %cst_239 [1] : vector<16x16xf32> to vector<16xf32>
    %755 = vector.shape_cast %754 : vector<16xf32> to vector<16x1xf32>
    %756 = vector.broadcast %755 : vector<16x1xf32> to vector<16x16xf32>
    %757 = arith.divf %753, %756 : vector<16x16xf32>
    %758 = arith.truncf %757 : vector<16x16xf32> to vector<16x16xbf16>
    %759 = vector.extract_strided_slice %693 {offsets = [0, 0], sizes = [16, 8], strides = [1, 1]} : vector<32x8xbf16> to vector<16x8xbf16>
    %cst_240 = arith.constant dense<0.000000e+00> : vector<16x8xf32>
    %760 = tpu.matmul %758, %759, %cst_240 {dimension_numbers = #tpu.dot_dimension_numbers<[1], [0], [0], [1], [0, 0, 1, 1], [], []>} : vector<16x16xbf16>, vector<16x8xbf16>, vector<16x8xf32> -> vector<16x8xf32>
    %761 = arith.truncf %760 : vector<16x8xf32> to vector<16x8xbf16>
    %762 = vector.extract_strided_slice %699 {offsets = [0, 0], sizes = [16, 8], strides = [1, 1]} : vector<32x8xbf16> to vector<16x8xbf16>
    %763 = vector.extract_strided_slice %705 {offsets = [0, 0], sizes = [16, 8], strides = [1, 1]} : vector<32x8xbf16> to vector<16x8xbf16>
    %cst_241 = arith.constant dense<0.000000e+00> : vector<16x16xf32>
    %764 = tpu.matmul %762, %763, %cst_241 {dimension_numbers = #tpu.dot_dimension_numbers<[1], [1], [0], [0], [0, 0, 1, 0], [], []>} : vector<16x8xbf16>, vector<16x8xbf16>, vector<16x16xf32> -> vector<16x16xf32>
    %cst_242 = arith.constant dense<0xFF800000> : vector<16xf32>
    %765 = vector.multi_reduction <maximumf>, %764, %cst_242 [1] : vector<16x16xf32> to vector<16xf32>
    %766 = vector.shape_cast %765 : vector<16xf32> to vector<16x1xf32>
    %767 = vector.broadcast %766 : vector<16x1xf32> to vector<16x16xf32>
    %768 = arith.subf %764, %767 : vector<16x16xf32>
    %769 = math.exp %768 : vector<16x16xf32>
    %cst_243 = arith.constant dense<0.000000e+00> : vector<16xf32>
    %770 = vector.multi_reduction <add>, %769, %cst_243 [1] : vector<16x16xf32> to vector<16xf32>
    %771 = vector.shape_cast %770 : vector<16xf32> to vector<16x1xf32>
    %772 = vector.broadcast %771 : vector<16x1xf32> to vector<16x16xf32>
    %773 = arith.divf %769, %772 : vector<16x16xf32>
    %774 = arith.truncf %773 : vector<16x16xf32> to vector<16x16xbf16>
    %775 = vector.extract_strided_slice %711 {offsets = [0, 0], sizes = [16, 8], strides = [1, 1]} : vector<32x8xbf16> to vector<16x8xbf16>
    %cst_244 = arith.constant dense<0.000000e+00> : vector<16x8xf32>
    %776 = tpu.matmul %774, %775, %cst_244 {dimension_numbers = #tpu.dot_dimension_numbers<[1], [0], [0], [1], [0, 0, 1, 1], [], []>} : vector<16x16xbf16>, vector<16x8xbf16>, vector<16x8xf32> -> vector<16x8xf32>
    %777 = arith.truncf %776 : vector<16x8xf32> to vector<16x8xbf16>
    %778 = vector.extract_strided_slice %717 {offsets = [0, 0], sizes = [16, 8], strides = [1, 1]} : vector<32x8xbf16> to vector<16x8xbf16>
    %779 = vector.extract_strided_slice %723 {offsets = [0, 0], sizes = [16, 8], strides = [1, 1]} : vector<32x8xbf16> to vector<16x8xbf16>
    %cst_245 = arith.constant dense<0.000000e+00> : vector<16x16xf32>
    %780 = tpu.matmul %778, %779, %cst_245 {dimension_numbers = #tpu.dot_dimension_numbers<[1], [1], [0], [0], [0, 0, 1, 0], [], []>} : vector<16x8xbf16>, vector<16x8xbf16>, vector<16x16xf32> -> vector<16x16xf32>
    %cst_246 = arith.constant dense<0xFF800000> : vector<16xf32>
    %781 = vector.multi_reduction <maximumf>, %780, %cst_246 [1] : vector<16x16xf32> to vector<16xf32>
    %782 = vector.shape_cast %781 : vector<16xf32> to vector<16x1xf32>
    %783 = vector.broadcast %782 : vector<16x1xf32> to vector<16x16xf32>
    %784 = arith.subf %780, %783 : vector<16x16xf32>
    %785 = math.exp %784 : vector<16x16xf32>
    %cst_247 = arith.constant dense<0.000000e+00> : vector<16xf32>
    %786 = vector.multi_reduction <add>, %785, %cst_247 [1] : vector<16x16xf32> to vector<16xf32>
    %787 = vector.shape_cast %786 : vector<16xf32> to vector<16x1xf32>
    %788 = vector.broadcast %787 : vector<16x1xf32> to vector<16x16xf32>
    %789 = arith.divf %785, %788 : vector<16x16xf32>
    %790 = arith.truncf %789 : vector<16x16xf32> to vector<16x16xbf16>
    %791 = vector.extract_strided_slice %729 {offsets = [0, 0], sizes = [16, 8], strides = [1, 1]} : vector<32x8xbf16> to vector<16x8xbf16>
    %cst_248 = arith.constant dense<0.000000e+00> : vector<16x8xf32>
    %792 = tpu.matmul %790, %791, %cst_248 {dimension_numbers = #tpu.dot_dimension_numbers<[1], [0], [0], [1], [0, 0, 1, 1], [], []>} : vector<16x16xbf16>, vector<16x8xbf16>, vector<16x8xf32> -> vector<16x8xf32>
    %793 = arith.truncf %792 : vector<16x8xf32> to vector<16x8xbf16>
    %794 = tpu.concatenate %745, %761, %777, %793 in 1 : vector<16x8xbf16>, vector<16x8xbf16>, vector<16x8xbf16>, vector<16x8xbf16> -> vector<16x32xbf16>
    %795 = vector.extract_strided_slice %663 {offsets = [16, 0], sizes = [16, 8], strides = [1, 1]} : vector<32x8xbf16> to vector<16x8xbf16>
    %796 = vector.extract_strided_slice %669 {offsets = [16, 0], sizes = [16, 8], strides = [1, 1]} : vector<32x8xbf16> to vector<16x8xbf16>
    %cst_249 = arith.constant dense<0.000000e+00> : vector<16x16xf32>
    %797 = tpu.matmul %795, %796, %cst_249 {dimension_numbers = #tpu.dot_dimension_numbers<[1], [1], [0], [0], [0, 0, 1, 0], [], []>} : vector<16x8xbf16>, vector<16x8xbf16>, vector<16x16xf32> -> vector<16x16xf32>
    %cst_250 = arith.constant dense<0xFF800000> : vector<16xf32>
    %798 = vector.multi_reduction <maximumf>, %797, %cst_250 [1] : vector<16x16xf32> to vector<16xf32>
    %799 = vector.shape_cast %798 : vector<16xf32> to vector<16x1xf32>
    %800 = vector.broadcast %799 : vector<16x1xf32> to vector<16x16xf32>
    %801 = arith.subf %797, %800 : vector<16x16xf32>
    %802 = math.exp %801 : vector<16x16xf32>
    %cst_251 = arith.constant dense<0.000000e+00> : vector<16xf32>
    %803 = vector.multi_reduction <add>, %802, %cst_251 [1] : vector<16x16xf32> to vector<16xf32>
    %804 = vector.shape_cast %803 : vector<16xf32> to vector<16x1xf32>
    %805 = vector.broadcast %804 : vector<16x1xf32> to vector<16x16xf32>
    %806 = arith.divf %802, %805 : vector<16x16xf32>
    %807 = arith.truncf %806 : vector<16x16xf32> to vector<16x16xbf16>
    %808 = vector.extract_strided_slice %675 {offsets = [16, 0], sizes = [16, 8], strides = [1, 1]} : vector<32x8xbf16> to vector<16x8xbf16>
    %cst_252 = arith.constant dense<0.000000e+00> : vector<16x8xf32>
    %809 = tpu.matmul %807, %808, %cst_252 {dimension_numbers = #tpu.dot_dimension_numbers<[1], [0], [0], [1], [0, 0, 1, 1], [], []>} : vector<16x16xbf16>, vector<16x8xbf16>, vector<16x8xf32> -> vector<16x8xf32>
    %810 = arith.truncf %809 : vector<16x8xf32> to vector<16x8xbf16>
    %811 = vector.extract_strided_slice %681 {offsets = [16, 0], sizes = [16, 8], strides = [1, 1]} : vector<32x8xbf16> to vector<16x8xbf16>
    %812 = vector.extract_strided_slice %687 {offsets = [16, 0], sizes = [16, 8], strides = [1, 1]} : vector<32x8xbf16> to vector<16x8xbf16>
    %cst_253 = arith.constant dense<0.000000e+00> : vector<16x16xf32>
    %813 = tpu.matmul %811, %812, %cst_253 {dimension_numbers = #tpu.dot_dimension_numbers<[1], [1], [0], [0], [0, 0, 1, 0], [], []>} : vector<16x8xbf16>, vector<16x8xbf16>, vector<16x16xf32> -> vector<16x16xf32>
    %cst_254 = arith.constant dense<0xFF800000> : vector<16xf32>
    %814 = vector.multi_reduction <maximumf>, %813, %cst_254 [1] : vector<16x16xf32> to vector<16xf32>
    %815 = vector.shape_cast %814 : vector<16xf32> to vector<16x1xf32>
    %816 = vector.broadcast %815 : vector<16x1xf32> to vector<16x16xf32>
    %817 = arith.subf %813, %816 : vector<16x16xf32>
    %818 = math.exp %817 : vector<16x16xf32>
    %cst_255 = arith.constant dense<0.000000e+00> : vector<16xf32>
    %819 = vector.multi_reduction <add>, %818, %cst_255 [1] : vector<16x16xf32> to vector<16xf32>
    %820 = vector.shape_cast %819 : vector<16xf32> to vector<16x1xf32>
    %821 = vector.broadcast %820 : vector<16x1xf32> to vector<16x16xf32>
    %822 = arith.divf %818, %821 : vector<16x16xf32>
    %823 = arith.truncf %822 : vector<16x16xf32> to vector<16x16xbf16>
    %824 = vector.extract_strided_slice %693 {offsets = [16, 0], sizes = [16, 8], strides = [1, 1]} : vector<32x8xbf16> to vector<16x8xbf16>
    %cst_256 = arith.constant dense<0.000000e+00> : vector<16x8xf32>
    %825 = tpu.matmul %823, %824, %cst_256 {dimension_numbers = #tpu.dot_dimension_numbers<[1], [0], [0], [1], [0, 0, 1, 1], [], []>} : vector<16x16xbf16>, vector<16x8xbf16>, vector<16x8xf32> -> vector<16x8xf32>
    %826 = arith.truncf %825 : vector<16x8xf32> to vector<16x8xbf16>
    %827 = vector.extract_strided_slice %699 {offsets = [16, 0], sizes = [16, 8], strides = [1, 1]} : vector<32x8xbf16> to vector<16x8xbf16>
    %828 = vector.extract_strided_slice %705 {offsets = [16, 0], sizes = [16, 8], strides = [1, 1]} : vector<32x8xbf16> to vector<16x8xbf16>
    %cst_257 = arith.constant dense<0.000000e+00> : vector<16x16xf32>
    %829 = tpu.matmul %827, %828, %cst_257 {dimension_numbers = #tpu.dot_dimension_numbers<[1], [1], [0], [0], [0, 0, 1, 0], [], []>} : vector<16x8xbf16>, vector<16x8xbf16>, vector<16x16xf32> -> vector<16x16xf32>
    %cst_258 = arith.constant dense<0xFF800000> : vector<16xf32>
    %830 = vector.multi_reduction <maximumf>, %829, %cst_258 [1] : vector<16x16xf32> to vector<16xf32>
    %831 = vector.shape_cast %830 : vector<16xf32> to vector<16x1xf32>
    %832 = vector.broadcast %831 : vector<16x1xf32> to vector<16x16xf32>
    %833 = arith.subf %829, %832 : vector<16x16xf32>
    %834 = math.exp %833 : vector<16x16xf32>
    %cst_259 = arith.constant dense<0.000000e+00> : vector<16xf32>
    %835 = vector.multi_reduction <add>, %834, %cst_259 [1] : vector<16x16xf32> to vector<16xf32>
    %836 = vector.shape_cast %835 : vector<16xf32> to vector<16x1xf32>
    %837 = vector.broadcast %836 : vector<16x1xf32> to vector<16x16xf32>
    %838 = arith.divf %834, %837 : vector<16x16xf32>
    %839 = arith.truncf %838 : vector<16x16xf32> to vector<16x16xbf16>
    %840 = vector.extract_strided_slice %711 {offsets = [16, 0], sizes = [16, 8], strides = [1, 1]} : vector<32x8xbf16> to vector<16x8xbf16>
    %cst_260 = arith.constant dense<0.000000e+00> : vector<16x8xf32>
    %841 = tpu.matmul %839, %840, %cst_260 {dimension_numbers = #tpu.dot_dimension_numbers<[1], [0], [0], [1], [0, 0, 1, 1], [], []>} : vector<16x16xbf16>, vector<16x8xbf16>, vector<16x8xf32> -> vector<16x8xf32>
    %842 = arith.truncf %841 : vector<16x8xf32> to vector<16x8xbf16>
    %843 = vector.extract_strided_slice %717 {offsets = [16, 0], sizes = [16, 8], strides = [1, 1]} : vector<32x8xbf16> to vector<16x8xbf16>
    %844 = vector.extract_strided_slice %723 {offsets = [16, 0], sizes = [16, 8], strides = [1, 1]} : vector<32x8xbf16> to vector<16x8xbf16>
    %cst_261 = arith.constant dense<0.000000e+00> : vector<16x16xf32>
    %845 = tpu.matmul %843, %844, %cst_261 {dimension_numbers = #tpu.dot_dimension_numbers<[1], [1], [0], [0], [0, 0, 1, 0], [], []>} : vector<16x8xbf16>, vector<16x8xbf16>, vector<16x16xf32> -> vector<16x16xf32>
    %cst_262 = arith.constant dense<0xFF800000> : vector<16xf32>
    %846 = vector.multi_reduction <maximumf>, %845, %cst_262 [1] : vector<16x16xf32> to vector<16xf32>
    %847 = vector.shape_cast %846 : vector<16xf32> to vector<16x1xf32>
    %848 = vector.broadcast %847 : vector<16x1xf32> to vector<16x16xf32>
    %849 = arith.subf %845, %848 : vector<16x16xf32>
    %850 = math.exp %849 : vector<16x16xf32>
    %cst_263 = arith.constant dense<0.000000e+00> : vector<16xf32>
    %851 = vector.multi_reduction <add>, %850, %cst_263 [1] : vector<16x16xf32> to vector<16xf32>
    %852 = vector.shape_cast %851 : vector<16xf32> to vector<16x1xf32>
    %853 = vector.broadcast %852 : vector<16x1xf32> to vector<16x16xf32>
    %854 = arith.divf %850, %853 : vector<16x16xf32>
    %855 = arith.truncf %854 : vector<16x16xf32> to vector<16x16xbf16>
    %856 = vector.extract_strided_slice %729 {offsets = [16, 0], sizes = [16, 8], strides = [1, 1]} : vector<32x8xbf16> to vector<16x8xbf16>
    %cst_264 = arith.constant dense<0.000000e+00> : vector<16x8xf32>
    %857 = tpu.matmul %855, %856, %cst_264 {dimension_numbers = #tpu.dot_dimension_numbers<[1], [0], [0], [1], [0, 0, 1, 1], [], []>} : vector<16x16xbf16>, vector<16x8xbf16>, vector<16x8xf32> -> vector<16x8xf32>
    %858 = arith.truncf %857 : vector<16x8xf32> to vector<16x8xbf16>
    %859 = tpu.concatenate %810, %826, %842, %858 in 1 : vector<16x8xbf16>, vector<16x8xbf16>, vector<16x8xbf16>, vector<16x8xbf16> -> vector<16x32xbf16>
    %860 = tpu.concatenate %794, %859 in 0 : vector<16x32xbf16>, vector<16x32xbf16> -> vector<32x32xbf16>
    %c1632 = arith.constant 1632 : index
    %c0_265 = arith.constant 0 : index
    %861 = vector.load %arg2[%c1632, %c0_265] : memref<1888x128xbf16, #tpu.memory_space<vmem>>, vector<32x32xbf16>
    %cst_266 = arith.constant dense<0.000000e+00> : vector<32x32xf32>
    %862 = tpu.matmul %860, %861, %cst_266 {dimension_numbers = #tpu.dot_dimension_numbers<[1], [0], [0], [1], [0, 0, 1, 1], [], []>} : vector<32x32xbf16>, vector<32x32xbf16>, vector<32x32xf32> -> vector<32x32xf32>
    %863 = arith.addf %629, %862 : vector<32x32xf32>
    %c312 = arith.constant 312 : index
    %c0_267 = arith.constant 0 : index
    %864 = vector.load %arg3[%c312, %c0_267] : memref<352x128xf32, #tpu.memory_space<vmem>>, vector<1x32xf32>
    %865 = vector.broadcast %864 : vector<1x32xf32> to vector<32x32xf32>
    %866 = arith.addf %863, %865 : vector<32x32xf32>
    %c320_268 = arith.constant 320 : index
    %c0_269 = arith.constant 0 : index
    %867 = vector.load %arg3[%c320_268, %c0_269] : memref<352x128xf32, #tpu.memory_space<vmem>>, vector<1x32xf32>
    %c328 = arith.constant 328 : index
    %c0_270 = arith.constant 0 : index
    %868 = vector.load %arg3[%c328, %c0_270] : memref<352x128xf32, #tpu.memory_space<vmem>>, vector<1x32xf32>
    %cst_271 = arith.constant dense<0.000000e+00> : vector<32xf32>
    %869 = vector.multi_reduction <add>, %866, %cst_271 [1] : vector<32x32xf32> to vector<32xf32>
    %870 = vector.shape_cast %869 : vector<32xf32> to vector<32x1xf32>
    %cst_272 = arith.constant 3.200000e+01 : f32
    %871 = vector.broadcast %cst_272 : f32 to vector<32x1xf32>
    %872 = arith.divf %870, %871 : vector<32x1xf32>
    %873 = vector.broadcast %872 : vector<32x1xf32> to vector<32x32xf32>
    %874 = arith.subf %866, %873 : vector<32x32xf32>
    %875 = arith.mulf %874, %874 : vector<32x32xf32>
    %cst_273 = arith.constant dense<0.000000e+00> : vector<32xf32>
    %876 = vector.multi_reduction <add>, %875, %cst_273 [1] : vector<32x32xf32> to vector<32xf32>
    %877 = vector.shape_cast %876 : vector<32xf32> to vector<32x1xf32>
    %cst_274 = arith.constant 3.200000e+01 : f32
    %878 = vector.broadcast %cst_274 : f32 to vector<32x1xf32>
    %879 = arith.divf %877, %878 : vector<32x1xf32>
    %880 = vector.broadcast %872 : vector<32x1xf32> to vector<32x32xf32>
    %881 = arith.subf %866, %880 : vector<32x32xf32>
    %cst_275 = arith.constant 9.99999997E-7 : f32
    %882 = vector.broadcast %cst_275 : f32 to vector<32x1xf32>
    %883 = arith.addf %879, %882 : vector<32x1xf32>
    %884 = math.rsqrt %883 : vector<32x1xf32>
    %885 = vector.broadcast %884 : vector<32x1xf32> to vector<32x32xf32>
    %886 = arith.mulf %881, %885 : vector<32x32xf32>
    %887 = vector.broadcast %867 : vector<1x32xf32> to vector<32x32xf32>
    %888 = arith.mulf %886, %887 : vector<32x32xf32>
    %889 = vector.broadcast %868 : vector<1x32xf32> to vector<32x32xf32>
    %890 = arith.addf %888, %889 : vector<32x32xf32>
    %891 = arith.truncf %890 : vector<32x32xf32> to vector<32x32xbf16>
    %c1664 = arith.constant 1664 : index
    %c0_276 = arith.constant 0 : index
    %892 = vector.load %arg2[%c1664, %c0_276] : memref<1888x128xbf16, #tpu.memory_space<vmem>>, vector<32x128xbf16>
    %cst_277 = arith.constant dense<0.000000e+00> : vector<32x128xf32>
    %893 = tpu.matmul %891, %892, %cst_277 {dimension_numbers = #tpu.dot_dimension_numbers<[1], [0], [0], [1], [0, 0, 1, 1], [], []>} : vector<32x32xbf16>, vector<32x128xbf16>, vector<32x128xf32> -> vector<32x128xf32>
    %c336 = arith.constant 336 : index
    %c0_278 = arith.constant 0 : index
    %894 = vector.load %arg3[%c336, %c0_278] : memref<352x128xf32, #tpu.memory_space<vmem>>, vector<1x128xf32>
    %895 = vector.broadcast %894 : vector<1x128xf32> to vector<32x128xf32>
    %896 = arith.addf %893, %895 : vector<32x128xf32>
    %cst_279 = arith.constant 5.000000e-01 : f32
    %897 = vector.broadcast %cst_279 : f32 to vector<32x128xf32>
    %898 = arith.mulf %897, %896 : vector<32x128xf32>
    %cst_280 = arith.constant 4.471500e-02 : f32
    %899 = vector.broadcast %cst_280 : f32 to vector<32x128xf32>
    %900 = arith.mulf %899, %896 : vector<32x128xf32>
    %901 = arith.mulf %900, %896 : vector<32x128xf32>
    %902 = arith.mulf %901, %896 : vector<32x128xf32>
    %903 = arith.addf %896, %902 : vector<32x128xf32>
    %cst_281 = arith.constant 0.797884583 : f32
    %904 = vector.broadcast %cst_281 : f32 to vector<32x128xf32>
    %905 = arith.mulf %904, %903 : vector<32x128xf32>
    %906 = math.tanh %905 : vector<32x128xf32>
    %cst_282 = arith.constant 1.000000e+00 : f32
    %907 = vector.broadcast %cst_282 : f32 to vector<32x128xf32>
    %908 = arith.addf %907, %906 : vector<32x128xf32>
    %909 = arith.mulf %898, %908 : vector<32x128xf32>
    %910 = arith.truncf %909 : vector<32x128xf32> to vector<32x128xbf16>
    %c1696 = arith.constant 1696 : index
    %c0_283 = arith.constant 0 : index
    %911 = vector.load %arg2[%c1696, %c0_283] : memref<1888x128xbf16, #tpu.memory_space<vmem>>, vector<128x32xbf16>
    %cst_284 = arith.constant dense<0.000000e+00> : vector<32x32xf32>
    %912 = tpu.matmul %910, %911, %cst_284 {dimension_numbers = #tpu.dot_dimension_numbers<[1], [0], [0], [1], [0, 0, 1, 1], [], []>} : vector<32x128xbf16>, vector<128x32xbf16>, vector<32x32xf32> -> vector<32x32xf32>
    %913 = arith.addf %866, %912 : vector<32x32xf32>
    %c344 = arith.constant 344 : index
    %c0_285 = arith.constant 0 : index
    %914 = vector.load %arg3[%c344, %c0_285] : memref<352x128xf32, #tpu.memory_space<vmem>>, vector<1x32xf32>
    %915 = vector.broadcast %914 : vector<1x32xf32> to vector<32x32xf32>
    %916 = arith.addf %913, %915 : vector<32x32xf32>
    %c88 = arith.constant 88 : index
    %c0_286 = arith.constant 0 : index
    %917 = vector.load %arg3[%c88, %c0_286] : memref<352x128xf32, #tpu.memory_space<vmem>>, vector<1x32xf32>
    %c96_287 = arith.constant 96 : index
    %c0_288 = arith.constant 0 : index
    %918 = vector.load %arg3[%c96_287, %c0_288] : memref<352x128xf32, #tpu.memory_space<vmem>>, vector<1x32xf32>
    %cst_289 = arith.constant dense<0.000000e+00> : vector<32xf32>
    %919 = vector.multi_reduction <add>, %916, %cst_289 [1] : vector<32x32xf32> to vector<32xf32>
    %920 = vector.shape_cast %919 : vector<32xf32> to vector<32x1xf32>
    %cst_290 = arith.constant 3.200000e+01 : f32
    %921 = vector.broadcast %cst_290 : f32 to vector<32x1xf32>
    %922 = arith.divf %920, %921 : vector<32x1xf32>
    %923 = vector.broadcast %922 : vector<32x1xf32> to vector<32x32xf32>
    %924 = arith.subf %916, %923 : vector<32x32xf32>
    %925 = arith.mulf %924, %924 : vector<32x32xf32>
    %cst_291 = arith.constant dense<0.000000e+00> : vector<32xf32>
    %926 = vector.multi_reduction <add>, %925, %cst_291 [1] : vector<32x32xf32> to vector<32xf32>
    %927 = vector.shape_cast %926 : vector<32xf32> to vector<32x1xf32>
    %cst_292 = arith.constant 3.200000e+01 : f32
    %928 = vector.broadcast %cst_292 : f32 to vector<32x1xf32>
    %929 = arith.divf %927, %928 : vector<32x1xf32>
    %930 = vector.broadcast %922 : vector<32x1xf32> to vector<32x32xf32>
    %931 = arith.subf %916, %930 : vector<32x32xf32>
    %cst_293 = arith.constant 9.99999997E-7 : f32
    %932 = vector.broadcast %cst_293 : f32 to vector<32x1xf32>
    %933 = arith.addf %929, %932 : vector<32x1xf32>
    %934 = math.rsqrt %933 : vector<32x1xf32>
    %935 = vector.broadcast %934 : vector<32x1xf32> to vector<32x32xf32>
    %936 = arith.mulf %931, %935 : vector<32x32xf32>
    %937 = vector.broadcast %917 : vector<1x32xf32> to vector<32x32xf32>
    %938 = arith.mulf %936, %937 : vector<32x32xf32>
    %939 = vector.broadcast %918 : vector<1x32xf32> to vector<32x32xf32>
    %940 = arith.addf %938, %939 : vector<32x32xf32>
    %941 = arith.truncf %940 : vector<32x32xf32> to vector<32x32xbf16>
    %c1856 = arith.constant 1856 : index
    %c0_294 = arith.constant 0 : index
    %942 = vector.load %arg2[%c1856, %c0_294] : memref<1888x128xbf16, #tpu.memory_space<vmem>>, vector<32x64xbf16>
    %cst_295 = arith.constant dense<0.000000e+00> : vector<32x64xf32>
    %943 = tpu.matmul %941, %942, %cst_295 {dimension_numbers = #tpu.dot_dimension_numbers<[1], [0], [0], [1], [0, 0, 1, 1], [], []>} : vector<32x32xbf16>, vector<32x64xbf16>, vector<32x64xf32> -> vector<32x64xf32>
    %c104 = arith.constant 104 : index
    %c0_296 = arith.constant 0 : index
    %944 = vector.load %arg3[%c104, %c0_296] : memref<352x128xf32, #tpu.memory_space<vmem>>, vector<1x64xf32>
    %945 = vector.broadcast %944 : vector<1x64xf32> to vector<32x64xf32>
    %946 = arith.addf %943, %945 : vector<32x64xf32>
    %c0_297 = arith.constant 0 : index
    %c0_298 = arith.constant 0 : index
    %947 = vector.load %arg4[%c0_297, %c0_298] : memref<32x64xf32, #tpu.memory_space<vmem>>, vector<32x64xf32>
    tpu.vector_store %arg4[%c0_297, %c0_298], %946 {strides = array<i32>} : memref<32x64xf32, #tpu.memory_space<vmem>>, vector<32x64xf32>,
    return
  }
}

</mosaic_0001>

<bundles_post_ra>
// kernel: forward.1
= control target key start
LH: loop header
LB: loop body
LE: loop exit
PB: predicated region body
PF: predicated region fallthrough
CT: control target
= control target key end

     0   :  { %vm61_vm0 = vcmask 523264   ;;  %vm140_vm1 = vcmask 261120   ;;  %v9108_v11 = vmov 0.0   ;;  %vm9109_vm2 = vmmov 0   ;;  %s11234_s0 = inlined_call_operand.vmem [shape: f32[32,64], index: 0, kind: input, shape index: {}]   ;;  %s11235_s1 = inlined_call_operand.vmem [shape: f32[2,32], index: 1, kind: input, shape index: {}]   ;;  %s11236_s2 = inlined_call_operand.vmem [shape: bf16[1888,128], index: 2, kind: input, shape index: {}]   ;;  %s11237_s3 = inlined_call_operand.vmem [shape: f32[352,128], index: 3, kind: input, shape index: {}]   ;;  %s11238_s4 = inlined_call_operand.hbm [shape: f32[32,64], index: 4, kind: output, shape index: {}]  }
   0x1   :  { %v8682_v0 = vld [vmem:[%s11236_s2] sm:$0xff]   ;;  %v8683_v1 = vld [vmem:[%s11236_s2 + $0x8] sm:$0xff]   ;;  %v8684_v2 = vld [vmem:[%s11236_s2 + $0x10] sm:$0xff]  }
   0x2   :  { %7955 = vmatprep.subr.bf16.mxu1 %v8682_v0  ;;  %v19_v3 = vld [vmem:[%s11234_s0] sm:$0xff]  ;;  %v20_v4 = vld [vmem:[%s11234_s0 + $0x8] sm:$0xff]  ;;  %v8685_v6 = vld [vmem:[%s11236_s2 + $0x18] sm:$0xff]  }
   0x3   :  { %7956 = vmatpush3.bf16.msra.mxu1 %v8682_v0  ;;  %v23_v5 = vpack.c.bf16 %v20_v4, %v19_v3  ;;  %v21_v7 = vld [vmem:[%s11234_s0 + $0x10] sm:$0xff]  ;;  %v22_v8 = vld [vmem:[%s11234_s0 + $0x18] sm:$0xff]  ;;  %v8686_v9 = vld [vmem:[%s11236_s2 + $0x20] sm:$0xff]  }
   0x4   :  { %7957 = vmatprep.subr.bf16.mxu1 %v8683_v1  ;;  %v24_v10 = vpack.c.bf16 %v22_v8, %v21_v7  ;;  %v8687_v12 = vld [vmem:[%s11236_s2 + $0x28] sm:$0xff]   ;;  %v117_v13 = vld [vmem:[%s11235_s1] sm:$0x3] }
   0x5   :  { %7963 = vmatprep.mubr.msk.bf16.mxu1 %vm61_vm0, %v23_v5  ;;  %v118_v14 = vpack.c.bf16 %v117_v13, %v117_v13 }
   0x7   :  { %7958 = vmatpush3.bf16.msra.mxu1 %v8683_v1 }
   0x8   :  { %7959 = vmatprep.subr.bf16.mxu1 %v8684_v2 }
   0xb   :  { %7960 = vmatpush3.bf16.msra.mxu1 %v8684_v2 }
   0xc   :  { %7961 = vmatprep.subr.bf16.mxu1 %v8685_v6 }
   0xf   :  { %7962 = vmatpush3.bf16.msra.mxu1 %v8685_v6 }
  0x10   :  { %7967 = vmatprep.subr.bf16.mxu1 %v9108_v11 }
  0x12   :  { %7964 = vmatmul.mubr.msk.bf16.vlgmr.msra.gmra.mrb[0].mxu1 %vm61_vm0, %v24_v10 }
  0x13   :  { %7968 = vmatpush3.bf16.msra.mxu1 %v8686_v9  ;;  %7971 = vmatprep.mubr.msk.bf16.mxu1 %vm9109_vm2, %v9108_v11 }
  0x14   :  { %7969 = vmatprep.subr.bf16.mxu1 %v9108_v11 }
  0x17   :  { %7970 = vmatpush3.bf16.msra.mxu1 %v8687_v12 }
  0x1a   :  { %7972 = vmatmul.mubr.msk.bf16.vlgmr.msra.gmra.mrb[4].mxu1 %vm140_vm1, %v118_v14 }
  0x1b   :  { %9 = vsyncpa [#allocation3], 0  ;;  %v7365_v19 = vld [vmem:[%s11237_s3 + $0x20] ss:$0 sm:$0xff]  ;;  %v191_v28 = vlaneseq  ;;  %v35_v30 = vld [vmem:[%s11237_s3 + $0x10] sm:$0xff]  ;;  %vm1137_vm3 = vcmask 64512  }
  0x1c   :  { %v33_v31 = vld [vmem:[%s11237_s3] sm:$0xff]  ;;  %v36_v35 = vld [vmem:[%s11237_s3 + $0x18] sm:$0xff]  ;;  %v34_v36 = vld [vmem:[%s11237_s3 + $0x8] sm:$0xff]  ;;  %vm1185_vm4 = vcmask 130048   ;;  %s9110_s21 = smov 8   ;;  %s9111_s22 = smov 16  }
  0x1d   :  { %v9183_v29 = vshrl.u32 %v191_v28, 7  ;;  %v8688_v8 = vld [vmem:[%s11236_s2 + $0x30] sm:$0xff]   ;;  %v8690_v10 = vld [vmem:[%s11236_s2 + $0x38] sm:$0xff]   ;;  %v8693_v14 = vld [vmem:[%s11236_s2 + $0x40] sm:$0xff]   ;;  %s9112_s23 = smov 24   ;;  %vm1613_vm5 = vcmask 195584  }
  0x1e   :  { %v8689_v9 = vld [vmem:[%s11236_s2 + $0x70] sm:$0xff]   ;;  %7975 = vmatprep.subr.bf16.mxu1 %v8688_v8  ;;  %v8691_v12 = vld [vmem:[%s11236_s2 + $0x78] sm:$0xff]   ;;  %s9113_s1 = smov [#allocation2]  }
  0x1f   :  { %v9192_v32 = vsub.s32 0, %v9183_v29  ;;  %v9195_v33 = vsub.s32 1, %v9183_v29  ;;  %7983 = vmatprep.subr.bf16.mxu0 %v8689_v9  ;;  %7976 = vmatpush3.bf16.msra.mxu1 %v8688_v8  ;;  %v8692_v13 = vld [vmem:[%s11236_s2 + $0xb0] sm:$0xff]   ;;  %v9368_v8 = vld [vmem:[%s11237_s3 + $0x80] sm:$0xf]  ;;  %s7348_s11 = sshll.u32 %s9113_s1, 4  ;;  %s7349_s11 = int_to_ptr.vmem [resolvable:$true] %s7348_s11 }
  0x20   :  { %7984 = vmatpush3.bf16.msra.mxu0 %v8689_v9  ;;  %7977 = vmatprep.subr.bf16.mxu1 %v8690_v10  ;;  %v9373_v9 = vld [vmem:[%s11237_s3 + $0x88] sm:$0xf]  ;;  %p9089_p1 = scmp.lt.s32.totalorder %s7349_s11, %s7349_s11 }
  0x21   :  { %7985 = vmatprep.subr.bf16.mxu0 %v8691_v12 }
  0x23   :  { %7978 = vmatpush3.bf16.msra.mxu1 %v8690_v10  ;;  %v286_v10 = vrot.slane %v9368_v8, %v9192_v32 }
  0x24   :  { %7986 = vmatpush3.bf16.msra.mxu0 %v8691_v12  ;;  %7991 = vmatprep.subr.bf16.mxu1 %v8692_v13  ;;  %v363_v12 = vrot.slane %v9373_v9, %v9192_v32 }
  0x25   :  { %7999 = vmatprep.subr.bf16.mxu0 %v8693_v14 }
  0xe5   :  { %v7965_v15 = vpop.f32.mrb[0].mxu1 }
  0xe6   :  { %v102_v16 = vpop.f32.mrb[1].mxu1  ;;  %v111_v38 = vadd.f32 %v7965_v15, %v35_v30  ;;  %v7370_v30 = vld [vmem:[%s11237_s3 + $0x70] ss:$0 sm:$0xff] }
  0xe7   :  { %v7966_v17 = vpop.f32.mrb[2].mxu1  ;;  %v103_v39 = vadd.f32 %v102_v16, %v33_v31 }
  0xe8   :  { %v105_v18 = vpop.f32.mrb[3].mxu1  ;;  %v114_v40 = vadd.f32 %v7966_v17, %v36_v35 }
  0xe9   :  { %v106_v41 = vadd.f32 %v105_v18, %v34_v36 }
  0xed   :  { %v178_v20 = vpop.f32.mrb[4].mxu1 }
  0xee   :  { %v179_v21 = vadd.f32 %v7365_v19, %v178_v20  ;;  %v7973_v22 = vpop.f32.mrb[5].mxu1 }
  0xef   :  { %v181_v23 = vpop.f32.mrb[6].mxu1 }
  0xf0   :  { %v7369_v24 = vmul.f32 -1.442695, %v179_v21  ;;  %v7974_v25 = vpop.f32.mrb[7].mxu1 }
  0xf2   :  { %8800 = vpow2.f32 %v7369_v24 }
  0xfc   :  { %v8801_v26 = vpop.eup %8800 }
  0xfd   :  { %v187_v27 = vadd.f32 1.0, %v8801_v26 }
  0xff   :  { %8802 = vrcp.f32 %v187_v27 }
 0x109   :  { %v8803_v34 = vpop.eup %8802 }
 0x10a   :  { %v190_v37 = vmul.f32 %v8803_v34, %v179_v21 }
 0x10c   :  { %v194_v42 = vrot.slane %v190_v37, %v9192_v32  ;;  %v198_v43 = vrot.slane %v190_v37, %v9195_v33  ;;  %v7371_v37 = vld [vmem:[%s11237_s3 + $0x78] ss:$0 sm:$0xff] }
 0x10e   :  { %v9205_v44 = vadd.f32 %v198_v43, %v111_v38  ;;  %v9207_v45 = vadd.f32 %v194_v42, %v103_v39  ;;  %v9209_v46 = vadd.f32 %v198_v43, %v114_v40  ;;  %v9211_v47 = vadd.f32 %v194_v42, %v106_v41 }
 0x110   :  { %v211_v48 = vsel %vm140_vm1, %v9205_v44, 0.0  ;;  %v205_v49 = vsel %vm140_vm1, %v9207_v45, 0.0  ;;  %v214_v50 = vsel %vm140_vm1, %v9209_v46, 0.0  ;;  %v208_v51 = vsel %vm140_vm1, %v9211_v47, 0.0 }
 0x111   :  { %212 = vadd.xlane.f32.xlu1 %v211_v48  ;;  %206 = vadd.xlane.f32.xlu0 %v205_v49 }
 0x115   :  { %215 = vadd.xlane.f32.xlu1 %v214_v50  ;;  %209 = vadd.xlane.f32.xlu0 %v208_v51 }
 0x19e   :  { %v213_v52 = vpop.xlane.xlu1 %212  ;;  %v207_v53 = vpop.xlane.xlu0 %206 }
 0x19f   :  { %v220_v54 = vmul.f32 0.03125, %v213_v52  ;;  %v218_v55 = vmul.f32 0.03125, %v207_v53 }
 0x1a1   :  { %v224_v56 = vsub.f32 %v9205_v44, %v220_v54  ;;  %v222_v57 = vsub.f32 %v9207_v45, %v218_v55  ;;  %v8694_v54 = vld [vmem:[%s11236_s2 + $0xb8] sm:$0xff]   ;;  %v8695_v55 = vld [vmem:[%s11236_s2 + $0x48] sm:$0xff]  }
 0x1a2   :  { %v216_v58 = vpop.xlane.xlu1 %215  ;;  %v210_v59 = vpop.xlane.xlu0 %209 }
 0x1a3   :  { %v221_v60 = vmul.f32 0.03125, %v216_v58  ;;  %v219_v61 = vmul.f32 0.03125, %v210_v59  ;;  %v226_v62 = vmul.f32 %v222_v57, %v222_v57  ;;  %v228_v2 = vmul.f32 %v224_v56, %v224_v56  ;;  %v8698_v58 = vld [vmem:[%s11236_s2 + $0x88] sm:$0xff]  }
 0x1a4   :  { %v8699_v59 = vld [vmem:[%s11236_s2 + $0xc8] sm:$0xff]  }
 0x1a5   :  { %v225_v63 = vsub.f32 %v9209_v46, %v221_v60  ;;  %v223_v0 = vsub.f32 %v9211_v47, %v219_v61  ;;  %v230_v1 = vsel %vm140_vm1, %v226_v62, 0.0  ;;  %v236_v4 = vsel %vm140_vm1, %v228_v2, 0.0  ;;  %v8700_v60 = vld [vmem:[%s11236_s2 + $0x50] sm:$0xff]   ;;  %v8702_v62 = vld [vmem:[%s11236_s2 + $0x58] sm:$0xff]  }
 0x1a6   :  { %231 = vadd.xlane.f32.xlu0 %v230_v1  ;;  %v8701_v61 = vld [vmem:[%s11236_s2 + $0x90] sm:$0xff]   ;;  %v8705_v1 = vld [vmem:[%s11236_s2 + $0x60] sm:$0xff]   ;;  %v8706_v2 = vld [vmem:[%s11236_s2 + $0xd8] sm:$0xff]  }
 0x1a7   :  { %v227_v3 = vmul.f32 %v223_v0, %v223_v0  ;;  %v229_v6 = vmul.f32 %v225_v63, %v225_v63 }
 0x1a9   :  { %v233_v5 = vsel %vm140_vm1, %v227_v3, 0.0  ;;  %v239_v7 = vsel %vm140_vm1, %v229_v6, 0.0  ;;  %v8707_v3 = vld [vmem:[%s11236_s2 + $0x68] sm:$0xff]  }
 0x1aa   :  { %237 = vadd.xlane.f32.xlu0 %v236_v4  ;;  %234 = vadd.xlane.f32.xlu1 %v233_v5  ;;  %v8708_v4 = vld [vmem:[%s11236_s2 + $0xa0] sm:$0xff]   ;;  %v8710_v6 = vld [vmem:[%s11236_s2 + $0xa8] sm:$0xff]  }
 0x1ab   :  { %v8709_v5 = vld [vmem:[%s11236_s2 + $0xe0] sm:$0xff]  }
 0x1ae   :  { %240 = vadd.xlane.f32.xlu1 %v239_v7  ;;  %v8711_v7 = vld [vmem:[%s11236_s2 + $0xe8] sm:$0xff]  }
 0x233   :  { %v232_v15 = vpop.xlane.xlu0 %231 }
 0x234   :  { %v242_v16 = vmul.f32 0.03125, %v232_v15 }
 0x236   :  { %v246_v17 = vadd.f32 1e-06, %v242_v16 }
 0x237   :  { %v235_v18 = vpop.xlane.xlu1 %234  ;;  %v238_v19 = vpop.xlane.xlu0 %237 }
 0x238   :  { %8804 = vrsqrt.f32 %v246_v17  ;;  %v243_v20 = vmul.f32 0.03125, %v235_v18  ;;  %v244_v21 = vmul.f32 0.03125, %v238_v19  ;;  %v9382_v19 = vld [vmem:[%s11237_s3 + $0x90] sm:$0xf] }
 0x23a   :  { %v247_v22 = vadd.f32 1e-06, %v243_v20  ;;  %v248_v23 = vadd.f32 1e-06, %v244_v21 }
 0x23b   :  { %v241_v24 = vpop.xlane.xlu1 %240 }
 0x23c   :  { %8806 = vrsqrt.f32 %v247_v22  ;;  %v245_v25 = vmul.f32 0.03125, %v241_v24 }
 0x23d   :  { %8808 = vrsqrt.f32 %v248_v23 }
 0x23e   :  { %v249_v26 = vadd.f32 1e-06, %v245_v25 }
 0x240   :  { %8810 = vrsqrt.f32 %v249_v26 }
 0x242   :  { %v8805_v27 = vpop.eup %8804 }
 0x243   :  { %v254_v28 = vmul.f32 %v8805_v27, %v222_v57  ;;  %v8697_v57 = vld [vmem:[%s11236_s2 + $0xc0] sm:$0xff]  }
 0x245   :  { %v262_v35 = vmul.f32 %v7370_v30, %v254_v28 }
 0x246   :  { %v8807_v31 = vpop.eup %8806 }
 0x247   :  { %v8809_v34 = vpop.eup %8808  ;;  %v255_v36 = vmul.f32 %v8807_v31, %v223_v0  ;;  %v270_v41 = vadd.f32 %v7371_v37, %v262_v35  ;;  %v8704_v0 = vld [vmem:[%s11236_s2 + $0xd0] sm:$0xff]   ;;  %v434_v35 = vrot.slane %v9382_v19, %v9192_v32 }
 0x248   :  { %v256_v38 = vmul.f32 %v8809_v34, %v224_v56  ;;  %v8696_v56 = vld [vmem:[%s11236_s2 + $0x80] sm:$0xff]  }
 0x249   :  { %v263_v39 = vmul.f32 %v7370_v30, %v255_v36 }
 0x24a   :  { %v8811_v40 = vpop.eup %8810  ;;  %v264_v43 = vmul.f32 %v7370_v30, %v256_v38 }
 0x24b   :  { %v271_v42 = vadd.f32 %v7371_v37, %v263_v39  ;;  %v257_v48 = vmul.f32 %v8811_v40, %v225_v63  ;;  %v8703_v63 = vld [vmem:[%s11236_s2 + $0x98] sm:$0xff]   ;;  %v505_v39 = vrot.slane %v9368_v8, %v9195_v33 }
 0x24c   :  { %v272_v51 = vadd.f32 %v7371_v37, %v264_v43 }
 0x24d   :  { %v9253_v49 = vpack.c.bf16 %v271_v42, %v270_v41  ;;  %v265_v50 = vmul.f32 %v7370_v30, %v257_v48 }
 0x24f   :  { %v273_v52 = vadd.f32 %v7371_v37, %v265_v50  ;;  %7979 = vmatprep.mubr.msk.bf16.mxu1 %vm140_vm1, %v9253_v49  ;;  %7987 = vmatprep.mubr.msk.bf16.mxu0 %vm140_vm1, %v9253_v49 }
 0x251   :  { %v9259_v53 = vpack.c.bf16 %v273_v52, %v272_v51 }
 0x253   :  { %7980 = vmatmul.mubr.msk.bf16.vlgmr.msra.gmra.mrb[8].mxu1 %vm140_vm1, %v9259_v53  ;;  %7988 = vmatmul.mubr.msk.bf16.vlgmr.msra.gmra.mrb[0].mxu0 %vm140_vm1, %v9259_v53 }
 0x254   :  { %7992 = vmatpush3.bf16.msra.mxu1 %v8692_v13  ;;  %7995 = vmatprep.mubr.msk.bf16.mxu1 %vm140_vm1, %v9253_v49 }
 0x255   :  { %8000 = vmatpush3.bf16.msra.mxu0 %v8693_v14  ;;  %8003 = vmatprep.mubr.msk.bf16.mxu0 %vm140_vm1, %v9253_v49 }
 0x256   :  { %7993 = vmatprep.subr.bf16.mxu1 %v8694_v54  ;;  %8001 = vmatprep.subr.bf16.mxu0 %v8695_v55 }
 0x258   :  { %7994 = vmatpush3.bf16.msra.mxu1 %v8694_v54 }
 0x259   :  { %8002 = vmatpush3.bf16.msra.mxu0 %v8695_v55  ;;  %8007 = vmatprep.subr.bf16.mxu1 %v8696_v56 }
 0x25a   :  { %8015 = vmatprep.subr.bf16.mxu0 %v8697_v57 }
 0x25b   :  { %7996 = vmatmul.mubr.msk.bf16.vlgmr.msra.gmra.mrb[12].mxu1 %vm140_vm1, %v9259_v53 }
 0x25c   :  { %8004 = vmatmul.mubr.msk.bf16.vlgmr.msra.gmra.mrb[4].mxu0 %vm140_vm1, %v9259_v53  ;;  %8008 = vmatpush3.bf16.msra.mxu1 %v8696_v56 }
 0x25d   :  { %8011 = vmatprep.mubr.msk.bf16.mxu1 %vm140_vm1, %v9253_v49  ;;  %8016 = vmatpush3.bf16.msra.mxu0 %v8697_v57 }
 0x25e   :  { %8019 = vmatprep.mubr.msk.bf16.mxu0 %vm140_vm1, %v9253_v49  ;;  %8009 = vmatprep.subr.bf16.mxu1 %v8698_v58 }
 0x25f   :  { %8017 = vmatprep.subr.bf16.mxu0 %v8699_v59 }
 0x260   :  { %8010 = vmatpush3.bf16.msra.mxu1 %v8698_v58 }
 0x261   :  { %8018 = vmatpush3.bf16.msra.mxu0 %v8699_v59  ;;  %8023 = vmatprep.subr.bf16.mxu1 %v8700_v60 }
 0x262   :  { %8031 = vmatprep.subr.bf16.mxu0 %v8701_v61 }
 0x263   :  { %8012 = vmatmul.mubr.msk.bf16.vlgmr.msra.gmra.mrb[16].mxu1 %vm140_vm1, %v9259_v53 }
 0x264   :  { %8020 = vmatmul.mubr.msk.bf16.vlgmr.msra.gmra.mrb[8].mxu0 %vm140_vm1, %v9259_v53  ;;  %8024 = vmatpush3.bf16.msra.mxu1 %v8700_v60 }
 0x265   :  { %8027 = vmatprep.mubr.msk.bf16.mxu1 %vm140_vm1, %v9253_v49  ;;  %8032 = vmatpush3.bf16.msra.mxu0 %v8701_v61 }
 0x266   :  { %8035 = vmatprep.mubr.msk.bf16.mxu0 %vm140_vm1, %v9253_v49  ;;  %8025 = vmatprep.subr.bf16.mxu1 %v8702_v62 }
 0x267   :  { %8033 = vmatprep.subr.bf16.mxu0 %v8703_v63 }
 0x268   :  { %8026 = vmatpush3.bf16.msra.mxu1 %v8702_v62 }
 0x269   :  { %8034 = vmatpush3.bf16.msra.mxu0 %v8703_v63  ;;  %8039 = vmatprep.subr.bf16.mxu1 %v8704_v0  ;;  %v647_v63 = vrot.slane %v9382_v19, %v9195_v33 }
 0x26a   :  { %8047 = vmatprep.subr.bf16.mxu0 %v8705_v1 }
 0x26b   :  { %8028 = vmatmul.mubr.msk.bf16.vlgmr.msra.gmra.mrb[20].mxu1 %vm140_vm1, %v9259_v53 }
 0x26c   :  { %8036 = vmatmul.mubr.msk.bf16.vlgmr.msra.gmra.mrb[12].mxu0 %vm140_vm1, %v9259_v53  ;;  %8040 = vmatpush3.bf16.msra.mxu1 %v8704_v0 }
 0x26d   :  { %8043 = vmatprep.mubr.msk.bf16.mxu1 %vm140_vm1, %v9253_v49  ;;  %8048 = vmatpush3.bf16.msra.mxu0 %v8705_v1  ;;  %v576_v1 = vrot.slane %v9373_v9, %v9195_v33 }
 0x26e   :  { %8051 = vmatprep.mubr.msk.bf16.mxu0 %vm140_vm1, %v9253_v49  ;;  %8041 = vmatprep.subr.bf16.mxu1 %v8706_v2 }
 0x26f   :  { %8049 = vmatprep.subr.bf16.mxu0 %v8707_v3 }
 0x270   :  { %8042 = vmatpush3.bf16.msra.mxu1 %v8706_v2 }
 0x271   :  { %8050 = vmatpush3.bf16.msra.mxu0 %v8707_v3  ;;  %8055 = vmatprep.subr.bf16.mxu1 %v8708_v4 }
 0x272   :  { %8063 = vmatprep.subr.bf16.mxu0 %v8709_v5 }
 0x273   :  { %8044 = vmatmul.mubr.msk.bf16.vlgmr.msra.gmra.mrb[24].mxu1 %vm140_vm1, %v9259_v53 }
 0x274   :  { %8052 = vmatmul.mubr.msk.bf16.vlgmr.msra.gmra.mrb[16].mxu0 %vm140_vm1, %v9259_v53  ;;  %8056 = vmatpush3.bf16.msra.mxu1 %v8708_v4 }
 0x275   :  { %8059 = vmatprep.mubr.msk.bf16.mxu1 %vm140_vm1, %v9253_v49  ;;  %8064 = vmatpush3.bf16.msra.mxu0 %v8709_v5 }
 0x276   :  { %8067 = vmatprep.mubr.msk.bf16.mxu0 %vm140_vm1, %v9253_v49  ;;  %8057 = vmatprep.subr.bf16.mxu1 %v8710_v6 }
 0x277   :  { %8065 = vmatprep.subr.bf16.mxu0 %v8711_v7 }
 0x278   :  { %8058 = vmatpush3.bf16.msra.mxu1 %v8710_v6 }
 0x279   :  { %8066 = vmatpush3.bf16.msra.mxu0 %v8711_v7  ;;  %8071 = vmatprep.subr.bf16.mxu1 %v9108_v11 }
 0x27a   :  { %8077 = vmatprep.subr.bf16.mxu0 %v9108_v11 }
 0x27b   :  { %8060 = vmatmul.mubr.msk.bf16.vlgmr.msra.gmra.mrb[28].mxu1 %vm140_vm1, %v9259_v53 }
 0x27c   :  { %8068 = vmatmul.mubr.msk.bf16.vlgmr.msra.gmra.mrb[20].mxu0 %vm140_vm1, %v9259_v53  ;;  %8073 = vmatprep.mubr.msk.bf16.mxu1 %vm9109_vm2, %v9108_v11 }
 0x27d   :  { %8079 = vmatprep.mubr.msk.bf16.mxu0 %vm9109_vm2, %v9108_v11 }
 0x326   :  { %v7981_v13 = vpop.f32.mrb[8].mxu1  ;;  %v7989_v14 = vpop.f32.mrb[0].mxu0 }
 0x327   :  { %v339_v15 = vpop.f32.mrb[9].mxu1  ;;  %v410_v16 = vpop.f32.mrb[1].mxu0  ;;  %v9384_v20 = vadd.f32 %v7981_v13, %v286_v10  ;;  %v9386_v21 = vadd.f32 %v7989_v14, %v363_v12 }
 0x328   :  { %v7982_v17 = vpop.f32.mrb[10].mxu1  ;;  %v7990_v18 = vpop.f32.mrb[2].mxu0  ;;  %v340_v26 = vadd.f32 %v339_v15, %v286_v10  ;;  %v411_v27 = vadd.f32 %v410_v16, %v363_v12  ;;  %v9434_v16 = vsub.s32 2, %v9183_v29 }
 0x329   :  { %v9388_v22 = vadd.f32 %v7982_v17, %v286_v10  ;;  %v9390_v23 = vadd.f32 %v7990_v18, %v363_v12  ;;  %v342_v24 = vpop.f32.mrb[11].mxu1  ;;  %v413_v25 = vpop.f32.mrb[3].mxu0 }
 0x32a   :  { %v343_v28 = vadd.f32 %v342_v24, %v286_v10  ;;  %v414_v30 = vadd.f32 %v413_v25, %v363_v12 }
 0x32b   :  { %v355_v31 = vpack.c.bf16 %v9388_v22, %v9384_v20  ;;  %v426_v34 = vpack.c.bf16 %v9390_v23, %v9386_v21 }
 0x32c   :  { %v354_v36 = vpack.c.bf16 %v343_v28, %v340_v26  ;;  %v425_v37 = vpack.c.bf16 %v414_v30, %v411_v27 }
 0x32e   :  { %v7997_v38 = vpop.f32.mrb[12].mxu1  ;;  %v1142_v40 = vsel %vm1137_vm3, %v425_v37, 0 }
 0x32f   :  { %v9401_v41 = vadd.f32 %v7997_v38, %v434_v35  ;;  %v8005_v42 = vpop.f32.mrb[4].mxu0  ;;  %v481_v43 = vpop.f32.mrb[13].mxu1  ;;  %8072 = vmatpush3.bf16.xpose.msra.mxu1 %v1142_v40  ;;  %v789_v38 = vrot.slane %v9373_v9, %v9434_v16 }
 0x330   :  { %v552_v48 = vpop.f32.mrb[5].mxu0  ;;  %v7998_v49 = vpop.f32.mrb[14].mxu1  ;;  %8083 = vmatprep.subr.bf16.mxu1 %v9108_v11  ;;  %v9406_v53 = vadd.f32 %v8005_v42, %v505_v39  ;;  %v482_v54 = vadd.f32 %v481_v43, %v434_v35 }
 0x331   :  { %v9404_v50 = vadd.f32 %v7998_v49, %v434_v35  ;;  %v8006_v51 = vpop.f32.mrb[6].mxu0  ;;  %v484_v52 = vpop.f32.mrb[15].mxu1  ;;  %v9410_v58 = vadd.f32 %v552_v48, %v505_v39 }
 0x332   :  { %v9408_v55 = vadd.f32 %v8006_v51, %v505_v39  ;;  %v485_v56 = vadd.f32 %v484_v52, %v434_v35  ;;  %v555_v57 = vpop.f32.mrb[7].mxu0 }
 0x333   :  { %v497_v59 = vpack.c.bf16 %v9404_v50, %v9401_v41  ;;  %v556_v60 = vadd.f32 %v555_v57, %v505_v39 }
 0x334   :  { %v568_v61 = vpack.c.bf16 %v9408_v55, %v9406_v53  ;;  %v496_v62 = vpack.c.bf16 %v485_v56, %v482_v54  ;;  %v9457_v56 = vsub.s32 3, %v9183_v29 }
 0x335   :  { %v567_v0 = vpack.c.bf16 %v556_v60, %v9410_v58 }
 0x336   :  { %v8013_v2 = vpop.f32.mrb[16].mxu1  ;;  %8074 = vmatmul.mubr.msk.bf16.vlgmr.msra.gmra.mrb[32].mxu1 %vm1137_vm3, %v354_v36  ;;  %8078 = vmatpush3.bf16.msra.mxu0 %v496_v62  ;;  %v718_v36 = vrot.slane %v9368_v8, %v9434_v16 }
 0x337   :  { %v8021_v3 = vpop.f32.mrb[8].mxu0  ;;  %v623_v4 = vpop.f32.mrb[17].mxu1  ;;  %8085 = vmatprep.mubr.msk.bf16.mxu1 %vm9109_vm2, %v9108_v11  ;;  %8089 = vmatprep.subr.bf16.mxu0 %v9108_v11  ;;  %v9427_v10 = vadd.f32 %v8013_v2, %v576_v1 }
 0x338   :  { %v9425_v5 = vadd.f32 %v8021_v3, %v647_v63  ;;  %v694_v6 = vpop.f32.mrb[9].mxu0  ;;  %v8014_v7 = vpop.f32.mrb[18].mxu1  ;;  %v624_v17 = vadd.f32 %v623_v4, %v576_v1  ;;  %v860_v4 = vrot.slane %v9382_v19, %v9434_v16 }
 0x339   :  { %v9429_v12 = vadd.f32 %v694_v6, %v647_v63  ;;  %v9431_v13 = vadd.f32 %v8014_v7, %v576_v1  ;;  %v8022_v14 = vpop.f32.mrb[10].mxu0  ;;  %v626_v15 = vpop.f32.mrb[19].mxu1 }
 0x33a   :  { %v9436_v18 = vadd.f32 %v8022_v14, %v647_v63  ;;  %v627_v24 = vadd.f32 %v626_v15, %v576_v1  ;;  %v697_v25 = vpop.f32.mrb[11].mxu0  ;;  %v931_v15 = vrot.slane %v9368_v8, %v9457_v56 }
 0x33b   :  { %v639_v26 = vpack.c.bf16 %v9431_v13, %v9427_v10  ;;  %v9440_v27 = vadd.f32 %v697_v25, %v647_v63 }
 0x33c   :  { %v710_v28 = vpack.c.bf16 %v9436_v18, %v9425_v5  ;;  %v638_v30 = vpack.c.bf16 %v627_v24, %v624_v17 }
 0x33d   :  { %v709_v35 = vpack.c.bf16 %v9440_v27, %v9429_v12 }
 0x33e   :  { %v8029_v37 = vpop.f32.mrb[20].mxu1  ;;  %v1258_v39 = vsel %vm1137_vm3, %v638_v30, 0 }
 0x33f   :  { %v8037_v40 = vpop.f32.mrb[12].mxu0  ;;  %v765_v42 = vpop.f32.mrb[21].mxu1  ;;  %8084 = vmatpush3.bf16.xpose.msra.mxu1 %v1258_v39  ;;  %v9452_v49 = vadd.f32 %v8029_v37, %v718_v36 }
 0x340   :  { %v836_v43 = vpop.f32.mrb[13].mxu0  ;;  %v8030_v48 = vpop.f32.mrb[22].mxu1  ;;  %8095 = vmatprep.subr.bf16.mxu1 %v9108_v11  ;;  %v9459_v57 = vadd.f32 %v8037_v40, %v789_v38  ;;  %v766_v58 = vadd.f32 %v765_v42, %v718_v36 }
 0x341   :  { %v9454_v51 = vadd.f32 %v8030_v48, %v718_v36  ;;  %v8038_v52 = vpop.f32.mrb[14].mxu0  ;;  %v768_v54 = vpop.f32.mrb[23].mxu1  ;;  %v837_v1 = vadd.f32 %v836_v43, %v789_v38 }
 0x342   :  { %v9461_v60 = vadd.f32 %v8038_v52, %v789_v38  ;;  %v769_v62 = vadd.f32 %v768_v54, %v718_v36  ;;  %v839_v63 = vpop.f32.mrb[15].mxu0 }
 0x343   :  { %v781_v2 = vpack.c.bf16 %v9454_v51, %v9452_v49  ;;  %v840_v3 = vadd.f32 %v839_v63, %v789_v38 }
 0x344   :  { %v852_v6 = vpack.c.bf16 %v9461_v60, %v9459_v57  ;;  %v780_v29 = vpack.c.bf16 %v769_v62, %v766_v58 }
 0x345   :  { %v851_v7 = vpack.c.bf16 %v840_v3, %v837_v1  ;;  %v1073_v1 = vrot.slane %v9382_v19, %v9457_v56 }
 0x346   :  { %v8045_v14 = vpop.f32.mrb[24].mxu1  ;;  %8086 = vmatmul.mubr.msk.bf16.vlgmr.msra.gmra.mrb[36].mxu1 %vm1137_vm3, %v567_v0  ;;  %v1850_v20 = vsel %vm1137_vm3, %v852_v6, 0 }
 0x347   :  { %v9472_v17 = vadd.f32 %v8045_v14, %v860_v4  ;;  %v8053_v24 = vpop.f32.mrb[16].mxu0  ;;  %v907_v25 = vpop.f32.mrb[25].mxu1  ;;  %v1373_v30 = vsel %vm1137_vm3, %v851_v7, 0  ;;  %8097 = vmatprep.mubr.msk.bf16.mxu1 %vm9109_vm2, %v9108_v11  ;;  %v1002_v7 = vrot.slane %v9373_v9, %v9457_v56 }
 0x348   :  { %v9477_v36 = vadd.f32 %v907_v25, %v860_v4  ;;  %v978_v37 = vpop.f32.mrb[17].mxu0  ;;  %8096 = vmatpush3.bf16.xpose.msra.mxu1 %v1373_v30  ;;  %v8046_v38 = vpop.f32.mrb[26].mxu1  ;;  %v987_v0 = vadd.f32 %v8053_v24, %v931_v15 }
 0x349   :  { %v9479_v39 = vadd.f32 %v8046_v38, %v860_v4  ;;  %v8054_v40 = vpop.f32.mrb[18].mxu0  ;;  %v910_v8 = vpop.f32.mrb[27].mxu1  ;;  %8107 = vmatprep.subr.bf16.mxu1 %v9108_v11  ;;  %v979_v52 = vadd.f32 %v978_v37, %v931_v15 }
 0x34a   :  { %v990_v42 = vadd.f32 %v8054_v40, %v931_v15  ;;  %v9482_v43 = vadd.f32 %v910_v8, %v860_v4  ;;  %v981_v48 = vpop.f32.mrb[19].mxu0 }
 0x34b   :  { %v923_v54 = vpack.c.bf16 %v9479_v39, %v9472_v17  ;;  %v982_v58 = vadd.f32 %v981_v48, %v931_v15 }
 0x34c   :  { %v994_v62 = vpack.c.bf16 %v990_v42, %v987_v0  ;;  %v922_v63 = vpack.c.bf16 %v9482_v43, %v9477_v36 }
 0x34d   :  { %v993_v3 = vpack.c.bf16 %v982_v58, %v979_v52 }
 0x34e   :  { %v8061_v14 = vpop.f32.mrb[28].mxu1 }
 0x34f   :  { %v8069_v4 = vpop.f32.mrb[20].mxu0  ;;  %8098 = vmatmul.mubr.msk.bf16.vlgmr.msra.gmra.mrb[40].mxu1 %vm1137_vm3, %v780_v29  ;;  %v1049_v24 = vpop.f32.mrb[29].mxu1  ;;  %v1058_v37 = vadd.f32 %v8061_v14, %v1002_v7 }
 0x350   :  { %v9493_v25 = vadd.f32 %v8069_v4, %v1073_v1  ;;  %v1120_v30 = vpop.f32.mrb[21].mxu0  ;;  %v8062_v15 = vpop.f32.mrb[30].mxu1  ;;  %8109 = vmatprep.mubr.msk.bf16.mxu1 %vm9109_vm2, %v9108_v11  ;;  %v1050_v0 = vadd.f32 %v1049_v24, %v1002_v7 }
 0x351   :  { %v9497_v38 = vadd.f32 %v1120_v30, %v1073_v1  ;;  %v1061_v19 = vadd.f32 %v8062_v15, %v1002_v7  ;;  %v8070_v40 = vpop.f32.mrb[22].mxu0  ;;  %v1052_v8 = vpop.f32.mrb[31].mxu1 }
 0x352   :  { %v9499_v9 = vadd.f32 %v8070_v40, %v1073_v1  ;;  %v1053_v42 = vadd.f32 %v1052_v8, %v1002_v7  ;;  %v1123_v48 = vpop.f32.mrb[23].mxu0 }
 0x353   :  { %v1065_v29 = vpack.c.bf16 %v1061_v19, %v1058_v37  ;;  %v9501_v52 = vadd.f32 %v1123_v48, %v1073_v1  ;;  %v1620_v1 = vsel %vm1137_vm3, %v426_v34, 0 }
 0x354   :  { %v1136_v58 = vpack.c.bf16 %v9499_v9, %v9493_v25  ;;  %v1064_v4 = vpack.c.bf16 %v1053_v42, %v1050_v0 }
 0x355   :  { %v1135_v14 = vpack.c.bf16 %v9501_v52, %v9497_v38  ;;  %v1965_v21 = vsel %vm1137_vm3, %v1065_v29, 0 }
 0x356   :  { %v1488_v30 = vsel %vm1137_vm3, %v1064_v4, 0 }
 0x357   :  { %8108 = vmatpush3.bf16.xpose.msra.mxu1 %v1488_v30 }
 0x358   :  { %8119 = vmatprep.subr.bf16.mxu1 %v9108_v11 }
 0x35e   :  { %8110 = vmatmul.mubr.msk.bf16.vlgmr.msra.gmra.mrb[44].mxu1 %vm1137_vm3, %v993_v3  ;;  %v1735_v3 = vsel %vm1137_vm3, %v639_v26, 0 }
 0x35f   :  { %8120 = vmatpush3.bf16.xpose.msra.mxu1 %v1620_v1  ;;  %8121 = vmatprep.mubr.msk.bf16.mxu1 %vm9109_vm2, %v9108_v11 }
 0x360   :  { %8131 = vmatprep.subr.bf16.mxu1 %v9108_v11 }
 0x366   :  { %8122 = vmatmul.mubr.msk.bf16.vlgmr.msra.gmra.mrb[48].mxu1 %vm1137_vm3, %v355_v31 }
 0x367   :  { %8132 = vmatpush3.bf16.xpose.msra.mxu1 %v1735_v3  ;;  %8133 = vmatprep.mubr.msk.bf16.mxu1 %vm9109_vm2, %v9108_v11 }
 0x368   :  { %8143 = vmatprep.subr.bf16.mxu1 %v9108_v11 }
 0x36e   :  { %8134 = vmatmul.mubr.msk.bf16.vlgmr.msra.gmra.mrb[52].mxu1 %vm1137_vm3, %v568_v61 }
 0x36f   :  { %8144 = vmatpush3.bf16.xpose.msra.mxu1 %v1850_v20  ;;  %8145 = vmatprep.mubr.msk.bf16.mxu1 %vm9109_vm2, %v9108_v11 }
 0x370   :  { %8155 = vmatprep.subr.bf16.mxu1 %v9108_v11 }
 0x376   :  { %8146 = vmatmul.mubr.msk.bf16.vlgmr.msra.gmra.mrb[56].mxu1 %vm1137_vm3, %v781_v2 }
 0x377   :  { %8156 = vmatpush3.bf16.xpose.msra.mxu1 %v1965_v21  ;;  %8157 = vmatprep.mubr.msk.bf16.mxu1 %vm9109_vm2, %v9108_v11 }
 0x37e   :  { %8158 = vmatmul.mubr.msk.bf16.vlgmr.msra.gmra.mrb[60].mxu1 %vm1137_vm3, %v994_v62 }
 0x409   :  { %v9547_v22 = vpop.f32.mrb[32].mxu1 }
 0x40a   :  { %v8075_v23 = vpop.f32.mrb[33].mxu1  ;;  %v1186_v31 = vsel %vm1185_vm4, %v9547_v22, -inf }
 0x40b   :  { %1187 = vmax.xlane.f32.xlu0 %v1186_v31  ;;  %v9551_v34 = vpop.f32.mrb[34].mxu1 }
 0x40c   :  { %v8076_v53 = vpop.f32.mrb[35].mxu1  ;;  %v1189_v55 = vsel %vm1185_vm4, %v9551_v34, -inf }
 0x40d   :  { %1190 = vmax.xlane.f32.xlu1 %v1189_v55 }
 0x419   :  { %v9555_v61 = vpop.f32.mrb[36].mxu1 }
 0x41a   :  { %v8087_v10 = vpop.f32.mrb[37].mxu1  ;;  %v1301_v13 = vsel %vm1185_vm4, %v9555_v61, -inf }
 0x41b   :  { %1302 = vmax.xlane.f32.xlu0 %v1301_v13  ;;  %v9559_v26 = vpop.f32.mrb[38].mxu1 }
 0x41c   :  { %v8088_v49 = vpop.f32.mrb[39].mxu1  ;;  %v1304_v51 = vsel %vm1185_vm4, %v9559_v26, -inf }
 0x41d   :  { %1305 = vmax.xlane.f32.xlu1 %v1304_v51 }
 0x422   :  { %v9563_v57 = vpop.f32.mrb[40].mxu1 }
 0x423   :  { %v8099_v60 = vpop.f32.mrb[41].mxu1  ;;  %v1416_v2 = vsel %vm1185_vm4, %v9563_v57, -inf }
 0x424   :  { %1417 = vmax.xlane.f32.xlu0 %v1416_v2  ;;  %v9567_v6 = vpop.f32.mrb[42].mxu1 }
 0x425   :  { %v8100_v62 = vpop.f32.mrb[43].mxu1  ;;  %v1419_v7 = vsel %vm1185_vm4, %v9567_v6, -inf }
 0x426   :  { %1420 = vmax.xlane.f32.xlu1 %v1419_v7 }
 0x431   :  { %v9571_v24 = vpop.f32.mrb[44].mxu1 }
 0x432   :  { %v8111_v15 = vpop.f32.mrb[45].mxu1  ;;  %v1531_v37 = vsel %vm1185_vm4, %v9571_v24, -inf }
 0x433   :  { %1532 = vmax.xlane.f32.xlu0 %v1531_v37  ;;  %v9575_v19 = vpop.f32.mrb[46].mxu1 }
 0x434   :  { %v8112_v40 = vpop.f32.mrb[47].mxu1  ;;  %v1534_v8 = vsel %vm1185_vm4, %v9575_v19, -inf }
 0x435   :  { %1535 = vmax.xlane.f32.xlu1 %v1534_v8 }
 0x439   :  { %v9579_v0 = vpop.f32.mrb[48].mxu1 }
 0x43a   :  { %v8123_v42 = vpop.f32.mrb[49].mxu1  ;;  %v1663_v48 = vsel %vm1185_vm4, %v9579_v0, -inf }
 0x43b   :  { %1664 = vmax.xlane.f32.xlu0 %v1663_v48  ;;  %v9583_v29 = vpop.f32.mrb[50].mxu1 }
 0x43c   :  { %v8124_v4 = vpop.f32.mrb[51].mxu1  ;;  %v1666_v30 = vsel %vm1185_vm4, %v9583_v29, -inf }
 0x43d   :  { %1667 = vmax.xlane.f32.xlu1 %v1666_v30 }
 0x441   :  { %v9587_v1 = vpop.f32.mrb[52].mxu1 }
 0x442   :  { %v8135_v3 = vpop.f32.mrb[53].mxu1  ;;  %v1778_v20 = vsel %vm1185_vm4, %v9587_v1, -inf }
 0x443   :  { %1779 = vmax.xlane.f32.xlu0 %v1778_v20  ;;  %v9591_v21 = vpop.f32.mrb[54].mxu1 }
 0x444   :  { %v8136_v23 = vpop.f32.mrb[55].mxu1  ;;  %v1781_v31 = vsel %vm1185_vm4, %v9591_v21, -inf }
 0x445   :  { %1782 = vmax.xlane.f32.xlu1 %v1781_v31 }
 0x449   :  { %v9595_v53 = vpop.f32.mrb[56].mxu1 }
 0x44a   :  { %v8147_v55 = vpop.f32.mrb[57].mxu1  ;;  %v1893_v10 = vsel %vm1185_vm4, %v9595_v53, -inf }
 0x44b   :  { %1894 = vmax.xlane.f32.xlu0 %v1893_v10  ;;  %v9599_v13 = vpop.f32.mrb[58].mxu1 }
 0x44c   :  { %v8148_v49 = vpop.f32.mrb[59].mxu1  ;;  %v1896_v51 = vsel %vm1185_vm4, %v9599_v13, -inf }
 0x44d   :  { %1897 = vmax.xlane.f32.xlu1 %v1896_v51 }
 0x451   :  { %v9603_v60 = vpop.f32.mrb[60].mxu1 }
 0x452   :  { %v8159_v2 = vpop.f32.mrb[61].mxu1  ;;  %v2008_v62 = vsel %vm1185_vm4, %v9603_v60, -inf }
 0x453   :  { %2009 = vmax.xlane.f32.xlu0 %v2008_v62  ;;  %v9607_v7 = vpop.f32.mrb[62].mxu1 }
 0x454   :  { %v8160_v15 = vpop.f32.mrb[63].mxu1  ;;  %v2011_v37 = vsel %vm1185_vm4, %v9607_v7, -inf }
 0x455   :  { %2012 = vmax.xlane.f32.xlu1 %v2011_v37 }
 0x498   :  { %v1188_v40 = vpop.xlane.xlu0 %1187 }
 0x499   :  { %v1192_v8 = vsub.f32 %v9547_v22, %v1188_v40 }
 0x49a   :  { %v1191_v42 = vpop.xlane.xlu1 %1190 }
 0x49b   :  { %v1194_v48 = vmul.f32 1.442695, %v1192_v8  ;;  %v1193_v4 = vsub.f32 %v9551_v34, %v1191_v42 }
 0x49d   :  { %8812 = vpow2.f32 %v1194_v48  ;;  %v1196_v30 = vmul.f32 1.442695, %v1193_v4 }
 0x49f   :  { %8814 = vpow2.f32 %v1196_v30 }
 0x4a7   :  { %v9613_v3 = vpop.eup %8812 }
 0x4a8   :  { %v1303_v20 = vpop.xlane.xlu0 %1302  ;;  %v1198_v23 = vsel %vm1185_vm4, %v9613_v3, 0.0 }
 0x4a9   :  { %v9617_v31 = vpop.eup %8814  ;;  %v1307_v55 = vsub.f32 %v9555_v61, %v1303_v20  ;;  %1199 = vadd.xlane.f32.xlu0 %v1198_v23 }
 0x4aa   :  { %v1306_v10 = vpop.xlane.xlu1 %1305  ;;  %v1201_v22 = vsel %vm1185_vm4, %v9617_v31, 0.0 }
 0x4ab   :  { %v1309_v49 = vmul.f32 1.442695, %v1307_v55  ;;  %v1308_v34 = vsub.f32 %v9559_v26, %v1306_v10  ;;  %1202 = vadd.xlane.f32.xlu1 %v1201_v22 }
 0x4ad   :  { %8816 = vpow2.f32 %v1309_v49  ;;  %v1311_v51 = vmul.f32 1.442695, %v1308_v34 }
 0x4af   :  { %8818 = vpow2.f32 %v1311_v51 }
 0x4b1   :  { %v1418_v2 = vpop.xlane.xlu0 %1417 }
 0x4b2   :  { %v1422_v62 = vsub.f32 %v9563_v57, %v1418_v2 }
 0x4b3   :  { %v1421_v15 = vpop.xlane.xlu1 %1420 }
 0x4b4   :  { %v1424_v37 = vmul.f32 1.442695, %v1422_v62  ;;  %v1423_v40 = vsub.f32 %v9567_v6, %v1421_v15 }
 0x4b6   :  { %8820 = vpow2.f32 %v1424_v37  ;;  %v1426_v61 = vmul.f32 1.442695, %v1423_v40 }
 0x4b7   :  { %v9625_v8 = vpop.eup %8816 }
 0x4b8   :  { %8822 = vpow2.f32 %v1426_v61  ;;  %v1313_v42 = vsel %vm1185_vm4, %v9625_v8, 0.0 }
 0x4b9   :  { %v9629_v26 = vpop.eup %8818  ;;  %1314 = vadd.xlane.f32.xlu0 %v1313_v42 }
 0x4ba   :  { %v1316_v48 = vsel %vm1185_vm4, %v9629_v26, 0.0 }
 0x4bb   :  { %1317 = vadd.xlane.f32.xlu1 %v1316_v48 }
 0x4c0   :  { %v9633_v57 = vpop.eup %8820  ;;  %v1533_v4 = vpop.xlane.xlu0 %1532 }
 0x4c1   :  { %v1537_v6 = vsub.f32 %v9571_v24, %v1533_v4  ;;  %v1428_v30 = vsel %vm1185_vm4, %v9633_v57, 0.0 }
 0x4c2   :  { %v9638_v20 = vpop.eup %8822  ;;  %1429 = vadd.xlane.f32.xlu0 %v1428_v30  ;;  %v1536_v23 = vpop.xlane.xlu1 %1535 }
 0x4c3   :  { %v1539_v55 = vmul.f32 1.442695, %v1537_v6  ;;  %v1538_v10 = vsub.f32 %v9575_v19, %v1536_v23  ;;  %v1431_v22 = vsel %vm1185_vm4, %v9638_v20, 0.0 }
 0x4c4   :  { %1432 = vadd.xlane.f32.xlu1 %v1431_v22 }
 0x4c5   :  { %8824 = vpow2.f32 %v1539_v55  ;;  %v1541_v49 = vmul.f32 1.442695, %v1538_v10 }
 0x4c7   :  { %8826 = vpow2.f32 %v1541_v49 }
 0x4c8   :  { %v1665_v34 = vpop.xlane.xlu0 %1664 }
 0x4c9   :  { %v1669_v24 = vsub.f32 %v9579_v0, %v1665_v34 }
 0x4ca   :  { %v1668_v51 = vpop.xlane.xlu1 %1667 }
 0x4cb   :  { %v1671_v2 = vmul.f32 1.442695, %v1669_v24  ;;  %v1670_v62 = vsub.f32 %v9583_v29, %v1668_v51 }
 0x4cd   :  { %8828 = vpow2.f32 %v1671_v2  ;;  %v1673_v15 = vmul.f32 1.442695, %v1670_v62 }
 0x4cf   :  { %v9645_v37 = vpop.eup %8824  ;;  %8830 = vpow2.f32 %v1673_v15 }
 0x4d0   :  { %v1780_v19 = vpop.xlane.xlu0 %1779  ;;  %v1543_v40 = vsel %vm1185_vm4, %v9645_v37, 0.0 }
 0x4d1   :  { %v9649_v61 = vpop.eup %8826  ;;  %v1784_v42 = vsub.f32 %v9587_v1, %v1780_v19  ;;  %1544 = vadd.xlane.f32.xlu0 %v1543_v40 }
 0x4d2   :  { %v1783_v48 = vpop.xlane.xlu1 %1782  ;;  %v1546_v0 = vsel %vm1185_vm4, %v9649_v61, 0.0 }
 0x4d3   :  { %v1786_v4 = vmul.f32 1.442695, %v1784_v42  ;;  %v1785_v29 = vsub.f32 %v9591_v21, %v1783_v48  ;;  %1547 = vadd.xlane.f32.xlu1 %v1546_v0 }
 0x4d5   :  { %8832 = vpow2.f32 %v1786_v4  ;;  %v1788_v6 = vmul.f32 1.442695, %v1785_v29 }
 0x4d7   :  { %v9655_v30 = vpop.eup %8828  ;;  %8834 = vpow2.f32 %v1788_v6 }
 0x4d8   :  { %v1895_v23 = vpop.xlane.xlu0 %1894  ;;  %v1675_v55 = vsel %vm1185_vm4, %v9655_v30, 0.0 }
 0x4d9   :  { %v9659_v10 = vpop.eup %8830  ;;  %v1899_v1 = vsub.f32 %v9595_v53, %v1895_v23  ;;  %1676 = vadd.xlane.f32.xlu0 %v1675_v55 }
 0x4da   :  { %v1898_v22 = vpop.xlane.xlu1 %1897  ;;  %v1678_v49 = vsel %vm1185_vm4, %v9659_v10, 0.0 }
 0x4db   :  { %v1901_v21 = vmul.f32 1.442695, %v1899_v1  ;;  %v1900_v34 = vsub.f32 %v9599_v13, %v1898_v22  ;;  %1679 = vadd.xlane.f32.xlu1 %v1678_v49 }
 0x4dd   :  { %8836 = vpow2.f32 %v1901_v21  ;;  %v1903_v24 = vmul.f32 1.442695, %v1900_v34 }
 0x4df   :  { %v9665_v51 = vpop.eup %8832  ;;  %8838 = vpow2.f32 %v1903_v24 }
 0x4e0   :  { %v2010_v2 = vpop.xlane.xlu0 %2009  ;;  %v1790_v62 = vsel %vm1185_vm4, %v9665_v51, 0.0 }
 0x4e1   :  { %v9669_v15 = vpop.eup %8834  ;;  %v2014_v53 = vsub.f32 %v9603_v60, %v2010_v2  ;;  %1791 = vadd.xlane.f32.xlu0 %v1790_v62 }
 0x4e2   :  { %v2013_v19 = vpop.xlane.xlu1 %2012  ;;  %v1793_v40 = vsel %vm1185_vm4, %v9669_v15, 0.0 }
 0x4e3   :  { %v2016_v13 = vmul.f32 1.442695, %v2014_v53  ;;  %v2015_v42 = vsub.f32 %v9607_v7, %v2013_v19  ;;  %1794 = vadd.xlane.f32.xlu1 %v1793_v40 }
 0x4e5   :  { %8840 = vpow2.f32 %v2016_v13  ;;  %v2018_v48 = vmul.f32 1.442695, %v2015_v42 }
 0x4e7   :  { %v9675_v0 = vpop.eup %8836  ;;  %8842 = vpow2.f32 %v2018_v48 }
 0x4e8   :  { %v1905_v4 = vsel %vm1185_vm4, %v9675_v0, 0.0 }
 0x4e9   :  { %v9679_v29 = vpop.eup %8838  ;;  %1906 = vadd.xlane.f32.xlu0 %v1905_v4 }
 0x4ea   :  { %v1908_v60 = vsel %vm1185_vm4, %v9679_v29, 0.0 }
 0x4eb   :  { %1909 = vadd.xlane.f32.xlu1 %v1908_v60 }
 0x4ef   :  { %v9683_v6 = vpop.eup %8840 }
 0x4f0   :  { %v2020_v7 = vsel %vm1185_vm4, %v9683_v6, 0.0 }
 0x4f1   :  { %v9687_v23 = vpop.eup %8842  ;;  %2021 = vadd.xlane.f32.xlu0 %v2020_v7 }
 0x4f2   :  { %v2023_v55 = vsel %vm1185_vm4, %v9687_v23, 0.0 }
 0x4f3   :  { %2024 = vadd.xlane.f32.xlu1 %v2023_v55 }
 0x536   :  { %v1200_v1 = vpop.xlane.xlu0 %1199 }
 0x537   :  { %8844 = vrcp.f32 %v1200_v1 }
 0x538   :  { %v1203_v22 = vpop.xlane.xlu1 %1202 }
 0x539   :  { %8846 = vrcp.f32 %v1203_v22 }
 0x541   :  { %v8845_v49 = vpop.eup %8844 }
 0x542   :  { %v1205_v34 = vmul.f32 %v8845_v49, %v9613_v3 }
 0x543   :  { %v8847_v21 = vpop.eup %8846 }
 0x544   :  { %v1207_v24 = vmul.f32 %v8847_v21, %v9617_v31 }
 0x546   :  { %v1315_v2 = vpop.xlane.xlu0 %1314  ;;  %v1208_v62 = vpack.c.bf16 %v1207_v24, %v1205_v34 }
 0x547   :  { %8848 = vrcp.f32 %v1315_v2 }
 0x548   :  { %8080 = vmatmul.mubr.msk.bf16.vlgmr.msra.gmra.mrb[24].mxu0 %vm1185_vm4, %v1208_v62  ;;  %v1318_v53 = vpop.xlane.xlu1 %1317 }
 0x549   :  { %8090 = vmatpush3.bf16.msra.mxu0 %v709_v35  ;;  %8850 = vrcp.f32 %v1318_v53  ;;  %8091 = vmatprep.mubr.msk.bf16.mxu0 %vm9109_vm2, %v9108_v11 }
 0x54a   :  { %8101 = vmatprep.subr.bf16.mxu0 %v9108_v11 }
 0x54f   :  { %v1430_v19 = vpop.xlane.xlu0 %1429 }
 0x550   :  { %8852 = vrcp.f32 %v1430_v19 }
 0x551   :  { %v8849_v3 = vpop.eup %8848  ;;  %v1433_v31 = vpop.xlane.xlu1 %1432 }
 0x552   :  { %8854 = vrcp.f32 %v1433_v31  ;;  %v1320_v13 = vmul.f32 %v8849_v3, %v9625_v8 }
 0x553   :  { %v8851_v40 = vpop.eup %8850 }
 0x554   :  { %v1322_v42 = vmul.f32 %v8851_v40, %v9629_v26 }
 0x556   :  { %v1323_v48 = vpack.c.bf16 %v1322_v42, %v1320_v13 }
 0x558   :  { %8092 = vmatmul.mubr.msk.bf16.vlgmr.msra.gmra.mrb[28].mxu0 %vm1185_vm4, %v1323_v48 }
 0x559   :  { %8102 = vmatpush3.bf16.msra.mxu0 %v922_v63  ;;  %8103 = vmatprep.mubr.msk.bf16.mxu0 %vm9109_vm2, %v9108_v11 }
 0x55a   :  { %v8853_v12 = vpop.eup %8852  ;;  %8113 = vmatprep.subr.bf16.mxu0 %v9108_v11 }
 0x55b   :  { %v1435_v35 = vmul.f32 %v8853_v12, %v9633_v57 }
 0x55c   :  { %v8855_v27 = vpop.eup %8854 }
 0x55d   :  { %v1437_v8 = vmul.f32 %v8855_v27, %v9638_v20 }
 0x55e   :  { %v1545_v4 = vpop.xlane.xlu0 %1544 }
 0x55f   :  { %8856 = vrcp.f32 %v1545_v4  ;;  %v1438_v26 = vpack.c.bf16 %v1437_v8, %v1435_v35 }
 0x560   :  { %v1548_v60 = vpop.xlane.xlu1 %1547 }
 0x561   :  { %8104 = vmatmul.mubr.msk.bf16.vlgmr.msra.gmra.mrb[32].mxu0 %vm1185_vm4, %v1438_v26  ;;  %8858 = vrcp.f32 %v1548_v60 }
 0x562   :  { %8114 = vmatpush3.bf16.msra.mxu0 %v1135_v14  ;;  %8115 = vmatprep.mubr.msk.bf16.mxu0 %vm9109_vm2, %v9108_v11 }
 0x563   :  { %8125 = vmatprep.subr.bf16.mxu0 %v9108_v11 }
 0x566   :  { %v1677_v36 = vpop.xlane.xlu0 %1676 }
 0x567   :  { %8860 = vrcp.f32 %v1677_v36 }
 0x568   :  { %v1680_v43 = vpop.xlane.xlu1 %1679 }
 0x569   :  { %v8857_v63 = vpop.eup %8856  ;;  %8862 = vrcp.f32 %v1680_v43 }
 0x56a   :  { %v1550_v20 = vmul.f32 %v8857_v63, %v9645_v37 }
 0x56b   :  { %v8859_v57 = vpop.eup %8858 }
 0x56c   :  { %v1552_v7 = vmul.f32 %v8859_v57, %v9649_v61 }
 0x56e   :  { %v1792_v55 = vpop.xlane.xlu0 %1791  ;;  %v1553_v1 = vpack.c.bf16 %v1552_v7, %v1550_v20  ;;  %v8712_v20 = vld [vmem:[%s11236_s2 + $0xf0] sm:$0xff]   ;;  %v8713_v7 = vld [vmem:[%s11236_s2 + $0xf8] sm:$0xff]  }
 0x56f   :  { %8864 = vrcp.f32 %v1792_v55  ;;  %8167 = vmatprep.subr.bf16.mxu1 %v8712_v20 }
 0x570   :  { %8116 = vmatmul.mubr.msk.bf16.vlgmr.msra.gmra.mrb[36].mxu0 %vm1185_vm4, %v1553_v1  ;;  %v1795_v38 = vpop.xlane.xlu1 %1794  ;;  %8168 = vmatpush3.bf16.msra.mxu1 %v8712_v20 }
 0x571   :  { %v8861_v52 = vpop.eup %8860  ;;  %8126 = vmatpush3.bf16.msra.mxu0 %v497_v59  ;;  %8866 = vrcp.f32 %v1795_v38  ;;  %8127 = vmatprep.mubr.msk.bf16.mxu0 %vm9109_vm2, %v9108_v11 }
 0x572   :  { %8137 = vmatprep.subr.bf16.mxu0 %v9108_v11  ;;  %v1682_v37 = vmul.f32 %v8861_v52, %v9655_v30  ;;  %8169 = vmatprep.subr.bf16.mxu1 %v8713_v7 }
 0x573   :  { %v8863_v14 = vpop.eup %8862 }
 0x574   :  { %v1684_v61 = vmul.f32 %v8863_v14, %v9659_v10  ;;  %8170 = vmatpush3.bf16.msra.mxu1 %v8713_v7 }
 0x576   :  { %v1907_v22 = vpop.xlane.xlu0 %1906  ;;  %v1685_v49 = vpack.c.bf16 %v1684_v61, %v1682_v37 }
 0x577   :  { %8868 = vrcp.f32 %v1907_v22 }
 0x578   :  { %8128 = vmatmul.mubr.msk.bf16.vlgmr.msra.gmra.mrb[40].mxu0 %vm1185_vm4, %v1685_v49  ;;  %v1910_v21 = vpop.xlane.xlu1 %1909 }
 0x579   :  { %v8865_v34 = vpop.eup %8864  ;;  %8138 = vmatpush3.bf16.msra.mxu0 %v710_v28  ;;  %8870 = vrcp.f32 %v1910_v21  ;;  %8139 = vmatprep.mubr.msk.bf16.mxu0 %vm9109_vm2, %v9108_v11 }
 0x57a   :  { %8149 = vmatprep.subr.bf16.mxu0 %v9108_v11  ;;  %v1797_v50 = vmul.f32 %v8865_v34, %v9665_v51 }
 0x57b   :  { %v8867_v41 = vpop.eup %8866 }
 0x57c   :  { %v1799_v59 = vmul.f32 %v8867_v41, %v9669_v15 }
 0x57e   :  { %v2022_v30 = vpop.xlane.xlu0 %2021  ;;  %v1800_v10 = vpack.c.bf16 %v1799_v59, %v1797_v50 }
 0x57f   :  { %8872 = vrcp.f32 %v2022_v30 }
 0x580   :  { %8140 = vmatmul.mubr.msk.bf16.vlgmr.msra.gmra.mrb[44].mxu0 %vm1185_vm4, %v1800_v10  ;;  %v2025_v24 = vpop.xlane.xlu1 %2024 }
 0x581   :  { %v8869_v2 = vpop.eup %8868  ;;  %8150 = vmatpush3.bf16.msra.mxu0 %v923_v54  ;;  %8874 = vrcp.f32 %v2025_v24  ;;  %8151 = vmatprep.mubr.msk.bf16.mxu0 %vm9109_vm2, %v9108_v11 }
 0x582   :  { %8161 = vmatprep.subr.bf16.mxu0 %v9108_v11  ;;  %v1912_v18 = vmul.f32 %v8869_v2, %v9675_v0 }
 0x583   :  { %v8871_v5 = vpop.eup %8870 }
 0x584   :  { %v1914_v28 = vmul.f32 %v8871_v5, %v9679_v29 }
 0x586   :  { %v1915_v51 = vpack.c.bf16 %v1914_v28, %v1912_v18 }
 0x588   :  { %8152 = vmatmul.mubr.msk.bf16.vlgmr.msra.gmra.mrb[48].mxu0 %vm1185_vm4, %v1915_v51 }
 0x589   :  { %v8873_v15 = vpop.eup %8872  ;;  %8162 = vmatpush3.bf16.msra.mxu0 %v1136_v58  ;;  %8163 = vmatprep.mubr.msk.bf16.mxu0 %vm9109_vm2, %v9108_v11 }
 0x58a   :  { %v2027_v39 = vmul.f32 %v8873_v15, %v9683_v6 }
 0x58b   :  { %v8875_v17 = vpop.eup %8874 }
 0x58c   :  { %v2029_v54 = vmul.f32 %v8875_v17, %v9687_v23 }
 0x58e   :  { %v2030_v62 = vpack.c.bf16 %v2029_v54, %v2027_v39 }
 0x590   :  { %8164 = vmatmul.mubr.msk.bf16.vlgmr.msra.gmra.mrb[52].mxu0 %vm1185_vm4, %v2030_v62 }
 0x61b   :  { %v1246_v0 = vpop.f32.mrb[24].mxu0 }
 0x61c   :  { %v8081_v29 = vpop.f32.mrb[25].mxu0 }
 0x61d   :  { %v1249_v53 = vpop.f32.mrb[26].mxu0 }
 0x61e   :  { %v1253_v19 = vpack.c.bf16 %v1249_v53, %v1246_v0  ;;  %v8082_v3 = vpop.f32.mrb[27].mxu0  ;;  %v7440_v0 = vld [vmem:[%s11237_s3 + $0x98] ss:$0 sm:$0xff] }
 0x62b   :  { %v1361_v31 = vpop.f32.mrb[28].mxu0 }
 0x62c   :  { %v8093_v40 = vpop.f32.mrb[29].mxu0 }
 0x62d   :  { %v1364_v25 = vpop.f32.mrb[30].mxu0 }
 0x62e   :  { %v1368_v9 = vpack.c.bf16 %v1364_v25, %v1361_v31  ;;  %v8094_v58 = vpop.f32.mrb[31].mxu0 }
 0x630   :  { %1600 = vrot.lane.b32.xlu0 %v1368_v9, %s9110_s21 }
 0x634   :  { %v1476_v13 = vpop.f32.mrb[32].mxu0 }
 0x635   :  { %v8105_v6 = vpop.f32.mrb[33].mxu0 }
 0x636   :  { %v1479_v42 = vpop.f32.mrb[34].mxu0 }
 0x637   :  { %v1483_v23 = vpack.c.bf16 %v1479_v42, %v1476_v13  ;;  %v8106_v48 = vpop.f32.mrb[35].mxu0 }
 0x639   :  { %1603 = vrot.lane.b32.xlu1 %v1483_v23, %s9111_s22 }
 0x643   :  { %v1591_v12 = vpop.f32.mrb[36].mxu0 }
 0x644   :  { %v8117_v27 = vpop.f32.mrb[37].mxu0 }
 0x645   :  { %v1594_v35 = vpop.f32.mrb[38].mxu0 }
 0x646   :  { %v1598_v8 = vpack.c.bf16 %v1594_v35, %v1591_v12  ;;  %v8118_v4 = vpop.f32.mrb[39].mxu0 }
 0x648   :  { %1606 = vrot.lane.b32.xlu1 %v1598_v8, %s9112_s23 }
 0x64b   :  { %v1723_v26 = vpop.f32.mrb[40].mxu0 }
 0x64c   :  { %v8129_v60 = vpop.f32.mrb[41].mxu0 }
 0x64d   :  { %v1726_v36 = vpop.f32.mrb[42].mxu0 }
 0x64e   :  { %v1730_v43 = vpack.c.bf16 %v1726_v36, %v1723_v26  ;;  %v8130_v63 = vpop.f32.mrb[43].mxu0 }
 0x653   :  { %v1838_v57 = vpop.f32.mrb[44].mxu0 }
 0x654   :  { %v8141_v55 = vpop.f32.mrb[45].mxu0 }
 0x655   :  { %v1841_v1 = vpop.f32.mrb[46].mxu0 }
 0x656   :  { %v1845_v38 = vpack.c.bf16 %v1841_v1, %v1838_v57  ;;  %v8142_v52 = vpop.f32.mrb[47].mxu0 }
 0x658   :  { %2077 = vrot.lane.b32.xlu1 %v1845_v38, %s9110_s21 }
 0x65b   :  { %v1953_v14 = vpop.f32.mrb[48].mxu0 }
 0x65c   :  { %v8153_v37 = vpop.f32.mrb[49].mxu0 }
 0x65d   :  { %v1956_v61 = vpop.f32.mrb[50].mxu0  ;;  %v8715_v37 = vld [vmem:[%s11236_s2 + $0x108] sm:$0xff]  }
 0x65e   :  { %v1960_v22 = vpack.c.bf16 %v1956_v61, %v1953_v14  ;;  %v8154_v49 = vpop.f32.mrb[51].mxu0  ;;  %v8714_v14 = vld [vmem:[%s11236_s2 + $0x100] sm:$0xff]  }
 0x65f   :  { %8175 = vmatprep.subr.bf16.mxu0 %v8714_v14 }
 0x660   :  { %2080 = vrot.lane.b32.xlu0 %v1960_v22, %s9111_s22  ;;  %8176 = vmatpush3.bf16.msra.mxu0 %v8714_v14 }
 0x661   :  { %8177 = vmatprep.subr.bf16.mxu0 %v8715_v37 }
 0x663   :  { %v2068_v21 = vpop.f32.mrb[52].mxu0 }
 0x664   :  { %v8165_v34 = vpop.f32.mrb[53].mxu0  ;;  %8178 = vmatpush3.bf16.msra.mxu0 %v8715_v37 }
 0x665   :  { %v2071_v41 = vpop.f32.mrb[54].mxu0 }
 0x666   :  { %v2075_v50 = vpack.c.bf16 %v2071_v41, %v2068_v21  ;;  %v8166_v59 = vpop.f32.mrb[55].mxu0 }
 0x668   :  { %2083 = vrot.lane.b32.xlu1 %v2075_v50, %s9112_s23 }
 0x6a2   :  { %v1601_v30 = vpop.permute.xlu0 %1600 }
 0x6a3   :  { %v1610_v24 = vsel %vm1137_vm3, %v1253_v19, %v1601_v30 }
 0x6ab   :  { %v1604_v10 = vpop.permute.xlu1 %1603 }
 0x6ac   :  { %v1612_v2 = vsel %vm1185_vm4, %v1610_v24, %v1604_v10 }
 0x6ba   :  { %v1607_v5 = vpop.permute.xlu1 %1606 }
 0x6bb   :  { %v1615_v18 = vsel %vm1613_vm5, %v1612_v2, %v1607_v5 }
 0x6bc   :  { %8171 = vmatprep.mubr.msk.bf16.mxu1 %vm140_vm1, %v1615_v18  ;;  %v7441_v18 = vld [vmem:[%s11237_s3 + $0xa0] ss:$0 sm:$0xff] }
 0x6ca   :  { %v2078_v28 = vpop.permute.xlu1 %2077 }
 0x6cb   :  { %v2087_v15 = vsel %vm1137_vm3, %v1730_v43, %v2078_v28 }
 0x6d2   :  { %v2081_v51 = vpop.permute.xlu0 %2080 }
 0x6d3   :  { %v2089_v17 = vsel %vm1185_vm4, %v2087_v15, %v2081_v51 }
 0x6da   :  { %v2084_v39 = vpop.permute.xlu1 %2083 }
 0x6db   :  { %v2091_v54 = vsel %vm1613_vm5, %v2089_v17, %v2084_v39 }
 0x6dc   :  { %8172 = vmatmul.mubr.msk.bf16.vlgmr.msra.gmra.mrb[64].mxu1 %vm140_vm1, %v2091_v54  ;;  %v7442_v54 = vld [vmem:[%s11237_s3 + $0xa8] ss:$0 sm:$0xff] }
 0x7af   :  { %v8173_v62 = vpop.f32.mrb[64].mxu1 }
 0x7b0   :  { %v2146_v29 = vpop.f32.mrb[65].mxu1  ;;  %v2163_v53 = vadd.f32 %v8173_v62, %v9205_v44 }
 0x7b1   :  { %v2161_v19 = vadd.f32 %v2146_v29, %v9207_v45  ;;  %v8174_v3 = vpop.f32.mrb[66].mxu1 }
 0x7b2   :  { %v2149_v31 = vpop.f32.mrb[67].mxu1  ;;  %v9784_v9 = vadd.f32 %v7440_v0, %v2163_v53  ;;  %v2164_v58 = vadd.f32 %v8174_v3, %v9209_v46 }
 0x7b3   :  { %v9781_v40 = vadd.f32 %v7440_v0, %v2161_v19  ;;  %v2162_v25 = vadd.f32 %v2149_v31, %v9211_v47 }
 0x7b4   :  { %v9793_v45 = vadd.f32 %v7440_v0, %v2164_v58  ;;  %v2182_v42 = vsel %vm140_vm1, %v9784_v9, 0.0 }
 0x7b5   :  { %v9787_v13 = vadd.f32 %v7440_v0, %v2162_v25  ;;  %v2176_v6 = vsel %vm140_vm1, %v9781_v40, 0.0 }
 0x7b6   :  { %2177 = vadd.xlane.f32.xlu0 %v2176_v6  ;;  %v2185_v47 = vsel %vm140_vm1, %v9793_v45, 0.0 }
 0x7b7   :  { %v2179_v44 = vsel %vm140_vm1, %v9787_v13, 0.0 }
 0x7b8   :  { %2180 = vadd.xlane.f32.xlu1 %v2179_v44 }
 0x7ba   :  { %2183 = vadd.xlane.f32.xlu0 %v2182_v42 }
 0x7be   :  { %2186 = vadd.xlane.f32.xlu0 %v2185_v47  ;;  %v8716_v47 = vld [vmem:[%s11236_s2 + $0x110] sm:$0xff]  }
 0x7bf   :  { %8183 = vmatprep.subr.bf16.mxu1 %v8716_v47 }
 0x7c0   :  { %8184 = vmatpush3.bf16.msra.mxu1 %v8716_v47 }
 0x843   :  { %v2178_v46 = vpop.xlane.xlu0 %2177 }
 0x844   :  { %v2188_v23 = vmul.f32 0.03125, %v2178_v46  ;;  %v8717_v46 = vld [vmem:[%s11236_s2 + $0x118] sm:$0xff]  }
 0x845   :  { %v2181_v48 = vpop.xlane.xlu1 %2180  ;;  %8185 = vmatprep.subr.bf16.mxu1 %v8717_v46 }
 0x846   :  { %v2192_v12 = vsub.f32 %v9781_v40, %v2188_v23  ;;  %v2189_v27 = vmul.f32 0.03125, %v2181_v48  ;;  %8186 = vmatpush3.bf16.msra.mxu1 %v8717_v46  ;;  %v8718_v23 = vld [vmem:[%s11236_s2 + $0x120] sm:$0xff]   ;;  %v8719_v48 = vld [vmem:[%s11236_s2 + $0x128] sm:$0xff]   ;;  %v7456_v46 = vld [vmem:[%s11237_s3 + $0xb8] ss:$0 sm:$0xff] }
 0x847   :  { %v2184_v35 = vpop.xlane.xlu0 %2183  ;;  %8187 = vmatprep.subr.bf16.mxu1 %v8718_v23 }
 0x848   :  { %v2193_v8 = vsub.f32 %v9787_v13, %v2189_v27  ;;  %v2190_v4 = vmul.f32 0.03125, %v2184_v35  ;;  %v2196_v26 = vmul.f32 %v2192_v12, %v2192_v12  ;;  %v8721_v27 = vld [vmem:[%s11236_s2 + $0x138] sm:$0xff]   ;;  %v8722_v35 = vld [vmem:[%s11236_s2 + $0x140] sm:$0xff]  }
 0x84a   :  { %v2194_v60 = vsub.f32 %v9784_v9, %v2190_v4  ;;  %v2200_v36 = vsel %vm140_vm1, %v2196_v26, 0.0  ;;  %v2197_v43 = vmul.f32 %v2193_v8, %v2193_v8  ;;  %8188 = vmatpush3.bf16.msra.mxu1 %v8718_v23  ;;  %v7443_v4 = vld [vmem:[%s11237_s3 + $0xb0] ss:$0 sm:$0xff] }
 0x84b   :  { %2201 = vadd.xlane.f32.xlu0 %v2200_v36  ;;  %v2187_v63 = vpop.xlane.xlu0 %2186  ;;  %8189 = vmatprep.subr.bf16.mxu1 %v8719_v48 }
 0x84c   :  { %v2191_v57 = vmul.f32 0.03125, %v2187_v63  ;;  %v2203_v20 = vsel %vm140_vm1, %v2197_v43, 0.0  ;;  %v2198_v7 = vmul.f32 %v2194_v60, %v2194_v60 }
 0x84d   :  { %2204 = vadd.xlane.f32.xlu1 %v2203_v20 }
 0x84e   :  { %v2195_v55 = vsub.f32 %v9793_v45, %v2191_v57  ;;  %v2206_v1 = vsel %vm140_vm1, %v2198_v7, 0.0  ;;  %8190 = vmatpush3.bf16.msra.mxu1 %v8719_v48 }
 0x84f   :  { %2207 = vadd.xlane.f32.xlu0 %v2206_v1 }
 0x850   :  { %v2199_v38 = vmul.f32 %v2195_v55, %v2195_v55 }
 0x852   :  { %v2209_v52 = vsel %vm140_vm1, %v2199_v38, 0.0 }
 0x853   :  { %2210 = vadd.xlane.f32.xlu1 %v2209_v52 }
 0x8d8   :  { %v2202_v61 = vpop.xlane.xlu0 %2201 }
 0x8d9   :  { %v2212_v22 = vmul.f32 0.03125, %v2202_v61 }
 0x8da   :  { %v2205_v49 = vpop.xlane.xlu1 %2204 }
 0x8db   :  { %v2216_v21 = vadd.f32 1e-06, %v2212_v22  ;;  %v2213_v34 = vmul.f32 0.03125, %v2205_v49 }
 0x8dc   :  { %v2208_v41 = vpop.xlane.xlu0 %2207 }
 0x8dd   :  { %8876 = vrsqrt.f32 %v2216_v21  ;;  %v2217_v50 = vadd.f32 1e-06, %v2213_v34  ;;  %v2214_v59 = vmul.f32 0.03125, %v2208_v41 }
 0x8df   :  { %8878 = vrsqrt.f32 %v2217_v50  ;;  %v2218_v30 = vadd.f32 1e-06, %v2214_v59 }
 0x8e0   :  { %v2211_v10 = vpop.xlane.xlu1 %2210 }
 0x8e1   :  { %8880 = vrsqrt.f32 %v2218_v30  ;;  %v2215_v24 = vmul.f32 0.03125, %v2211_v10 }
 0x8e3   :  { %v2219_v2 = vadd.f32 1e-06, %v2215_v24 }
 0x8e5   :  { %8882 = vrsqrt.f32 %v2219_v2 }
 0x8e7   :  { %v8877_v5 = vpop.eup %8876 }
 0x8e8   :  { %v2224_v28 = vmul.f32 %v8877_v5, %v2192_v12  ;;  %v8720_v12 = vld [vmem:[%s11236_s2 + $0x130] sm:$0xff]  }
 0x8e9   :  { %v8879_v51 = vpop.eup %8878  ;;  %8191 = vmatprep.subr.bf16.mxu1 %v8720_v12 }
 0x8ea   :  { %v2225_v15 = vmul.f32 %v8879_v51, %v2193_v8  ;;  %v2232_v17 = vmul.f32 %v7441_v18, %v2224_v28  ;;  %8192 = vmatpush3.bf16.msra.mxu1 %v8720_v12  ;;  %v8723_v8 = vld [vmem:[%s11236_s2 + $0x148] sm:$0xff]  }
 0x8eb   :  { %v8881_v39 = vpop.eup %8880  ;;  %8193 = vmatprep.subr.bf16.mxu1 %v8721_v27 }
 0x8ec   :  { %v2226_v62 = vmul.f32 %v8881_v39, %v2194_v60  ;;  %v2233_v0 = vmul.f32 %v7441_v18, %v2225_v15  ;;  %v2240_v29 = vadd.f32 %v7442_v54, %v2232_v17 }
 0x8ee   :  { %v2241_v53 = vadd.f32 %v7442_v54, %v2233_v0  ;;  %v2234_v25 = vmul.f32 %v7441_v18, %v2226_v62  ;;  %8194 = vmatpush3.bf16.msra.mxu1 %v8721_v27 }
 0x8ef   :  { %v8883_v19 = vpop.eup %8882  ;;  %8195 = vmatprep.subr.bf16.mxu1 %v8722_v35 }
 0x8f0   :  { %v2227_v3 = vmul.f32 %v8883_v19, %v2195_v55  ;;  %v2244_v31 = vpack.c.bf16 %v2241_v53, %v2240_v29  ;;  %v2242_v6 = vadd.f32 %v7442_v54, %v2234_v25 }
 0x8f2   :  { %8179 = vmatprep.mubr.msk.bf16.mxu0 %vm140_vm1, %v2244_v31  ;;  %v2235_v58 = vmul.f32 %v7441_v18, %v2227_v3  ;;  %8196 = vmatpush3.bf16.msra.mxu1 %v8722_v35 }
 0x8f3   :  { %8197 = vmatprep.subr.bf16.mxu1 %v8723_v8 }
 0x8f4   :  { %v2243_v44 = vadd.f32 %v7442_v54, %v2235_v58 }
 0x8f6   :  { %v2245_v42 = vpack.c.bf16 %v2243_v44, %v2242_v6  ;;  %8198 = vmatpush3.bf16.msra.mxu1 %v8723_v8 }
 0x8f8   :  { %8180 = vmatmul.mubr.msk.bf16.vlgmr.msra.gmra.mrb[56].mxu0 %vm140_vm1, %v2245_v42 }
 0x9cb   :  { %v8181_v26 = vpop.f32.mrb[56].mxu0 }
 0x9cc   :  { %v2316_v60 = vadd.f32 %v8181_v26, %v7443_v4  ;;  %v2307_v36 = vpop.f32.mrb[57].mxu0 }
 0x9cd   :  { %v2308_v43 = vadd.f32 %v7443_v4, %v2307_v36  ;;  %v8182_v63 = vpop.f32.mrb[58].mxu0 }
 0x9ce   :  { %v2328_v57 = vmul.f32 0.044715, %v2316_v60  ;;  %v2319_v20 = vadd.f32 %v8182_v63, %v7443_v4  ;;  %v2310_v7 = vpop.f32.mrb[59].mxu0  ;;  %v2324_v62 = vmul.f32 0.5, %v2316_v60 }
 0x9cf   :  { %v2326_v55 = vmul.f32 0.044715, %v2308_v43  ;;  %v2311_v1 = vadd.f32 %v7443_v4, %v2310_v7  ;;  %v2322_v53 = vmul.f32 0.5, %v2308_v43 }
 0x9d0   :  { %v2332_v38 = vmul.f32 %v2328_v57, %v2316_v60  ;;  %v2329_v52 = vmul.f32 0.044715, %v2319_v20  ;;  %v2325_v0 = vmul.f32 0.5, %v2319_v20 }
 0x9d1   :  { %v2330_v14 = vmul.f32 %v2326_v55, %v2308_v43  ;;  %v2327_v37 = vmul.f32 0.044715, %v2311_v1  ;;  %v2323_v19 = vmul.f32 0.5, %v2311_v1 }
 0x9d2   :  { %v2336_v61 = vmul.f32 %v2332_v38, %v2316_v60  ;;  %v2333_v22 = vmul.f32 %v2329_v52, %v2319_v20 }
 0x9d3   :  { %v2334_v49 = vmul.f32 %v2330_v14, %v2308_v43  ;;  %v2331_v21 = vmul.f32 %v2327_v37, %v2311_v1 }
 0x9d4   :  { %v2340_v34 = vadd.f32 %v2336_v61, %v2316_v60  ;;  %v2337_v41 = vmul.f32 %v2333_v22, %v2319_v20 }
 0x9d5   :  { %v2335_v50 = vmul.f32 %v2331_v21, %v2311_v1  ;;  %v2338_v59 = vadd.f32 %v2334_v49, %v2308_v43 }
 0x9d6   :  { %v2344_v30 = vmul.f32 0.7978846, %v2340_v34  ;;  %v2341_v10 = vadd.f32 %v2337_v41, %v2319_v20 }
 0x9d7   :  { %v2339_v24 = vadd.f32 %v2335_v50, %v2311_v1  ;;  %v2342_v2 = vmul.f32 0.7978846, %v2338_v59 }
 0x9d8   :  { %8884 = vtanh.f32 %v2344_v30  ;;  %v2345_v5 = vmul.f32 0.7978846, %v2341_v10 }
 0x9d9   :  { %v2343_v18 = vmul.f32 0.7978846, %v2339_v24  ;;  %8886 = vtanh.f32 %v2342_v2  ;;  %v8724_v24 = vld [vmem:[%s11236_s2 + $0x150] sm:$0xff]   ;;  %v8725_v2 = vld [vmem:[%s11236_s2 + $0x1a0] sm:$0xff]  }
 0x9da   :  { %8888 = vtanh.f32 %v2345_v5  ;;  %8203 = vmatprep.subr.bf16.mxu0 %v8724_v24  ;;  %8235 = vmatprep.subr.bf16.mxu1 %v8725_v2  ;;  %v8726_v5 = vld [vmem:[%s11236_s2 + $0x158] sm:$0xff]  }
 0x9db   :  { %8890 = vtanh.f32 %v2343_v18  ;;  %8204 = vmatpush3.bf16.msra.mxu0 %v8724_v24  ;;  %v8727_v18 = vld [vmem:[%s11236_s2 + $0x1a8] sm:$0xff]  }
 0x9dc   :  { %8205 = vmatprep.subr.bf16.mxu0 %v8726_v5  ;;  %v8747_v24 = vld [vmem:[%s11236_s2 + $0x208] sm:$0xff]  }
 0x9df   :  { %8206 = vmatpush3.bf16.msra.mxu0 %v8726_v5  ;;  %v10023_v5 = vld [vmem:[%s11237_s3 + $0xd8] sm:$0xf] }
 0x9e2   :  { %v8885_v28 = vpop.eup %8884 }
 0x9e3   :  { %v8887_v51 = vpop.eup %8886  ;;  %v2352_v15 = vadd.f32 1.0, %v8885_v28  ;;  %v8728_v28 = vld [vmem:[%s11236_s2 + $0x190] sm:$0xff]  }
 0x9e4   :  { %v8889_v17 = vpop.eup %8888  ;;  %v2350_v39 = vadd.f32 1.0, %v8887_v51  ;;  %v8729_v51 = vld [vmem:[%s11236_s2 + $0x170] sm:$0xff]   ;;  %8211 = vmatprep.subr.bf16.mxu0 %v8728_v28 }
 0x9e5   :  { %v8891_v54 = vpop.eup %8890  ;;  %v2353_v29 = vadd.f32 1.0, %v8889_v17  ;;  %v2356_v31 = vmul.f32 %v2352_v15, %v2324_v62 }
 0x9e6   :  { %v2351_v3 = vadd.f32 1.0, %v8891_v54  ;;  %v2354_v58 = vmul.f32 %v2350_v39, %v2322_v53 }
 0x9e7   :  { %v2357_v25 = vmul.f32 %v2353_v29, %v2325_v0 }
 0x9e8   :  { %v2355_v6 = vmul.f32 %v2351_v3, %v2323_v19 }
 0x9e9   :  { %v2359_v44 = vpack.c.bf16 %v2357_v25, %v2356_v31 }
 0x9ea   :  { %v2358_v42 = vpack.c.bf16 %v2355_v6, %v2354_v58  ;;  %v7457_v6 = vld [vmem:[%s11237_s3 + $0xc0] ss:$0 sm:$0xff] }
 0x9ec   :  { %8199 = vmatprep.mubr.bf16.mxu1 %v2358_v42 }
 0x9ed   :  { %8200 = vmatmul.mubr.bf16.vlgmr.msra.gmra.mrb[68].mxu1 %v2359_v44 }
 0x9ee   :  { %8236 = vmatpush3.bf16.msra.mxu1 %v8725_v2  ;;  %v10018_v2 = vld [vmem:[%s11237_s3 + $0xd0] sm:$0xf] }
 0x9ef   :  { %8237 = vmatprep.subr.bf16.mxu1 %v8727_v18 }
 0x9f2   :  { %8238 = vmatpush3.bf16.msra.mxu1 %v8727_v18  ;;  %v2568_v18 = vrot.slane %v10018_v2, %v9192_v32 }
 0x9f3   :  { %8251 = vmatprep.subr.bf16.mxu1 %v8729_v51 }
 0xac0   :  { %v8201_v47 = vpop.f32.mrb[68].mxu1 }
 0xac1   :  { %v2458_v23 = vpop.f32.mrb[69].mxu1  ;;  %v2475_v48 = vadd.f32 %v8201_v47, %v9784_v9 }
 0xac2   :  { %v2473_v12 = vadd.f32 %v2458_v23, %v9781_v40  ;;  %v8202_v27 = vpop.f32.mrb[70].mxu1 }
 0xac3   :  { %v2461_v35 = vpop.f32.mrb[71].mxu1  ;;  %v2476_v4 = vadd.f32 %v8202_v27, %v9793_v45  ;;  %v9857_v60 = vadd.f32 %v7456_v46, %v2475_v48  ;;  %v7458_v48 = vld [vmem:[%s11237_s3 + $0xc8] ss:$0 sm:$0xff] }
 0xac4   :  { %v9853_v8 = vadd.f32 %v7456_v46, %v2473_v12  ;;  %v2474_v26 = vadd.f32 %v2461_v35, %v9787_v13 }
 0xac5   :  { %v9863_v63 = vadd.f32 %v7456_v46, %v2476_v4  ;;  %v2494_v9 = vsel %vm140_vm1, %v9857_v60, 0.0 }
 0xac6   :  { %v9859_v36 = vadd.f32 %v7456_v46, %v2474_v26  ;;  %v2488_v43 = vsel %vm140_vm1, %v9853_v8, 0.0 }
 0xac7   :  { %2489 = vadd.xlane.f32.xlu0 %v2488_v43  ;;  %v2497_v13 = vsel %vm140_vm1, %v9863_v63, 0.0 }
 0xac8   :  { %v2491_v40 = vsel %vm140_vm1, %v9859_v36, 0.0 }
 0xac9   :  { %2492 = vadd.xlane.f32.xlu1 %v2491_v40 }
 0xacb   :  { %2495 = vadd.xlane.f32.xlu0 %v2494_v9 }
 0xacd   :  { %2498 = vadd.xlane.f32.xlu1 %v2497_v13 }
 0xb54   :  { %v2490_v45 = vpop.xlane.xlu0 %2489 }
 0xb55   :  { %v2500_v57 = vmul.f32 0.03125, %v2490_v45 }
 0xb56   :  { %v2493_v20 = vpop.xlane.xlu1 %2492 }
 0xb57   :  { %v2504_v7 = vsub.f32 %v9853_v8, %v2500_v57  ;;  %v2501_v55 = vmul.f32 0.03125, %v2493_v20 }
 0xb58   :  { %v2496_v1 = vpop.xlane.xlu0 %2495 }
 0xb59   :  { %v2505_v38 = vsub.f32 %v9859_v36, %v2501_v55  ;;  %v2502_v52 = vmul.f32 0.03125, %v2496_v1  ;;  %v2508_v14 = vmul.f32 %v2504_v7, %v2504_v7  ;;  %v8731_v55 = vld [vmem:[%s11236_s2 + $0x178] sm:$0xff]   ;;  %v8732_v1 = vld [vmem:[%s11236_s2 + $0x1d0] sm:$0xff]  }
 0xb5a   :  { %v2499_v37 = vpop.xlane.xlu1 %2498 }
 0xb5b   :  { %v2506_v61 = vsub.f32 %v9857_v60, %v2502_v52  ;;  %v2503_v22 = vmul.f32 0.03125, %v2499_v37  ;;  %v2512_v49 = vsel %vm140_vm1, %v2508_v14, 0.0  ;;  %v2509_v21 = vmul.f32 %v2505_v38, %v2505_v38  ;;  %v8734_v52 = vld [vmem:[%s11236_s2 + $0x1d8] sm:$0xff]   ;;  %v8736_v37 = vld [vmem:[%s11236_s2 + $0x160] sm:$0xff]  }
 0xb5c   :  { %2513 = vadd.xlane.f32.xlu0 %v2512_v49  ;;  %v8735_v14 = vld [vmem:[%s11236_s2 + $0x1f8] sm:$0xff]   ;;  %v8739_v49 = vld [vmem:[%s11236_s2 + $0x1c8] sm:$0xff]  }
 0xb5d   :  { %v2507_v34 = vsub.f32 %v9863_v63, %v2503_v22  ;;  %v2515_v41 = vsel %vm140_vm1, %v2509_v21, 0.0  ;;  %v2510_v50 = vmul.f32 %v2506_v61, %v2506_v61  ;;  %v8738_v22 = vld [vmem:[%s11236_s2 + $0x168] sm:$0xff]   ;;  %v8740_v21 = vld [vmem:[%s11236_s2 + $0x1e0] sm:$0xff]  }
 0xb5e   :  { %2516 = vadd.xlane.f32.xlu1 %v2515_v41  ;;  %v8742_v41 = vld [vmem:[%s11236_s2 + $0x1b0] sm:$0xff]  }
 0xb5f   :  { %v2518_v59 = vsel %vm140_vm1, %v2510_v50, 0.0  ;;  %v2511_v30 = vmul.f32 %v2507_v34, %v2507_v34  ;;  %v8743_v50 = vld [vmem:[%s11236_s2 + $0x1b8] sm:$0xff]  }
 0xb60   :  { %2519 = vadd.xlane.f32.xlu0 %v2518_v59  ;;  %v8744_v59 = vld [vmem:[%s11236_s2 + $0x180] sm:$0xff]  }
 0xb61   :  { %v2521_v10 = vsel %vm140_vm1, %v2511_v30, 0.0  ;;  %v8745_v30 = vld [vmem:[%s11236_s2 + $0x188] sm:$0xff]  }
 0xb62   :  { %2522 = vadd.xlane.f32.xlu1 %v2521_v10  ;;  %v8746_v10 = vld [vmem:[%s11236_s2 + $0x200] sm:$0xff]  }
 0xbe9   :  { %v2514_v15 = vpop.xlane.xlu0 %2513 }
 0xbea   :  { %v2524_v17 = vmul.f32 0.03125, %v2514_v15 }
 0xbeb   :  { %v2517_v39 = vpop.xlane.xlu1 %2516 }
 0xbec   :  { %v2528_v54 = vadd.f32 1e-06, %v2524_v17  ;;  %v2525_v62 = vmul.f32 0.03125, %v2517_v39 }
 0xbed   :  { %v2520_v0 = vpop.xlane.xlu0 %2519 }
 0xbee   :  { %8892 = vrsqrt.f32 %v2528_v54  ;;  %v2529_v29 = vadd.f32 1e-06, %v2525_v62  ;;  %v2526_v53 = vmul.f32 0.03125, %v2520_v0 }
 0xbef   :  { %v2523_v19 = vpop.xlane.xlu1 %2522 }
 0xbf0   :  { %8894 = vrsqrt.f32 %v2529_v29  ;;  %v2530_v3 = vadd.f32 1e-06, %v2526_v53  ;;  %v2527_v31 = vmul.f32 0.03125, %v2523_v19 }
 0xbf2   :  { %8896 = vrsqrt.f32 %v2530_v3  ;;  %v2531_v25 = vadd.f32 1e-06, %v2527_v31 }
 0xbf4   :  { %8898 = vrsqrt.f32 %v2531_v25 }
 0xbf8   :  { %v8893_v58 = vpop.eup %8892 }
 0xbf9   :  { %v2536_v44 = vmul.f32 %v8893_v58, %v2504_v7  ;;  %v8730_v7 = vld [vmem:[%s11236_s2 + $0x198] sm:$0xff]  }
 0xbfa   :  { %v8895_v42 = vpop.eup %8894 }
 0xbfb   :  { %v2544_v47 = vmul.f32 %v7457_v6, %v2536_v44  ;;  %v2537_v46 = vmul.f32 %v8895_v42, %v2505_v38  ;;  %v8733_v38 = vld [vmem:[%s11236_s2 + $0x1f0] sm:$0xff]  }
 0xbfc   :  { %v8897_v23 = vpop.eup %8896 }
 0xbfd   :  { %v2545_v12 = vmul.f32 %v7457_v6, %v2537_v46  ;;  %v2538_v27 = vmul.f32 %v8897_v23, %v2506_v61  ;;  %v2552_v4 = vadd.f32 %v7458_v48, %v2544_v47  ;;  %v8737_v61 = vld [vmem:[%s11236_s2 + $0x1c0] sm:$0xff]  }
 0xbfe   :  { %v8899_v35 = vpop.eup %8898 }
 0xbff   :  { %v2553_v26 = vadd.f32 %v7458_v48, %v2545_v12  ;;  %v2546_v43 = vmul.f32 %v7457_v6, %v2538_v27  ;;  %v2539_v40 = vmul.f32 %v8899_v35, %v2507_v34  ;;  %v8741_v34 = vld [vmem:[%s11236_s2 + $0x1e8] sm:$0xff]   ;;  %v3000_v27 = vrot.slane %v10018_v2, %v9434_v16 }
 0xc01   :  { %v9903_v9 = vpack.c.bf16 %v2553_v26, %v2552_v4  ;;  %v2547_v13 = vmul.f32 %v7457_v6, %v2539_v40  ;;  %v2554_v45 = vadd.f32 %v7458_v48, %v2546_v43  ;;  %v10048_v40 = vld [vmem:[%s11237_s3 + $0xe0] sm:$0xf] }
 0xc03   :  { %v2555_v57 = vadd.f32 %v7458_v48, %v2547_v13  ;;  %8207 = vmatprep.mubr.msk.bf16.mxu0 %vm140_vm1, %v9903_v9  ;;  %8239 = vmatprep.mubr.msk.bf16.mxu1 %vm140_vm1, %v9903_v9  ;;  %v2645_v48 = vrot.slane %v10023_v5, %v9192_v32 }
 0xc05   :  { %v9909_v20 = vpack.c.bf16 %v2555_v57, %v2554_v45 }
 0xc07   :  { %8208 = vmatmul.mubr.msk.bf16.vlgmr.msra.gmra.mrb[60].mxu0 %vm140_vm1, %v9909_v20  ;;  %8240 = vmatmul.mubr.msk.bf16.vlgmr.msra.gmra.mrb[72].mxu1 %vm140_vm1, %v9909_v20 }
 0xc08   :  { %8212 = vmatpush3.bf16.msra.mxu0 %v8728_v28  ;;  %8215 = vmatprep.mubr.msk.bf16.mxu0 %vm140_vm1, %v9903_v9  ;;  %v2858_v28 = vrot.slane %v10023_v5, %v9195_v33 }
 0xc09   :  { %8252 = vmatpush3.bf16.msra.mxu1 %v8729_v51  ;;  %8255 = vmatprep.mubr.msk.bf16.mxu1 %vm140_vm1, %v9903_v9 }
 0xc0a   :  { %8213 = vmatprep.subr.bf16.mxu0 %v8730_v7  ;;  %8253 = vmatprep.subr.bf16.mxu1 %v8731_v55 }
 0xc0c   :  { %8214 = vmatpush3.bf16.msra.mxu0 %v8730_v7 }
 0xc0d   :  { %8254 = vmatpush3.bf16.msra.mxu1 %v8731_v55  ;;  %8219 = vmatprep.subr.bf16.mxu0 %v8732_v1 }
 0xc0e   :  { %8267 = vmatprep.subr.bf16.mxu1 %v8733_v38 }
 0xc0f   :  { %8216 = vmatmul.mubr.msk.bf16.vlgmr.msra.gmra.mrb[64].mxu0 %vm140_vm1, %v9909_v20 }
 0xc10   :  { %8256 = vmatmul.mubr.msk.bf16.vlgmr.msra.gmra.mrb[76].mxu1 %vm140_vm1, %v9909_v20  ;;  %8220 = vmatpush3.bf16.msra.mxu0 %v8732_v1 }
 0xc11   :  { %8223 = vmatprep.mubr.msk.bf16.mxu0 %vm140_vm1, %v9903_v9  ;;  %8268 = vmatpush3.bf16.msra.mxu1 %v8733_v38 }
 0xc12   :  { %8271 = vmatprep.mubr.msk.bf16.mxu1 %vm140_vm1, %v9903_v9  ;;  %8221 = vmatprep.subr.bf16.mxu0 %v8734_v52 }
 0xc13   :  { %8269 = vmatprep.subr.bf16.mxu1 %v8735_v14 }
 0xc14   :  { %8222 = vmatpush3.bf16.msra.mxu0 %v8734_v52 }
 0xc15   :  { %8270 = vmatpush3.bf16.msra.mxu1 %v8735_v14  ;;  %8227 = vmatprep.subr.bf16.mxu0 %v8736_v37 }
 0xc16   :  { %8283 = vmatprep.subr.bf16.mxu1 %v8737_v61 }
 0xc17   :  { %8224 = vmatmul.mubr.msk.bf16.vlgmr.msra.gmra.mrb[68].mxu0 %vm140_vm1, %v9909_v20 }
 0xc18   :  { %8272 = vmatmul.mubr.msk.bf16.vlgmr.msra.gmra.mrb[80].mxu1 %vm140_vm1, %v9909_v20  ;;  %8228 = vmatpush3.bf16.msra.mxu0 %v8736_v37 }
 0xc19   :  { %8231 = vmatprep.mubr.msk.bf16.mxu0 %vm140_vm1, %v9903_v9  ;;  %8284 = vmatpush3.bf16.msra.mxu1 %v8737_v61  ;;  %v2716_v61 = vrot.slane %v10048_v40, %v9192_v32 }
 0xc1a   :  { %8287 = vmatprep.mubr.msk.bf16.mxu1 %vm140_vm1, %v9903_v9  ;;  %8229 = vmatprep.subr.bf16.mxu0 %v8738_v22 }
 0xc1b   :  { %8285 = vmatprep.subr.bf16.mxu1 %v8739_v49 }
 0xc1c   :  { %8230 = vmatpush3.bf16.msra.mxu0 %v8738_v22 }
 0xc1d   :  { %8286 = vmatpush3.bf16.msra.mxu1 %v8739_v49  ;;  %8243 = vmatprep.subr.bf16.mxu0 %v8740_v21 }
 0xc1e   :  { %8299 = vmatprep.subr.bf16.mxu1 %v9108_v11 }
 0xc1f   :  { %8232 = vmatmul.mubr.msk.bf16.vlgmr.msra.gmra.mrb[72].mxu0 %vm140_vm1, %v9909_v20 }
 0xc20   :  { %8288 = vmatmul.mubr.msk.bf16.vlgmr.msra.gmra.mrb[84].mxu1 %vm140_vm1, %v9909_v20  ;;  %8244 = vmatpush3.bf16.msra.mxu0 %v8740_v21  ;;  %v3142_v21 = vrot.slane %v10048_v40, %v9434_v16 }
 0xc21   :  { %8247 = vmatprep.mubr.msk.bf16.mxu0 %vm140_vm1, %v9903_v9  ;;  %8245 = vmatprep.subr.bf16.mxu0 %v8741_v34 }
 0xc22   :  { %8301 = vmatprep.mubr.msk.bf16.mxu1 %vm9109_vm2, %v9108_v11 }
 0xc24   :  { %8246 = vmatpush3.bf16.msra.mxu0 %v8741_v34 }
 0xc25   :  { %8259 = vmatprep.subr.bf16.mxu0 %v8742_v41 }
 0xc27   :  { %8248 = vmatmul.mubr.msk.bf16.vlgmr.msra.gmra.mrb[76].mxu0 %vm140_vm1, %v9909_v20 }
 0xc28   :  { %8260 = vmatpush3.bf16.msra.mxu0 %v8742_v41  ;;  %8263 = vmatprep.mubr.msk.bf16.mxu0 %vm140_vm1, %v9903_v9 }
 0xc29   :  { %8261 = vmatprep.subr.bf16.mxu0 %v8743_v50 }
 0xc2c   :  { %8262 = vmatpush3.bf16.msra.mxu0 %v8743_v50 }
 0xc2d   :  { %8275 = vmatprep.subr.bf16.mxu0 %v8744_v59 }
 0xc2f   :  { %8264 = vmatmul.mubr.msk.bf16.vlgmr.msra.gmra.mrb[80].mxu0 %vm140_vm1, %v9909_v20 }
 0xc30   :  { %8276 = vmatpush3.bf16.msra.mxu0 %v8744_v59  ;;  %8279 = vmatprep.mubr.msk.bf16.mxu0 %vm140_vm1, %v9903_v9 }
 0xc31   :  { %8277 = vmatprep.subr.bf16.mxu0 %v8745_v30 }
 0xc34   :  { %8278 = vmatpush3.bf16.msra.mxu0 %v8745_v30 }
 0xc35   :  { %8291 = vmatprep.subr.bf16.mxu0 %v8746_v10 }
 0xc37   :  { %8280 = vmatmul.mubr.msk.bf16.vlgmr.msra.gmra.mrb[84].mxu0 %vm140_vm1, %v9909_v20 }
 0xc38   :  { %8292 = vmatpush3.bf16.msra.mxu0 %v8746_v10  ;;  %8295 = vmatprep.mubr.msk.bf16.mxu0 %vm140_vm1, %v9903_v9 }
 0xc39   :  { %8293 = vmatprep.subr.bf16.mxu0 %v8747_v24 }
 0xc3c   :  { %8294 = vmatpush3.bf16.msra.mxu0 %v8747_v24 }
 0xc3d   :  { %8305 = vmatprep.subr.bf16.mxu0 %v9108_v11 }
 0xc3f   :  { %8296 = vmatmul.mubr.msk.bf16.vlgmr.msra.gmra.mrb[88].mxu0 %vm140_vm1, %v9909_v20 }
 0xc40   :  { %8307 = vmatprep.mubr.msk.bf16.mxu0 %vm9109_vm2, %v9108_v11 }
 0xcda   :  { %v8209_v51 = vpop.f32.mrb[60].mxu0  ;;  %v8241_v15 = vpop.f32.mrb[72].mxu1 }
 0xcdb   :  { %v2621_v17 = vpop.f32.mrb[61].mxu0  ;;  %v2905_v39 = vpop.f32.mrb[73].mxu1  ;;  %v10029_v0 = vadd.f32 %v8209_v51, %v2568_v18  ;;  %v10031_v29 = vadd.f32 %v8241_v15, %v2858_v28 }
 0xcdc   :  { %v8210_v54 = vpop.f32.mrb[62].mxu0  ;;  %v8242_v62 = vpop.f32.mrb[74].mxu1  ;;  %v2622_v25 = vadd.f32 %v2621_v17, %v2568_v18  ;;  %v2906_v58 = vadd.f32 %v2905_v39, %v2858_v28 }
 0xcdd   :  { %v10033_v53 = vadd.f32 %v8210_v54, %v2568_v18  ;;  %v10035_v19 = vadd.f32 %v8242_v62, %v2858_v28  ;;  %v2624_v3 = vpop.f32.mrb[63].mxu0  ;;  %v2908_v31 = vpop.f32.mrb[75].mxu1 }
 0xcde   :  { %v2625_v6 = vadd.f32 %v2624_v3, %v2568_v18  ;;  %v2909_v44 = vadd.f32 %v2908_v31, %v2858_v28 }
 0xcdf   :  { %v2637_v42 = vpack.c.bf16 %v10033_v53, %v10029_v0  ;;  %v2921_v47 = vpack.c.bf16 %v10035_v19, %v10031_v29 }
 0xce0   :  { %v2636_v46 = vpack.c.bf16 %v2625_v6, %v2622_v25  ;;  %v2920_v23 = vpack.c.bf16 %v2909_v44, %v2906_v58 }
 0xce2   :  { %v8217_v12 = vpop.f32.mrb[64].mxu0 }
 0xce3   :  { %v8257_v35 = vpop.f32.mrb[76].mxu1  ;;  %v2692_v4 = vpop.f32.mrb[65].mxu0  ;;  %v10050_v9 = vadd.f32 %v8217_v12, %v2645_v48  ;;  %v2787_v12 = vrot.slane %v10018_v2, %v9195_v33 }
 0xce4   :  { %v3047_v26 = vpop.f32.mrb[77].mxu1  ;;  %v8218_v43 = vpop.f32.mrb[66].mxu0  ;;  %v10054_v20 = vadd.f32 %v8257_v35, %v3000_v27  ;;  %v2693_v7 = vadd.f32 %v2692_v4, %v2645_v48  ;;  %v3284_v35 = vrot.slane %v10023_v5, %v9457_v56  ;;  %v3538_v4 = vsel %vm1137_vm3, %v2920_v23, 0 }
 0xce5   :  { %v10052_v13 = vadd.f32 %v8218_v43, %v2645_v48  ;;  %v8258_v45 = vpop.f32.mrb[78].mxu1  ;;  %v2695_v57 = vpop.f32.mrb[67].mxu0  ;;  %v10058_v52 = vadd.f32 %v3047_v26, %v3000_v27 }
 0xce6   :  { %v10056_v55 = vadd.f32 %v8258_v45, %v3000_v27  ;;  %v2696_v1 = vadd.f32 %v2695_v57, %v2645_v48  ;;  %v3050_v38 = vpop.f32.mrb[79].mxu1 }
 0xce7   :  { %v2708_v14 = vpack.c.bf16 %v10052_v13, %v10050_v9  ;;  %v10062_v37 = vadd.f32 %v3050_v38, %v3000_v27 }
 0xce8   :  { %v3063_v22 = vpack.c.bf16 %v10056_v55, %v10054_v20  ;;  %v2707_v49 = vpack.c.bf16 %v2696_v1, %v2693_v7 }
 0xce9   :  { %v3062_v34 = vpack.c.bf16 %v10062_v37, %v10058_v52 }
 0xcea   :  { %v8225_v41 = vpop.f32.mrb[68].mxu0  ;;  %v3423_v50 = vsel %vm1137_vm3, %v2707_v49, 0 }
 0xceb   :  { %v10073_v59 = vadd.f32 %v8225_v41, %v2716_v61  ;;  %v8273_v30 = vpop.f32.mrb[80].mxu1  ;;  %v2763_v10 = vpop.f32.mrb[69].mxu0  ;;  %8300 = vmatpush3.bf16.xpose.msra.mxu1 %v3423_v50 }
 0xcec   :  { %v10075_v24 = vadd.f32 %v8273_v30, %v3142_v21  ;;  %v3189_v18 = vpop.f32.mrb[81].mxu1  ;;  %v8226_v28 = vpop.f32.mrb[70].mxu0  ;;  %8311 = vmatprep.subr.bf16.mxu1 %v9108_v11  ;;  %v2764_v54 = vadd.f32 %v2763_v10, %v2716_v61 }
 0xced   :  { %v10078_v51 = vadd.f32 %v3189_v18, %v3142_v21  ;;  %v10080_v15 = vadd.f32 %v8226_v28, %v2716_v61  ;;  %v8274_v17 = vpop.f32.mrb[82].mxu1  ;;  %v2766_v39 = vpop.f32.mrb[71].mxu0  ;;  %v2929_v18 = vrot.slane %v10048_v40, %v9195_v33 }
 0xcee   :  { %v10082_v62 = vadd.f32 %v8274_v17, %v3142_v21  ;;  %v2767_v3 = vadd.f32 %v2766_v39, %v2716_v61  ;;  %v3192_v31 = vpop.f32.mrb[83].mxu1 }
 0xcef   :  { %v10086_v58 = vadd.f32 %v3192_v31, %v3142_v21 }
 0xcf0   :  { %v2778_v44 = vpack.c.bf16 %v2767_v3, %v2764_v54 }
 0xcf1   :  { %v3204_v48 = vpack.c.bf16 %v10086_v58, %v10078_v51 }
 0xcf2   :  { %v8233_v27 = vpop.f32.mrb[72].mxu0  ;;  %8302 = vmatmul.mubr.msk.bf16.vlgmr.msra.gmra.mrb[88].mxu1 %vm1137_vm3, %v2636_v46  ;;  %8306 = vmatpush3.bf16.msra.mxu0 %v2778_v44 }
 0xcf3   :  { %v8289_v26 = vpop.f32.mrb[84].mxu1  ;;  %v2834_v43 = vpop.f32.mrb[73].mxu0  ;;  %8312 = vmatpush3.bf16.xpose.msra.mxu1 %v3538_v4  ;;  %8313 = vmatprep.mubr.msk.bf16.mxu1 %vm9109_vm2, %v9108_v11  ;;  %v10102_v7 = vadd.f32 %v8233_v27, %v2787_v12 }
 0xcf4   :  { %v3331_v45 = vpop.f32.mrb[85].mxu1  ;;  %v8234_v57 = vpop.f32.mrb[74].mxu0  ;;  %8323 = vmatprep.subr.bf16.mxu1 %v9108_v11  ;;  %8317 = vmatprep.subr.bf16.mxu0 %v9108_v11  ;;  %v10106_v61 = vadd.f32 %v8289_v26, %v3284_v35  ;;  %v2835_v23 = vadd.f32 %v2834_v43, %v2787_v12 }
 0xcf5   :  { %v10104_v1 = vadd.f32 %v8234_v57, %v2787_v12  ;;  %v8290_v46 = vpop.f32.mrb[86].mxu1  ;;  %v2837_v38 = vpop.f32.mrb[75].mxu0  ;;  %v3332_v50 = vadd.f32 %v3331_v45, %v3284_v35  ;;  %v3071_v45 = vrot.slane %v10023_v5, %v9434_v16 }
 0xcf6   :  { %v10108_v49 = vadd.f32 %v8290_v46, %v3284_v35  ;;  %v2838_v21 = vadd.f32 %v2837_v38, %v2787_v12  ;;  %v3334_v41 = vpop.f32.mrb[87].mxu1 }
 0xcf7   :  { %v2850_v30 = vpack.c.bf16 %v10104_v1, %v10102_v7  ;;  %v3335_v10 = vadd.f32 %v3334_v41, %v3284_v35 }
 0xcf8   :  { %v3347_v28 = vpack.c.bf16 %v10108_v49, %v10106_v61  ;;  %v2849_v17 = vpack.c.bf16 %v2838_v21, %v2835_v23 }
 0xcf9   :  { %v3346_v39 = vpack.c.bf16 %v3335_v10, %v3332_v50 }
 0xcfa   :  { %v8249_v54 = vpop.f32.mrb[76].mxu0  ;;  %8314 = vmatmul.mubr.msk.bf16.vlgmr.msra.gmra.mrb[92].mxu1 %vm1137_vm3, %v2849_v17  ;;  %v4244_v29 = vsel %vm1137_vm3, %v3347_v28, 0 }
 0xcfb   :  { %v10117_v3 = vadd.f32 %v8249_v54, %v2929_v18  ;;  %v2976_v31 = vpop.f32.mrb[77].mxu0  ;;  %8325 = vmatprep.mubr.msk.bf16.mxu1 %vm9109_vm2, %v9108_v11  ;;  %v3213_v54 = vrot.slane %v10018_v2, %v9457_v56  ;;  %v3768_v2 = vsel %vm1137_vm3, %v3346_v39, 0  ;;  %v3899_v39 = vsel %vm1137_vm3, %v2708_v14, 0 }
 0xcfc   :  { %v10121_v44 = vadd.f32 %v2976_v31, %v2929_v18  ;;  %v8250_v12 = vpop.f32.mrb[78].mxu0 }
 0xcfd   :  { %v10123_v27 = vadd.f32 %v8250_v12, %v2929_v18  ;;  %v2979_v35 = vpop.f32.mrb[79].mxu0 }
 0xcfe   :  { %v10125_v4 = vadd.f32 %v2979_v35, %v2929_v18 }
 0xd00   :  { %v2991_v43 = vpack.c.bf16 %v10125_v4, %v10121_v44 }
 0xd02   :  { %v8265_v57 = vpop.f32.mrb[80].mxu0 }
 0xd03   :  { %v3118_v46 = vpop.f32.mrb[81].mxu0  ;;  %v3127_v23 = vadd.f32 %v8265_v57, %v3071_v45 }
 0xd04   :  { %v8266_v38 = vpop.f32.mrb[82].mxu0  ;;  %v3119_v50 = vadd.f32 %v3118_v46, %v3071_v45 }
 0xd05   :  { %v3130_v21 = vadd.f32 %v8266_v38, %v3071_v45  ;;  %v3121_v41 = vpop.f32.mrb[83].mxu0 }
 0xd06   :  { %v3122_v10 = vadd.f32 %v3121_v41, %v3071_v45  ;;  %v3355_v45 = vrot.slane %v10048_v40, %v9457_v56 }
 0xd07   :  { %v3134_v17 = vpack.c.bf16 %v3130_v21, %v3127_v23 }
 0xd08   :  { %v3133_v18 = vpack.c.bf16 %v3122_v10, %v3119_v50  ;;  %v4014_v10 = vsel %vm1137_vm3, %v2921_v47, 0 }
 0xd09   :  { %v4129_v0 = vsel %vm1137_vm3, %v3134_v17, 0 }
 0xd0a   :  { %v8281_v31 = vpop.f32.mrb[84].mxu0  ;;  %v3653_v12 = vsel %vm1137_vm3, %v3133_v18, 0 }
 0xd0b   :  { %v3260_v35 = vpop.f32.mrb[85].mxu0  ;;  %8324 = vmatpush3.bf16.xpose.msra.mxu1 %v3653_v12  ;;  %v3269_v5 = vadd.f32 %v8281_v31, %v3213_v54 }
 0xd0c   :  { %v8282_v6 = vpop.f32.mrb[86].mxu0  ;;  %8335 = vmatprep.subr.bf16.mxu1 %v9108_v11  ;;  %v3261_v38 = vadd.f32 %v3260_v35, %v3213_v54 }
 0xd0d   :  { %v3272_v26 = vadd.f32 %v8282_v6, %v3213_v54  ;;  %v3263_v57 = vpop.f32.mrb[87].mxu0 }
 0xd0e   :  { %v3264_v25 = vadd.f32 %v3263_v57, %v3213_v54 }
 0xd0f   :  { %v3276_v46 = vpack.c.bf16 %v3272_v26, %v3269_v5 }
 0xd10   :  { %v3275_v23 = vpack.c.bf16 %v3264_v25, %v3261_v38 }
 0xd12   :  { %v8297_v21 = vpop.f32.mrb[88].mxu0  ;;  %8326 = vmatmul.mubr.msk.bf16.vlgmr.msra.gmra.mrb[96].mxu1 %vm1137_vm3, %v3062_v34 }
 0xd13   :  { %v10144_v41 = vadd.f32 %v8297_v21, %v3355_v45  ;;  %v3402_v50 = vpop.f32.mrb[89].mxu0  ;;  %8336 = vmatpush3.bf16.xpose.msra.mxu1 %v3768_v2  ;;  %8337 = vmatprep.mubr.msk.bf16.mxu1 %vm9109_vm2, %v9108_v11 }
 0xd14   :  { %v10148_v6 = vadd.f32 %v3402_v50, %v3355_v45  ;;  %v8298_v26 = vpop.f32.mrb[90].mxu0  ;;  %8347 = vmatprep.subr.bf16.mxu1 %v9108_v11 }
 0xd15   :  { %v10151_v40 = vadd.f32 %v8298_v26, %v3355_v45  ;;  %v3405_v25 = vpop.f32.mrb[91].mxu0 }
 0xd16   :  { %v10153_v52 = vadd.f32 %v3405_v25, %v3355_v45 }
 0xd17   :  { %v3418_v37 = vpack.c.bf16 %v10151_v40, %v10144_v41 }
 0xd18   :  { %v3417_v34 = vpack.c.bf16 %v10153_v52, %v10148_v6  ;;  %v11239_v6 = vpack.c.bf16 %v10080_v15, %v10073_v59  ;;  %v11240_v59 = vpack.c.bf16 %v10123_v27, %v10117_v3  ;;  %v11241_v3 = vpack.c.bf16 %v10082_v62, %v10075_v24 }
 0xd1a   :  { %8338 = vmatmul.mubr.msk.bf16.vlgmr.msra.gmra.mrb[100].mxu1 %vm1137_vm3, %v3275_v23 }
 0xd1b   :  { %8348 = vmatpush3.bf16.xpose.msra.mxu1 %v3899_v39  ;;  %8349 = vmatprep.mubr.msk.bf16.mxu1 %vm9109_vm2, %v9108_v11 }
 0xd1c   :  { %8359 = vmatprep.subr.bf16.mxu1 %v9108_v11 }
 0xd22   :  { %8350 = vmatmul.mubr.msk.bf16.vlgmr.msra.gmra.mrb[104].mxu1 %vm1137_vm3, %v2637_v42 }
 0xd23   :  { %8360 = vmatpush3.bf16.xpose.msra.mxu1 %v4014_v10  ;;  %8361 = vmatprep.mubr.msk.bf16.mxu1 %vm9109_vm2, %v9108_v11 }
 0xd24   :  { %8371 = vmatprep.subr.bf16.mxu1 %v9108_v11 }
 0xd2a   :  { %8362 = vmatmul.mubr.msk.bf16.vlgmr.msra.gmra.mrb[108].mxu1 %vm1137_vm3, %v2850_v30 }
 0xd2b   :  { %8372 = vmatpush3.bf16.xpose.msra.mxu1 %v4129_v0  ;;  %8373 = vmatprep.mubr.msk.bf16.mxu1 %vm9109_vm2, %v9108_v11 }
 0xd2c   :  { %8383 = vmatprep.subr.bf16.mxu1 %v9108_v11 }
 0xd32   :  { %8374 = vmatmul.mubr.msk.bf16.vlgmr.msra.gmra.mrb[112].mxu1 %vm1137_vm3, %v3063_v22 }
 0xd33   :  { %8384 = vmatpush3.bf16.xpose.msra.mxu1 %v4244_v29  ;;  %8385 = vmatprep.mubr.msk.bf16.mxu1 %vm9109_vm2, %v9108_v11 }
 0xd3a   :  { %8386 = vmatmul.mubr.msk.bf16.vlgmr.msra.gmra.mrb[116].mxu1 %vm1137_vm3, %v3276_v46 }
 0xdc5   :  { %v10197_v53 = vpop.f32.mrb[88].mxu1 }
 0xdc6   :  { %v8303_v19 = vpop.f32.mrb[89].mxu1  ;;  %v3466_v42 = vsel %vm1185_vm4, %v10197_v53, -inf }
 0xdc7   :  { %3467 = vmax.xlane.f32.xlu0 %v3466_v42  ;;  %v10201_v47 = vpop.f32.mrb[90].mxu1 }
 0xdc8   :  { %v8304_v9 = vpop.f32.mrb[91].mxu1  ;;  %v3469_v13 = vsel %vm1185_vm4, %v10201_v47, -inf }
 0xdc9   :  { %3470 = vmax.xlane.f32.xlu1 %v3469_v13 }
 0xdcd   :  { %v10205_v20 = vpop.f32.mrb[92].mxu1 }
 0xdce   :  { %v8315_v55 = vpop.f32.mrb[93].mxu1  ;;  %v3581_v14 = vsel %vm1185_vm4, %v10205_v20, -inf }
 0xdcf   :  { %3582 = vmax.xlane.f32.xlu0 %v3581_v14  ;;  %v10209_v22 = vpop.f32.mrb[94].mxu1 }
 0xdd0   :  { %v8316_v7 = vpop.f32.mrb[95].mxu1  ;;  %v3584_v1 = vsel %vm1185_vm4, %v10209_v22, -inf }
 0xdd1   :  { %3585 = vmax.xlane.f32.xlu1 %v3584_v1 }
 0xde5   :  { %v10213_v61 = vpop.f32.mrb[96].mxu1 }
 0xde6   :  { %v8327_v49 = vpop.f32.mrb[97].mxu1  ;;  %v3696_v30 = vsel %vm1185_vm4, %v10213_v61, -inf }
 0xde7   :  { %3697 = vmax.xlane.f32.xlu0 %v3696_v30  ;;  %v10217_v28 = vpop.f32.mrb[98].mxu1 }
 0xde8   :  { %v8328_v17 = vpop.f32.mrb[99].mxu1  ;;  %v3699_v18 = vsel %vm1185_vm4, %v10217_v28, -inf }
 0xde9   :  { %3700 = vmax.xlane.f32.xlu1 %v3699_v18 }
 0xded   :  { %v10221_v54 = vpop.f32.mrb[100].mxu1 }
 0xdee   :  { %v8339_v31 = vpop.f32.mrb[101].mxu1  ;;  %v3811_v12 = vsel %vm1185_vm4, %v10221_v54, -inf }
 0xdef   :  { %3812 = vmax.xlane.f32.xlu0 %v3811_v12  ;;  %v10225_v35 = vpop.f32.mrb[102].mxu1 }
 0xdf0   :  { %v8340_v5 = vpop.f32.mrb[103].mxu1  ;;  %v3814_v57 = vsel %vm1185_vm4, %v10225_v35, -inf }
 0xdf1   :  { %3815 = vmax.xlane.f32.xlu1 %v3814_v57 }
 0xdf5   :  { %v10229_v38 = vpop.f32.mrb[104].mxu1 }
 0xdf6   :  { %v8351_v46 = vpop.f32.mrb[105].mxu1  ;;  %v3942_v45 = vsel %vm1185_vm4, %v10229_v38, -inf }
 0xdf7   :  { %3943 = vmax.xlane.f32.xlu0 %v3942_v45  ;;  %v10233_v23 = vpop.f32.mrb[106].mxu1 }
 0xdf8   :  { %v8352_v21 = vpop.f32.mrb[107].mxu1  ;;  %v3945_v2 = vsel %vm1185_vm4, %v10233_v23, -inf }
 0xdf9   :  { %3946 = vmax.xlane.f32.xlu1 %v3945_v2 }
 0xdfd   :  { %v10237_v50 = vpop.f32.mrb[108].mxu1 }
 0xdfe   :  { %v8363_v26 = vpop.f32.mrb[109].mxu1  ;;  %v4057_v25 = vsel %vm1185_vm4, %v10237_v50, -inf }
 0xdff   :  { %4058 = vmax.xlane.f32.xlu0 %v4057_v25  ;;  %v10241_v39 = vpop.f32.mrb[110].mxu1 }
 0xe00   :  { %v8364_v10 = vpop.f32.mrb[111].mxu1  ;;  %v4060_v0 = vsel %vm1185_vm4, %v10241_v39, -inf }
 0xe01   :  { %4061 = vmax.xlane.f32.xlu1 %v4060_v0 }
 0xe05   :  { %v10245_v29 = vpop.f32.mrb[112].mxu1 }
 0xe06   :  { %v8375_v19 = vpop.f32.mrb[113].mxu1  ;;  %v4172_v42 = vsel %vm1185_vm4, %v10245_v29, -inf }
 0xe07   :  { %4173 = vmax.xlane.f32.xlu0 %v4172_v42  ;;  %v10249_v9 = vpop.f32.mrb[114].mxu1 }
 0xe08   :  { %v8376_v13 = vpop.f32.mrb[115].mxu1  ;;  %v4175_v55 = vsel %vm1185_vm4, %v10249_v9, -inf }
 0xe09   :  { %4176 = vmax.xlane.f32.xlu1 %v4175_v55 }
 0xe0d   :  { %v10253_v14 = vpop.f32.mrb[116].mxu1 }
 0xe0e   :  { %v8387_v7 = vpop.f32.mrb[117].mxu1  ;;  %v4287_v1 = vsel %vm1185_vm4, %v10253_v14, -inf }
 0xe0f   :  { %4288 = vmax.xlane.f32.xlu0 %v4287_v1  ;;  %v10257_v49 = vpop.f32.mrb[118].mxu1 }
 0xe10   :  { %v8388_v30 = vpop.f32.mrb[119].mxu1  ;;  %v4290_v17 = vsel %vm1185_vm4, %v10257_v49, -inf }
 0xe11   :  { %4291 = vmax.xlane.f32.xlu1 %v4290_v17 }
 0xe54   :  { %v3468_v18 = vpop.xlane.xlu0 %3467 }
 0xe55   :  { %v3472_v31 = vsub.f32 %v10197_v53, %v3468_v18 }
 0xe56   :  { %v3471_v12 = vpop.xlane.xlu1 %3470 }
 0xe57   :  { %v3474_v5 = vmul.f32 1.442695, %v3472_v31  ;;  %v3473_v57 = vsub.f32 %v10201_v47, %v3471_v12 }
 0xe59   :  { %8900 = vpow2.f32 %v3474_v5  ;;  %v3476_v46 = vmul.f32 1.442695, %v3473_v57 }
 0xe5b   :  { %8902 = vpow2.f32 %v3476_v46 }
 0xe5c   :  { %v3583_v45 = vpop.xlane.xlu0 %3582 }
 0xe5d   :  { %v3587_v21 = vsub.f32 %v10205_v20, %v3583_v45 }
 0xe5e   :  { %v3586_v2 = vpop.xlane.xlu1 %3585 }
 0xe5f   :  { %v3589_v26 = vmul.f32 1.442695, %v3587_v21  ;;  %v3588_v25 = vsub.f32 %v10209_v22, %v3586_v2 }
 0xe61   :  { %8904 = vpow2.f32 %v3589_v26  ;;  %v3591_v10 = vmul.f32 1.442695, %v3588_v25 }
 0xe63   :  { %v10265_v0 = vpop.eup %8900  ;;  %8906 = vpow2.f32 %v3591_v10 }
 0xe64   :  { %v3478_v53 = vsel %vm1185_vm4, %v10265_v0, 0.0 }
 0xe65   :  { %v10269_v19 = vpop.eup %8902  ;;  %3479 = vadd.xlane.f32.xlu0 %v3478_v53 }
 0xe66   :  { %v3481_v47 = vsel %vm1185_vm4, %v10269_v19, 0.0 }
 0xe67   :  { %3482 = vadd.xlane.f32.xlu1 %v3481_v47 }
 0xe6b   :  { %v10273_v20 = vpop.eup %8904 }
 0xe6c   :  { %v3593_v22 = vsel %vm1185_vm4, %v10273_v20, 0.0 }
 0xe6d   :  { %v10277_v42 = vpop.eup %8906  ;;  %3594 = vadd.xlane.f32.xlu0 %v3593_v22 }
 0xe6e   :  { %v3596_v13 = vsel %vm1185_vm4, %v10277_v42, 0.0 }
 0xe6f   :  { %3597 = vadd.xlane.f32.xlu1 %v3596_v13 }
 0xe74   :  { %v3698_v55 = vpop.xlane.xlu0 %3697 }
 0xe75   :  { %v3702_v7 = vsub.f32 %v10213_v61, %v3698_v55 }
 0xe76   :  { %v3701_v1 = vpop.xlane.xlu1 %3700 }
 0xe77   :  { %v3704_v30 = vmul.f32 1.442695, %v3702_v7  ;;  %v3703_v17 = vsub.f32 %v10217_v28, %v3701_v1 }
 0xe79   :  { %8908 = vpow2.f32 %v3704_v30  ;;  %v3706_v18 = vmul.f32 1.442695, %v3703_v17 }
 0xe7b   :  { %8910 = vpow2.f32 %v3706_v18 }
 0xe7c   :  { %v3813_v31 = vpop.xlane.xlu0 %3812 }
 0xe7d   :  { %v3817_v12 = vsub.f32 %v10221_v54, %v3813_v31 }
 0xe7e   :  { %v3816_v5 = vpop.xlane.xlu1 %3815 }
 0xe7f   :  { %v3819_v57 = vmul.f32 1.442695, %v3817_v12  ;;  %v3818_v46 = vsub.f32 %v10225_v35, %v3816_v5 }
 0xe81   :  { %8912 = vpow2.f32 %v3819_v57  ;;  %v3821_v45 = vmul.f32 1.442695, %v3818_v46 }
 0xe83   :  { %v10285_v21 = vpop.eup %8908  ;;  %8914 = vpow2.f32 %v3821_v45 }
 0xe84   :  { %v3944_v61 = vpop.xlane.xlu0 %3943  ;;  %v3708_v2 = vsel %vm1185_vm4, %v10285_v21, 0.0 }
 0xe85   :  { %v10289_v28 = vpop.eup %8910  ;;  %v3948_v26 = vsub.f32 %v10229_v38, %v3944_v61  ;;  %3709 = vadd.xlane.f32.xlu0 %v3708_v2 }
 0xe86   :  { %v3947_v25 = vpop.xlane.xlu1 %3946  ;;  %v3711_v54 = vsel %vm1185_vm4, %v10289_v28, 0.0 }
 0xe87   :  { %v3950_v10 = vmul.f32 1.442695, %v3948_v26  ;;  %v3949_v35 = vsub.f32 %v10233_v23, %v3947_v25  ;;  %3712 = vadd.xlane.f32.xlu1 %v3711_v54 }
 0xe89   :  { %8916 = vpow2.f32 %v3950_v10  ;;  %v3952_v53 = vmul.f32 1.442695, %v3949_v35 }
 0xe8b   :  { %v10295_v47 = vpop.eup %8912  ;;  %8918 = vpow2.f32 %v3952_v53 }
 0xe8c   :  { %v4059_v22 = vpop.xlane.xlu0 %4058  ;;  %v3823_v13 = vsel %vm1185_vm4, %v10295_v47, 0.0 }
 0xe8d   :  { %v10299_v55 = vpop.eup %8914  ;;  %v4063_v38 = vsub.f32 %v10237_v50, %v4059_v22  ;;  %3824 = vadd.xlane.f32.xlu0 %v3823_v13 }
 0xe8e   :  { %v4062_v7 = vpop.xlane.xlu1 %4061  ;;  %v3826_v1 = vsel %vm1185_vm4, %v10299_v55, 0.0 }
 0xe8f   :  { %v4065_v23 = vmul.f32 1.442695, %v4063_v38  ;;  %v4064_v30 = vsub.f32 %v10241_v39, %v4062_v7  ;;  %3827 = vadd.xlane.f32.xlu1 %v3826_v1 }
 0xe91   :  { %8920 = vpow2.f32 %v4065_v23  ;;  %v4067_v17 = vmul.f32 1.442695, %v4064_v30 }
 0xe93   :  { %v10305_v18 = vpop.eup %8916  ;;  %8922 = vpow2.f32 %v4067_v17 }
 0xe94   :  { %v4174_v31 = vpop.xlane.xlu0 %4173  ;;  %v3954_v12 = vsel %vm1185_vm4, %v10305_v18, 0.0 }
 0xe95   :  { %v10309_v5 = vpop.eup %8918  ;;  %v4178_v50 = vsub.f32 %v10245_v29, %v4174_v31  ;;  %3955 = vadd.xlane.f32.xlu0 %v3954_v12 }
 0xe96   :  { %v4177_v57 = vpop.xlane.xlu1 %4176  ;;  %v3957_v46 = vsel %vm1185_vm4, %v10309_v5, 0.0 }
 0xe97   :  { %v4180_v39 = vmul.f32 1.442695, %v4178_v50  ;;  %v4179_v45 = vsub.f32 %v10249_v9, %v4177_v57  ;;  %3958 = vadd.xlane.f32.xlu1 %v3957_v46 }
 0xe99   :  { %8924 = vpow2.f32 %v4180_v39  ;;  %v4182_v61 = vmul.f32 1.442695, %v4179_v45 }
 0xe9b   :  { %v10315_v2 = vpop.eup %8920  ;;  %8926 = vpow2.f32 %v4182_v61 }
 0xe9c   :  { %v4289_v26 = vpop.xlane.xlu0 %4288  ;;  %v4069_v25 = vsel %vm1185_vm4, %v10315_v2, 0.0 }
 0xe9d   :  { %v10319_v54 = vpop.eup %8922  ;;  %v4293_v29 = vsub.f32 %v10253_v14, %v4289_v26  ;;  %4070 = vadd.xlane.f32.xlu0 %v4069_v25 }
 0xe9e   :  { %v4292_v10 = vpop.xlane.xlu1 %4291  ;;  %v4072_v35 = vsel %vm1185_vm4, %v10319_v54, 0.0 }
 0xe9f   :  { %v4295_v9 = vmul.f32 1.442695, %v4293_v29  ;;  %v4294_v53 = vsub.f32 %v10257_v49, %v4292_v10  ;;  %4073 = vadd.xlane.f32.xlu1 %v4072_v35 }
 0xea1   :  { %8928 = vpow2.f32 %v4295_v9  ;;  %v4297_v22 = vmul.f32 1.442695, %v4294_v53 }
 0xea3   :  { %v10325_v13 = vpop.eup %8924  ;;  %8930 = vpow2.f32 %v4297_v22 }
 0xea4   :  { %v4184_v38 = vsel %vm1185_vm4, %v10325_v13, 0.0 }
 0xea5   :  { %v10329_v7 = vpop.eup %8926  ;;  %4185 = vadd.xlane.f32.xlu0 %v4184_v38 }
 0xea6   :  { %v4187_v14 = vsel %vm1185_vm4, %v10329_v7, 0.0 }
 0xea7   :  { %4188 = vadd.xlane.f32.xlu1 %v4187_v14 }
 0xeab   :  { %v10333_v1 = vpop.eup %8928 }
 0xeac   :  { %v4299_v49 = vsel %vm1185_vm4, %v10333_v1, 0.0 }
 0xead   :  { %v10337_v23 = vpop.eup %8930  ;;  %4300 = vadd.xlane.f32.xlu0 %v4299_v49 }
 0xeae   :  { %v4302_v30 = vsel %vm1185_vm4, %v10337_v23, 0.0 }
 0xeaf   :  { %4303 = vadd.xlane.f32.xlu1 %v4302_v30 }
 0xef2   :  { %v3480_v17 = vpop.xlane.xlu0 %3479 }
 0xef3   :  { %8932 = vrcp.f32 %v3480_v17 }
 0xef4   :  { %v3483_v31 = vpop.xlane.xlu1 %3482 }
 0xef5   :  { %8934 = vrcp.f32 %v3483_v31 }
 0xefa   :  { %v3595_v12 = vpop.xlane.xlu0 %3594 }
 0xefb   :  { %8936 = vrcp.f32 %v3595_v12 }
 0xefc   :  { %v3598_v50 = vpop.xlane.xlu1 %3597 }
 0xefd   :  { %v8933_v57 = vpop.eup %8932  ;;  %8938 = vrcp.f32 %v3598_v50 }
 0xefe   :  { %v3485_v39 = vmul.f32 %v8933_v57, %v10265_v0 }
 0xeff   :  { %v8935_v46 = vpop.eup %8934 }
 0xf00   :  { %v3487_v45 = vmul.f32 %v8935_v46, %v10269_v19 }
 0xf02   :  { %v3488_v61 = vpack.c.bf16 %v3487_v45, %v3485_v39 }
 0xf04   :  { %8308 = vmatmul.mubr.msk.bf16.vlgmr.msra.gmra.mrb[92].mxu0 %vm1185_vm4, %v3488_v61 }
 0xf05   :  { %v8937_v26 = vpop.eup %8936  ;;  %8318 = vmatpush3.bf16.msra.mxu0 %v2991_v43  ;;  %8319 = vmatprep.mubr.msk.bf16.mxu0 %vm9109_vm2, %v9108_v11 }
 0xf06   :  { %8329 = vmatprep.subr.bf16.mxu0 %v9108_v11  ;;  %v3600_v29 = vmul.f32 %v8937_v26, %v10273_v20 }
 0xf07   :  { %v8939_v25 = vpop.eup %8938 }
 0xf08   :  { %v3602_v0 = vmul.f32 %v8939_v25, %v10277_v42 }
 0xf0a   :  { %v3603_v10 = vpack.c.bf16 %v3602_v0, %v3600_v29 }
 0xf0c   :  { %8320 = vmatmul.mubr.msk.bf16.vlgmr.msra.gmra.mrb[96].mxu0 %vm1185_vm4, %v3603_v10 }
 0xf0d   :  { %8330 = vmatpush3.bf16.msra.mxu0 %v3204_v48  ;;  %8331 = vmatprep.mubr.msk.bf16.mxu0 %vm9109_vm2, %v9108_v11 }
 0xf0e   :  { %8341 = vmatprep.subr.bf16.mxu0 %v9108_v11 }
 0xf12   :  { %v3710_v44 = vpop.xlane.xlu0 %3709 }
 0xf13   :  { %8940 = vrcp.f32 %v3710_v44 }
 0xf14   :  { %v3713_v4 = vpop.xlane.xlu1 %3712 }
 0xf15   :  { %8942 = vrcp.f32 %v3713_v4 }
 0xf1a   :  { %v3825_v43 = vpop.xlane.xlu0 %3824 }
 0xf1b   :  { %8944 = vrcp.f32 %v3825_v43 }
 0xf1c   :  { %v3828_v19 = vpop.xlane.xlu1 %3827 }
 0xf1d   :  { %v8941_v20 = vpop.eup %8940  ;;  %8946 = vrcp.f32 %v3828_v19 }
 0xf1e   :  { %v3715_v35 = vmul.f32 %v8941_v20, %v10285_v21 }
 0xf1f   :  { %v8943_v42 = vpop.eup %8942 }
 0xf20   :  { %v3717_v51 = vmul.f32 %v8943_v42, %v10289_v28 }
 0xf22   :  { %v3956_v58 = vpop.xlane.xlu0 %3955  ;;  %v3718_v48 = vpack.c.bf16 %v3717_v51, %v3715_v35 }
 0xf23   :  { %8948 = vrcp.f32 %v3956_v58 }
 0xf24   :  { %8332 = vmatmul.mubr.msk.bf16.vlgmr.msra.gmra.mrb[100].mxu0 %vm1185_vm4, %v3718_v48  ;;  %v3959_v9 = vpop.xlane.xlu1 %3958 }
 0xf25   :  { %v8945_v53 = vpop.eup %8944  ;;  %8342 = vmatpush3.bf16.msra.mxu0 %v3417_v34  ;;  %8950 = vrcp.f32 %v3959_v9  ;;  %8343 = vmatprep.mubr.msk.bf16.mxu0 %vm9109_vm2, %v9108_v11 }
 0xf26   :  { %8353 = vmatprep.subr.bf16.mxu0 %v9108_v11  ;;  %v3830_v28 = vmul.f32 %v8945_v53, %v10295_v47 }
 0xf27   :  { %v8947_v21 = vpop.eup %8946 }
 0xf28   :  { %v3832_v22 = vmul.f32 %v8947_v21, %v10299_v55 }
 0xf2a   :  { %v4071_v38 = vpop.xlane.xlu0 %4070  ;;  %v3833_v14 = vpack.c.bf16 %v3832_v22, %v3830_v28 }
 0xf2b   :  { %8952 = vrcp.f32 %v4071_v38 }
 0xf2c   :  { %8344 = vmatmul.mubr.msk.bf16.vlgmr.msra.gmra.mrb[104].mxu0 %vm1185_vm4, %v3833_v14  ;;  %v4074_v49 = vpop.xlane.xlu1 %4073  ;;  %v8748_v14 = vld [vmem:[%s11236_s2 + $0x210] sm:$0xff]  }
 0xf2d   :  { %v8949_v30 = vpop.eup %8948  ;;  %8354 = vmatpush3.bf16.msra.mxu0 %v11239_v6  ;;  %8954 = vrcp.f32 %v4074_v49  ;;  %8355 = vmatprep.mubr.msk.bf16.mxu0 %vm9109_vm2, %v9108_v11  ;;  %v8749_v49 = vld [vmem:[%s11236_s2 + $0x218] sm:$0xff]  }
 0xf2e   :  { %8365 = vmatprep.subr.bf16.mxu0 %v9108_v11  ;;  %v3961_v34 = vmul.f32 %v8949_v30, %v10305_v18  ;;  %8395 = vmatprep.subr.bf16.mxu1 %v8748_v14 }
 0xf2f   :  { %v8951_v52 = vpop.eup %8950  ;;  %8396 = vmatpush3.bf16.msra.mxu1 %v8748_v14 }
 0xf30   :  { %v3963_v47 = vmul.f32 %v8951_v52, %v10309_v5  ;;  %8397 = vmatprep.subr.bf16.mxu1 %v8749_v49 }
 0xf32   :  { %v4186_v55 = vpop.xlane.xlu0 %4185  ;;  %v3964_v17 = vpack.c.bf16 %v3963_v47, %v3961_v34 }
 0xf33   :  { %8956 = vrcp.f32 %v4186_v55  ;;  %8398 = vmatpush3.bf16.msra.mxu1 %v8749_v49 }
 0xf34   :  { %8356 = vmatmul.mubr.msk.bf16.vlgmr.msra.gmra.mrb[108].mxu0 %vm1185_vm4, %v3964_v17  ;;  %v4189_v31 = vpop.xlane.xlu1 %4188 }
 0xf35   :  { %v8953_v12 = vpop.eup %8952  ;;  %8366 = vmatpush3.bf16.msra.mxu0 %v11240_v59  ;;  %8958 = vrcp.f32 %v4189_v31  ;;  %8367 = vmatprep.mubr.msk.bf16.mxu0 %vm9109_vm2, %v9108_v11 }
 0xf36   :  { %8377 = vmatprep.subr.bf16.mxu0 %v9108_v11  ;;  %v4076_v18 = vmul.f32 %v8953_v12, %v10315_v2 }
 0xf37   :  { %v8955_v15 = vpop.eup %8954 }
 0xf38   :  { %v4078_v5 = vmul.f32 %v8955_v15, %v10319_v54 }
 0xf3a   :  { %v4301_v50 = vpop.xlane.xlu0 %4300  ;;  %v4079_v57 = vpack.c.bf16 %v4078_v5, %v4076_v18 }
 0xf3b   :  { %8960 = vrcp.f32 %v4301_v50 }
 0xf3c   :  { %8368 = vmatmul.mubr.msk.bf16.vlgmr.msra.gmra.mrb[112].mxu0 %vm1185_vm4, %v4079_v57  ;;  %v4304_v46 = vpop.xlane.xlu1 %4303 }
 0xf3d   :  { %v8957_v39 = vpop.eup %8956  ;;  %8378 = vmatpush3.bf16.msra.mxu0 %v11241_v3  ;;  %8962 = vrcp.f32 %v4304_v46  ;;  %8379 = vmatprep.mubr.msk.bf16.mxu0 %vm9109_vm2, %v9108_v11 }
 0xf3e   :  { %8389 = vmatprep.subr.bf16.mxu0 %v9108_v11  ;;  %v4191_v2 = vmul.f32 %v8957_v39, %v10325_v13 }
 0xf3f   :  { %v8959_v27 = vpop.eup %8958 }
 0xf40   :  { %v4193_v54 = vmul.f32 %v8959_v27, %v10329_v7 }
 0xf42   :  { %v4194_v45 = vpack.c.bf16 %v4193_v54, %v4191_v2 }
 0xf44   :  { %8380 = vmatmul.mubr.msk.bf16.vlgmr.msra.gmra.mrb[116].mxu0 %vm1185_vm4, %v4194_v45 }
 0xf45   :  { %v8961_v61 = vpop.eup %8960  ;;  %8390 = vmatpush3.bf16.msra.mxu0 %v3418_v37  ;;  %8391 = vmatprep.mubr.msk.bf16.mxu0 %vm9109_vm2, %v9108_v11 }
 0xf46   :  { %v4306_v62 = vmul.f32 %v8961_v61, %v10333_v1 }
 0xf47   :  { %v8963_v24 = vpop.eup %8962 }
 0xf48   :  { %v4308_v26 = vmul.f32 %v8963_v24, %v10337_v23 }
 0xf4a   :  { %v4309_v25 = vpack.c.bf16 %v4308_v26, %v4306_v62 }
 0xf4c   :  { %8392 = vmatmul.mubr.msk.bf16.vlgmr.msra.gmra.mrb[120].mxu0 %vm1185_vm4, %v4309_v25 }
 0xfd7   :  { %v3526_v13 = vpop.f32.mrb[92].mxu0 }
 0xfd8   :  { %v8309_v7 = vpop.f32.mrb[93].mxu0 }
 0xfd9   :  { %v3529_v29 = vpop.f32.mrb[94].mxu0 }
 0xfda   :  { %v3533_v0 = vpack.c.bf16 %v3529_v29, %v3526_v13  ;;  %v8310_v10 = vpop.f32.mrb[95].mxu0  ;;  %v7527_v13 = vld [vmem:[%s11237_s3 + $0xe8] ss:$0 sm:$0xff] }
 0xfdf   :  { %v3641_v44 = vpop.f32.mrb[96].mxu0 }
 0xfe0   :  { %v8321_v4 = vpop.f32.mrb[97].mxu0 }
 0xfe1   :  { %v3644_v41 = vpop.f32.mrb[98].mxu0 }
 0xfe2   :  { %v3648_v40 = vpack.c.bf16 %v3644_v41, %v3641_v44  ;;  %v8322_v37 = vpop.f32.mrb[99].mxu0 }
 0xfe4   :  { %3880 = vrot.lane.b32.xlu0 %v3648_v40, %s9110_s21 }
 0xff7   :  { %v3756_v43 = vpop.f32.mrb[100].mxu0 }
 0xff8   :  { %v8333_v19 = vpop.f32.mrb[101].mxu0 }
 0xff9   :  { %v3759_v1 = vpop.f32.mrb[102].mxu0 }
 0xffa   :  { %v3763_v20 = vpack.c.bf16 %v3759_v1, %v3756_v43  ;;  %v8334_v23 = vpop.f32.mrb[103].mxu0 }
 0xffc   :  { %3883 = vrot.lane.b32.xlu1 %v3763_v20, %s9111_s22 }
 0xfff   :  { %v3871_v42 = vpop.f32.mrb[104].mxu0 }
0x1000   :  { %v8345_v35 = vpop.f32.mrb[105].mxu0 }
0x1001   :  { %v3874_v51 = vpop.f32.mrb[106].mxu0 }
0x1002   :  { %v3878_v58 = vpack.c.bf16 %v3874_v51, %v3871_v42  ;;  %v8346_v48 = vpop.f32.mrb[107].mxu0 }
0x1004   :  { %3886 = vrot.lane.b32.xlu1 %v3878_v58, %s9112_s23 }
0x1007   :  { %v4002_v9 = vpop.f32.mrb[108].mxu0 }
0x1008   :  { %v8357_v53 = vpop.f32.mrb[109].mxu0 }
0x1009   :  { %v4005_v21 = vpop.f32.mrb[110].mxu0 }
0x100a   :  { %v4009_v28 = vpack.c.bf16 %v4005_v21, %v4002_v9  ;;  %v8358_v22 = vpop.f32.mrb[111].mxu0 }
0x100f   :  { %v4117_v38 = vpop.f32.mrb[112].mxu0 }
0x1010   :  { %v8369_v30 = vpop.f32.mrb[113].mxu0 }
0x1011   :  { %v4120_v6 = vpop.f32.mrb[114].mxu0 }
0x1012   :  { %v4124_v52 = vpack.c.bf16 %v4120_v6, %v4117_v38  ;;  %v8370_v34 = vpop.f32.mrb[115].mxu0 }
0x1014   :  { %4356 = vrot.lane.b32.xlu1 %v4124_v52, %s9110_s21 }
0x1017   :  { %v4232_v47 = vpop.f32.mrb[116].mxu0 }
0x1018   :  { %v8381_v55 = vpop.f32.mrb[117].mxu0 }
0x1019   :  { %v4235_v17 = vpop.f32.mrb[118].mxu0  ;;  %v8751_v55 = vld [vmem:[%s11236_s2 + $0x228] sm:$0xff]  }
0x101a   :  { %v4239_v31 = vpack.c.bf16 %v4235_v17, %v4232_v47  ;;  %v8382_v12 = vpop.f32.mrb[119].mxu0  ;;  %v8750_v47 = vld [vmem:[%s11236_s2 + $0x220] sm:$0xff]  }
0x101b   :  { %8403 = vmatprep.subr.bf16.mxu0 %v8750_v47 }
0x101c   :  { %4359 = vrot.lane.b32.xlu0 %v4239_v31, %s9111_s22  ;;  %8404 = vmatpush3.bf16.msra.mxu0 %v8750_v47 }
0x101d   :  { %8405 = vmatprep.subr.bf16.mxu0 %v8751_v55 }
0x101f   :  { %v4347_v59 = vpop.f32.mrb[120].mxu0 }
0x1020   :  { %v8393_v15 = vpop.f32.mrb[121].mxu0  ;;  %8406 = vmatpush3.bf16.msra.mxu0 %v8751_v55 }
0x1021   :  { %v4350_v18 = vpop.f32.mrb[122].mxu0 }
0x1022   :  { %v4354_v5 = vpack.c.bf16 %v4350_v18, %v4347_v59  ;;  %v8394_v50 = vpop.f32.mrb[123].mxu0 }
0x1024   :  { %4362 = vrot.lane.b32.xlu1 %v4354_v5, %s9112_s23 }
0x1056   :  { %v3881_v57 = vpop.permute.xlu0 %3880 }
0x1057   :  { %v3890_v39 = vsel %vm1137_vm3, %v3533_v0, %v3881_v57 }
0x106e   :  { %v3884_v46 = vpop.permute.xlu1 %3883 }
0x106f   :  { %v3892_v3 = vsel %vm1185_vm4, %v3890_v39, %v3884_v46 }
0x1076   :  { %v3887_v27 = vpop.permute.xlu1 %3886 }
0x1077   :  { %v3894_v2 = vsel %vm1613_vm5, %v3892_v3, %v3887_v27 }
0x1078   :  { %8399 = vmatprep.mubr.msk.bf16.mxu1 %vm140_vm1, %v3894_v2  ;;  %v7528_v2 = vld [vmem:[%s11237_s3 + $0xf0] ss:$0 sm:$0xff] }
0x1086   :  { %v4357_v54 = vpop.permute.xlu1 %4356 }
0x1087   :  { %v4366_v61 = vsel %vm1137_vm3, %v4009_v28, %v4357_v54 }
0x108e   :  { %v4360_v45 = vpop.permute.xlu0 %4359 }
0x108f   :  { %v4368_v24 = vsel %vm1185_vm4, %v4366_v61, %v4360_v45 }
0x1096   :  { %v4363_v62 = vpop.permute.xlu1 %4362 }
0x1097   :  { %v4370_v26 = vsel %vm1613_vm5, %v4368_v24, %v4363_v62 }
0x1098   :  { %8400 = vmatmul.mubr.msk.bf16.vlgmr.msra.gmra.mrb[120].mxu1 %vm140_vm1, %v4370_v26  ;;  %v7529_v26 = vld [vmem:[%s11237_s3 + $0xf8] ss:$0 sm:$0xff] }
0x116b   :  { %v8401_v25 = vpop.f32.mrb[120].mxu1 }
0x116c   :  { %v4425_v7 = vpop.f32.mrb[121].mxu1  ;;  %v4442_v29 = vadd.f32 %v8401_v25, %v9857_v60 }
0x116d   :  { %v4440_v0 = vadd.f32 %v4425_v7, %v9853_v8  ;;  %v8402_v10 = vpop.f32.mrb[122].mxu1 }
0x116e   :  { %v4428_v44 = vpop.f32.mrb[123].mxu1  ;;  %v10434_v40 = vadd.f32 %v7527_v13, %v4442_v29  ;;  %v4443_v37 = vadd.f32 %v8402_v10, %v9863_v63 }
0x116f   :  { %v10431_v4 = vadd.f32 %v7527_v13, %v4440_v0  ;;  %v4441_v41 = vadd.f32 %v4428_v44, %v9859_v36 }
0x1170   :  { %v10443_v8 = vadd.f32 %v7527_v13, %v4443_v37  ;;  %v4461_v1 = vsel %vm140_vm1, %v10434_v40, 0.0 }
0x1171   :  { %v10437_v43 = vadd.f32 %v7527_v13, %v4441_v41  ;;  %v4455_v19 = vsel %vm140_vm1, %v10431_v4, 0.0 }
0x1172   :  { %4456 = vadd.xlane.f32.xlu0 %v4455_v19  ;;  %v4464_v36 = vsel %vm140_vm1, %v10443_v8, 0.0 }
0x1173   :  { %v4458_v60 = vsel %vm140_vm1, %v10437_v43, 0.0 }
0x1174   :  { %4459 = vadd.xlane.f32.xlu1 %v4458_v60 }
0x1176   :  { %4462 = vadd.xlane.f32.xlu0 %v4461_v1 }
0x117a   :  { %4465 = vadd.xlane.f32.xlu0 %v4464_v36  ;;  %v8752_v36 = vld [vmem:[%s11236_s2 + $0x230] sm:$0xff]  }
0x117b   :  { %8411 = vmatprep.subr.bf16.mxu1 %v8752_v36 }
0x117c   :  { %8412 = vmatpush3.bf16.msra.mxu1 %v8752_v36 }
0x11ff   :  { %v4457_v63 = vpop.xlane.xlu0 %4456 }
0x1200   :  { %v4467_v20 = vmul.f32 0.03125, %v4457_v63  ;;  %v8753_v63 = vld [vmem:[%s11236_s2 + $0x238] sm:$0xff]  }
0x1201   :  { %v4460_v23 = vpop.xlane.xlu1 %4459  ;;  %8413 = vmatprep.subr.bf16.mxu1 %v8753_v63 }
0x1202   :  { %v4471_v42 = vsub.f32 %v10431_v4, %v4467_v20  ;;  %v4468_v35 = vmul.f32 0.03125, %v4460_v23  ;;  %8414 = vmatpush3.bf16.msra.mxu1 %v8753_v63  ;;  %v8754_v20 = vld [vmem:[%s11236_s2 + $0x240] sm:$0xff]   ;;  %v8755_v23 = vld [vmem:[%s11236_s2 + $0x248] sm:$0xff]  }
0x1203   :  { %v4463_v51 = vpop.xlane.xlu0 %4462  ;;  %8415 = vmatprep.subr.bf16.mxu1 %v8754_v20  ;;  %v7543_v63 = vld [vmem:[%s11237_s3 + $0x108] ss:$0 sm:$0xff] }
0x1204   :  { %v4472_v58 = vsub.f32 %v10437_v43, %v4468_v35  ;;  %v4469_v48 = vmul.f32 0.03125, %v4463_v51  ;;  %v4475_v9 = vmul.f32 %v4471_v42, %v4471_v42  ;;  %v8757_v35 = vld [vmem:[%s11236_s2 + $0x258] sm:$0xff]   ;;  %v8758_v51 = vld [vmem:[%s11236_s2 + $0x260] sm:$0xff]  }
0x1206   :  { %v4473_v53 = vsub.f32 %v10434_v40, %v4469_v48  ;;  %v4479_v21 = vsel %vm140_vm1, %v4475_v9, 0.0  ;;  %v4476_v28 = vmul.f32 %v4472_v58, %v4472_v58  ;;  %8416 = vmatpush3.bf16.msra.mxu1 %v8754_v20  ;;  %v7530_v48 = vld [vmem:[%s11237_s3 + $0x100] ss:$0 sm:$0xff] }
0x1207   :  { %4480 = vadd.xlane.f32.xlu0 %v4479_v21  ;;  %v4466_v22 = vpop.xlane.xlu0 %4465  ;;  %8417 = vmatprep.subr.bf16.mxu1 %v8755_v23 }
0x1208   :  { %v4470_v38 = vmul.f32 0.03125, %v4466_v22  ;;  %v4482_v14 = vsel %vm140_vm1, %v4476_v28, 0.0  ;;  %v4477_v49 = vmul.f32 %v4473_v53, %v4473_v53 }
0x1209   :  { %4483 = vadd.xlane.f32.xlu1 %v4482_v14 }
0x120a   :  { %v4474_v30 = vsub.f32 %v10443_v8, %v4470_v38  ;;  %v4485_v6 = vsel %vm140_vm1, %v4477_v49, 0.0  ;;  %8418 = vmatpush3.bf16.msra.mxu1 %v8755_v23 }
0x120b   :  { %4486 = vadd.xlane.f32.xlu0 %v4485_v6 }
0x120c   :  { %v4478_v52 = vmul.f32 %v4474_v30, %v4474_v30 }
0x120e   :  { %v4488_v34 = vsel %vm140_vm1, %v4478_v52, 0.0 }
0x120f   :  { %4489 = vadd.xlane.f32.xlu1 %v4488_v34 }
0x1294   :  { %v4481_v17 = vpop.xlane.xlu0 %4480 }
0x1295   :  { %v4491_v31 = vmul.f32 0.03125, %v4481_v17 }
0x1296   :  { %v4484_v12 = vpop.xlane.xlu1 %4483 }
0x1297   :  { %v4495_v59 = vadd.f32 1e-06, %v4491_v31  ;;  %v4492_v15 = vmul.f32 0.03125, %v4484_v12 }
0x1298   :  { %v4487_v18 = vpop.xlane.xlu0 %4486 }
0x1299   :  { %8964 = vrsqrt.f32 %v4495_v59  ;;  %v4496_v5 = vadd.f32 1e-06, %v4492_v15  ;;  %v4493_v50 = vmul.f32 0.03125, %v4487_v18 }
0x129b   :  { %8966 = vrsqrt.f32 %v4496_v5  ;;  %v4497_v57 = vadd.f32 1e-06, %v4493_v50 }
0x129c   :  { %v4490_v46 = vpop.xlane.xlu1 %4489 }
0x129d   :  { %8968 = vrsqrt.f32 %v4497_v57  ;;  %v4494_v39 = vmul.f32 0.03125, %v4490_v46 }
0x129f   :  { %v4498_v3 = vadd.f32 1e-06, %v4494_v39 }
0x12a1   :  { %8970 = vrsqrt.f32 %v4498_v3 }
0x12a3   :  { %v8965_v27 = vpop.eup %8964 }
0x12a4   :  { %v4503_v54 = vmul.f32 %v8965_v27, %v4471_v42  ;;  %v8756_v42 = vld [vmem:[%s11236_s2 + $0x250] sm:$0xff]  }
0x12a5   :  { %v8967_v45 = vpop.eup %8966  ;;  %8419 = vmatprep.subr.bf16.mxu1 %v8756_v42 }
0x12a6   :  { %v4504_v61 = vmul.f32 %v8967_v45, %v4472_v58  ;;  %v4511_v24 = vmul.f32 %v7528_v2, %v4503_v54  ;;  %8420 = vmatpush3.bf16.msra.mxu1 %v8756_v42  ;;  %v8759_v58 = vld [vmem:[%s11236_s2 + $0x268] sm:$0xff]  }
0x12a7   :  { %v8969_v62 = vpop.eup %8968  ;;  %8421 = vmatprep.subr.bf16.mxu1 %v8757_v35 }
0x12a8   :  { %v4505_v25 = vmul.f32 %v8969_v62, %v4473_v53  ;;  %v4512_v13 = vmul.f32 %v7528_v2, %v4504_v61  ;;  %v4519_v7 = vadd.f32 %v7529_v26, %v4511_v24 }
0x12aa   :  { %v4520_v29 = vadd.f32 %v7529_v26, %v4512_v13  ;;  %v4513_v10 = vmul.f32 %v7528_v2, %v4505_v25  ;;  %8422 = vmatpush3.bf16.msra.mxu1 %v8757_v35 }
0x12ab   :  { %v8971_v0 = vpop.eup %8970  ;;  %8423 = vmatprep.subr.bf16.mxu1 %v8758_v51 }
0x12ac   :  { %v4506_v44 = vmul.f32 %v8971_v0, %v4474_v30  ;;  %v4523_v41 = vpack.c.bf16 %v4520_v29, %v4519_v7  ;;  %v4521_v19 = vadd.f32 %v7529_v26, %v4513_v10 }
0x12ae   :  { %v4514_v37 = vmul.f32 %v7528_v2, %v4506_v44  ;;  %8407 = vmatprep.mubr.msk.bf16.mxu0 %vm140_vm1, %v4523_v41  ;;  %8424 = vmatpush3.bf16.msra.mxu1 %v8758_v51 }
0x12af   :  { %8425 = vmatprep.subr.bf16.mxu1 %v8759_v58 }
0x12b0   :  { %v4522_v60 = vadd.f32 %v7529_v26, %v4514_v37 }
0x12b2   :  { %v4524_v1 = vpack.c.bf16 %v4522_v60, %v4521_v19  ;;  %8426 = vmatpush3.bf16.msra.mxu1 %v8759_v58 }
0x12b4   :  { %8408 = vmatmul.mubr.msk.bf16.vlgmr.msra.gmra.mrb[124].mxu0 %vm140_vm1, %v4524_v1 }
0x1387   :  { %v8409_v9 = vpop.f32.mrb[124].mxu0 }
0x1388   :  { %v4595_v53 = vadd.f32 %v8409_v9, %v7530_v48  ;;  %v4586_v21 = vpop.f32.mrb[125].mxu0 }
0x1389   :  { %v4587_v28 = vadd.f32 %v7530_v48, %v4586_v21  ;;  %v8410_v22 = vpop.f32.mrb[126].mxu0 }
0x138a   :  { %v4607_v38 = vmul.f32 0.044715, %v4595_v53  ;;  %v4598_v14 = vadd.f32 %v8410_v22, %v7530_v48  ;;  %v4589_v49 = vpop.f32.mrb[127].mxu0  ;;  %v4603_v25 = vmul.f32 0.5, %v4595_v53 }
0x138b   :  { %v4605_v30 = vmul.f32 0.044715, %v4587_v28  ;;  %v4590_v6 = vadd.f32 %v7530_v48, %v4589_v49  ;;  %v4601_v29 = vmul.f32 0.5, %v4587_v28 }
0x138c   :  { %v4611_v52 = vmul.f32 %v4607_v38, %v4595_v53  ;;  %v4608_v34 = vmul.f32 0.044715, %v4598_v14  ;;  %v4604_v13 = vmul.f32 0.5, %v4598_v14 }
0x138d   :  { %v4609_v47 = vmul.f32 %v4605_v30, %v4587_v28  ;;  %v4606_v55 = vmul.f32 0.044715, %v4590_v6  ;;  %v4602_v0 = vmul.f32 0.5, %v4590_v6 }
0x138e   :  { %v4615_v17 = vmul.f32 %v4611_v52, %v4595_v53  ;;  %v4612_v31 = vmul.f32 %v4608_v34, %v4598_v14 }
0x138f   :  { %v4613_v12 = vmul.f32 %v4609_v47, %v4587_v28  ;;  %v4610_v59 = vmul.f32 %v4606_v55, %v4590_v6 }
0x1390   :  { %v4619_v15 = vadd.f32 %v4615_v17, %v4595_v53  ;;  %v4616_v18 = vmul.f32 %v4612_v31, %v4598_v14 }
0x1391   :  { %v4614_v5 = vmul.f32 %v4610_v59, %v4590_v6  ;;  %v4617_v50 = vadd.f32 %v4613_v12, %v4587_v28 }
0x1392   :  { %v4623_v57 = vmul.f32 0.7978846, %v4619_v15  ;;  %v4620_v46 = vadd.f32 %v4616_v18, %v4598_v14 }
0x1393   :  { %v4618_v39 = vadd.f32 %v4614_v5, %v4590_v6  ;;  %v4621_v3 = vmul.f32 0.7978846, %v4617_v50 }
0x1394   :  { %8972 = vtanh.f32 %v4623_v57  ;;  %v4624_v27 = vmul.f32 0.7978846, %v4620_v46 }
0x1395   :  { %v4622_v2 = vmul.f32 0.7978846, %v4618_v39  ;;  %8974 = vtanh.f32 %v4621_v3  ;;  %v8760_v39 = vld [vmem:[%s11236_s2 + $0x390] sm:$0xff]   ;;  %v8761_v3 = vld [vmem:[%s11236_s2 + $0x398] sm:$0xff]  }
0x1396   :  { %8976 = vtanh.f32 %v4624_v27  ;;  %8431 = vmatprep.subr.bf16.mxu0 %v8760_v39 }
0x1397   :  { %8978 = vtanh.f32 %v4622_v2  ;;  %8432 = vmatpush3.bf16.msra.mxu0 %v8760_v39 }
0x1398   :  { %8433 = vmatprep.subr.bf16.mxu0 %v8761_v3 }
0x139b   :  { %8434 = vmatpush3.bf16.msra.mxu0 %v8761_v3 }
0x139e   :  { %v8973_v54 = vpop.eup %8972 }
0x139f   :  { %v8975_v45 = vpop.eup %8974  ;;  %v4631_v61 = vadd.f32 1.0, %v8973_v54 }
0x13a0   :  { %v8977_v24 = vpop.eup %8976  ;;  %v4629_v62 = vadd.f32 1.0, %v8975_v45 }
0x13a1   :  { %v8979_v26 = vpop.eup %8978  ;;  %v4632_v7 = vadd.f32 1.0, %v8977_v24  ;;  %v4635_v44 = vmul.f32 %v4631_v61, %v4603_v25 }
0x13a2   :  { %v4630_v10 = vadd.f32 1.0, %v8979_v26  ;;  %v4633_v37 = vmul.f32 %v4629_v62, %v4601_v29 }
0x13a3   :  { %v4636_v41 = vmul.f32 %v4632_v7, %v4604_v13 }
0x13a4   :  { %v4634_v19 = vmul.f32 %v4630_v10, %v4602_v0  ;;  %v7544_v10 = vld [vmem:[%s11237_s3 + $0x28] ss:$0 sm:$0xff] }
0x13a5   :  { %v4638_v60 = vpack.c.bf16 %v4636_v41, %v4635_v44 }
0x13a6   :  { %v4637_v1 = vpack.c.bf16 %v4634_v19, %v4633_v37 }
0x13a8   :  { %8427 = vmatprep.mubr.bf16.mxu1 %v4637_v1  ;;  %v7545_v1 = vld [vmem:[%s11237_s3 + $0x30] ss:$0 sm:$0xff] }
0x13a9   :  { %8428 = vmatmul.mubr.bf16.vlgmr.msra.gmra.mrb[124].mxu1 %v4638_v60 }
0x147c   :  { %v8429_v36 = vpop.f32.mrb[124].mxu1 }
0x147d   :  { %v4737_v20 = vpop.f32.mrb[125].mxu1  ;;  %v4754_v23 = vadd.f32 %v8429_v36, %v10434_v40 }
0x147e   :  { %v4752_v42 = vadd.f32 %v4737_v20, %v10431_v4  ;;  %v8430_v35 = vpop.f32.mrb[126].mxu1 }
0x147f   :  { %v4740_v51 = vpop.f32.mrb[127].mxu1  ;;  %v4755_v48 = vadd.f32 %v8430_v35, %v10443_v8  ;;  %v4763_v53 = vadd.f32 %v7543_v63, %v4754_v23 }
0x1480   :  { %v4761_v58 = vadd.f32 %v7543_v63, %v4752_v42  ;;  %v4753_v9 = vadd.f32 %v4740_v51, %v10437_v43 }
0x1481   :  { %v4764_v22 = vadd.f32 %v7543_v63, %v4755_v48  ;;  %v4773_v40 = vsel %vm140_vm1, %v4763_v53, 0.0 }
0x1482   :  { %v4762_v21 = vadd.f32 %v7543_v63, %v4753_v9  ;;  %v4767_v28 = vsel %vm140_vm1, %v4761_v58, 0.0 }
0x1483   :  { %4768 = vadd.xlane.f32.xlu0 %v4767_v28  ;;  %v4776_v4 = vsel %vm140_vm1, %v4764_v22, 0.0  ;;  %v4841_v28 = vld [vmem:[%s11237_s3 + $0x38] sm:$0xff] }
0x1484   :  { %v4770_v38 = vsel %vm140_vm1, %v4762_v21, 0.0 }
0x1485   :  { %4771 = vadd.xlane.f32.xlu1 %v4770_v38  ;;  %v4843_v38 = vld [vmem:[%s11237_s3 + $0x48] sm:$0xff] }
0x1487   :  { %4774 = vadd.xlane.f32.xlu0 %v4773_v40 }
0x1489   :  { %4777 = vadd.xlane.f32.xlu1 %v4776_v4  ;;  %v4842_v4 = vld [vmem:[%s11237_s3 + $0x40] sm:$0xff] }
0x1510   :  { %v4769_v14 = vpop.xlane.xlu0 %4768 }
0x1511   :  { %v4779_v49 = vmul.f32 0.03125, %v4769_v14 }
0x1512   :  { %v4772_v8 = vpop.xlane.xlu1 %4771 }
0x1513   :  { %v4783_v30 = vsub.f32 %v4761_v58, %v4779_v49  ;;  %v4780_v43 = vmul.f32 0.03125, %v4772_v8  ;;  %v4844_v8 = vld [vmem:[%s11237_s3 + $0x50] sm:$0xff] }
0x1514   :  { %v4775_v6 = vpop.xlane.xlu0 %4774 }
0x1515   :  { %v4784_v52 = vsub.f32 %v4762_v21, %v4780_v43  ;;  %v4781_v34 = vmul.f32 0.03125, %v4775_v6  ;;  %v4787_v47 = vmul.f32 %v4783_v30, %v4783_v30 }
0x1516   :  { %v4778_v55 = vpop.xlane.xlu1 %4777 }
0x1517   :  { %v4785_v17 = vsub.f32 %v4763_v53, %v4781_v34  ;;  %v4782_v31 = vmul.f32 0.03125, %v4778_v55  ;;  %v4791_v12 = vsel %vm140_vm1, %v4787_v47, 0.0  ;;  %v4788_v59 = vmul.f32 %v4784_v52, %v4784_v52 }
0x1518   :  { %4792 = vadd.xlane.f32.xlu0 %v4791_v12 }
0x1519   :  { %v4786_v15 = vsub.f32 %v4764_v22, %v4782_v31  ;;  %v4794_v18 = vsel %vm140_vm1, %v4788_v59, 0.0  ;;  %v4789_v5 = vmul.f32 %v4785_v17, %v4785_v17 }
0x151a   :  { %4795 = vadd.xlane.f32.xlu1 %v4794_v18 }
0x151b   :  { %v4797_v50 = vsel %vm140_vm1, %v4789_v5, 0.0  ;;  %v4790_v57 = vmul.f32 %v4786_v15, %v4786_v15 }
0x151c   :  { %4798 = vadd.xlane.f32.xlu0 %v4797_v50 }
0x151d   :  { %v4800_v46 = vsel %vm140_vm1, %v4790_v57, 0.0 }
0x151e   :  { %4801 = vadd.xlane.f32.xlu1 %v4800_v46 }
0x15a5   :  { %v4793_v27 = vpop.xlane.xlu0 %4792 }
0x15a6   :  { %v4803_v2 = vmul.f32 0.03125, %v4793_v27 }
0x15a7   :  { %v4796_v54 = vpop.xlane.xlu1 %4795 }
0x15a8   :  { %v4807_v45 = vadd.f32 1e-06, %v4803_v2  ;;  %v4804_v61 = vmul.f32 0.03125, %v4796_v54 }
0x15a9   :  { %v4799_v24 = vpop.xlane.xlu0 %4798 }
0x15aa   :  { %8980 = vrsqrt.f32 %v4807_v45  ;;  %v4808_v62 = vadd.f32 1e-06, %v4804_v61  ;;  %v4805_v26 = vmul.f32 0.03125, %v4799_v24 }
0x15ab   :  { %v4802_v25 = vpop.xlane.xlu1 %4801 }
0x15ac   :  { %8982 = vrsqrt.f32 %v4808_v62  ;;  %v4809_v13 = vadd.f32 1e-06, %v4805_v26  ;;  %v4806_v7 = vmul.f32 0.03125, %v4802_v25 }
0x15ae   :  { %8984 = vrsqrt.f32 %v4809_v13  ;;  %v4810_v29 = vadd.f32 1e-06, %v4806_v7  ;;  %v8762_v13 = vld [vmem:[%s11236_s2 + $0x270] sm:$0xff]   ;;  %v8763_v7 = vld [vmem:[%s11236_s2 + $0x280] sm:$0xff]  }
0x15af   :  { %8439 = vmatprep.subr.bf16.mxu0 %v8762_v13  ;;  %8463 = vmatprep.subr.bf16.mxu1 %v8763_v7 }
0x15b0   :  { %8986 = vrsqrt.f32 %v4810_v29  ;;  %8464 = vmatpush3.bf16.msra.mxu1 %v8763_v7  ;;  %v8764_v29 = vld [vmem:[%s11236_s2 + $0x278] sm:$0xff]   ;;  %v10702_v7 = vld [vmem:[%s11237_s3 + $0x120] sm:$0xf] }
0x15b4   :  { %v8981_v0 = vpop.eup %8980 }
0x15b5   :  { %v4815_v44 = vmul.f32 %v8981_v0, %v4783_v30  ;;  %v8765_v0 = vld [vmem:[%s11236_s2 + $0x288] sm:$0xff]  }
0x15b6   :  { %v8983_v41 = vpop.eup %8982  ;;  %8465 = vmatprep.subr.bf16.mxu1 %v8765_v0 }
0x15b7   :  { %v4816_v37 = vmul.f32 %v8983_v41, %v4784_v52  ;;  %v4823_v19 = vmul.f32 %v7544_v10, %v4815_v44  ;;  %8466 = vmatpush3.bf16.msra.mxu1 %v8765_v0  ;;  %v8767_v44 = vld [vmem:[%s11236_s2 + $0x300] sm:$0xff]   ;;  %v5213_v0 = vrot.slane %v10702_v7, %v9195_v33 }
0x15b8   :  { %v8985_v60 = vpop.eup %8984  ;;  %8479 = vmatprep.subr.bf16.mxu1 %v8767_v44 }
0x15b9   :  { %v4817_v36 = vmul.f32 %v8985_v60, %v4785_v17  ;;  %v4824_v63 = vmul.f32 %v7544_v10, %v4816_v37  ;;  %v4831_v35 = vadd.f32 %v7545_v1, %v4823_v19 }
0x15ba   :  { %v8987_v20 = vpop.eup %8986 }
0x15bb   :  { %v4825_v23 = vmul.f32 %v7544_v10, %v4817_v36  ;;  %v4818_v42 = vmul.f32 %v8987_v20, %v4786_v15  ;;  %v4832_v51 = vadd.f32 %v7545_v1, %v4824_v63 }
0x15bd   :  { %v4826_v58 = vmul.f32 %v7544_v10, %v4818_v42  ;;  %v4835_v48 = vpack.c.bf16 %v4832_v51, %v4831_v35  ;;  %v4833_v9 = vadd.f32 %v7545_v1, %v4825_v23  ;;  %v8766_v10 = vld [vmem:[%s11236_s2 + $0x2b0] sm:$0xff]  }
0x15bf   :  { %8435 = vmatprep.mubr.msk.bf16.mxu0 %vm140_vm1, %v4835_v48  ;;  %v4834_v53 = vadd.f32 %v7545_v1, %v4826_v58  ;;  %v7550_v48 = vld [vmem:[%s11237_s3 + $0x110] ss:$0 sm:$0xff] }
0x15c1   :  { %v4836_v21 = vpack.c.bf16 %v4834_v53, %v4833_v9 }
0x15c3   :  { %8436 = vmatmul.mubr.msk.bf16.vlgmr.msra.gmra.mrb[128].mxu0 %vm140_vm1, %v4836_v21 }
0x15c4   :  { %8440 = vmatpush3.bf16.msra.mxu0 %v8762_v13  ;;  %v8785_v13 = vld [vmem:[%s11236_s2 + $0x2e8] sm:$0xff]  }
0x15c5   :  { %8441 = vmatprep.subr.bf16.mxu0 %v8764_v29 }
0x15c8   :  { %8442 = vmatpush3.bf16.msra.mxu0 %v8764_v29  ;;  %v4994_v29 = vrot.slane %v10702_v7, %v9192_v32 }
0x15c9   :  { %8447 = vmatprep.subr.bf16.mxu0 %v8766_v10 }
0x1696   :  { %v8437_v22 = vpop.f32.mrb[128].mxu0 }
0x1697   :  { %v4897_v40 = vpop.f32.mrb[129].mxu0  ;;  %v10541_v43 = vadd.f32 %v8437_v22, %v4843_v38  ;;  %v7551_v38 = vld [vmem:[%s11237_s3 + $0x118] ss:$0 sm:$0xff] }
0x1698   :  { %v10536_v14 = vadd.f32 %v4897_v40, %v4841_v28  ;;  %v8438_v49 = vpop.f32.mrb[130].mxu0 }
0x1699   :  { %v4900_v30 = vpop.f32.mrb[131].mxu0  ;;  %v10547_v34 = vadd.f32 %v8438_v49, %v4844_v8  ;;  %v4920_v55 = vsel %vm140_vm1, %v10541_v43, 0.0 }
0x169a   :  { %v10543_v6 = vadd.f32 %v4900_v30, %v4842_v4  ;;  %v4914_v52 = vsel %vm140_vm1, %v10536_v14, 0.0 }
0x169b   :  { %4915 = vadd.xlane.f32.xlu0 %v4914_v52  ;;  %v4923_v17 = vsel %vm140_vm1, %v10547_v34, 0.0 }
0x169c   :  { %v4917_v47 = vsel %vm140_vm1, %v10543_v6, 0.0 }
0x169d   :  { %4918 = vadd.xlane.f32.xlu1 %v4917_v47 }
0x169f   :  { %4921 = vadd.xlane.f32.xlu0 %v4920_v55 }
0x16a1   :  { %4924 = vadd.xlane.f32.xlu1 %v4923_v17 }
0x1728   :  { %v4916_v31 = vpop.xlane.xlu0 %4915 }
0x1729   :  { %v4926_v12 = vmul.f32 0.03125, %v4916_v31 }
0x172a   :  { %v4919_v59 = vpop.xlane.xlu1 %4918 }
0x172b   :  { %v4930_v15 = vsub.f32 %v10536_v14, %v4926_v12  ;;  %v4927_v18 = vmul.f32 0.03125, %v4919_v59 }
0x172c   :  { %v4922_v5 = vpop.xlane.xlu0 %4921 }
0x172d   :  { %v4931_v50 = vsub.f32 %v10543_v6, %v4927_v18  ;;  %v4928_v57 = vmul.f32 0.03125, %v4922_v5  ;;  %v4934_v46 = vmul.f32 %v4930_v15, %v4930_v15  ;;  %v8769_v18 = vld [vmem:[%s11236_s2 + $0x308] sm:$0xff]   ;;  %v8770_v5 = vld [vmem:[%s11236_s2 + $0x2f0] sm:$0xff]  }
0x172e   :  { %v4925_v39 = vpop.xlane.xlu1 %4924 }
0x172f   :  { %v4932_v3 = vsub.f32 %v10541_v43, %v4928_v57  ;;  %v4929_v27 = vmul.f32 0.03125, %v4925_v39  ;;  %v4938_v2 = vsel %vm140_vm1, %v4934_v46, 0.0  ;;  %v4935_v54 = vmul.f32 %v4931_v50, %v4931_v50  ;;  %v8772_v57 = vld [vmem:[%s11236_s2 + $0x2f8] sm:$0xff]   ;;  %v8774_v39 = vld [vmem:[%s11236_s2 + $0x2c0] sm:$0xff]  }
0x1730   :  { %4939 = vadd.xlane.f32.xlu0 %v4938_v2  ;;  %v8773_v46 = vld [vmem:[%s11236_s2 + $0x2d8] sm:$0xff]   ;;  %v8777_v2 = vld [vmem:[%s11236_s2 + $0x2a8] sm:$0xff]  }
0x1731   :  { %v4933_v45 = vsub.f32 %v10547_v34, %v4929_v27  ;;  %v4941_v61 = vsel %vm140_vm1, %v4935_v54, 0.0  ;;  %v4936_v24 = vmul.f32 %v4932_v3, %v4932_v3  ;;  %v8776_v27 = vld [vmem:[%s11236_s2 + $0x2c8] sm:$0xff]   ;;  %v8778_v54 = vld [vmem:[%s11236_s2 + $0x290] sm:$0xff]  }
0x1732   :  { %4942 = vadd.xlane.f32.xlu1 %v4941_v61  ;;  %v8780_v61 = vld [vmem:[%s11236_s2 + $0x298] sm:$0xff]  }
0x1733   :  { %v4944_v62 = vsel %vm140_vm1, %v4936_v24, 0.0  ;;  %v4937_v26 = vmul.f32 %v4933_v45, %v4933_v45  ;;  %v8781_v24 = vld [vmem:[%s11236_s2 + $0x328] sm:$0xff]  }
0x1734   :  { %4945 = vadd.xlane.f32.xlu0 %v4944_v62  ;;  %v8782_v62 = vld [vmem:[%s11236_s2 + $0x310] sm:$0xff]  }
0x1735   :  { %v4947_v25 = vsel %vm140_vm1, %v4937_v26, 0.0  ;;  %v8783_v26 = vld [vmem:[%s11236_s2 + $0x318] sm:$0xff]  }
0x1736   :  { %4948 = vadd.xlane.f32.xlu1 %v4947_v25  ;;  %v8784_v25 = vld [vmem:[%s11236_s2 + $0x2e0] sm:$0xff]  }
0x17bd   :  { %v4940_v41 = vpop.xlane.xlu0 %4939 }
0x17be   :  { %v4950_v37 = vmul.f32 0.03125, %v4940_v41 }
0x17bf   :  { %v4943_v19 = vpop.xlane.xlu1 %4942 }
0x17c0   :  { %v4954_v60 = vadd.f32 1e-06, %v4950_v37  ;;  %v4951_v1 = vmul.f32 0.03125, %v4943_v19 }
0x17c1   :  { %v4946_v36 = vpop.xlane.xlu0 %4945 }
0x17c2   :  { %8988 = vrsqrt.f32 %v4954_v60  ;;  %v4955_v63 = vadd.f32 1e-06, %v4951_v1  ;;  %v4952_v20 = vmul.f32 0.03125, %v4946_v36 }
0x17c3   :  { %v4949_v23 = vpop.xlane.xlu1 %4948 }
0x17c4   :  { %8990 = vrsqrt.f32 %v4955_v63  ;;  %v4956_v42 = vadd.f32 1e-06, %v4952_v20  ;;  %v4953_v35 = vmul.f32 0.03125, %v4949_v23 }
0x17c6   :  { %8992 = vrsqrt.f32 %v4956_v42  ;;  %v4957_v51 = vadd.f32 1e-06, %v4953_v35  ;;  %v10719_v35 = vld [vmem:[%s11237_s3 + $0x130] sm:$0xf] }
0x17c8   :  { %8994 = vrsqrt.f32 %v4957_v51 }
0x17cc   :  { %v8989_v58 = vpop.eup %8988 }
0x17cd   :  { %v4962_v9 = vmul.f32 %v8989_v58, %v4930_v15  ;;  %v8768_v15 = vld [vmem:[%s11236_s2 + $0x2b8] sm:$0xff]  }
0x17ce   :  { %v8991_v53 = vpop.eup %8990 }
0x17cf   :  { %v4970_v21 = vmul.f32 %v7550_v48, %v4962_v9  ;;  %v4963_v28 = vmul.f32 %v8991_v53, %v4931_v50  ;;  %v8771_v50 = vld [vmem:[%s11236_s2 + $0x2d0] sm:$0xff]   ;;  %v10728_v53 = vld [vmem:[%s11237_s3 + $0x128] sm:$0xf] }
0x17d0   :  { %v8993_v22 = vpop.eup %8992 }
0x17d1   :  { %v4971_v40 = vmul.f32 %v7550_v48, %v4963_v28  ;;  %v4964_v4 = vmul.f32 %v8993_v22, %v4932_v3  ;;  %v4978_v8 = vadd.f32 %v7551_v38, %v4970_v21  ;;  %v8775_v3 = vld [vmem:[%s11236_s2 + $0x2a0] sm:$0xff]  }
0x17d2   :  { %v8995_v49 = vpop.eup %8994 }
0x17d3   :  { %v4979_v30 = vadd.f32 %v7551_v38, %v4971_v40  ;;  %v4972_v52 = vmul.f32 %v7550_v48, %v4964_v4  ;;  %v4965_v47 = vmul.f32 %v8995_v49, %v4933_v45  ;;  %v8779_v45 = vld [vmem:[%s11236_s2 + $0x320] sm:$0xff]   ;;  %v5355_v40 = vrot.slane %v10719_v35, %v9195_v33 }
0x17d4   :  { %v5071_v4 = vrot.slane %v10728_v53, %v9192_v32 }
0x17d5   :  { %v10587_v55 = vpack.c.bf16 %v4979_v30, %v4978_v8  ;;  %v4973_v17 = vmul.f32 %v7550_v48, %v4965_v47  ;;  %v4980_v31 = vadd.f32 %v7551_v38, %v4972_v52 }
0x17d7   :  { %v4981_v12 = vadd.f32 %v7551_v38, %v4973_v17  ;;  %8443 = vmatprep.mubr.msk.bf16.mxu0 %vm140_vm1, %v10587_v55  ;;  %8467 = vmatprep.mubr.msk.bf16.mxu1 %vm140_vm1, %v10587_v55 }
0x17d9   :  { %v10593_v59 = vpack.c.bf16 %v4981_v12, %v4980_v31 }
0x17db   :  { %8444 = vmatmul.mubr.msk.bf16.vlgmr.msra.gmra.mrb[132].mxu0 %vm140_vm1, %v10593_v59  ;;  %8468 = vmatmul.mubr.msk.bf16.vlgmr.msra.gmra.mrb[128].mxu1 %vm140_vm1, %v10593_v59 }
0x17dc   :  { %8448 = vmatpush3.bf16.msra.mxu0 %v8766_v10  ;;  %8451 = vmatprep.mubr.msk.bf16.mxu0 %vm140_vm1, %v10587_v55 }
0x17dd   :  { %8480 = vmatpush3.bf16.msra.mxu1 %v8767_v44  ;;  %8483 = vmatprep.mubr.msk.bf16.mxu1 %vm140_vm1, %v10587_v55 }
0x17de   :  { %8449 = vmatprep.subr.bf16.mxu0 %v8768_v15  ;;  %8481 = vmatprep.subr.bf16.mxu1 %v8769_v18 }
0x17e0   :  { %8450 = vmatpush3.bf16.msra.mxu0 %v8768_v15 }
0x17e1   :  { %8482 = vmatpush3.bf16.msra.mxu1 %v8769_v18  ;;  %8455 = vmatprep.subr.bf16.mxu0 %v8770_v5 }
0x17e2   :  { %8495 = vmatprep.subr.bf16.mxu1 %v8771_v50 }
0x17e3   :  { %8452 = vmatmul.mubr.msk.bf16.vlgmr.msra.gmra.mrb[136].mxu0 %vm140_vm1, %v10593_v59 }
0x17e4   :  { %8484 = vmatmul.mubr.msk.bf16.vlgmr.msra.gmra.mrb[132].mxu1 %vm140_vm1, %v10593_v59  ;;  %8456 = vmatpush3.bf16.msra.mxu0 %v8770_v5 }
0x17e5   :  { %8459 = vmatprep.mubr.msk.bf16.mxu0 %vm140_vm1, %v10587_v55  ;;  %8496 = vmatpush3.bf16.msra.mxu1 %v8771_v50 }
0x17e6   :  { %8499 = vmatprep.mubr.msk.bf16.mxu1 %vm140_vm1, %v10587_v55  ;;  %8457 = vmatprep.subr.bf16.mxu0 %v8772_v57 }
0x17e7   :  { %8497 = vmatprep.subr.bf16.mxu1 %v8773_v46 }
0x17e8   :  { %8458 = vmatpush3.bf16.msra.mxu0 %v8772_v57 }
0x17e9   :  { %8498 = vmatpush3.bf16.msra.mxu1 %v8773_v46  ;;  %8471 = vmatprep.subr.bf16.mxu0 %v8774_v39 }
0x17ea   :  { %8511 = vmatprep.subr.bf16.mxu1 %v8775_v3 }
0x17eb   :  { %8460 = vmatmul.mubr.msk.bf16.vlgmr.msra.gmra.mrb[140].mxu0 %vm140_vm1, %v10593_v59 }
0x17ec   :  { %8500 = vmatmul.mubr.msk.bf16.vlgmr.msra.gmra.mrb[136].mxu1 %vm140_vm1, %v10593_v59  ;;  %8472 = vmatpush3.bf16.msra.mxu0 %v8774_v39 }
0x17ed   :  { %8475 = vmatprep.mubr.msk.bf16.mxu0 %vm140_vm1, %v10587_v55  ;;  %8512 = vmatpush3.bf16.msra.mxu1 %v8775_v3  ;;  %v5142_v3 = vrot.slane %v10719_v35, %v9192_v32 }
0x17ee   :  { %8515 = vmatprep.mubr.msk.bf16.mxu1 %vm140_vm1, %v10587_v55  ;;  %8473 = vmatprep.subr.bf16.mxu0 %v8776_v27 }
0x17ef   :  { %8513 = vmatprep.subr.bf16.mxu1 %v8777_v2 }
0x17f0   :  { %8474 = vmatpush3.bf16.msra.mxu0 %v8776_v27 }
0x17f1   :  { %8514 = vmatpush3.bf16.msra.mxu1 %v8777_v2  ;;  %8487 = vmatprep.subr.bf16.mxu0 %v8778_v54 }
0x17f2   :  { %8527 = vmatprep.subr.bf16.mxu1 %v8779_v45 }
0x17f3   :  { %8476 = vmatmul.mubr.msk.bf16.vlgmr.msra.gmra.mrb[144].mxu0 %vm140_vm1, %v10593_v59 }
0x17f4   :  { %8516 = vmatmul.mubr.msk.bf16.vlgmr.msra.gmra.mrb[140].mxu1 %vm140_vm1, %v10593_v59  ;;  %8488 = vmatpush3.bf16.msra.mxu0 %v8778_v54 }
0x17f5   :  { %8491 = vmatprep.mubr.msk.bf16.mxu0 %vm140_vm1, %v10587_v55  ;;  %8528 = vmatpush3.bf16.msra.mxu1 %v8779_v45 }
0x17f6   :  { %8531 = vmatprep.mubr.msk.bf16.mxu1 %vm140_vm1, %v10587_v55  ;;  %8489 = vmatprep.subr.bf16.mxu0 %v8780_v61 }
0x17f7   :  { %8529 = vmatprep.subr.bf16.mxu1 %v8781_v24 }
0x17f8   :  { %8490 = vmatpush3.bf16.msra.mxu0 %v8780_v61  ;;  %v5497_v61 = vrot.slane %v10728_v53, %v9434_v16 }
0x17f9   :  { %8530 = vmatpush3.bf16.msra.mxu1 %v8781_v24  ;;  %8503 = vmatprep.subr.bf16.mxu0 %v8782_v62 }
0x17fa   :  { %8541 = vmatprep.subr.bf16.mxu1 %v9108_v11 }
0x17fb   :  { %8492 = vmatmul.mubr.msk.bf16.vlgmr.msra.gmra.mrb[148].mxu0 %vm140_vm1, %v10593_v59 }
0x17fc   :  { %8532 = vmatmul.mubr.msk.bf16.vlgmr.msra.gmra.mrb[144].mxu1 %vm140_vm1, %v10593_v59  ;;  %8504 = vmatpush3.bf16.msra.mxu0 %v8782_v62 }
0x17fd   :  { %8507 = vmatprep.mubr.msk.bf16.mxu0 %vm140_vm1, %v10587_v55  ;;  %8505 = vmatprep.subr.bf16.mxu0 %v8783_v26 }
0x17fe   :  { %8543 = vmatprep.mubr.msk.bf16.mxu1 %vm9109_vm2, %v9108_v11 }
0x1800   :  { %8506 = vmatpush3.bf16.msra.mxu0 %v8783_v26 }
0x1801   :  { %8519 = vmatprep.subr.bf16.mxu0 %v8784_v25 }
0x1803   :  { %8508 = vmatmul.mubr.msk.bf16.vlgmr.msra.gmra.mrb[152].mxu0 %vm140_vm1, %v10593_v59 }
0x1804   :  { %8520 = vmatpush3.bf16.msra.mxu0 %v8784_v25  ;;  %8523 = vmatprep.mubr.msk.bf16.mxu0 %vm140_vm1, %v10587_v55 }
0x1805   :  { %8521 = vmatprep.subr.bf16.mxu0 %v8785_v13 }
0x1808   :  { %8522 = vmatpush3.bf16.msra.mxu0 %v8785_v13 }
0x1809   :  { %8535 = vmatprep.subr.bf16.mxu0 %v9108_v11 }
0x180b   :  { %8524 = vmatmul.mubr.msk.bf16.vlgmr.msra.gmra.mrb[156].mxu0 %vm140_vm1, %v10593_v59 }
0x180c   :  { %8537 = vmatprep.mubr.msk.bf16.mxu0 %vm9109_vm2, %v9108_v11 }
0x18ae   :  { %v8445_v10 = vpop.f32.mrb[132].mxu0  ;;  %v8469_v44 = vpop.f32.mrb[128].mxu1 }
0x18af   :  { %v5047_v41 = vpop.f32.mrb[133].mxu0  ;;  %v5260_v37 = vpop.f32.mrb[129].mxu1  ;;  %v10708_v1 = vadd.f32 %v8445_v10, %v4994_v29  ;;  %v10710_v36 = vadd.f32 %v8469_v44, %v5213_v0 }
0x18b0   :  { %v8446_v19 = vpop.f32.mrb[134].mxu0  ;;  %v8470_v60 = vpop.f32.mrb[130].mxu1  ;;  %v5048_v51 = vadd.f32 %v5047_v41, %v4994_v29  ;;  %v10721_v58 = vadd.f32 %v5260_v37, %v5213_v0 }
0x18b1   :  { %v10712_v63 = vadd.f32 %v8446_v19, %v4994_v29  ;;  %v10714_v20 = vadd.f32 %v8470_v60, %v5213_v0  ;;  %v5050_v23 = vpop.f32.mrb[135].mxu0  ;;  %v5263_v42 = vpop.f32.mrb[131].mxu1 }
0x18b2   :  { %v5051_v48 = vadd.f32 %v5050_v23, %v4994_v29  ;;  %v10723_v9 = vadd.f32 %v5263_v42, %v5213_v0 }
0x18b3   :  { %v5063_v21 = vpack.c.bf16 %v10712_v63, %v10708_v1  ;;  %v5276_v28 = vpack.c.bf16 %v10714_v20, %v10710_v36 }
0x18b4   :  { %v5062_v22 = vpack.c.bf16 %v5051_v48, %v5048_v51  ;;  %v5275_v38 = vpack.c.bf16 %v10723_v9, %v10721_v58 }
0x18b6   :  { %v8453_v49 = vpop.f32.mrb[136].mxu0 }
0x18b7   :  { %v8485_v8 = vpop.f32.mrb[132].mxu1  ;;  %v5118_v30 = vpop.f32.mrb[137].mxu0  ;;  %v10742_v17 = vadd.f32 %v8453_v49, %v5071_v4  ;;  %v5284_v49 = vrot.slane %v10728_v53, %v9195_v33 }
0x18b8   :  { %v10740_v52 = vadd.f32 %v8485_v8, %v5355_v40  ;;  %v5402_v47 = vpop.f32.mrb[133].mxu1  ;;  %v8454_v55 = vpop.f32.mrb[138].mxu0  ;;  %v5119_v18 = vadd.f32 %v5118_v30, %v5071_v4  ;;  %v5639_v30 = vrot.slane %v10702_v7, %v9457_v56 }
0x18b9   :  { %v10744_v31 = vadd.f32 %v5402_v47, %v5355_v40  ;;  %v10746_v12 = vadd.f32 %v8454_v55, %v5071_v4  ;;  %v8486_v59 = vpop.f32.mrb[134].mxu1  ;;  %v5121_v15 = vpop.f32.mrb[139].mxu0 }
0x18ba   :  { %v10748_v5 = vadd.f32 %v8486_v59, %v5355_v40  ;;  %v5122_v50 = vadd.f32 %v5121_v15, %v5071_v4  ;;  %v5405_v57 = vpop.f32.mrb[135].mxu1 }
0x18bb   :  { %v5134_v46 = vpack.c.bf16 %v10746_v12, %v10742_v17  ;;  %v10752_v39 = vadd.f32 %v5405_v57, %v5355_v40 }
0x18bc   :  { %v5418_v27 = vpack.c.bf16 %v10748_v5, %v10740_v52  ;;  %v5133_v2 = vpack.c.bf16 %v5122_v50, %v5119_v18 }
0x18bd   :  { %v5417_v54 = vpack.c.bf16 %v10752_v39, %v10744_v31 }
0x18be   :  { %v8461_v45 = vpop.f32.mrb[140].mxu0  ;;  %v5849_v24 = vsel %vm1137_vm3, %v5133_v2, 0 }
0x18bf   :  { %v10763_v62 = vadd.f32 %v8461_v45, %v5142_v3  ;;  %v8501_v26 = vpop.f32.mrb[136].mxu1  ;;  %v5189_v25 = vpop.f32.mrb[141].mxu0  ;;  %8536 = vmatpush3.bf16.xpose.msra.mxu0 %v5849_v24 }
0x18c0   :  { %v5544_v13 = vpop.f32.mrb[137].mxu1  ;;  %v8462_v32 = vpop.f32.mrb[142].mxu0  ;;  %8547 = vmatprep.subr.bf16.mxu0 %v9108_v11  ;;  %v10768_v44 = vadd.f32 %v8501_v26, %v5497_v61  ;;  %v5190_v41 = vadd.f32 %v5189_v25, %v5142_v3 }
0x18c1   :  { %v10766_v29 = vadd.f32 %v8462_v32, %v5142_v3  ;;  %v8502_v0 = vpop.f32.mrb[138].mxu1  ;;  %v5192_v10 = vpop.f32.mrb[143].mxu0  ;;  %v5545_v23 = vadd.f32 %v5544_v13, %v5497_v61 }
0x18c2   :  { %v10770_v37 = vadd.f32 %v8502_v0, %v5497_v61  ;;  %v5193_v19 = vadd.f32 %v5192_v10, %v5142_v3  ;;  %v5547_v60 = vpop.f32.mrb[139].mxu1  ;;  %v5781_v0 = vrot.slane %v10719_v35, %v9457_v56 }
0x18c3   :  { %v5205_v42 = vpack.c.bf16 %v10766_v29, %v10763_v62  ;;  %v5548_v51 = vadd.f32 %v5547_v60, %v5497_v61 }
0x18c4   :  { %v5560_v48 = vpack.c.bf16 %v10770_v37, %v10768_v44  ;;  %v5204_v40 = vpack.c.bf16 %v5193_v19, %v5190_v41  ;;  %v5426_v41 = vrot.slane %v10702_v7, %v9434_v16 }
0x18c5   :  { %v5559_v4 = vpack.c.bf16 %v5548_v51, %v5545_v23 }
0x18c6   :  { %v8477_v8 = vpop.f32.mrb[144].mxu0  ;;  %8538 = vmatmul.mubr.msk.bf16.vlgmr.msra.gmra.mrb[160].mxu0 %vm1137_vm3, %v5062_v22  ;;  %8542 = vmatpush3.bf16.msra.mxu1 %v5204_v40  ;;  %v6555_v1 = vsel %vm1137_vm3, %v5560_v48, 0 }
0x18c7   :  { %v8517_v47 = vpop.f32.mrb[140].mxu1  ;;  %v5331_v55 = vpop.f32.mrb[145].mxu0  ;;  %8549 = vmatprep.mubr.msk.bf16.mxu0 %vm9109_vm2, %v9108_v11  ;;  %8553 = vmatprep.subr.bf16.mxu1 %v9108_v11  ;;  %v10784_v18 = vadd.f32 %v8477_v8, %v5284_v49 }
0x18c8   :  { %v5686_v59 = vpop.f32.mrb[141].mxu1  ;;  %v8478_v15 = vpop.f32.mrb[146].mxu0  ;;  %v10788_v3 = vadd.f32 %v8517_v47, %v5639_v30  ;;  %v5332_v2 = vadd.f32 %v5331_v55, %v5284_v49 }
0x18c9   :  { %v10786_v50 = vadd.f32 %v8478_v15, %v5284_v49  ;;  %v8518_v33 = vpop.f32.mrb[142].mxu1  ;;  %v5334_v57 = vpop.f32.mrb[147].mxu0  ;;  %v10792_v24 = vadd.f32 %v5686_v59, %v5639_v30 }
0x18ca   :  { %v10790_v22 = vadd.f32 %v8518_v33, %v5639_v30  ;;  %v5335_v45 = vadd.f32 %v5334_v57, %v5284_v49  ;;  %v5689_v61 = vpop.f32.mrb[143].mxu1 }
0x18cb   :  { %v5347_v26 = vpack.c.bf16 %v10786_v50, %v10784_v18  ;;  %v5690_v25 = vadd.f32 %v5689_v61, %v5639_v30 }
0x18cc   :  { %v5702_v13 = vpack.c.bf16 %v10790_v22, %v10788_v3  ;;  %v5346_v32 = vpack.c.bf16 %v5335_v45, %v5332_v2 }
0x18cd   :  { %v5701_v10 = vpack.c.bf16 %v5690_v25, %v10792_v24  ;;  %v5568_v24 = vrot.slane %v10719_v35, %v9434_v16 }
0x18ce   :  { %v8493_v19 = vpop.f32.mrb[148].mxu0  ;;  %v5964_v60 = vsel %vm1137_vm3, %v5346_v32, 0 }
0x18cf   :  { %v8533_v23 = vpop.f32.mrb[144].mxu1  ;;  %v5473_v51 = vpop.f32.mrb[149].mxu0  ;;  %8548 = vmatpush3.bf16.xpose.msra.mxu0 %v5964_v60  ;;  %v5482_v30 = vadd.f32 %v8493_v19, %v5426_v41 }
0x18d0   :  { %v10804_v40 = vadd.f32 %v8533_v23, %v5781_v0  ;;  %v5828_v49 = vpop.f32.mrb[145].mxu1  ;;  %v8494_v8 = vpop.f32.mrb[150].mxu0  ;;  %8559 = vmatprep.subr.bf16.mxu0 %v9108_v11  ;;  %v5474_v33 = vadd.f32 %v5473_v51, %v5426_v41 }
0x18d1   :  { %v10807_v47 = vadd.f32 %v5828_v49, %v5781_v0  ;;  %v5485_v55 = vadd.f32 %v8494_v8, %v5426_v41  ;;  %v8534_v59 = vpop.f32.mrb[146].mxu1  ;;  %v5476_v15 = vpop.f32.mrb[151].mxu0 }
0x18d2   :  { %v10809_v7 = vadd.f32 %v8534_v59, %v5781_v0  ;;  %v5477_v57 = vadd.f32 %v5476_v15, %v5426_v41  ;;  %v5831_v2 = vpop.f32.mrb[147].mxu1  ;;  %v6079_v41 = vsel %vm1137_vm3, %v5559_v4, 0  ;;  %v5710_v4 = vrot.slane %v10728_v53, %v9457_v56 }
0x18d3   :  { %v5489_v45 = vpack.c.bf16 %v5485_v55, %v5482_v30  ;;  %v10811_v61 = vadd.f32 %v5831_v2, %v5781_v0  ;;  %v6325_v56 = vsel %vm1137_vm3, %v5134_v46, 0  ;;  %v6440_v53 = vsel %vm1137_vm3, %v5347_v26, 0 }
0x18d4   :  { %v5844_v25 = vpack.c.bf16 %v10809_v7, %v10804_v40  ;;  %v5488_v32 = vpack.c.bf16 %v5477_v57, %v5474_v33 }
0x18d5   :  { %v5843_v19 = vpack.c.bf16 %v10811_v61, %v10807_v47 }
0x18d6   :  { %v8509_v60 = vpop.f32.mrb[152].mxu0  ;;  %8550 = vmatmul.mubr.msk.bf16.vlgmr.msra.gmra.mrb[164].mxu0 %vm1137_vm3, %v5275_v38 }
0x18d7   :  { %v10824_v0 = vadd.f32 %v8509_v60, %v5568_v24  ;;  %v5615_v23 = vpop.f32.mrb[153].mxu0  ;;  %8560 = vmatpush3.bf16.xpose.msra.mxu0 %v6079_v41  ;;  %8561 = vmatprep.mubr.msk.bf16.mxu0 %vm9109_vm2, %v9108_v11 }
0x18d8   :  { %v10828_v16 = vadd.f32 %v5615_v23, %v5568_v24  ;;  %v8510_v35 = vpop.f32.mrb[154].mxu0  ;;  %8571 = vmatprep.subr.bf16.mxu0 %v9108_v11 }
0x18d9   :  { %v10831_v51 = vadd.f32 %v8510_v35, %v5568_v24  ;;  %v5618_v49 = vpop.f32.mrb[155].mxu0 }
0x18da   :  { %v10833_v58 = vadd.f32 %v5618_v49, %v5568_v24 }
0x18db   :  { %v5631_v9 = vpack.c.bf16 %v10831_v51, %v10824_v0 }
0x18dc   :  { %v5630_v38 = vpack.c.bf16 %v10833_v58, %v10828_v16 }
0x18de   :  { %v8525_v8 = vpop.f32.mrb[156].mxu0  ;;  %8562 = vmatmul.mubr.msk.bf16.vlgmr.msra.gmra.mrb[168].mxu0 %vm1137_vm3, %v5488_v32 }
0x18df   :  { %v5757_v30 = vpop.f32.mrb[157].mxu0  ;;  %8573 = vmatprep.mubr.msk.bf16.mxu0 %vm9109_vm2, %v9108_v11  ;;  %v5766_v59 = vadd.f32 %v8525_v8, %v5710_v4 }
0x18e0   :  { %v8526_v55 = vpop.f32.mrb[158].mxu0  ;;  %v5758_v57 = vadd.f32 %v5757_v30, %v5710_v4 }
0x18e1   :  { %v5769_v15 = vadd.f32 %v8526_v55, %v5710_v4  ;;  %v5760_v33 = vpop.f32.mrb[159].mxu0 }
0x18e2   :  { %v5761_v2 = vadd.f32 %v5760_v33, %v5710_v4 }
0x18e3   :  { %v5773_v24 = vpack.c.bf16 %v5769_v15, %v5766_v59 }
0x18e4   :  { %v5772_v60 = vpack.c.bf16 %v5761_v2, %v5758_v57 }
0x18e5   :  { %v6670_v63 = vsel %vm1137_vm3, %v5773_v24, 0 }
0x18e6   :  { %v6194_v41 = vsel %vm1137_vm3, %v5772_v60, 0 }
0x18e7   :  { %8572 = vmatpush3.bf16.xpose.msra.mxu0 %v6194_v41 }
0x18e8   :  { %8583 = vmatprep.subr.bf16.mxu0 %v9108_v11 }
0x18ee   :  { %8574 = vmatmul.mubr.msk.bf16.vlgmr.msra.gmra.mrb[172].mxu0 %vm1137_vm3, %v5701_v10 }
0x18ef   :  { %8584 = vmatpush3.bf16.xpose.msra.mxu0 %v6325_v56  ;;  %8585 = vmatprep.mubr.msk.bf16.mxu0 %vm9109_vm2, %v9108_v11 }
0x18f0   :  { %8595 = vmatprep.subr.bf16.mxu0 %v9108_v11 }
0x18f6   :  { %8586 = vmatmul.mubr.msk.bf16.vlgmr.msra.gmra.mrb[176].mxu0 %vm1137_vm3, %v5063_v21 }
0x18f7   :  { %8596 = vmatpush3.bf16.xpose.msra.mxu0 %v6440_v53  ;;  %8597 = vmatprep.mubr.msk.bf16.mxu0 %vm9109_vm2, %v9108_v11 }
0x18f8   :  { %8607 = vmatprep.subr.bf16.mxu0 %v9108_v11 }
0x18fe   :  { %8598 = vmatmul.mubr.msk.bf16.vlgmr.msra.gmra.mrb[180].mxu0 %vm1137_vm3, %v5276_v28 }
0x18ff   :  { %8608 = vmatpush3.bf16.xpose.msra.mxu0 %v6555_v1  ;;  %8609 = vmatprep.mubr.msk.bf16.mxu0 %vm9109_vm2, %v9108_v11 }
0x1900   :  { %8619 = vmatprep.subr.bf16.mxu0 %v9108_v11 }
0x1906   :  { %8610 = vmatmul.mubr.msk.bf16.vlgmr.msra.gmra.mrb[184].mxu0 %vm1137_vm3, %v5489_v45 }
0x1907   :  { %8620 = vmatpush3.bf16.xpose.msra.mxu0 %v6670_v63  ;;  %8621 = vmatprep.mubr.msk.bf16.mxu0 %vm9109_vm2, %v9108_v11 }
0x190e   :  { %8622 = vmatmul.mubr.msk.bf16.vlgmr.msra.gmra.mrb[188].mxu0 %vm1137_vm3, %v5702_v13 }
0x1999   :  { %v10884_v36 = vpop.f32.mrb[160].mxu0 }
0x199a   :  { %v8539_v20 = vpop.f32.mrb[161].mxu0  ;;  %v5892_v21 = vsel %vm1185_vm4, %v10884_v36, -inf }
0x199b   :  { %5893 = vmax.xlane.f32.xlu0 %v5892_v21  ;;  %v10888_v28 = vpop.f32.mrb[162].mxu0 }
0x199c   :  { %v8540_v17 = vpop.f32.mrb[163].mxu0  ;;  %v5895_v12 = vsel %vm1185_vm4, %v10888_v28, -inf }
0x199d   :  { %5896 = vmax.xlane.f32.xlu1 %v5895_v12 }
0x19a9   :  { %v10892_v46 = vpop.f32.mrb[164].mxu0 }
0x19aa   :  { %v8551_v44 = vpop.f32.mrb[165].mxu0  ;;  %v6007_v37 = vsel %vm1185_vm4, %v10892_v46, -inf }
0x19ab   :  { %6008 = vmax.xlane.f32.xlu0 %v6007_v37  ;;  %v10896_v48 = vpop.f32.mrb[166].mxu0 }
0x19ac   :  { %v8552_v18 = vpop.f32.mrb[167].mxu0  ;;  %v6010_v50 = vsel %vm1185_vm4, %v10896_v48, -inf }
0x19ad   :  { %6011 = vmax.xlane.f32.xlu1 %v6010_v50 }
0x19b1   :  { %v10900_v3 = vpop.f32.mrb[168].mxu0 }
0x19b2   :  { %v8563_v22 = vpop.f32.mrb[169].mxu0  ;;  %v6122_v26 = vsel %vm1185_vm4, %v10900_v3, -inf }
0x19b3   :  { %6123 = vmax.xlane.f32.xlu0 %v6122_v26  ;;  %v10904_v13 = vpop.f32.mrb[170].mxu0 }
0x19b4   :  { %v8564_v10 = vpop.f32.mrb[171].mxu0  ;;  %v6125_v45 = vsel %vm1185_vm4, %v10904_v13, -inf }
0x19b5   :  { %6126 = vmax.xlane.f32.xlu1 %v6125_v45 }
0x19c1   :  { %v10908_v32 = vpop.f32.mrb[172].mxu0 }
0x19c2   :  { %v8575_v23 = vpop.f32.mrb[173].mxu0  ;;  %v6237_v35 = vsel %vm1185_vm4, %v10908_v32, -inf }
0x19c3   :  { %6238 = vmax.xlane.f32.xlu0 %v6237_v35  ;;  %v10912_v49 = vpop.f32.mrb[174].mxu0 }
0x19c4   :  { %v8576_v4 = vpop.f32.mrb[175].mxu0  ;;  %v6240_v8 = vsel %vm1185_vm4, %v10912_v49, -inf }
0x19c5   :  { %6241 = vmax.xlane.f32.xlu1 %v6240_v8 }
0x19c9   :  { %v10916_v30 = vpop.f32.mrb[176].mxu0 }
0x19ca   :  { %v8587_v55 = vpop.f32.mrb[177].mxu0  ;;  %v6368_v59 = vsel %vm1185_vm4, %v10916_v30, -inf }
0x19cb   :  { %6369 = vmax.xlane.f32.xlu0 %v6368_v59  ;;  %v10920_v15 = vpop.f32.mrb[178].mxu0 }
0x19cc   :  { %v8588_v33 = vpop.f32.mrb[179].mxu0  ;;  %v6371_v57 = vsel %vm1185_vm4, %v10920_v15, -inf }
0x19cd   :  { %6372 = vmax.xlane.f32.xlu1 %v6371_v57 }
0x19d1   :  { %v10924_v2 = vpop.f32.mrb[180].mxu0 }
0x19d2   :  { %v8599_v24 = vpop.f32.mrb[181].mxu0  ;;  %v6483_v60 = vsel %vm1185_vm4, %v10924_v2, -inf }
0x19d3   :  { %6484 = vmax.xlane.f32.xlu0 %v6483_v60  ;;  %v10928_v41 = vpop.f32.mrb[182].mxu0 }
0x19d4   :  { %v8600_v56 = vpop.f32.mrb[183].mxu0  ;;  %v6486_v53 = vsel %vm1185_vm4, %v10928_v41, -inf }
0x19d5   :  { %6487 = vmax.xlane.f32.xlu1 %v6486_v53 }
0x19d9   :  { %v10932_v1 = vpop.f32.mrb[184].mxu0 }
0x19da   :  { %v8611_v63 = vpop.f32.mrb[185].mxu0  ;;  %v6598_v20 = vsel %vm1185_vm4, %v10932_v1, -inf }
0x19db   :  { %6599 = vmax.xlane.f32.xlu0 %v6598_v20  ;;  %v10936_v21 = vpop.f32.mrb[186].mxu0 }
0x19dc   :  { %v8612_v17 = vpop.f32.mrb[187].mxu0  ;;  %v6601_v12 = vsel %vm1185_vm4, %v10936_v21, -inf }
0x19dd   :  { %6602 = vmax.xlane.f32.xlu1 %v6601_v12 }
0x19e1   :  { %v10940_v44 = vpop.f32.mrb[188].mxu0 }
0x19e2   :  { %v8623_v37 = vpop.f32.mrb[189].mxu0  ;;  %v6713_v18 = vsel %vm1185_vm4, %v10940_v44, -inf }
0x19e3   :  { %6714 = vmax.xlane.f32.xlu0 %v6713_v18  ;;  %v10944_v50 = vpop.f32.mrb[190].mxu0 }
0x19e4   :  { %v8624_v22 = vpop.f32.mrb[191].mxu0  ;;  %v6716_v26 = vsel %vm1185_vm4, %v10944_v50, -inf }
0x19e5   :  { %6717 = vmax.xlane.f32.xlu1 %v6716_v26 }
0x1a28   :  { %v5894_v10 = vpop.xlane.xlu0 %5893 }
0x1a29   :  { %v5898_v45 = vsub.f32 %v10884_v36, %v5894_v10 }
0x1a2a   :  { %v5897_v23 = vpop.xlane.xlu1 %5896 }
0x1a2b   :  { %v5900_v35 = vmul.f32 1.442695, %v5898_v45  ;;  %v5899_v4 = vsub.f32 %v10888_v28, %v5897_v23 }
0x1a2d   :  { %8996 = vpow2.f32 %v5900_v35  ;;  %v5902_v8 = vmul.f32 1.442695, %v5899_v4 }
0x1a2f   :  { %8998 = vpow2.f32 %v5902_v8 }
0x1a37   :  { %v10950_v55 = vpop.eup %8996 }
0x1a38   :  { %v6009_v59 = vpop.xlane.xlu0 %6008  ;;  %v5904_v33 = vsel %vm1185_vm4, %v10950_v55, 0.0 }
0x1a39   :  { %v10954_v57 = vpop.eup %8998  ;;  %v6013_v24 = vsub.f32 %v10892_v46, %v6009_v59  ;;  %5905 = vadd.xlane.f32.xlu0 %v5904_v33 }
0x1a3a   :  { %v6012_v60 = vpop.xlane.xlu1 %6011  ;;  %v5907_v36 = vsel %vm1185_vm4, %v10954_v57, 0.0 }
0x1a3b   :  { %v6015_v56 = vmul.f32 1.442695, %v6013_v24  ;;  %v6014_v28 = vsub.f32 %v10896_v48, %v6012_v60  ;;  %5908 = vadd.xlane.f32.xlu1 %v5907_v36 }
0x1a3d   :  { %9000 = vpow2.f32 %v6015_v56  ;;  %v6017_v53 = vmul.f32 1.442695, %v6014_v28 }
0x1a3f   :  { %9002 = vpow2.f32 %v6017_v53 }
0x1a40   :  { %v6124_v63 = vpop.xlane.xlu0 %6123 }
0x1a41   :  { %v6128_v20 = vsub.f32 %v10900_v3, %v6124_v63 }
0x1a42   :  { %v6127_v17 = vpop.xlane.xlu1 %6126 }
0x1a43   :  { %v6130_v12 = vmul.f32 1.442695, %v6128_v20  ;;  %v6129_v37 = vsub.f32 %v10904_v13, %v6127_v17 }
0x1a45   :  { %9004 = vpow2.f32 %v6130_v12  ;;  %v6132_v46 = vmul.f32 1.442695, %v6129_v37 }
0x1a47   :  { %v10962_v18 = vpop.eup %9000  ;;  %9006 = vpow2.f32 %v6132_v46 }
0x1a48   :  { %v6019_v22 = vsel %vm1185_vm4, %v10962_v18, 0.0 }
0x1a49   :  { %v10966_v48 = vpop.eup %9002  ;;  %6020 = vadd.xlane.f32.xlu0 %v6019_v22 }
0x1a4a   :  { %v6022_v26 = vsel %vm1185_vm4, %v10966_v48, 0.0 }
0x1a4b   :  { %6023 = vadd.xlane.f32.xlu1 %v6022_v26 }
0x1a4f   :  { %v10970_v3 = vpop.eup %9004 }
0x1a50   :  { %v6239_v10 = vpop.xlane.xlu0 %6238  ;;  %v6134_v13 = vsel %vm1185_vm4, %v10970_v3, 0.0 }
0x1a51   :  { %v10974_v45 = vpop.eup %9006  ;;  %v6243_v23 = vsub.f32 %v10908_v32, %v6239_v10  ;;  %6135 = vadd.xlane.f32.xlu0 %v6134_v13 }
0x1a52   :  { %v6242_v35 = vpop.xlane.xlu1 %6241  ;;  %v6137_v4 = vsel %vm1185_vm4, %v10974_v45, 0.0 }
0x1a53   :  { %v6245_v8 = vmul.f32 1.442695, %v6243_v23  ;;  %v6244_v59 = vsub.f32 %v10912_v49, %v6242_v35  ;;  %6138 = vadd.xlane.f32.xlu1 %v6137_v4 }
0x1a55   :  { %9008 = vpow2.f32 %v6245_v8  ;;  %v6247_v33 = vmul.f32 1.442695, %v6244_v59 }
0x1a57   :  { %9010 = vpow2.f32 %v6247_v33 }
0x1a58   :  { %v6370_v24 = vpop.xlane.xlu0 %6369 }
0x1a59   :  { %v6374_v60 = vsub.f32 %v10916_v30, %v6370_v24 }
0x1a5a   :  { %v6373_v36 = vpop.xlane.xlu1 %6372 }
0x1a5b   :  { %v6376_v56 = vmul.f32 1.442695, %v6374_v60  ;;  %v6375_v28 = vsub.f32 %v10920_v15, %v6373_v36 }
0x1a5d   :  { %9012 = vpow2.f32 %v6376_v56  ;;  %v6378_v32 = vmul.f32 1.442695, %v6375_v28 }
0x1a5f   :  { %v10982_v53 = vpop.eup %9008  ;;  %9014 = vpow2.f32 %v6378_v32 }
0x1a60   :  { %v6485_v63 = vpop.xlane.xlu0 %6484  ;;  %v6249_v49 = vsel %vm1185_vm4, %v10982_v53, 0.0 }
0x1a61   :  { %v10986_v20 = vpop.eup %9010  ;;  %v6489_v17 = vsub.f32 %v10924_v2, %v6485_v63  ;;  %6250 = vadd.xlane.f32.xlu0 %v6249_v49 }
0x1a62   :  { %v6488_v12 = vpop.xlane.xlu1 %6487  ;;  %v6252_v30 = vsel %vm1185_vm4, %v10986_v20, 0.0 }
0x1a63   :  { %v6491_v37 = vmul.f32 1.442695, %v6489_v17  ;;  %v6490_v15 = vsub.f32 %v10928_v41, %v6488_v12  ;;  %6253 = vadd.xlane.f32.xlu1 %v6252_v30 }
0x1a65   :  { %9016 = vpow2.f32 %v6491_v37  ;;  %v6493_v46 = vmul.f32 1.442695, %v6490_v15 }
0x1a67   :  { %v10992_v22 = vpop.eup %9012  ;;  %9018 = vpow2.f32 %v6493_v46 }
0x1a68   :  { %v6600_v26 = vpop.xlane.xlu0 %6599  ;;  %v6380_v10 = vsel %vm1185_vm4, %v10992_v22, 0.0 }
0x1a69   :  { %v10996_v13 = vpop.eup %9014  ;;  %v6604_v2 = vsub.f32 %v10932_v1, %v6600_v26  ;;  %6381 = vadd.xlane.f32.xlu0 %v6380_v10 }
0x1a6a   :  { %v6603_v23 = vpop.xlane.xlu1 %6602  ;;  %v6383_v35 = vsel %vm1185_vm4, %v10996_v13, 0.0 }
0x1a6b   :  { %v6606_v41 = vmul.f32 1.442695, %v6604_v2  ;;  %v6605_v4 = vsub.f32 %v10936_v21, %v6603_v23  ;;  %6384 = vadd.xlane.f32.xlu1 %v6383_v35 }
0x1a6d   :  { %9020 = vpow2.f32 %v6606_v41  ;;  %v6608_v8 = vmul.f32 1.442695, %v6605_v4 }
0x1a6f   :  { %v11002_v59 = vpop.eup %9016  ;;  %9022 = vpow2.f32 %v6608_v8 }
0x1a70   :  { %v6715_v33 = vpop.xlane.xlu0 %6714  ;;  %v6495_v24 = vsel %vm1185_vm4, %v11002_v59, 0.0 }
0x1a71   :  { %v11006_v60 = vpop.eup %9018  ;;  %v6719_v1 = vsub.f32 %v10940_v44, %v6715_v33  ;;  %6496 = vadd.xlane.f32.xlu0 %v6495_v24 }
0x1a72   :  { %v6718_v36 = vpop.xlane.xlu1 %6717  ;;  %v6498_v56 = vsel %vm1185_vm4, %v11006_v60, 0.0 }
0x1a73   :  { %v6721_v21 = vmul.f32 1.442695, %v6719_v1  ;;  %v6720_v28 = vsub.f32 %v10944_v50, %v6718_v36  ;;  %6499 = vadd.xlane.f32.xlu1 %v6498_v56 }
0x1a75   :  { %9024 = vpow2.f32 %v6721_v21  ;;  %v6723_v32 = vmul.f32 1.442695, %v6720_v28 }
0x1a77   :  { %v11012_v63 = vpop.eup %9020  ;;  %9026 = vpow2.f32 %v6723_v32 }
0x1a78   :  { %v6610_v49 = vsel %vm1185_vm4, %v11012_v63, 0.0 }
0x1a79   :  { %v11016_v17 = vpop.eup %9022  ;;  %6611 = vadd.xlane.f32.xlu0 %v6610_v49 }
0x1a7a   :  { %v6613_v44 = vsel %vm1185_vm4, %v11016_v17, 0.0 }
0x1a7b   :  { %6614 = vadd.xlane.f32.xlu1 %v6613_v44 }
0x1a7f   :  { %v11020_v12 = vpop.eup %9024 }
0x1a80   :  { %v6725_v50 = vsel %vm1185_vm4, %v11020_v12, 0.0 }
0x1a81   :  { %v11024_v30 = vpop.eup %9026  ;;  %6726 = vadd.xlane.f32.xlu0 %v6725_v50 }
0x1a82   :  { %v6728_v37 = vsel %vm1185_vm4, %v11024_v30, 0.0 }
0x1a83   :  { %6729 = vadd.xlane.f32.xlu1 %v6728_v37 }
0x1ac6   :  { %v5906_v15 = vpop.xlane.xlu0 %5905 }
0x1ac7   :  { %9028 = vrcp.f32 %v5906_v15 }
0x1ac8   :  { %v5909_v46 = vpop.xlane.xlu1 %5908 }
0x1ac9   :  { %9030 = vrcp.f32 %v5909_v46 }
0x1ad1   :  { %v9029_v26 = vpop.eup %9028 }
0x1ad2   :  { %v5911_v2 = vmul.f32 %v9029_v26, %v10950_v55 }
0x1ad3   :  { %v9031_v10 = vpop.eup %9030 }
0x1ad4   :  { %v5913_v23 = vmul.f32 %v9031_v10, %v10954_v57 }
0x1ad6   :  { %v6021_v35 = vpop.xlane.xlu0 %6020  ;;  %v5914_v41 = vpack.c.bf16 %v5913_v23, %v5911_v2 }
0x1ad7   :  { %9032 = vrcp.f32 %v6021_v35 }
0x1ad8   :  { %8544 = vmatmul.mubr.msk.bf16.vlgmr.msra.gmra.mrb[148].mxu1 %vm1185_vm4, %v5914_v41  ;;  %v6024_v4 = vpop.xlane.xlu1 %6023 }
0x1ad9   :  { %8554 = vmatpush3.bf16.msra.mxu1 %v5417_v54  ;;  %9034 = vrcp.f32 %v6024_v4  ;;  %8555 = vmatprep.mubr.msk.bf16.mxu1 %vm9109_vm2, %v9108_v11 }
0x1ada   :  { %8565 = vmatprep.subr.bf16.mxu1 %v9108_v11 }
0x1ade   :  { %v6136_v8 = vpop.xlane.xlu0 %6135 }
0x1adf   :  { %9036 = vrcp.f32 %v6136_v8 }
0x1ae0   :  { %v6139_v55 = vpop.xlane.xlu1 %6138 }
0x1ae1   :  { %v9033_v57 = vpop.eup %9032  ;;  %9038 = vrcp.f32 %v6139_v55 }
0x1ae2   :  { %v6026_v24 = vmul.f32 %v9033_v57, %v10962_v18 }
0x1ae3   :  { %v9035_v33 = vpop.eup %9034 }
0x1ae4   :  { %v6028_v1 = vmul.f32 %v9035_v33, %v10966_v48 }
0x1ae6   :  { %v6029_v36 = vpack.c.bf16 %v6028_v1, %v6026_v24 }
0x1ae8   :  { %8556 = vmatmul.mubr.msk.bf16.vlgmr.msra.gmra.mrb[152].mxu1 %vm1185_vm4, %v6029_v36 }
0x1ae9   :  { %v9037_v31 = vpop.eup %9036  ;;  %8566 = vmatpush3.bf16.msra.mxu1 %v5630_v38  ;;  %8567 = vmatprep.mubr.msk.bf16.mxu1 %vm9109_vm2, %v9108_v11 }
0x1aea   :  { %8577 = vmatprep.subr.bf16.mxu1 %v9108_v11  ;;  %v6141_v54 = vmul.f32 %v9037_v31, %v10970_v3 }
0x1aeb   :  { %v9039_v39 = vpop.eup %9038 }
0x1aec   :  { %v6143_v18 = vmul.f32 %v9039_v39, %v10974_v45 }
0x1aee   :  { %v6251_v56 = vpop.xlane.xlu0 %6250  ;;  %v6144_v48 = vpack.c.bf16 %v6143_v18, %v6141_v54 }
0x1aef   :  { %9040 = vrcp.f32 %v6251_v56 }
0x1af0   :  { %8568 = vmatmul.mubr.msk.bf16.vlgmr.msra.gmra.mrb[156].mxu1 %vm1185_vm4, %v6144_v48  ;;  %v6254_v21 = vpop.xlane.xlu1 %6253 }
0x1af1   :  { %8578 = vmatpush3.bf16.msra.mxu1 %v5843_v19  ;;  %9042 = vrcp.f32 %v6254_v21  ;;  %8579 = vmatprep.mubr.msk.bf16.mxu1 %vm9109_vm2, %v9108_v11  ;;  %v8786_v21 = vld [vmem:[%s11236_s2 + $0x330] sm:$0xff]  }
0x1af2   :  { %8589 = vmatprep.subr.bf16.mxu1 %v9108_v11  ;;  %8631 = vmatprep.subr.bf16.mxu0 %v8786_v21 }
0x1af3   :  { %8632 = vmatpush3.bf16.msra.mxu0 %v8786_v21 }
0x1af6   :  { %v6382_v16 = vpop.xlane.xlu0 %6381 }
0x1af7   :  { %9044 = vrcp.f32 %v6382_v16  ;;  %v8787_v16 = vld [vmem:[%s11236_s2 + $0x338] sm:$0xff]  }
0x1af8   :  { %v6385_v58 = vpop.xlane.xlu1 %6384  ;;  %8633 = vmatprep.subr.bf16.mxu0 %v8787_v16 }
0x1af9   :  { %v9041_v38 = vpop.eup %9040  ;;  %9046 = vrcp.f32 %v6385_v58  ;;  %8634 = vmatpush3.bf16.msra.mxu0 %v8787_v16  ;;  %v8788_v16 = vld [vmem:[%s11236_s2 + $0x340] sm:$0xff]  }
0x1afa   :  { %v6256_v45 = vmul.f32 %v9041_v38, %v10982_v53 }
0x1afb   :  { %v9043_v3 = vpop.eup %9042 }
0x1afc   :  { %v6258_v28 = vmul.f32 %v9043_v3, %v10986_v20 }
0x1afe   :  { %v6497_v32 = vpop.xlane.xlu0 %6496  ;;  %v6259_v49 = vpack.c.bf16 %v6258_v28, %v6256_v45 }
0x1aff   :  { %9048 = vrcp.f32 %v6497_v32 }
0x1b00   :  { %8580 = vmatmul.mubr.msk.bf16.vlgmr.msra.gmra.mrb[160].mxu1 %vm1185_vm4, %v6259_v49  ;;  %v6500_v47 = vpop.xlane.xlu1 %6499 }
0x1b01   :  { %v9045_v61 = vpop.eup %9044  ;;  %8590 = vmatpush3.bf16.msra.mxu1 %v5205_v42  ;;  %9050 = vrcp.f32 %v6500_v47  ;;  %8591 = vmatprep.mubr.msk.bf16.mxu1 %vm9109_vm2, %v9108_v11 }
0x1b02   :  { %8601 = vmatprep.subr.bf16.mxu1 %v9108_v11  ;;  %v6387_v53 = vmul.f32 %v9045_v61, %v10992_v22 }
0x1b03   :  { %v9047_v19 = vpop.eup %9046 }
0x1b04   :  { %v6389_v20 = vmul.f32 %v9047_v19, %v10996_v13 }
0x1b06   :  { %v6612_v44 = vpop.xlane.xlu0 %6611  ;;  %v6390_v50 = vpack.c.bf16 %v6389_v20, %v6387_v53 }
0x1b07   :  { %9052 = vrcp.f32 %v6612_v44 }
0x1b08   :  { %8592 = vmatmul.mubr.msk.bf16.vlgmr.msra.gmra.mrb[164].mxu1 %vm1185_vm4, %v6390_v50  ;;  %v6615_v37 = vpop.xlane.xlu1 %6614 }
0x1b09   :  { %v9049_v15 = vpop.eup %9048  ;;  %8602 = vmatpush3.bf16.msra.mxu1 %v5418_v27  ;;  %9054 = vrcp.f32 %v6615_v37  ;;  %8603 = vmatprep.mubr.msk.bf16.mxu1 %vm9109_vm2, %v9108_v11 }
0x1b0a   :  { %8613 = vmatprep.subr.bf16.mxu1 %v9108_v11  ;;  %v6502_v29 = vmul.f32 %v9049_v15, %v11002_v59 }
0x1b0b   :  { %v9051_v62 = vpop.eup %9050 }
0x1b0c   :  { %v6504_v42 = vmul.f32 %v9051_v62, %v11006_v60 }
0x1b0e   :  { %v6727_v22 = vpop.xlane.xlu0 %6726  ;;  %v6505_v13 = vpack.c.bf16 %v6504_v42, %v6502_v29 }
0x1b0f   :  { %9056 = vrcp.f32 %v6727_v22 }
0x1b10   :  { %8604 = vmatmul.mubr.msk.bf16.vlgmr.msra.gmra.mrb[168].mxu1 %vm1185_vm4, %v6505_v13  ;;  %v6730_v46 = vpop.xlane.xlu1 %6729 }
0x1b11   :  { %v9053_v26 = vpop.eup %9052  ;;  %8614 = vmatpush3.bf16.msra.mxu1 %v5631_v9  ;;  %9058 = vrcp.f32 %v6730_v46  ;;  %8615 = vmatprep.mubr.msk.bf16.mxu1 %vm9109_vm2, %v9108_v11 }
0x1b12   :  { %8625 = vmatprep.subr.bf16.mxu1 %v9108_v11  ;;  %v6617_v5 = vmul.f32 %v9053_v26, %v11012_v63 }
0x1b13   :  { %v9055_v52 = vpop.eup %9054 }
0x1b14   :  { %v6619_v27 = vmul.f32 %v9055_v52, %v11016_v17 }
0x1b16   :  { %v6620_v59 = vpack.c.bf16 %v6619_v27, %v6617_v5 }
0x1b18   :  { %8616 = vmatmul.mubr.msk.bf16.vlgmr.msra.gmra.mrb[172].mxu1 %vm1185_vm4, %v6620_v59 }
0x1b19   :  { %v9057_v60 = vpop.eup %9056  ;;  %8626 = vmatpush3.bf16.msra.mxu1 %v5844_v25  ;;  %8627 = vmatprep.mubr.msk.bf16.mxu1 %vm9109_vm2, %v9108_v11 }
0x1b1a   :  { %v6732_v51 = vmul.f32 %v9057_v60, %v11020_v12  ;;  %v7620_v60 = vld [vmem:[%s11237_s3 + $0x138] ss:$0 sm:$0xff]  ;;  %8639 = vmatprep.subr.bf16.mxu1 %v8788_v16 }
0x1b1b   :  { %v9059_v0 = vpop.eup %9058 }
0x1b1c   :  { %v6734_v9 = vmul.f32 %v9059_v0, %v11024_v30 }
0x1b1e   :  { %v6735_v10 = vpack.c.bf16 %v6734_v9, %v6732_v51 }
0x1b20   :  { %8628 = vmatmul.mubr.msk.bf16.vlgmr.msra.gmra.mrb[176].mxu1 %vm1185_vm4, %v6735_v10 }
0x1b21   :  { %8640 = vmatpush3.bf16.msra.mxu1 %v8788_v16 }
0x1bab   :  { %v5952_v63 = vpop.f32.mrb[148].mxu1 }
0x1bac   :  { %v8545_v17 = vpop.f32.mrb[149].mxu1 }
0x1bad   :  { %v5955_v2 = vpop.f32.mrb[150].mxu1 }
0x1bae   :  { %v5959_v23 = vpack.c.bf16 %v5955_v2, %v5952_v63  ;;  %v8546_v35 = vpop.f32.mrb[151].mxu1 }
0x1bbb   :  { %v6067_v41 = vpop.f32.mrb[152].mxu1 }
0x1bbc   :  { %v8557_v4 = vpop.f32.mrb[153].mxu1 }
0x1bbd   :  { %v6070_v40 = vpop.f32.mrb[154].mxu1 }
0x1bbe   :  { %v6074_v7 = vpack.c.bf16 %v6070_v40, %v6067_v41  ;;  %v8558_v25 = vpop.f32.mrb[155].mxu1 }
0x1bc0   :  { %6306 = vrot.lane.b32.xlu0 %v6074_v7, %s9110_s21 }
0x1bc3   :  { %v6182_v11 = vpop.f32.mrb[156].mxu1 }
0x1bc4   :  { %v8569_v8 = vpop.f32.mrb[157].mxu1 }
0x1bc5   :  { %v6185_v12 = vpop.f32.mrb[158].mxu1 }
0x1bc6   :  { %v6189_v55 = vpack.c.bf16 %v6185_v12, %v6182_v11  ;;  %v8570_v30 = vpop.f32.mrb[159].mxu1 }
0x1bc8   :  { %6309 = vrot.lane.b32.xlu1 %v6189_v55, %s9111_s22 }
0x1bd3   :  { %v6297_v57 = vpop.f32.mrb[160].mxu1 }
0x1bd4   :  { %v8581_v33 = vpop.f32.mrb[161].mxu1 }
0x1bd5   :  { %v6300_v24 = vpop.f32.mrb[162].mxu1 }
0x1bd6   :  { %v6304_v1 = vpack.c.bf16 %v6300_v24, %v6297_v57  ;;  %v8582_v36 = vpop.f32.mrb[163].mxu1 }
0x1bd8   :  { %6312 = vrot.lane.b32.xlu1 %v6304_v1, %s9112_s23 }
0x1bdb   :  { %v6428_v31 = vpop.f32.mrb[164].mxu1 }
0x1bdc   :  { %v8593_v39 = vpop.f32.mrb[165].mxu1 }
0x1bdd   :  { %v6431_v54 = vpop.f32.mrb[166].mxu1 }
0x1bde   :  { %v6435_v18 = vpack.c.bf16 %v6431_v54, %v6428_v31  ;;  %v8594_v56 = vpop.f32.mrb[167].mxu1 }
0x1be3   :  { %v6543_v48 = vpop.f32.mrb[168].mxu1 }
0x1be4   :  { %v8605_v58 = vpop.f32.mrb[169].mxu1 }
0x1be5   :  { %v6546_v38 = vpop.f32.mrb[170].mxu1  ;;  %v8789_v58 = vld [vmem:[%s11236_s2 + $0x348] sm:$0xff]  }
0x1be6   :  { %v6550_v3 = vpack.c.bf16 %v6546_v38, %v6543_v48  ;;  %v8606_v45 = vpop.f32.mrb[171].mxu1  ;;  %8641 = vmatprep.subr.bf16.mxu1 %v8789_v58 }
0x1be7   :  { %8642 = vmatpush3.bf16.msra.mxu1 %v8789_v58 }
0x1be8   :  { %6782 = vrot.lane.b32.xlu1 %v6550_v3, %s9110_s21 }
0x1beb   :  { %v6658_v28 = vpop.f32.mrb[172].mxu1 }
0x1bec   :  { %v8617_v32 = vpop.f32.mrb[173].mxu1 }
0x1bed   :  { %v6661_v49 = vpop.f32.mrb[174].mxu1 }
0x1bee   :  { %v6665_v47 = vpack.c.bf16 %v6661_v49, %v6658_v28  ;;  %v8618_v61 = vpop.f32.mrb[175].mxu1 }
0x1bf0   :  { %6785 = vrot.lane.b32.xlu0 %v6665_v47, %s9111_s22 }
0x1bf3   :  { %v6773_v19 = vpop.f32.mrb[176].mxu1 }
0x1bf4   :  { %v8629_v53 = vpop.f32.mrb[177].mxu1 }
0x1bf5   :  { %v6776_v20 = vpop.f32.mrb[178].mxu1 }
0x1bf6   :  { %v6780_v44 = vpack.c.bf16 %v6776_v20, %v6773_v19  ;;  %v8630_v50 = vpop.f32.mrb[179].mxu1 }
0x1bf8   :  { %6788 = vrot.lane.b32.xlu1 %v6780_v44, %s9112_s23 }
0x1c32   :  { %v6307_v37 = vpop.permute.xlu0 %6306 }
0x1c33   :  { %v6316_v62 = vsel %vm1137_vm3, %v5959_v23, %v6307_v37  ;;  %v7621_v37 = vld [vmem:[%s11237_s3 + $0x140] ss:$0 sm:$0xff] }
0x1c3a   :  { %v6310_v15 = vpop.permute.xlu1 %6309 }
0x1c3b   :  { %v6318_v29 = vsel %vm1185_vm4, %v6316_v62, %v6310_v15 }
0x1c4a   :  { %v6313_v42 = vpop.permute.xlu1 %6312 }
0x1c4b   :  { %v6320_v22 = vsel %vm1613_vm5, %v6318_v29, %v6313_v42 }
0x1c4c   :  { %8635 = vmatprep.mubr.msk.bf16.mxu0 %vm140_vm1, %v6320_v22 }
0x1c5a   :  { %v6783_v13 = vpop.permute.xlu1 %6782 }
0x1c5b   :  { %v6792_v26 = vsel %vm1137_vm3, %v6435_v18, %v6783_v13  ;;  %v7622_v13 = vld [vmem:[%s11237_s3 + $0x148] ss:$0 sm:$0xff] }
0x1c62   :  { %v6786_v46 = vpop.permute.xlu0 %6785 }
0x1c63   :  { %v6794_v52 = vsel %vm1185_vm4, %v6792_v26, %v6786_v46 }
0x1c6a   :  { %v6789_v5 = vpop.permute.xlu1 %6788 }
0x1c6b   :  { %v6796_v27 = vsel %vm1613_vm5, %v6794_v52, %v6789_v5 }
0x1c6c   :  { %8636 = vmatmul.mubr.msk.bf16.vlgmr.msra.gmra.mrb[192].mxu0 %vm140_vm1, %v6796_v27 }
0x1d3f   :  { %v8637_v59 = vpop.f32.mrb[192].mxu0 }
0x1d40   :  { %v6851_v0 = vpop.f32.mrb[193].mxu0  ;;  %v6868_v51 = vadd.f32 %v8637_v59, %v10541_v43 }
0x1d41   :  { %v6866_v9 = vadd.f32 %v6851_v0, %v10536_v14  ;;  %v8638_v10 = vpop.f32.mrb[194].mxu0 }
0x1d42   :  { %v6854_v63 = vpop.f32.mrb[195].mxu0  ;;  %v11121_v23 = vadd.f32 %v7620_v60, %v6868_v51  ;;  %v6869_v35 = vadd.f32 %v8638_v10, %v10547_v34 }
0x1d43   :  { %v11118_v17 = vadd.f32 %v7620_v60, %v6866_v9  ;;  %v6867_v2 = vadd.f32 %v6854_v63, %v10543_v6 }
0x1d44   :  { %v11130_v14 = vadd.f32 %v7620_v60, %v6869_v35  ;;  %v6887_v40 = vsel %vm140_vm1, %v11121_v23, 0.0  ;;  %v8791_v35 = vld [vmem:[%s11236_s2 + $0x358] sm:$0xff]  }
0x1d45   :  { %v11124_v41 = vadd.f32 %v7620_v60, %v6867_v2  ;;  %v6881_v4 = vsel %vm140_vm1, %v11118_v17, 0.0  ;;  %v8790_v2 = vld [vmem:[%s11236_s2 + $0x350] sm:$0xff]  }
0x1d46   :  { %6882 = vadd.xlane.f32.xlu0 %v6881_v4  ;;  %v6890_v6 = vsel %vm140_vm1, %v11130_v14, 0.0  ;;  %8647 = vmatprep.subr.bf16.mxu0 %v8790_v2  ;;  %v8792_v4 = vld [vmem:[%s11236_s2 + $0x360] sm:$0xff]  }
0x1d47   :  { %v6884_v43 = vsel %vm140_vm1, %v11124_v41, 0.0  ;;  %8648 = vmatpush3.bf16.msra.mxu0 %v8790_v2 }
0x1d48   :  { %6885 = vadd.xlane.f32.xlu1 %v6884_v43  ;;  %8649 = vmatprep.subr.bf16.mxu0 %v8791_v35  ;;  %v8793_v43 = vld [vmem:[%s11236_s2 + $0x368] sm:$0xff]  }
0x1d4a   :  { %6888 = vadd.xlane.f32.xlu0 %v6887_v40  ;;  %v8794_v40 = vld [vmem:[%s11236_s2 + $0x370] sm:$0xff]  }
0x1d4b   :  { %8650 = vmatpush3.bf16.msra.mxu0 %v8791_v35 }
0x1d4c   :  { %8651 = vmatprep.subr.bf16.mxu0 %v8792_v4 }
0x1d4e   :  { %6891 = vadd.xlane.f32.xlu0 %v6890_v6  ;;  %v8795_v6 = vld [vmem:[%s11236_s2 + $0x378] sm:$0xff]  }
0x1d4f   :  { %8652 = vmatpush3.bf16.msra.mxu0 %v8792_v4 }
0x1d50   :  { %8653 = vmatprep.subr.bf16.mxu0 %v8793_v43 }
0x1d53   :  { %8654 = vmatpush3.bf16.msra.mxu0 %v8793_v43 }
0x1d54   :  { %8655 = vmatprep.subr.bf16.mxu0 %v8794_v40 }
0x1d57   :  { %8656 = vmatpush3.bf16.msra.mxu0 %v8794_v40 }
0x1d58   :  { %8657 = vmatprep.subr.bf16.mxu0 %v8795_v6 }
0x1d5b   :  { %8658 = vmatpush3.bf16.msra.mxu0 %v8795_v6 }
0x1dd3   :  { %v6883_v34 = vpop.xlane.xlu0 %6882 }
0x1dd4   :  { %v6893_v7 = vmul.f32 0.03125, %v6883_v34  ;;  %v8796_v34 = vld [vmem:[%s11236_s2 + $0x380] sm:$0xff]  }
0x1dd5   :  { %v6886_v25 = vpop.xlane.xlu1 %6885  ;;  %8659 = vmatprep.subr.bf16.mxu0 %v8796_v34 }
0x1dd6   :  { %v6897_v11 = vsub.f32 %v11118_v17, %v6893_v7  ;;  %v6894_v8 = vmul.f32 0.03125, %v6886_v25  ;;  %v8797_v7 = vld [vmem:[%s11236_s2 + $0x388] sm:$0xff]   ;;  %8660 = vmatpush3.bf16.msra.mxu0 %v8796_v34  ;;  %v7623_v25 = vld [vmem:[%s11237_s3 + $0x150] ss:$0 sm:$0xff] }
0x1dd7   :  { %v6889_v12 = vpop.xlane.xlu0 %6888  ;;  %8661 = vmatprep.subr.bf16.mxu0 %v8797_v7 }
0x1dd8   :  { %v6898_v55 = vsub.f32 %v11124_v41, %v6894_v8  ;;  %v6895_v30 = vmul.f32 0.03125, %v6889_v12  ;;  %v6901_v57 = vmul.f32 %v6897_v11, %v6897_v11 }
0x1dda   :  { %v6899_v33 = vsub.f32 %v11121_v23, %v6895_v30  ;;  %v6905_v24 = vsel %vm140_vm1, %v6901_v57, 0.0  ;;  %v6902_v1 = vmul.f32 %v6898_v55, %v6898_v55  ;;  %8662 = vmatpush3.bf16.msra.mxu0 %v8797_v7 }
0x1ddb   :  { %6906 = vadd.xlane.f32.xlu0 %v6905_v24  ;;  %v6892_v36 = vpop.xlane.xlu0 %6891 }
0x1ddc   :  { %v6896_v31 = vmul.f32 0.03125, %v6892_v36  ;;  %v6908_v39 = vsel %vm140_vm1, %v6902_v1, 0.0  ;;  %v6903_v54 = vmul.f32 %v6899_v33, %v6899_v33 }
0x1ddd   :  { %6909 = vadd.xlane.f32.xlu1 %v6908_v39 }
0x1dde   :  { %v6900_v18 = vsub.f32 %v11130_v14, %v6896_v31  ;;  %v6911_v56 = vsel %vm140_vm1, %v6903_v54, 0.0 }
0x1ddf   :  { %6912 = vadd.xlane.f32.xlu0 %v6911_v56 }
0x1de0   :  { %v6904_v48 = vmul.f32 %v6900_v18, %v6900_v18 }
0x1de2   :  { %v6914_v21 = vsel %vm140_vm1, %v6904_v48, 0.0 }
0x1de3   :  { %6915 = vadd.xlane.f32.xlu1 %v6914_v21 }
0x1e68   :  { %v6907_v38 = vpop.xlane.xlu0 %6906 }
0x1e69   :  { %v6917_v3 = vmul.f32 0.03125, %v6907_v38 }
0x1e6a   :  { %v6910_v45 = vpop.xlane.xlu1 %6909 }
0x1e6b   :  { %v6921_v28 = vadd.f32 1e-06, %v6917_v3  ;;  %v6918_v32 = vmul.f32 0.03125, %v6910_v45 }
0x1e6c   :  { %v6913_v49 = vpop.xlane.xlu0 %6912 }
0x1e6d   :  { %9060 = vrsqrt.f32 %v6921_v28  ;;  %v6922_v47 = vadd.f32 1e-06, %v6918_v32  ;;  %v6919_v61 = vmul.f32 0.03125, %v6913_v49 }
0x1e6f   :  { %9062 = vrsqrt.f32 %v6922_v47  ;;  %v6923_v19 = vadd.f32 1e-06, %v6919_v61 }
0x1e70   :  { %v6916_v53 = vpop.xlane.xlu1 %6915 }
0x1e71   :  { %9064 = vrsqrt.f32 %v6923_v19  ;;  %v6920_v20 = vmul.f32 0.03125, %v6916_v53 }
0x1e73   :  { %v6924_v44 = vadd.f32 1e-06, %v6920_v20 }
0x1e75   :  { %9066 = vrsqrt.f32 %v6924_v44 }
0x1e77   :  { %v9061_v50 = vpop.eup %9060 }
0x1e78   :  { %v6929_v15 = vmul.f32 %v9061_v50, %v6897_v11 }
0x1e79   :  { %v9063_v62 = vpop.eup %9062 }
0x1e7a   :  { %v6930_v29 = vmul.f32 %v9063_v62, %v6898_v55  ;;  %v6937_v42 = vmul.f32 %v7621_v37, %v6929_v15 }
0x1e7b   :  { %v9065_v22 = vpop.eup %9064 }
0x1e7c   :  { %v6931_v46 = vmul.f32 %v9065_v22, %v6899_v33  ;;  %v6938_v26 = vmul.f32 %v7621_v37, %v6930_v29  ;;  %v6945_v52 = vadd.f32 %v7622_v13, %v6937_v42 }
0x1e7e   :  { %v6946_v5 = vadd.f32 %v7622_v13, %v6938_v26  ;;  %v6939_v59 = vmul.f32 %v7621_v37, %v6931_v46 }
0x1e7f   :  { %v9067_v27 = vpop.eup %9066 }
0x1e80   :  { %v6932_v60 = vmul.f32 %v9067_v27, %v6900_v18  ;;  %v6949_v0 = vpack.c.bf16 %v6946_v5, %v6945_v52  ;;  %v6947_v9 = vadd.f32 %v7622_v13, %v6939_v59 }
0x1e82   :  { %v6940_v51 = vmul.f32 %v7621_v37, %v6932_v60  ;;  %8643 = vmatprep.mubr.msk.bf16.mxu1 %vm140_vm1, %v6949_v0 }
0x1e84   :  { %v6948_v10 = vadd.f32 %v7622_v13, %v6940_v51  ;;  %v7636_v51 = vld [vmem:[%s11237_s3 + $0x158] ss:$0 sm:$0xff] }
0x1e86   :  { %v6950_v63 = vpack.c.bf16 %v6948_v10, %v6947_v9 }
0x1e88   :  { %8644 = vmatmul.mubr.msk.bf16.vlgmr.msra.gmra.mrb[180].mxu1 %vm140_vm1, %v6950_v63 }
0x1f5b   :  { %v8645_v11 = vpop.f32.mrb[180].mxu1 }
0x1f5c   :  { %v7021_v8 = vadd.f32 %v8645_v11, %v7623_v25  ;;  %v7012_v12 = vpop.f32.mrb[181].mxu1 }
0x1f5d   :  { %v7013_v55 = vadd.f32 %v7623_v25, %v7012_v12  ;;  %v8646_v30 = vpop.f32.mrb[182].mxu1 }
0x1f5e   :  { %v7033_v57 = vmul.f32 0.044715, %v7021_v8  ;;  %v7024_v33 = vadd.f32 %v8646_v30, %v7623_v25  ;;  %v7015_v24 = vpop.f32.mrb[183].mxu1  ;;  %v7029_v62 = vmul.f32 0.5, %v7021_v8 }
0x1f5f   :  { %v7031_v1 = vmul.f32 0.044715, %v7013_v55  ;;  %v7016_v36 = vadd.f32 %v7623_v25, %v7015_v24  ;;  %v7027_v22 = vmul.f32 0.5, %v7013_v55 }
0x1f60   :  { %v7037_v31 = vmul.f32 %v7033_v57, %v7021_v8  ;;  %v7034_v39 = vmul.f32 0.044715, %v7024_v33  ;;  %v7030_v29 = vmul.f32 0.5, %v7024_v33 }
0x1f61   :  { %v7035_v54 = vmul.f32 %v7031_v1, %v7013_v55  ;;  %v7032_v18 = vmul.f32 0.044715, %v7016_v36  ;;  %v7028_v13 = vmul.f32 0.5, %v7016_v36 }
0x1f62   :  { %v7041_v56 = vmul.f32 %v7037_v31, %v7021_v8  ;;  %v7038_v48 = vmul.f32 %v7034_v39, %v7024_v33 }
0x1f63   :  { %v7039_v21 = vmul.f32 %v7035_v54, %v7013_v55  ;;  %v7036_v16 = vmul.f32 %v7032_v18, %v7016_v36 }
0x1f64   :  { %v7045_v58 = vadd.f32 %v7041_v56, %v7021_v8  ;;  %v7042_v38 = vmul.f32 %v7038_v48, %v7024_v33 }
0x1f65   :  { %v7040_v3 = vmul.f32 %v7036_v16, %v7016_v36  ;;  %v7043_v45 = vadd.f32 %v7039_v21, %v7013_v55 }
0x1f66   :  { %v7049_v28 = vmul.f32 0.7978846, %v7045_v58  ;;  %v7046_v32 = vadd.f32 %v7042_v38, %v7024_v33  ;;  %v8798_v38 = vld [vmem:[%s11236_s2 + $0x3a0] sm:$0xff]  }
0x1f67   :  { %v7044_v49 = vadd.f32 %v7040_v3, %v7016_v36  ;;  %v7047_v47 = vmul.f32 0.7978846, %v7043_v45  ;;  %8667 = vmatprep.subr.bf16.mxu1 %v8798_v38  ;;  %v8799_v3 = vld [vmem:[%s11236_s2 + $0x3a8] sm:$0xff]  }
0x1f68   :  { %9068 = vtanh.f32 %v7049_v28  ;;  %v7050_v61 = vmul.f32 0.7978846, %v7046_v32  ;;  %8668 = vmatpush3.bf16.msra.mxu1 %v8798_v38 }
0x1f69   :  { %v7048_v19 = vmul.f32 0.7978846, %v7044_v49  ;;  %9070 = vtanh.f32 %v7047_v47  ;;  %8669 = vmatprep.subr.bf16.mxu1 %v8799_v3 }
0x1f6a   :  { %9072 = vtanh.f32 %v7050_v61 }
0x1f6b   :  { %9074 = vtanh.f32 %v7048_v19 }
0x1f6c   :  { %8670 = vmatpush3.bf16.msra.mxu1 %v8799_v3 }
0x1f72   :  { %v9069_v53 = vpop.eup %9068 }
0x1f73   :  { %v9071_v20 = vpop.eup %9070  ;;  %v7057_v44 = vadd.f32 1.0, %v9069_v53 }
0x1f74   :  { %v9073_v50 = vpop.eup %9072  ;;  %v7055_v37 = vadd.f32 1.0, %v9071_v20 }
0x1f75   :  { %v9075_v15 = vpop.eup %9074  ;;  %v7058_v42 = vadd.f32 1.0, %v9073_v50  ;;  %v7061_v26 = vmul.f32 %v7057_v44, %v7029_v62  ;;  %v7637_v62 = vld [vmem:[%s11237_s3 + $0x58] ss:$0 sm:$0xff] }
0x1f76   :  { %v7056_v46 = vadd.f32 1.0, %v9075_v15  ;;  %v7059_v5 = vmul.f32 %v7055_v37, %v7027_v22 }
0x1f77   :  { %v7062_v52 = vmul.f32 %v7058_v42, %v7030_v29 }
0x1f78   :  { %v7060_v27 = vmul.f32 %v7056_v46, %v7028_v13 }
0x1f79   :  { %v7064_v59 = vpack.c.bf16 %v7062_v52, %v7061_v26  ;;  %v7638_v26 = vld [vmem:[%s11237_s3 + $0x60] ss:$0 sm:$0xff] }
0x1f7a   :  { %v7063_v60 = vpack.c.bf16 %v7060_v27, %v7059_v5 }
0x1f7c   :  { %8663 = vmatprep.mubr.bf16.mxu0 %v7063_v60 }
0x1f7d   :  { %8664 = vmatmul.mubr.bf16.vlgmr.msra.gmra.mrb[196].mxu0 %v7064_v59 }
0x2050   :  { %v8665_v0 = vpop.f32.mrb[196].mxu0 }
0x2051   :  { %v7163_v9 = vpop.f32.mrb[197].mxu0  ;;  %v7180_v10 = vadd.f32 %v8665_v0, %v11121_v23 }
0x2052   :  { %v7178_v63 = vadd.f32 %v7163_v9, %v11118_v17  ;;  %v8666_v2 = vpop.f32.mrb[198].mxu0 }
0x2053   :  { %v7166_v35 = vpop.f32.mrb[199].mxu0  ;;  %v7181_v43 = vadd.f32 %v8666_v2, %v11130_v14  ;;  %v7189_v6 = vadd.f32 %v7636_v51, %v7180_v10 }
0x2054   :  { %v7187_v4 = vadd.f32 %v7636_v51, %v7178_v63  ;;  %v7179_v40 = vadd.f32 %v7166_v35, %v11124_v41 }
0x2055   :  { %v7190_v25 = vadd.f32 %v7636_v51, %v7181_v43  ;;  %v7199_v23 = vsel %vm140_vm1, %v7189_v6, 0.0 }
0x2056   :  { %v7188_v34 = vadd.f32 %v7636_v51, %v7179_v40  ;;  %v7193_v7 = vsel %vm140_vm1, %v7187_v4, 0.0 }
0x2057   :  { %7194 = vadd.xlane.f32.xlu0 %v7193_v7  ;;  %v7202_v17 = vsel %vm140_vm1, %v7190_v25, 0.0 }
0x2058   :  { %v7196_v11 = vsel %vm140_vm1, %v7188_v34, 0.0 }
0x2059   :  { %7197 = vadd.xlane.f32.xlu1 %v7196_v11 }
0x205b   :  { %7200 = vadd.xlane.f32.xlu0 %v7199_v23 }
0x205d   :  { %7203 = vadd.xlane.f32.xlu1 %v7202_v17 }
0x20e4   :  { %v7195_v8 = vpop.xlane.xlu0 %7194 }
0x20e5   :  { %v7205_v12 = vmul.f32 0.03125, %v7195_v8 }
0x20e6   :  { %v7198_v14 = vpop.xlane.xlu1 %7197 }
0x20e7   :  { %v7209_v55 = vsub.f32 %v7187_v4, %v7205_v12  ;;  %v7206_v41 = vmul.f32 0.03125, %v7198_v14  ;;  %v7639_v4 = vld [vmem:[%s11237_s3 + $0x68] ss:$0 sm:$0xff]  ;;  %s9084_s3 = scalar_lea.vmem %s7349_s11, 512 }
0x20e8   :  { %v7201_v30 = vpop.xlane.xlu0 %7200  ;;  %p9085_p0 = scmp.ne.s32.totalorder %s7349_s11, %s9084_s3  ;;  %p9090_p2 = scmp.lt.s32.totalorder %s9084_s3, %s9084_s3 }
0x20e9   :  { %v7210_v57 = vsub.f32 %v7188_v34, %v7206_v41  ;;  %v7207_v33 = vmul.f32 0.03125, %v7201_v30  ;;  %v7213_v24 = vmul.f32 %v7209_v55, %v7209_v55 }
0x20ea   :  { %v7204_v1 = vpop.xlane.xlu1 %7203  ;;  %p9091_p3 = por %p9090_p2, %p9089_p1 }
0x20eb   :  { %v7211_v36 = vsub.f32 %v7189_v6, %v7207_v33  ;;  %v7208_v31 = vmul.f32 0.03125, %v7204_v1  ;;  %v7217_v39 = vsel %vm140_vm1, %v7213_v24, 0.0  ;;  %v7214_v54 = vmul.f32 %v7210_v57, %v7210_v57 }
0x20ec   :  { %7218 = vadd.xlane.f32.xlu0 %v7217_v39  ;;  %p9092_p4 = pnand %p9091_p3, %p9085_p0 }
0x20ed   :  { %v7212_v18 = vsub.f32 %v7190_v25, %v7208_v31  ;;  %v7220_v56 = vsel %vm140_vm1, %v7214_v54, 0.0  ;;  %v7215_v48 = vmul.f32 %v7211_v36, %v7211_v36 }
0x20ee   :  { %7221 = vadd.xlane.f32.xlu1 %v7220_v56 }
0x20ef   :  { %v7223_v21 = vsel %vm140_vm1, %v7215_v48, 0.0  ;;  %v7216_v16 = vmul.f32 %v7212_v18, %v7212_v18 }
0x20f0   :  { %7224 = vadd.xlane.f32.xlu0 %v7223_v21 }
0x20f1   :  { %v7226_v58 = vsel %vm140_vm1, %v7216_v16, 0.0 }
0x20f2   :  { %7227 = vadd.xlane.f32.xlu1 %v7226_v58 }
0x2179   :  { %v7219_v45 = vpop.xlane.xlu0 %7218 }
0x217a   :  { %v7229_v28 = vmul.f32 0.03125, %v7219_v45 }
0x217b   :  { %v7222_v32 = vpop.xlane.xlu1 %7221 }
0x217c   :  { %v7233_v49 = vadd.f32 1e-06, %v7229_v28  ;;  %v7230_v47 = vmul.f32 0.03125, %v7222_v32 }
0x217d   :  { %v7225_v61 = vpop.xlane.xlu0 %7224 }
0x217e   :  { %9076 = vrsqrt.f32 %v7233_v49  ;;  %v7234_v19 = vadd.f32 1e-06, %v7230_v47  ;;  %v7231_v53 = vmul.f32 0.03125, %v7225_v61 }
0x217f   :  { %v7228_v20 = vpop.xlane.xlu1 %7227 }
0x2180   :  { %9078 = vrsqrt.f32 %v7234_v19  ;;  %v7235_v44 = vadd.f32 1e-06, %v7231_v53  ;;  %v7232_v50 = vmul.f32 0.03125, %v7228_v20 }
0x2182   :  { %9080 = vrsqrt.f32 %v7235_v44  ;;  %v7236_v37 = vadd.f32 1e-06, %v7232_v50 }
0x2184   :  { %9082 = vrsqrt.f32 %v7236_v37 }
0x2188   :  { %v9077_v15 = vpop.eup %9076 }
0x2189   :  { %v7241_v29 = vmul.f32 %v9077_v15, %v7209_v55 }
0x218a   :  { %v9079_v42 = vpop.eup %9078 }
0x218b   :  { %v7242_v22 = vmul.f32 %v9079_v42, %v7210_v57  ;;  %v7249_v13 = vmul.f32 %v7637_v62, %v7241_v29 }
0x218c   :  { %v9081_v46 = vpop.eup %9080 }
0x218d   :  { %v7243_v52 = vmul.f32 %v9081_v46, %v7211_v36  ;;  %v7250_v5 = vmul.f32 %v7637_v62, %v7242_v22  ;;  %v7257_v0 = vadd.f32 %v7638_v26, %v7249_v13 }
0x218e   :  { %v9083_v27 = vpop.eup %9082 }
0x218f   :  { %v7251_v59 = vmul.f32 %v7637_v62, %v7243_v52  ;;  %v7244_v60 = vmul.f32 %v9083_v27, %v7212_v18  ;;  %v7258_v51 = vadd.f32 %v7638_v26, %v7250_v5 }
0x2191   :  { %v7252_v9 = vmul.f32 %v7637_v62, %v7244_v60  ;;  %v7261_v10 = vpack.c.bf16 %v7258_v51, %v7257_v0  ;;  %v7259_v63 = vadd.f32 %v7638_v26, %v7251_v59 }
0x2193   :  { %8671 = vmatprep.mubr.msk.bf16.mxu1 %vm140_vm1, %v7261_v10  ;;  %v7260_v2 = vadd.f32 %v7638_v26, %v7252_v9 }
0x2195   :  { %v7262_v35 = vpack.c.bf16 %v7260_v2, %v7259_v63 }
0x2197   :  { %8672 = vmatmul.mubr.msk.bf16.vlgmr.msra.gmra.mrb[184].mxu1 %vm140_vm1, %v7262_v35 }
0x226a   :  { %v8673_v43 = vpop.f32.mrb[184].mxu1 }
0x226b   :  { %v7333_v40 = vadd.f32 %v8673_v43, %v7639_v4  ;;  %v7324_v6 = vpop.f32.mrb[185].mxu1 }
0x226c   :  { %v7325_v34 = vadd.f32 %v7639_v4, %v7324_v6  ;;  %v8674_v7 = vpop.f32.mrb[186].mxu1 }
0x226d   :  { %7341 = vst.msk [vmem:[#allocation2 + $0x10] sm:$0xff] %vm61_vm0, %v7333_v40  ;;  %v7336_v25 = vadd.f32 %v8674_v7, %v7639_v4  ;;  %v7327_v11 = vpop.f32.mrb[187].mxu1 }
0x226e   :  { %7339 = vst.msk [vmem:[#allocation2] sm:$0xff] %vm61_vm0, %v7325_v34  ;;  %v7328_v23 = vadd.f32 %v7639_v4, %v7327_v11 }
0x226f   :  { %7342 = vst.msk [vmem:[#allocation2 + $0x18] sm:$0xff] %vm61_vm0, %v7336_v25 }
0x2270   :  { %7340 = vst.msk [vmem:[#allocation2 + $0x8] sm:$0xff] %vm61_vm0, %v7328_v23 }
0x2271   :  { %9095 = shalt.err (!%p9092_p4)
}
0x2272   :  { %s9096_s14 = scalar_lea.hbm %s11238_s4, 512 }
0x2273   :  { %p9097_p5 = scmp.ne.s32.totalorder %s11238_s4, %s9096_s14  ;;  %p9100_p6 = scmp.lt.u32.totalorder %s9096_s14, %s11238_s4 }
0x2275   :  { %p9102_p7 = pnand %p9100_p6, %p9097_p5 }
0x2277   :  { %9105 = shalt.err (!%p9102_p7)
}
0x2278   :  { %s9114_s19 = smov 128  }
0x2279   :  { %7354 = dma.vmem_to_hbm [thread:$0]  %s7349_s11, 512, %s11238_s4, [#allocation3], %s9114_s19, %s9114_s19, %s9110_s21  }
0x227a   :  { %9106 = dma.done.wait [#allocation3], 512  }
0x227b   :  { %9107 = vsyncadd [#allocation3], 4294966784 }
0x227c   :  { %7358 = vsyncpa [#allocation3], 1 }

</bundles_post_ra>
